<compile_context>
chip_gen: v7x
topology: tpu7x:2x2x1
jax: 0.10.0
libtpu: 0.0.40
codegen_flags: <defaults>
</compile_context>

<pallas_src>
import jax
import jax.numpy as jnp
from jax import lax
from jax.experimental import pallas as pl
from jax.experimental.pallas import tpu as pltpu


def _round_up(n, m):
    return ((n + m - 1) // m) * m


def _vmem_limit(resident_bytes):
    # generous floor so the double-buffered pipeline never trips the default
    # scoped limit; cap at 64 MiB (v7x physical VMEM).
    return int(min(max(2 * resident_bytes, 32 * 1024 * 1024), 64 * 1024 * 1024))


# ----------------------------------------------------------------------------
# Kernel bodies
# ----------------------------------------------------------------------------

def _make_conv3x3_kernel(cout, has_residual):
    """3x3 stride-1 conv over one whole (padded) image; optional fused residual.

    xp_ref : (1, Hp, Wp, C)   padded NHWC input (Hp = Ho+2, Wp = Wo+2)
    res_ref: (1, Ho*Wo, cout) optional residual (added before store)
    w_ref  : (3, 3, C, Np)    HWIO weights, Cout lane-padded to Np, bf16
    b_ref  : (1, Np)          f32 bias (lane-padded)
    o_ref  : (1, Ho*Wo, cout) output, written unpadded
    """

    def kernel(*refs):
        if has_residual:
            xp_ref, res_ref, w_ref, b_ref, o_ref = refs
        else:
            xp_ref, w_ref, b_ref, o_ref = refs
        xp = xp_ref[0]                                  # (Hp, Wp, C)
        Hp, Wp, C = xp.shape
        Ho, Wo = Hp - 2, Wp - 2
        acc = None
        for kh in range(3):
            for kw in range(3):
                tap = xp[kh:kh + Ho, kw:kw + Wo, :].reshape(Ho * Wo, C)
                part = jnp.dot(tap.astype(jnp.bfloat16), w_ref[kh, kw],
                               preferred_element_type=jnp.float32)
                acc = part if acc is None else acc + part
        acc = acc + b_ref[...]                          # (Ho*Wo, Np) f32
        y = acc[:, :cout]                               # drop lane padding
        if has_residual:
            y = y + res_ref[0].astype(jnp.float32)
        o_ref[0] = y.astype(o_ref.dtype)

    return kernel


def _make_gn_silu_kernel(eps, has_add):
    """Fused (x [+ per-channel add]) -> GroupNorm -> affine -> SiLU, one sample.

    x_ref  : (1, HW, C)
    add_ref: (1, 1, C)  (optional, f32)
    g_ref/b_ref: (1, C) f32 affine
    red_ref: (C, G) group membership scaled by 1/(HW*Cg)  (reduce -> group mean)
    bc_ref : (G, C) group membership                      (broadcast back)
    """

    def kernel(*refs):
        if has_add:
            x_ref, add_ref, g_ref, b_ref, red_ref, bc_ref, o_ref = refs
        else:
            x_ref, g_ref, b_ref, red_ref, bc_ref, o_ref = refs
        x = x_ref[0].astype(jnp.float32)                # (HW, C)
        if has_add:
            x = x + add_ref[0].astype(jnp.float32)      # f32 add (not quantized)
        s1 = jnp.sum(x, axis=0, keepdims=True)          # (1, C)
        gmean = jnp.dot(s1, red_ref[...], preferred_element_type=jnp.float32,
                        precision=lax.Precision.HIGHEST)        # (1, G)
        mean = jnp.dot(gmean, bc_ref[...], preferred_element_type=jnp.float32,
                       precision=lax.Precision.HIGHEST)         # (1, C)
        d = x - mean                                    # two-pass variance
        s2 = jnp.sum(d * d, axis=0, keepdims=True)
        gvar = jnp.dot(s2, red_ref[...], preferred_element_type=jnp.float32,
                       precision=lax.Precision.HIGHEST)
        var = jnp.dot(gvar, bc_ref[...], preferred_element_type=jnp.float32,
                      precision=lax.Precision.HIGHEST)          # (1, C)
        y = d * lax.rsqrt(var + eps) * g_ref[...] + b_ref[...]
        y = y * jax.nn.sigmoid(y)                       # SiLU
        o_ref[0] = y.astype(o_ref.dtype)

    return kernel


def _silu_linear_kernel(e_ref, w_ref, b_ref, o_ref):
    """emb_layers: SiLU(e) @ W + b.  W in bf16, f32 accumulate."""
    e = e_ref[...].astype(jnp.float32)
    e = e * jax.nn.sigmoid(e)
    acc = jnp.dot(e.astype(jnp.bfloat16), w_ref[...],
                  preferred_element_type=jnp.float32)
    o_ref[...] = (acc + b_ref[...]).astype(o_ref.dtype)


def _make_conv1x1_kernel(cout):
    """1x1 conv as a row-tiled matmul: (TM, C) @ (C, Np) + b, store unpadded."""

    def kernel(x_ref, w_ref, b_ref, o_ref):
        acc = jnp.dot(x_ref[...].astype(jnp.bfloat16), w_ref[...],
                      preferred_element_type=jnp.float32)
        acc = acc + b_ref[...]
        o_ref[...] = acc[:, :cout].astype(o_ref.dtype)

    return kernel


# ----------------------------------------------------------------------------
# Pallas wrappers (NHWC internally)
# ----------------------------------------------------------------------------

def conv3x3_nhwc(x, w_hwio_pad, bias_pad, cout, residual=None):
    """Conv2d(k=3, s=1, p=1) on NHWC input, pre-formatted bf16 HWIO weights.

    Optionally fuses `residual` (same shape as the output) into the epilogue.
    """
    B, H, W, C = x.shape
    Np = w_hwio_pad.shape[-1]
    xp = jnp.pad(x, ((0, 0), (1, 1), (1, 1), (0, 0)))
    Hp, Wp = H + 2, W + 2
    Ho, Wo = H, W

    has_res = residual is not None
    in_specs = [pl.BlockSpec((1, Hp, Wp, C), lambda b: (b, 0, 0, 0))]
    args = [xp]
    res_bytes = 0
    if has_res:
        res_flat = residual.reshape(B, Ho * Wo, cout)
        in_specs.append(pl.BlockSpec((1, Ho * Wo, cout), lambda b: (b, 0, 0)))
        args.append(res_flat)
        res_bytes = Ho * Wo * cout * jnp.dtype(residual.dtype).itemsize
    in_specs += [
        pl.BlockSpec((3, 3, C, Np), lambda b: (0, 0, 0, 0)),
        pl.BlockSpec((1, Np), lambda b: (0, 0)),
    ]
    args += [w_hwio_pad, bias_pad]

    itemx = jnp.dtype(x.dtype).itemsize
    xp_bytes = Hp * Wp * C * itemx
    w_bytes = 9 * C * Np * 2 + Np * 4
    out_bytes = Ho * Wo * cout * itemx
    scratch = Ho * Wo * Np * 4 + Ho * Wo * C * (itemx + 2)   # acc + tap slabs
    resident = 2 * (xp_bytes + res_bytes + w_bytes + out_bytes) + scratch

    out = pl.pallas_call(
        _make_conv3x3_kernel(cout, has_res),
        out_shape=jax.ShapeDtypeStruct((B, Ho * Wo, cout), x.dtype),
        grid=(B,),
        in_specs=in_specs,
        out_specs=pl.BlockSpec((1, Ho * Wo, cout), lambda b: (b, 0, 0)),
        compiler_params=pltpu.CompilerParams(
            dimension_semantics=("parallel",),
            vmem_limit_bytes=_vmem_limit(resident)),
        cost_estimate=pl.CostEstimate(
            flops=2 * B * Ho * Wo * 9 * C * cout,
            transcendentals=0,
            bytes_accessed=B * (xp_bytes + res_bytes + out_bytes) + w_bytes),
    )(*args)
    return out.reshape(B, Ho, Wo, cout)


def gn_silu_nhwc(x, gamma, beta, groups, add=None, eps=1e-5):
    """Fused GroupNorm(groups)(x [+ add]) -> affine -> SiLU on NHWC input."""
    B, H, W, C = x.shape
    assert C % groups == 0
    HW, cg = H * W, C // groups
    xf = x.reshape(B, HW, C)
    gid = jnp.arange(C) // cg
    red = ((gid[:, None] == jnp.arange(groups)[None, :]).astype(jnp.float32)
           / float(HW * cg))                                   # (C, G), mean scale baked in
    bcast = (jnp.arange(groups)[:, None] == gid[None, :]).astype(jnp.float32)  # (G, C)
    g = gamma.reshape(1, C).astype(jnp.float32)
    b = beta.reshape(1, C).astype(jnp.float32)

    has_add = add is not None
    in_specs = [pl.BlockSpec((1, HW, C), lambda i: (i, 0, 0))]
    args = [xf]
    if has_add:
        add3 = add.reshape(B, 1, C).astype(jnp.float32)
        in_specs.append(pl.BlockSpec((1, 1, C), lambda i: (i, 0, 0)))
        args.append(add3)
    in_specs += [
        pl.BlockSpec((1, C), lambda i: (0, 0)),
        pl.BlockSpec((1, C), lambda i: (0, 0)),
        pl.BlockSpec((C, groups), lambda i: (0, 0)),
        pl.BlockSpec((groups, C), lambda i: (0, 0)),
    ]
    args += [g, b, red, bcast]

    itemx = jnp.dtype(x.dtype).itemsize
    resident = 2 * (2 * HW * C * itemx) + HW * C * 8 + 2 * C * groups * 4

    out = pl.pallas_call(
        _make_gn_silu_kernel(eps, has_add),
        out_shape=jax.ShapeDtypeStruct((B, HW, C), x.dtype),
        grid=(B,),
        in_specs=in_specs,
        out_specs=pl.BlockSpec((1, HW, C), lambda i: (i, 0, 0)),
        compiler_params=pltpu.CompilerParams(
            dimension_semantics=("parallel",),
            vmem_limit_bytes=_vmem_limit(resident)),
    )(*args)
    return out.reshape(B, H, W, C)


def emb_linear_silu(emb, w_bf16, bias_f32):
    """emb_layers: Linear(SiLU(emb)); weight (E, Cout) bf16, bias (1, Cout) f32."""
    B, E = emb.shape
    Cout = w_bf16.shape[1]
    return pl.pallas_call(
        _silu_linear_kernel,
        out_shape=jax.ShapeDtypeStruct((B, Cout), jnp.float32),
        grid=(1,),
        in_specs=[
            pl.BlockSpec((B, E), lambda i: (0, 0)),
            pl.BlockSpec((E, Cout), lambda i: (0, 0)),
            pl.BlockSpec((1, Cout), lambda i: (0, 0)),
        ],
        out_specs=pl.BlockSpec((B, Cout), lambda i: (0, 0)),
        compiler_params=pltpu.CompilerParams(
            dimension_semantics=("arbitrary",),
            vmem_limit_bytes=_vmem_limit(4 * (B * E + E * Cout + B * Cout) * 4)),
    )(emb, w_bf16, bias_f32)


def conv1x1_nhwc(x, w_pad_bf16, bias_pad_f32, cout):
    """Conv2d(k=1) on NHWC input as a row-tiled matmul over B*H*W rows."""
    B, H, W, C = x.shape
    Np = w_pad_bf16.shape[-1]
    M = B * H * W
    xf = x.reshape(M, C)
    TM = M
    for cand in (512, 256, 128, 64, 32, 16, 8):
        if M % cand == 0:
            TM = cand
            break
    itemx = jnp.dtype(x.dtype).itemsize
    resident = 2 * (TM * C * itemx + C * Np * 2 + TM * cout * itemx) + TM * Np * 4

    out = pl.pallas_call(
        _make_conv1x1_kernel(cout),
        out_shape=jax.ShapeDtypeStruct((M, cout), x.dtype),
        grid=(M // TM,),
        in_specs=[
            pl.BlockSpec((TM, C), lambda i: (i, 0)),
            pl.BlockSpec((C, Np), lambda i: (0, 0)),
            pl.BlockSpec((1, Np), lambda i: (0, 0)),
        ],
        out_specs=pl.BlockSpec((TM, cout), lambda i: (i, 0)),
        compiler_params=pltpu.CompilerParams(
            dimension_semantics=("parallel",),
            vmem_limit_bytes=_vmem_limit(resident)),
    )(xf, w_pad_bf16, bias_pad_f32)
    return out.reshape(B, H, W, cout)


# ----------------------------------------------------------------------------
# Weight pre-formatting (done ONCE, not per forward call)
# ----------------------------------------------------------------------------

def _prep_conv3x3_weights(w_oihw, b):
    co, ci = w_oihw.shape[0], w_oihw.shape[1]
    np_ = _round_up(co, 128)
    w = jnp.transpose(w_oihw, (2, 3, 1, 0))                         # HWIO
    w = jnp.pad(w, ((0, 0), (0, 0), (0, 0), (0, np_ - co))).astype(jnp.bfloat16)
    bb = jnp.pad(b, (0, np_ - co)).reshape(1, np_).astype(jnp.float32)
    return w, bb


def _prep_conv1x1_weights(w_oihw, b):
    co, ci = w_oihw.shape[0], w_oihw.shape[1]
    np_ = _round_up(co, 128)
    w = jnp.pad(w_oihw.reshape(co, ci).T, ((0, 0), (0, np_ - co))).astype(jnp.bfloat16)
    bb = jnp.pad(b, (0, np_ - co)).reshape(1, np_).astype(jnp.float32)
    return w, bb


# ----------------------------------------------------------------------------
# ResBlock module (JAX / Pallas port of the PyTorch ResBlock, inference path)
# ----------------------------------------------------------------------------

class ResBlock:
    def __init__(self, channels, emb_channels, dropout=0.0, out_channels=None,
                 use_conv=False, use_scale_shift_norm=False, dims=2,
                 use_checkpoint=False, up=False, down=False, key=None):
        assert dims == 2, "only dims=2 implemented"
        if use_scale_shift_norm:
            # TODO(synk): use_scale_shift_norm=True (GN(h)*(1+scale)+shift) not implemented.
            raise NotImplementedError("use_scale_shift_norm=True not supported")
        self.channels = channels
        self.emb_channels = emb_channels
        self.dropout = dropout   # TODO(synk): training-mode dropout not implemented (inference = identity).
        self.out_channels = out_channels or channels
        self.use_conv = use_conv
        self.up, self.down = up, down
        self.updown = up or down
        self.groups = 32          # normalization() == GroupNorm32(32, C)
        assert channels % self.groups == 0 and self.out_channels % self.groups == 0

        key = jax.random.PRNGKey(0) if key is None else key
        ks = jax.random.split(key, 3)
        C, Co, E = channels, self.out_channels, emb_channels

        def conv_init(kk, co, ci, ksz):
            fan_in = ci * ksz * ksz
            bound = 1.0 / (fan_in ** 0.5)
            kw_, kb_ = jax.random.split(kk)
            w = jax.random.uniform(kw_, (co, ci, ksz, ksz), minval=-bound,
                                   maxval=bound, dtype=jnp.float32)
            b = jax.random.uniform(kb_, (co,), minval=-bound, maxval=bound,
                                   dtype=jnp.float32)
            return w, b

        # in_layers: GroupNorm32 -> SiLU -> conv3x3
        self.gamma1 = jnp.ones((C,), jnp.float32)
        self.beta1 = jnp.zeros((C,), jnp.float32)
        self.w1, self.b1 = conv_init(ks[0], Co, C, 3)
        # emb_layers: SiLU -> Linear(E, Co); weight stored as (E, Co)
        bound = 1.0 / (E ** 0.5)
        kw_, kb_ = jax.random.split(ks[1])
        self.we = jax.random.uniform(kw_, (E, Co), minval=-bound, maxval=bound,
                                     dtype=jnp.float32)
        self.be = jax.random.uniform(kb_, (Co,), minval=-bound, maxval=bound,
                                     dtype=jnp.float32)
        # out_layers: GroupNorm32 -> SiLU -> Dropout -> zero_module(conv3x3)
        self.gamma2 = jnp.ones((Co,), jnp.float32)
        self.beta2 = jnp.zeros((Co,), jnp.float32)
        self.w2 = jnp.zeros((Co, Co, 3, 3), jnp.float32)
        self.b2 = jnp.zeros((Co,), jnp.float32)
        # skip connection
        if Co == C:
            self.skip_w, self.skip_b = None, None
        elif use_conv:
            self.skip_w, self.skip_b = conv_init(ks[2], Co, C, 3)
        else:
            self.skip_w, self.skip_b = conv_init(ks[2], Co, C, 1)
        self._prepare()

    def _prepare(self):
        """Build kernel-format weights (HWIO, lane-padded, bf16) once."""
        self.w1_k, self.b1_k = _prep_conv3x3_weights(self.w1, self.b1)
        self.w2_k, self.b2_k = _prep_conv3x3_weights(self.w2, self.b2)
        self.we_k = self.we.astype(jnp.bfloat16)
        self.be_k = self.be.reshape(1, -1).astype(jnp.float32)
        if self.skip_w is None:
            self.skip_w_k, self.skip_b_k = None, None
        elif self.use_conv:
            self.skip_w_k, self.skip_b_k = _prep_conv3x3_weights(self.skip_w, self.skip_b)
        else:
            self.skip_w_k, self.skip_b_k = _prep_conv1x1_weights(self.skip_w, self.skip_b)

    # up/down resampling (Upsample/Downsample with use_conv=False) — plain jnp;
    # purely HBM-bound, XLA reshape/mean/repeat is at roofline.
    def _resample(self, x_nhwc):
        B, H, W, Cc = x_nhwc.shape
        if self.up:
            return jnp.repeat(jnp.repeat(x_nhwc, 2, axis=1), 2, axis=2)
        Hc, Wc = (H // 2) * 2, (W // 2) * 2
        xc = x_nhwc[:, :Hc, :Wc, :]
        return xc.reshape(B, Hc // 2, 2, Wc // 2, 2, Cc).mean(axis=(2, 4))

    def __call__(self, x_nchw, emb):
        assert x_nchw.shape[1] == self.channels
        Co = self.out_channels
        # single NCHW -> NHWC transpose; everything below is NHWC
        x = jnp.transpose(x_nchw, (0, 2, 3, 1))

        h = gn_silu_nhwc(x, self.gamma1, self.beta1, self.groups)
        if self.updown:
            h = self._resample(h)
            x = self._resample(x)
        h = conv3x3_nhwc(h, self.w1_k, self.b1_k, Co)

        emb_out = emb_linear_silu(emb, self.we_k, self.be_k)            # (B, Co) f32
        h = gn_silu_nhwc(h, self.gamma2, self.beta2, self.groups, add=emb_out)
        # Dropout (p=self.dropout) is identity at inference.

        if self.skip_w is None:
            skip = x
        elif self.use_conv:
            skip = conv3x3_nhwc(x, self.skip_w_k, self.skip_b_k, Co)
        else:
            skip = conv1x1_nhwc(x, self.skip_w_k, self.skip_b_k, Co)

        # second conv with the residual add fused into its epilogue
        out = conv3x3_nhwc(h, self.w2_k, self.b2_k, Co, residual=skip)
        return jnp.transpose(out, (0, 3, 1, 2))                         # back to NCHW


# ----------------------------------------------------------------------------
# Pure-JAX reference (mirrors the PyTorch forward; matmuls in bf16 like kernels)
# ----------------------------------------------------------------------------

def _gn_ref(x, gamma, beta, groups, eps=1e-5):
    B, C, H, W = x.shape
    xg = x.reshape(B, groups, C // groups, H, W)
    mean = xg.mean(axis=(2, 3, 4), keepdims=True)
    var = ((xg - mean) ** 2).mean(axis=(2, 3, 4), keepdims=True)
    xg = (xg - mean) * lax.rsqrt(var + eps)
    return (xg.reshape(B, C, H, W) * gamma[None, :, None, None]
            + beta[None, :, None, None])


def _conv_ref(x, w, b, padding):
    y = lax.conv_general_dilated(
        x.astype(jnp.bfloat16), w.astype(jnp.bfloat16), window_strides=(1, 1),
        padding=((padding, padding), (padding, padding)),
        dimension_numbers=("NCHW", "OIHW", "NCHW"),
        preferred_element_type=jnp.float32)
    return y + b[None, :, None, None]


def resblock_ref(blk, x, emb):
    silu = lambda v: v * jax.nn.sigmoid(v)
    h = silu(_gn_ref(x, blk.gamma1, blk.beta1, blk.groups))
    h = _conv_ref(h, blk.w1, blk.b1, 1)
    e = jnp.dot(silu(emb).astype(jnp.bfloat16), blk.we.astype(jnp.bfloat16),
                preferred_element_type=jnp.float32) + blk.be
    h = h + e[:, :, None, None]
    h = silu(_gn_ref(h, blk.gamma2, blk.beta2, blk.groups))
    h = _conv_ref(h, blk.w2, blk.b2, 1)
    if blk.skip_w is None:
        skip = x
    elif blk.use_conv:
        skip = _conv_ref(x, blk.skip_w, blk.skip_b, 1)
    else:
        skip = _conv_ref(x, blk.skip_w, blk.skip_b, 0)
    return skip + h


# ----------------------------------------------------------------------------
# Main
# ----------------------------------------------------------------------------

if __name__ == "__main__":
    root = jax.random.PRNGKey(0)
    ks = jax.random.split(root, 10)

    # GroupNorm32 requires channels % 32 == 0 -> small but faithful shapes.
    B, C, H, W, E = 2, 32, 16, 16, 64
    x = jax.random.normal(ks[0], (B, C, H, W), dtype=jnp.float32)
    emb = jax.random.normal(ks[1], (B, E), dtype=jnp.float32)

    ok = True

    # --- Config A: out_channels == channels -> identity skip ----------------
    blk = ResBlock(C, E, dropout=0.0, out_channels=C, key=ks[2])
    # zero_module() would make the residual branch vanish; randomize the final
    # conv (and the first GN affine) so the check exercises every kernel.
    blk.w2 = 0.05 * jax.random.normal(ks[3], blk.w2.shape, jnp.float32)
    blk.b2 = 0.05 * jax.random.normal(ks[4], blk.b2.shape, jnp.float32)
    blk.gamma1 = 1.0 + 0.1 * jax.random.normal(ks[5], (C,), jnp.float32)
    blk.beta1 = 0.1 * jax.random.normal(ks[6], (C,), jnp.float32)
    blk._prepare()

    y = jax.block_until_ready(jax.jit(lambda a, b: blk(a, b))(x, emb))
    y_ref = resblock_ref(blk, x, emb)
    ok &= (y.shape == (B, C, H, W))
    ok &= bool(jnp.allclose(y, y_ref, atol=1e-2, rtol=1e-2))

    # --- Config B: out_channels != channels -> 1x1-conv skip ----------------
    blk2 = ResBlock(C, E, dropout=0.0, out_channels=2 * C, key=ks[7])
    blk2.w2 = 0.05 * jax.random.normal(ks[8], blk2.w2.shape, jnp.float32)
    blk2.b2 = 0.05 * jax.random.normal(ks[9], blk2.b2.shape, jnp.float32)
    blk2._prepare()

    y2 = jax.block_until_ready(jax.jit(lambda a, b: blk2(a, b))(x, emb))
    y2_ref = resblock_ref(blk2, x, emb)
    ok &= (y2.shape == (B, 2 * C, H, W))
    ok &= bool(jnp.allclose(y2, y2_ref, atol=1e-2, rtol=1e-2))

    if ok:
        print("KERNEL_OK")
    else:
        print("MISMATCH: maxA=%.3e maxB=%.3e" %
              (float(jnp.max(jnp.abs(y - y_ref))),
               float(jnp.max(jnp.abs(y2 - y2_ref)))))
</pallas_src>

<mosaic_0001>
module attributes {stable_mosaic.version = 11 : i64} {
  func.func @kernel(%arg0: i32, %arg1: memref<1x256x32xf32, #tpu.memory_space<vmem>>, %arg2: memref<1x32xf32, #tpu.memory_space<vmem>>, %arg3: memref<1x32xf32, #tpu.memory_space<vmem>>, %arg4: memref<32x32xf32, #tpu.memory_space<vmem>>, %arg5: memref<32x32xf32, #tpu.memory_space<vmem>>, %arg6: memref<1x256x32xf32, #tpu.memory_space<vmem>>) attributes {dimension_semantics = [#tpu.dimension_semantics<parallel>], iteration_bounds = array<i64: 2>, scalar_prefetch = 0 : i64, scratch_operands = 0 : i64, tpu.core_type = #tpu.core_type<tc>, window_params = [{transform_indices = @transform_0, window_bounds = array<i64: 1, 256, 32>}, {pipeline_mode = #tpu.pipeline_mode<synchronous>, transform_indices = @transform_1, window_bounds = array<i64: 1, 32>}, {pipeline_mode = #tpu.pipeline_mode<synchronous>, transform_indices = @transform_2, window_bounds = array<i64: 1, 32>}, {pipeline_mode = #tpu.pipeline_mode<synchronous>, transform_indices = @transform_3, window_bounds = array<i64: 32, 32>}, {pipeline_mode = #tpu.pipeline_mode<synchronous>, transform_indices = @transform_4, window_bounds = array<i64: 32, 32>}, {transform_indices = @transform_5, window_bounds = array<i64: 1, 256, 32>}]} {
    %c0 = arith.constant 0 : index
    %c0_0 = arith.constant 0 : index
    %c0_1 = arith.constant 0 : index
    %0 = vector.load %arg1[%c0, %c0_0, %c0_1] : memref<1x256x32xf32, #tpu.memory_space<vmem>>, vector<1x256x32xf32>
    %1 = vector.shape_cast %0 : vector<1x256x32xf32> to vector<256x32xf32>
    %cst = arith.constant dense<0.000000e+00> : vector<32xf32>
    %2 = vector.multi_reduction <add>, %1, %cst [0] : vector<256x32xf32> to vector<32xf32>
    %3 = vector.shape_cast %2 : vector<32xf32> to vector<1x32xf32>
    %c0_2 = arith.constant 0 : index
    %c0_3 = arith.constant 0 : index
    %4 = vector.load %arg4[%c0_2, %c0_3] : memref<32x32xf32, #tpu.memory_space<vmem>>, vector<32x32xf32>
    %cst_4 = arith.constant dense<0.000000e+00> : vector<1x32xf32>
    %5 = tpu.matmul %3, %4, %cst_4 {dimension_numbers = #tpu.dot_dimension_numbers<[1], [0], [0], [1], [0, 0, 1, 1], [], []>, precision = #tpu.contract_precision<fp32>} : vector<1x32xf32>, vector<32x32xf32>, vector<1x32xf32> -> vector<1x32xf32>
    %c0_5 = arith.constant 0 : index
    %c0_6 = arith.constant 0 : index
    %6 = vector.load %arg5[%c0_5, %c0_6] : memref<32x32xf32, #tpu.memory_space<vmem>>, vector<32x32xf32>
    %cst_7 = arith.constant dense<0.000000e+00> : vector<1x32xf32>
    %7 = tpu.matmul %5, %6, %cst_7 {dimension_numbers = #tpu.dot_dimension_numbers<[1], [0], [0], [1], [0, 0, 1, 1], [], []>, precision = #tpu.contract_precision<fp32>} : vector<1x32xf32>, vector<32x32xf32>, vector<1x32xf32> -> vector<1x32xf32>
    %8 = vector.broadcast %7 : vector<1x32xf32> to vector<256x32xf32>
    %9 = arith.subf %1, %8 : vector<256x32xf32>
    %10 = arith.mulf %9, %9 : vector<256x32xf32>
    %cst_8 = arith.constant dense<0.000000e+00> : vector<32xf32>
    %11 = vector.multi_reduction <add>, %10, %cst_8 [0] : vector<256x32xf32> to vector<32xf32>
    %12 = vector.shape_cast %11 : vector<32xf32> to vector<1x32xf32>
    %c0_9 = arith.constant 0 : index
    %c0_10 = arith.constant 0 : index
    %13 = vector.load %arg4[%c0_9, %c0_10] : memref<32x32xf32, #tpu.memory_space<vmem>>, vector<32x32xf32>
    %cst_11 = arith.constant dense<0.000000e+00> : vector<1x32xf32>
    %14 = tpu.matmul %12, %13, %cst_11 {dimension_numbers = #tpu.dot_dimension_numbers<[1], [0], [0], [1], [0, 0, 1, 1], [], []>, precision = #tpu.contract_precision<fp32>} : vector<1x32xf32>, vector<32x32xf32>, vector<1x32xf32> -> vector<1x32xf32>
    %c0_12 = arith.constant 0 : index
    %c0_13 = arith.constant 0 : index
    %15 = vector.load %arg5[%c0_12, %c0_13] : memref<32x32xf32, #tpu.memory_space<vmem>>, vector<32x32xf32>
    %cst_14 = arith.constant dense<0.000000e+00> : vector<1x32xf32>
    %16 = tpu.matmul %14, %15, %cst_14 {dimension_numbers = #tpu.dot_dimension_numbers<[1], [0], [0], [1], [0, 0, 1, 1], [], []>, precision = #tpu.contract_precision<fp32>} : vector<1x32xf32>, vector<32x32xf32>, vector<1x32xf32> -> vector<1x32xf32>
    %cst_15 = arith.constant 9.99999974E-6 : f32
    %17 = vector.broadcast %cst_15 : f32 to vector<1x32xf32>
    %18 = arith.addf %16, %17 : vector<1x32xf32>
    %19 = math.rsqrt %18 : vector<1x32xf32>
    %20 = vector.broadcast %19 : vector<1x32xf32> to vector<256x32xf32>
    %21 = arith.mulf %9, %20 : vector<256x32xf32>
    %c0_16 = arith.constant 0 : index
    %c0_17 = arith.constant 0 : index
    %22 = vector.load %arg2[%c0_16, %c0_17] : memref<1x32xf32, #tpu.memory_space<vmem>>, vector<1x32xf32>
    %23 = vector.broadcast %22 : vector<1x32xf32> to vector<256x32xf32>
    %24 = arith.mulf %21, %23 : vector<256x32xf32>
    %c0_18 = arith.constant 0 : index
    %c0_19 = arith.constant 0 : index
    %25 = vector.load %arg3[%c0_18, %c0_19] : memref<1x32xf32, #tpu.memory_space<vmem>>, vector<1x32xf32>
    %26 = vector.broadcast %25 : vector<1x32xf32> to vector<256x32xf32>
    %27 = arith.addf %24, %26 : vector<256x32xf32>
    %28 = arith.negf %27 : vector<256x32xf32>
    %29 = math.exp %28 : vector<256x32xf32>
    %cst_20 = arith.constant 1.000000e+00 : f32
    %30 = vector.broadcast %cst_20 : f32 to vector<256x32xf32>
    %31 = arith.addf %30, %29 : vector<256x32xf32>
    %32 = arith.divf %30, %31 : vector<256x32xf32>
    %33 = arith.mulf %27, %32 : vector<256x32xf32>
    %c0_21 = arith.constant 0 : index
    %c0_22 = arith.constant 0 : index
    %c0_23 = arith.constant 0 : index
    %34 = vector.load %arg6[%c0_21, %c0_22, %c0_23] : memref<1x256x32xf32, #tpu.memory_space<vmem>>, vector<1x256x32xf32>
    %35 = vector.shape_cast %34 : vector<1x256x32xf32> to vector<256x32xf32>
    %36 = vector.shape_cast %33 : vector<256x32xf32> to vector<1x256x32xf32>
    tpu.vector_store %arg6[%c0_21, %c0_22, %c0_23], %36 {strides = array<i32>} : memref<1x256x32xf32, #tpu.memory_space<vmem>>, vector<1x256x32xf32>,
    return
  }
  func.func @transform_0(%arg0: i32) -> (i32, i32, i32) {
    %c0_i32 = arith.constant 0 : i32
    %c0_i32_0 = arith.constant 0 : i32
    %c0_i32_1 = arith.constant 0 : i32
    return %arg0, %c0_i32, %c0_i32_0 : i32, i32, i32
  }
  func.func @transform_1(%arg0: i32) -> (i32, i32) {
    %c0_i32 = arith.constant 0 : i32
    %c0_i32_0 = arith.constant 0 : i32
    %c0_i32_1 = arith.constant 0 : i32
    return %c0_i32, %c0_i32_0 : i32, i32
  }
  func.func @transform_2(%arg0: i32) -> (i32, i32) {
    %c0_i32 = arith.constant 0 : i32
    %c0_i32_0 = arith.constant 0 : i32
    %c0_i32_1 = arith.constant 0 : i32
    return %c0_i32, %c0_i32_0 : i32, i32
  }
  func.func @transform_3(%arg0: i32) -> (i32, i32) {
    %c0_i32 = arith.constant 0 : i32
    %c0_i32_0 = arith.constant 0 : i32
    %c0_i32_1 = arith.constant 0 : i32
    return %c0_i32, %c0_i32_0 : i32, i32
  }
  func.func @transform_4(%arg0: i32) -> (i32, i32) {
    %c0_i32 = arith.constant 0 : i32
    %c0_i32_0 = arith.constant 0 : i32
    %c0_i32_1 = arith.constant 0 : i32
    return %c0_i32, %c0_i32_0 : i32, i32
  }
  func.func @transform_5(%arg0: i32) -> (i32, i32, i32) {
    %c0_i32 = arith.constant 0 : i32
    %c0_i32_0 = arith.constant 0 : i32
    %c0_i32_1 = arith.constant 0 : i32
    return %arg0, %c0_i32, %c0_i32_0 : i32, i32, i32
  }
}

module attributes {stable_mosaic.version = 11 : i64} {
  func.func @_silu_linear_kernel(%arg0: i32, %arg1: memref<2x64xf32, #tpu.memory_space<vmem>>, %arg2: memref<64x32xbf16, #tpu.memory_space<vmem>>, %arg3: memref<1x32xf32, #tpu.memory_space<vmem>>, %arg4: memref<2x32xf32, #tpu.memory_space<vmem>>) attributes {dimension_semantics = [#tpu.dimension_semantics<arbitrary>], iteration_bounds = array<i64: 1>, scalar_prefetch = 0 : i64, scratch_operands = 0 : i64, tpu.core_type = #tpu.core_type<tc>, window_params = [{pipeline_mode = #tpu.pipeline_mode<synchronous>, transform_indices = @transform_0, window_bounds = array<i64: 2, 64>}, {pipeline_mode = #tpu.pipeline_mode<synchronous>, transform_indices = @transform_1, window_bounds = array<i64: 64, 32>}, {pipeline_mode = #tpu.pipeline_mode<synchronous>, transform_indices = @transform_2, window_bounds = array<i64: 1, 32>}, {pipeline_mode = #tpu.pipeline_mode<synchronous>, transform_indices = @transform_3, window_bounds = array<i64: 2, 32>}]} {
    %c0 = arith.constant 0 : index
    %c0_0 = arith.constant 0 : index
    %0 = vector.load %arg1[%c0, %c0_0] : memref<2x64xf32, #tpu.memory_space<vmem>>, vector<2x64xf32>
    %1 = arith.negf %0 : vector<2x64xf32>
    %2 = math.exp %1 : vector<2x64xf32>
    %cst = arith.constant 1.000000e+00 : f32
    %3 = vector.broadcast %cst : f32 to vector<2x64xf32>
    %4 = arith.addf %3, %2 : vector<2x64xf32>
    %5 = arith.divf %3, %4 : vector<2x64xf32>
    %6 = arith.mulf %0, %5 : vector<2x64xf32>
    %7 = arith.truncf %6 : vector<2x64xf32> to vector<2x64xbf16>
    %c0_1 = arith.constant 0 : index
    %c0_2 = arith.constant 0 : index
    %8 = vector.load %arg2[%c0_1, %c0_2] : memref<64x32xbf16, #tpu.memory_space<vmem>>, vector<64x32xbf16>
    %cst_3 = arith.constant dense<0.000000e+00> : vector<2x32xf32>
    %9 = tpu.matmul %7, %8, %cst_3 {dimension_numbers = #tpu.dot_dimension_numbers<[1], [0], [0], [1], [0, 0, 1, 1], [], []>} : vector<2x64xbf16>, vector<64x32xbf16>, vector<2x32xf32> -> vector<2x32xf32>
    %c0_4 = arith.constant 0 : index
    %c0_5 = arith.constant 0 : index
    %10 = vector.load %arg3[%c0_4, %c0_5] : memref<1x32xf32, #tpu.memory_space<vmem>>, vector<1x32xf32>
    %11 = vector.broadcast %10 : vector<1x32xf32> to vector<2x32xf32>
    %12 = arith.addf %9, %11 : vector<2x32xf32>
    %c0_6 = arith.constant 0 : index
    %c0_7 = arith.constant 0 : index
    %13 = vector.load %arg4[%c0_6, %c0_7] : memref<2x32xf32, #tpu.memory_space<vmem>>, vector<2x32xf32>
    tpu.vector_store %arg4[%c0_6, %c0_7], %12 {strides = array<i32>} : memref<2x32xf32, #tpu.memory_space<vmem>>, vector<2x32xf32>,
    return
  }
  func.func @transform_0(%arg0: i32) -> (i32, i32) {
    %c0_i32 = arith.constant 0 : i32
    %c0_i32_0 = arith.constant 0 : i32
    %c0_i32_1 = arith.constant 0 : i32
    return %c0_i32, %c0_i32_0 : i32, i32
  }
  func.func @transform_1(%arg0: i32) -> (i32, i32) {
    %c0_i32 = arith.constant 0 : i32
    %c0_i32_0 = arith.constant 0 : i32
    %c0_i32_1 = arith.constant 0 : i32
    return %c0_i32, %c0_i32_0 : i32, i32
  }
  func.func @transform_2(%arg0: i32) -> (i32, i32) {
    %c0_i32 = arith.constant 0 : i32
    %c0_i32_0 = arith.constant 0 : i32
    %c0_i32_1 = arith.constant 0 : i32
    return %c0_i32, %c0_i32_0 : i32, i32
  }
  func.func @transform_3(%arg0: i32) -> (i32, i32) {
    %c0_i32 = arith.constant 0 : i32
    %c0_i32_0 = arith.constant 0 : i32
    %c0_i32_1 = arith.constant 0 : i32
    return %c0_i32, %c0_i32_0 : i32, i32
  }
}

module attributes {stable_mosaic.version = 11 : i64} {
  func.func @kernel(%arg0: i32, %arg1: memref<1x18x18x32xf32, #tpu.memory_space<vmem>>, %arg2: memref<3x3x32x128xbf16, #tpu.memory_space<vmem>>, %arg3: memref<1x128xf32, #tpu.memory_space<vmem>>, %arg4: memref<1x256x32xf32, #tpu.memory_space<vmem>>) attributes {dimension_semantics = [#tpu.dimension_semantics<parallel>], iteration_bounds = array<i64: 2>, scalar_prefetch = 0 : i64, scratch_operands = 0 : i64, tpu.core_type = #tpu.core_type<tc>, window_params = [{transform_indices = @transform_0, window_bounds = array<i64: 1, 18, 18, 32>}, {pipeline_mode = #tpu.pipeline_mode<synchronous>, transform_indices = @transform_1, window_bounds = array<i64: 3, 3, 32, 128>}, {pipeline_mode = #tpu.pipeline_mode<synchronous>, transform_indices = @transform_2, window_bounds = array<i64: 1, 128>}, {transform_indices = @transform_3, window_bounds = array<i64: 1, 256, 32>}]} {
    %c0 = arith.constant 0 : index
    %c0_0 = arith.constant 0 : index
    %c0_1 = arith.constant 0 : index
    %c0_2 = arith.constant 0 : index
    %0 = vector.load %arg1[%c0, %c0_0, %c0_1, %c0_2] : memref<1x18x18x32xf32, #tpu.memory_space<vmem>>, vector<1x18x18x32xf32>
    %1 = vector.shape_cast %0 : vector<1x18x18x32xf32> to vector<18x18x32xf32>
    %2 = vector.extract_strided_slice %1 {offsets = [0, 0, 0], sizes = [16, 16, 32], strides = [1, 1, 1]} : vector<18x18x32xf32> to vector<16x16x32xf32>
    %3 = vector.shape_cast %2 : vector<16x16x32xf32> to vector<256x32xf32>
    %4 = arith.truncf %3 : vector<256x32xf32> to vector<256x32xbf16>
    %c0_3 = arith.constant 0 : index
    %c0_4 = arith.constant 0 : index
    %c0_5 = arith.constant 0 : index
    %c0_6 = arith.constant 0 : index
    %5 = vector.load %arg2[%c0_3, %c0_4, %c0_5, %c0_6] : memref<3x3x32x128xbf16, #tpu.memory_space<vmem>>, vector<1x1x32x128xbf16>
    %6 = vector.shape_cast %5 : vector<1x1x32x128xbf16> to vector<32x128xbf16>
    %cst = arith.constant dense<0.000000e+00> : vector<256x128xf32>
    %7 = tpu.matmul %4, %6, %cst {dimension_numbers = #tpu.dot_dimension_numbers<[1], [0], [0], [1], [0, 0, 1, 1], [], []>} : vector<256x32xbf16>, vector<32x128xbf16>, vector<256x128xf32> -> vector<256x128xf32>
    %8 = vector.extract_strided_slice %1 {offsets = [0, 1, 0], sizes = [16, 16, 32], strides = [1, 1, 1]} : vector<18x18x32xf32> to vector<16x16x32xf32>
    %9 = vector.shape_cast %8 : vector<16x16x32xf32> to vector<256x32xf32>
    %10 = arith.truncf %9 : vector<256x32xf32> to vector<256x32xbf16>
    %c0_7 = arith.constant 0 : index
    %c1 = arith.constant 1 : index
    %c0_8 = arith.constant 0 : index
    %c0_9 = arith.constant 0 : index
    %11 = vector.load %arg2[%c0_7, %c1, %c0_8, %c0_9] : memref<3x3x32x128xbf16, #tpu.memory_space<vmem>>, vector<1x1x32x128xbf16>
    %12 = vector.shape_cast %11 : vector<1x1x32x128xbf16> to vector<32x128xbf16>
    %cst_10 = arith.constant dense<0.000000e+00> : vector<256x128xf32>
    %13 = tpu.matmul %10, %12, %cst_10 {dimension_numbers = #tpu.dot_dimension_numbers<[1], [0], [0], [1], [0, 0, 1, 1], [], []>} : vector<256x32xbf16>, vector<32x128xbf16>, vector<256x128xf32> -> vector<256x128xf32>
    %14 = arith.addf %7, %13 : vector<256x128xf32>
    %15 = vector.extract_strided_slice %1 {offsets = [0, 2, 0], sizes = [16, 16, 32], strides = [1, 1, 1]} : vector<18x18x32xf32> to vector<16x16x32xf32>
    %16 = vector.shape_cast %15 : vector<16x16x32xf32> to vector<256x32xf32>
    %17 = arith.truncf %16 : vector<256x32xf32> to vector<256x32xbf16>
    %c0_11 = arith.constant 0 : index
    %c2 = arith.constant 2 : index
    %c0_12 = arith.constant 0 : index
    %c0_13 = arith.constant 0 : index
    %18 = vector.load %arg2[%c0_11, %c2, %c0_12, %c0_13] : memref<3x3x32x128xbf16, #tpu.memory_space<vmem>>, vector<1x1x32x128xbf16>
    %19 = vector.shape_cast %18 : vector<1x1x32x128xbf16> to vector<32x128xbf16>
    %cst_14 = arith.constant dense<0.000000e+00> : vector<256x128xf32>
    %20 = tpu.matmul %17, %19, %cst_14 {dimension_numbers = #tpu.dot_dimension_numbers<[1], [0], [0], [1], [0, 0, 1, 1], [], []>} : vector<256x32xbf16>, vector<32x128xbf16>, vector<256x128xf32> -> vector<256x128xf32>
    %21 = arith.addf %14, %20 : vector<256x128xf32>
    %22 = vector.extract_strided_slice %1 {offsets = [1, 0, 0], sizes = [16, 16, 32], strides = [1, 1, 1]} : vector<18x18x32xf32> to vector<16x16x32xf32>
    %23 = vector.shape_cast %22 : vector<16x16x32xf32> to vector<256x32xf32>
    %24 = arith.truncf %23 : vector<256x32xf32> to vector<256x32xbf16>
    %c1_15 = arith.constant 1 : index
    %c0_16 = arith.constant 0 : index
    %c0_17 = arith.constant 0 : index
    %c0_18 = arith.constant 0 : index
    %25 = vector.load %arg2[%c1_15, %c0_16, %c0_17, %c0_18] : memref<3x3x32x128xbf16, #tpu.memory_space<vmem>>, vector<1x1x32x128xbf16>
    %26 = vector.shape_cast %25 : vector<1x1x32x128xbf16> to vector<32x128xbf16>
    %cst_19 = arith.constant dense<0.000000e+00> : vector<256x128xf32>
    %27 = tpu.matmul %24, %26, %cst_19 {dimension_numbers = #tpu.dot_dimension_numbers<[1], [0], [0], [1], [0, 0, 1, 1], [], []>} : vector<256x32xbf16>, vector<32x128xbf16>, vector<256x128xf32> -> vector<256x128xf32>
    %28 = arith.addf %21, %27 : vector<256x128xf32>
    %29 = vector.extract_strided_slice %1 {offsets = [1, 1, 0], sizes = [16, 16, 32], strides = [1, 1, 1]} : vector<18x18x32xf32> to vector<16x16x32xf32>
    %30 = vector.shape_cast %29 : vector<16x16x32xf32> to vector<256x32xf32>
    %31 = arith.truncf %30 : vector<256x32xf32> to vector<256x32xbf16>
    %c1_20 = arith.constant 1 : index
    %c1_21 = arith.constant 1 : index
    %c0_22 = arith.constant 0 : index
    %c0_23 = arith.constant 0 : index
    %32 = vector.load %arg2[%c1_20, %c1_21, %c0_22, %c0_23] : memref<3x3x32x128xbf16, #tpu.memory_space<vmem>>, vector<1x1x32x128xbf16>
    %33 = vector.shape_cast %32 : vector<1x1x32x128xbf16> to vector<32x128xbf16>
    %cst_24 = arith.constant dense<0.000000e+00> : vector<256x128xf32>
    %34 = tpu.matmul %31, %33, %cst_24 {dimension_numbers = #tpu.dot_dimension_numbers<[1], [0], [0], [1], [0, 0, 1, 1], [], []>} : vector<256x32xbf16>, vector<32x128xbf16>, vector<256x128xf32> -> vector<256x128xf32>
    %35 = arith.addf %28, %34 : vector<256x128xf32>
    %36 = vector.extract_strided_slice %1 {offsets = [1, 2, 0], sizes = [16, 16, 32], strides = [1, 1, 1]} : vector<18x18x32xf32> to vector<16x16x32xf32>
    %37 = vector.shape_cast %36 : vector<16x16x32xf32> to vector<256x32xf32>
    %38 = arith.truncf %37 : vector<256x32xf32> to vector<256x32xbf16>
    %c1_25 = arith.constant 1 : index
    %c2_26 = arith.constant 2 : index
    %c0_27 = arith.constant 0 : index
    %c0_28 = arith.constant 0 : index
    %39 = vector.load %arg2[%c1_25, %c2_26, %c0_27, %c0_28] : memref<3x3x32x128xbf16, #tpu.memory_space<vmem>>, vector<1x1x32x128xbf16>
    %40 = vector.shape_cast %39 : vector<1x1x32x128xbf16> to vector<32x128xbf16>
    %cst_29 = arith.constant dense<0.000000e+00> : vector<256x128xf32>
    %41 = tpu.matmul %38, %40, %cst_29 {dimension_numbers = #tpu.dot_dimension_numbers<[1], [0], [0], [1], [0, 0, 1, 1], [], []>} : vector<256x32xbf16>, vector<32x128xbf16>, vector<256x128xf32> -> vector<256x128xf32>
    %42 = arith.addf %35, %41 : vector<256x128xf32>
    %43 = vector.extract_strided_slice %1 {offsets = [2, 0, 0], sizes = [16, 16, 32], strides = [1, 1, 1]} : vector<18x18x32xf32> to vector<16x16x32xf32>
    %44 = vector.shape_cast %43 : vector<16x16x32xf32> to vector<256x32xf32>
    %45 = arith.truncf %44 : vector<256x32xf32> to vector<256x32xbf16>
    %c2_30 = arith.constant 2 : index
    %c0_31 = arith.constant 0 : index
    %c0_32 = arith.constant 0 : index
    %c0_33 = arith.constant 0 : index
    %46 = vector.load %arg2[%c2_30, %c0_31, %c0_32, %c0_33] : memref<3x3x32x128xbf16, #tpu.memory_space<vmem>>, vector<1x1x32x128xbf16>
    %47 = vector.shape_cast %46 : vector<1x1x32x128xbf16> to vector<32x128xbf16>
    %cst_34 = arith.constant dense<0.000000e+00> : vector<256x128xf32>
    %48 = tpu.matmul %45, %47, %cst_34 {dimension_numbers = #tpu.dot_dimension_numbers<[1], [0], [0], [1], [0, 0, 1, 1], [], []>} : vector<256x32xbf16>, vector<32x128xbf16>, vector<256x128xf32> -> vector<256x128xf32>
    %49 = arith.addf %42, %48 : vector<256x128xf32>
    %50 = vector.extract_strided_slice %1 {offsets = [2, 1, 0], sizes = [16, 16, 32], strides = [1, 1, 1]} : vector<18x18x32xf32> to vector<16x16x32xf32>
    %51 = vector.shape_cast %50 : vector<16x16x32xf32> to vector<256x32xf32>
    %52 = arith.truncf %51 : vector<256x32xf32> to vector<256x32xbf16>
    %c2_35 = arith.constant 2 : index
    %c1_36 = arith.constant 1 : index
    %c0_37 = arith.constant 0 : index
    %c0_38 = arith.constant 0 : index
    %53 = vector.load %arg2[%c2_35, %c1_36, %c0_37, %c0_38] : memref<3x3x32x128xbf16, #tpu.memory_space<vmem>>, vector<1x1x32x128xbf16>
    %54 = vector.shape_cast %53 : vector<1x1x32x128xbf16> to vector<32x128xbf16>
    %cst_39 = arith.constant dense<0.000000e+00> : vector<256x128xf32>
    %55 = tpu.matmul %52, %54, %cst_39 {dimension_numbers = #tpu.dot_dimension_numbers<[1], [0], [0], [1], [0, 0, 1, 1], [], []>} : vector<256x32xbf16>, vector<32x128xbf16>, vector<256x128xf32> -> vector<256x128xf32>
    %56 = arith.addf %49, %55 : vector<256x128xf32>
    %57 = vector.extract_strided_slice %1 {offsets = [2, 2, 0], sizes = [16, 16, 32], strides = [1, 1, 1]} : vector<18x18x32xf32> to vector<16x16x32xf32>
    %58 = vector.shape_cast %57 : vector<16x16x32xf32> to vector<256x32xf32>
    %59 = arith.truncf %58 : vector<256x32xf32> to vector<256x32xbf16>
    %c2_40 = arith.constant 2 : index
    %c2_41 = arith.constant 2 : index
    %c0_42 = arith.constant 0 : index
    %c0_43 = arith.constant 0 : index
    %60 = vector.load %arg2[%c2_40, %c2_41, %c0_42, %c0_43] : memref<3x3x32x128xbf16, #tpu.memory_space<vmem>>, vector<1x1x32x128xbf16>
    %61 = vector.shape_cast %60 : vector<1x1x32x128xbf16> to vector<32x128xbf16>
    %cst_44 = arith.constant dense<0.000000e+00> : vector<256x128xf32>
    %62 = tpu.matmul %59, %61, %cst_44 {dimension_numbers = #tpu.dot_dimension_numbers<[1], [0], [0], [1], [0, 0, 1, 1], [], []>} : vector<256x32xbf16>, vector<32x128xbf16>, vector<256x128xf32> -> vector<256x128xf32>
    %63 = arith.addf %56, %62 : vector<256x128xf32>
    %c0_45 = arith.constant 0 : index
    %c0_46 = arith.constant 0 : index
    %64 = vector.load %arg3[%c0_45, %c0_46] : memref<1x128xf32, #tpu.memory_space<vmem>>, vector<1x128xf32>
    %65 = vector.broadcast %64 : vector<1x128xf32> to vector<256x128xf32>
    %66 = arith.addf %63, %65 : vector<256x128xf32>
    %67 = vector.extract_strided_slice %66 {offsets = [0, 0], sizes = [256, 32], strides = [1, 1]} : vector<256x128xf32> to vector<256x32xf32>
    %c0_47 = arith.constant 0 : index
    %c0_48 = arith.constant 0 : index
    %c0_49 = arith.constant 0 : index
    %68 = vector.load %arg4[%c0_47, %c0_48, %c0_49] : memref<1x256x32xf32, #tpu.memory_space<vmem>>, vector<1x256x32xf32>
    %69 = vector.shape_cast %68 : vector<1x256x32xf32> to vector<256x32xf32>
    %70 = vector.shape_cast %67 : vector<256x32xf32> to vector<1x256x32xf32>
    tpu.vector_store %arg4[%c0_47, %c0_48, %c0_49], %70 {strides = array<i32>} : memref<1x256x32xf32, #tpu.memory_space<vmem>>, vector<1x256x32xf32>,
    return
  }
  func.func @transform_0(%arg0: i32) -> (i32, i32, i32, i32) {
    %c0_i32 = arith.constant 0 : i32
    %c0_i32_0 = arith.constant 0 : i32
    %c0_i32_1 = arith.constant 0 : i32
    %c0_i32_2 = arith.constant 0 : i32
    return %arg0, %c0_i32, %c0_i32_0, %c0_i32_1 : i32, i32, i32, i32
  }
  func.func @transform_1(%arg0: i32) -> (i32, i32, i32, i32) {
    %c0_i32 = arith.constant 0 : i32
    %c0_i32_0 = arith.constant 0 : i32
    %c0_i32_1 = arith.constant 0 : i32
    %c0_i32_2 = arith.constant 0 : i32
    %c0_i32_3 = arith.constant 0 : i32
    return %c0_i32, %c0_i32_0, %c0_i32_1, %c0_i32_2 : i32, i32, i32, i32
  }
  func.func @transform_2(%arg0: i32) -> (i32, i32) {
    %c0_i32 = arith.constant 0 : i32
    %c0_i32_0 = arith.constant 0 : i32
    %c0_i32_1 = arith.constant 0 : i32
    return %c0_i32, %c0_i32_0 : i32, i32
  }
  func.func @transform_3(%arg0: i32) -> (i32, i32, i32) {
    %c0_i32 = arith.constant 0 : i32
    %c0_i32_0 = arith.constant 0 : i32
    %c0_i32_1 = arith.constant 0 : i32
    return %arg0, %c0_i32, %c0_i32_0 : i32, i32, i32
  }
}

module attributes {stable_mosaic.version = 11 : i64} {
  func.func @kernel(%arg0: i32, %arg1: memref<1x256x32xf32, #tpu.memory_space<vmem>>, %arg2: memref<1x1x32xf32, #tpu.memory_space<vmem>>, %arg3: memref<1x32xf32, #tpu.memory_space<vmem>>, %arg4: memref<1x32xf32, #tpu.memory_space<vmem>>, %arg5: memref<32x32xf32, #tpu.memory_space<vmem>>, %arg6: memref<32x32xf32, #tpu.memory_space<vmem>>, %arg7: memref<1x256x32xf32, #tpu.memory_space<vmem>>) attributes {dimension_semantics = [#tpu.dimension_semantics<parallel>], iteration_bounds = array<i64: 2>, scalar_prefetch = 0 : i64, scratch_operands = 0 : i64, tpu.core_type = #tpu.core_type<tc>, window_params = [{transform_indices = @transform_0, window_bounds = array<i64: 1, 256, 32>}, {transform_indices = @transform_1, window_bounds = array<i64: 1, 1, 32>}, {pipeline_mode = #tpu.pipeline_mode<synchronous>, transform_indices = @transform_2, window_bounds = array<i64: 1, 32>}, {pipeline_mode = #tpu.pipeline_mode<synchronous>, transform_indices = @transform_3, window_bounds = array<i64: 1, 32>}, {pipeline_mode = #tpu.pipeline_mode<synchronous>, transform_indices = @transform_4, window_bounds = array<i64: 32, 32>}, {pipeline_mode = #tpu.pipeline_mode<synchronous>, transform_indices = @transform_5, window_bounds = array<i64: 32, 32>}, {transform_indices = @transform_6, window_bounds = array<i64: 1, 256, 32>}]} {
    %c0 = arith.constant 0 : index
    %c0_0 = arith.constant 0 : index
    %c0_1 = arith.constant 0 : index
    %0 = vector.load %arg1[%c0, %c0_0, %c0_1] : memref<1x256x32xf32, #tpu.memory_space<vmem>>, vector<1x256x32xf32>
    %1 = vector.shape_cast %0 : vector<1x256x32xf32> to vector<256x32xf32>
    %c0_2 = arith.constant 0 : index
    %c0_3 = arith.constant 0 : index
    %c0_4 = arith.constant 0 : index
    %2 = vector.load %arg2[%c0_2, %c0_3, %c0_4] : memref<1x1x32xf32, #tpu.memory_space<vmem>>, vector<1x1x32xf32>
    %3 = vector.shape_cast %2 : vector<1x1x32xf32> to vector<1x32xf32>
    %4 = vector.broadcast %3 : vector<1x32xf32> to vector<256x32xf32>
    %5 = arith.addf %1, %4 : vector<256x32xf32>
    %cst = arith.constant dense<0.000000e+00> : vector<32xf32>
    %6 = vector.multi_reduction <add>, %5, %cst [0] : vector<256x32xf32> to vector<32xf32>
    %7 = vector.shape_cast %6 : vector<32xf32> to vector<1x32xf32>
    %c0_5 = arith.constant 0 : index
    %c0_6 = arith.constant 0 : index
    %8 = vector.load %arg5[%c0_5, %c0_6] : memref<32x32xf32, #tpu.memory_space<vmem>>, vector<32x32xf32>
    %cst_7 = arith.constant dense<0.000000e+00> : vector<1x32xf32>
    %9 = tpu.matmul %7, %8, %cst_7 {dimension_numbers = #tpu.dot_dimension_numbers<[1], [0], [0], [1], [0, 0, 1, 1], [], []>, precision = #tpu.contract_precision<fp32>} : vector<1x32xf32>, vector<32x32xf32>, vector<1x32xf32> -> vector<1x32xf32>
    %c0_8 = arith.constant 0 : index
    %c0_9 = arith.constant 0 : index
    %10 = vector.load %arg6[%c0_8, %c0_9] : memref<32x32xf32, #tpu.memory_space<vmem>>, vector<32x32xf32>
    %cst_10 = arith.constant dense<0.000000e+00> : vector<1x32xf32>
    %11 = tpu.matmul %9, %10, %cst_10 {dimension_numbers = #tpu.dot_dimension_numbers<[1], [0], [0], [1], [0, 0, 1, 1], [], []>, precision = #tpu.contract_precision<fp32>} : vector<1x32xf32>, vector<32x32xf32>, vector<1x32xf32> -> vector<1x32xf32>
    %12 = vector.broadcast %11 : vector<1x32xf32> to vector<256x32xf32>
    %13 = arith.subf %5, %12 : vector<256x32xf32>
    %14 = arith.mulf %13, %13 : vector<256x32xf32>
    %cst_11 = arith.constant dense<0.000000e+00> : vector<32xf32>
    %15 = vector.multi_reduction <add>, %14, %cst_11 [0] : vector<256x32xf32> to vector<32xf32>
    %16 = vector.shape_cast %15 : vector<32xf32> to vector<1x32xf32>
    %c0_12 = arith.constant 0 : index
    %c0_13 = arith.constant 0 : index
    %17 = vector.load %arg5[%c0_12, %c0_13] : memref<32x32xf32, #tpu.memory_space<vmem>>, vector<32x32xf32>
    %cst_14 = arith.constant dense<0.000000e+00> : vector<1x32xf32>
    %18 = tpu.matmul %16, %17, %cst_14 {dimension_numbers = #tpu.dot_dimension_numbers<[1], [0], [0], [1], [0, 0, 1, 1], [], []>, precision = #tpu.contract_precision<fp32>} : vector<1x32xf32>, vector<32x32xf32>, vector<1x32xf32> -> vector<1x32xf32>
    %c0_15 = arith.constant 0 : index
    %c0_16 = arith.constant 0 : index
    %19 = vector.load %arg6[%c0_15, %c0_16] : memref<32x32xf32, #tpu.memory_space<vmem>>, vector<32x32xf32>
    %cst_17 = arith.constant dense<0.000000e+00> : vector<1x32xf32>
    %20 = tpu.matmul %18, %19, %cst_17 {dimension_numbers = #tpu.dot_dimension_numbers<[1], [0], [0], [1], [0, 0, 1, 1], [], []>, precision = #tpu.contract_precision<fp32>} : vector<1x32xf32>, vector<32x32xf32>, vector<1x32xf32> -> vector<1x32xf32>
    %cst_18 = arith.constant 9.99999974E-6 : f32
    %21 = vector.broadcast %cst_18 : f32 to vector<1x32xf32>
    %22 = arith.addf %20, %21 : vector<1x32xf32>
    %23 = math.rsqrt %22 : vector<1x32xf32>
    %24 = vector.broadcast %23 : vector<1x32xf32> to vector<256x32xf32>
    %25 = arith.mulf %13, %24 : vector<256x32xf32>
    %c0_19 = arith.constant 0 : index
    %c0_20 = arith.constant 0 : index
    %26 = vector.load %arg3[%c0_19, %c0_20] : memref<1x32xf32, #tpu.memory_space<vmem>>, vector<1x32xf32>
    %27 = vector.broadcast %26 : vector<1x32xf32> to vector<256x32xf32>
    %28 = arith.mulf %25, %27 : vector<256x32xf32>
    %c0_21 = arith.constant 0 : index
    %c0_22 = arith.constant 0 : index
    %29 = vector.load %arg4[%c0_21, %c0_22] : memref<1x32xf32, #tpu.memory_space<vmem>>, vector<1x32xf32>
    %30 = vector.broadcast %29 : vector<1x32xf32> to vector<256x32xf32>
    %31 = arith.addf %28, %30 : vector<256x32xf32>
    %32 = arith.negf %31 : vector<256x32xf32>
    %33 = math.exp %32 : vector<256x32xf32>
    %cst_23 = arith.constant 1.000000e+00 : f32
    %34 = vector.broadcast %cst_23 : f32 to vector<256x32xf32>
    %35 = arith.addf %34, %33 : vector<256x32xf32>
    %36 = arith.divf %34, %35 : vector<256x32xf32>
    %37 = arith.mulf %31, %36 : vector<256x32xf32>
    %c0_24 = arith.constant 0 : index
    %c0_25 = arith.constant 0 : index
    %c0_26 = arith.constant 0 : index
    %38 = vector.load %arg7[%c0_24, %c0_25, %c0_26] : memref<1x256x32xf32, #tpu.memory_space<vmem>>, vector<1x256x32xf32>
    %39 = vector.shape_cast %38 : vector<1x256x32xf32> to vector<256x32xf32>
    %40 = vector.shape_cast %37 : vector<256x32xf32> to vector<1x256x32xf32>
    tpu.vector_store %arg7[%c0_24, %c0_25, %c0_26], %40 {strides = array<i32>} : memref<1x256x32xf32, #tpu.memory_space<vmem>>, vector<1x256x32xf32>,
    return
  }
  func.func @transform_0(%arg0: i32) -> (i32, i32, i32) {
    %c0_i32 = arith.constant 0 : i32
    %c0_i32_0 = arith.constant 0 : i32
    %c0_i32_1 = arith.constant 0 : i32
    return %arg0, %c0_i32, %c0_i32_0 : i32, i32, i32
  }
  func.func @transform_1(%arg0: i32) -> (i32, i32, i32) {
    %c0_i32 = arith.constant 0 : i32
    %c0_i32_0 = arith.constant 0 : i32
    %c0_i32_1 = arith.constant 0 : i32
    return %arg0, %c0_i32, %c0_i32_0 : i32, i32, i32
  }
  func.func @transform_2(%arg0: i32) -> (i32, i32) {
    %c0_i32 = arith.constant 0 : i32
    %c0_i32_0 = arith.constant 0 : i32
    %c0_i32_1 = arith.constant 0 : i32
    return %c0_i32, %c0_i32_0 : i32, i32
  }
  func.func @transform_3(%arg0: i32) -> (i32, i32) {
    %c0_i32 = arith.constant 0 : i32
    %c0_i32_0 = arith.constant 0 : i32
    %c0_i32_1 = arith.constant 0 : i32
    return %c0_i32, %c0_i32_0 : i32, i32
  }
  func.func @transform_4(%arg0: i32) -> (i32, i32) {
    %c0_i32 = arith.constant 0 : i32
    %c0_i32_0 = arith.constant 0 : i32
    %c0_i32_1 = arith.constant 0 : i32
    return %c0_i32, %c0_i32_0 : i32, i32
  }
  func.func @transform_5(%arg0: i32) -> (i32, i32) {
    %c0_i32 = arith.constant 0 : i32
    %c0_i32_0 = arith.constant 0 : i32
    %c0_i32_1 = arith.constant 0 : i32
    return %c0_i32, %c0_i32_0 : i32, i32
  }
  func.func @transform_6(%arg0: i32) -> (i32, i32, i32) {
    %c0_i32 = arith.constant 0 : i32
    %c0_i32_0 = arith.constant 0 : i32
    %c0_i32_1 = arith.constant 0 : i32
    return %arg0, %c0_i32, %c0_i32_0 : i32, i32, i32
  }
}

module attributes {stable_mosaic.version = 11 : i64} {
  func.func @kernel(%arg0: i32, %arg1: memref<1x18x18x32xf32, #tpu.memory_space<vmem>>, %arg2: memref<1x256x32xf32, #tpu.memory_space<vmem>>, %arg3: memref<3x3x32x128xbf16, #tpu.memory_space<vmem>>, %arg4: memref<1x128xf32, #tpu.memory_space<vmem>>, %arg5: memref<1x256x32xf32, #tpu.memory_space<vmem>>) attributes {dimension_semantics = [#tpu.dimension_semantics<parallel>], iteration_bounds = array<i64: 2>, scalar_prefetch = 0 : i64, scratch_operands = 0 : i64, tpu.core_type = #tpu.core_type<tc>, window_params = [{transform_indices = @transform_0, window_bounds = array<i64: 1, 18, 18, 32>}, {transform_indices = @transform_1, window_bounds = array<i64: 1, 256, 32>}, {pipeline_mode = #tpu.pipeline_mode<synchronous>, transform_indices = @transform_2, window_bounds = array<i64: 3, 3, 32, 128>}, {pipeline_mode = #tpu.pipeline_mode<synchronous>, transform_indices = @transform_3, window_bounds = array<i64: 1, 128>}, {transform_indices = @transform_4, window_bounds = array<i64: 1, 256, 32>}]} {
    %c0 = arith.constant 0 : index
    %c0_0 = arith.constant 0 : index
    %c0_1 = arith.constant 0 : index
    %c0_2 = arith.constant 0 : index
    %0 = vector.load %arg1[%c0, %c0_0, %c0_1, %c0_2] : memref<1x18x18x32xf32, #tpu.memory_space<vmem>>, vector<1x18x18x32xf32>
    %1 = vector.shape_cast %0 : vector<1x18x18x32xf32> to vector<18x18x32xf32>
    %2 = vector.extract_strided_slice %1 {offsets = [0, 0, 0], sizes = [16, 16, 32], strides = [1, 1, 1]} : vector<18x18x32xf32> to vector<16x16x32xf32>
    %3 = vector.shape_cast %2 : vector<16x16x32xf32> to vector<256x32xf32>
    %4 = arith.truncf %3 : vector<256x32xf32> to vector<256x32xbf16>
    %c0_3 = arith.constant 0 : index
    %c0_4 = arith.constant 0 : index
    %c0_5 = arith.constant 0 : index
    %c0_6 = arith.constant 0 : index
    %5 = vector.load %arg3[%c0_3, %c0_4, %c0_5, %c0_6] : memref<3x3x32x128xbf16, #tpu.memory_space<vmem>>, vector<1x1x32x128xbf16>
    %6 = vector.shape_cast %5 : vector<1x1x32x128xbf16> to vector<32x128xbf16>
    %cst = arith.constant dense<0.000000e+00> : vector<256x128xf32>
    %7 = tpu.matmul %4, %6, %cst {dimension_numbers = #tpu.dot_dimension_numbers<[1], [0], [0], [1], [0, 0, 1, 1], [], []>} : vector<256x32xbf16>, vector<32x128xbf16>, vector<256x128xf32> -> vector<256x128xf32>
    %8 = vector.extract_strided_slice %1 {offsets = [0, 1, 0], sizes = [16, 16, 32], strides = [1, 1, 1]} : vector<18x18x32xf32> to vector<16x16x32xf32>
    %9 = vector.shape_cast %8 : vector<16x16x32xf32> to vector<256x32xf32>
    %10 = arith.truncf %9 : vector<256x32xf32> to vector<256x32xbf16>
    %c0_7 = arith.constant 0 : index
    %c1 = arith.constant 1 : index
    %c0_8 = arith.constant 0 : index
    %c0_9 = arith.constant 0 : index
    %11 = vector.load %arg3[%c0_7, %c1, %c0_8, %c0_9] : memref<3x3x32x128xbf16, #tpu.memory_space<vmem>>, vector<1x1x32x128xbf16>
    %12 = vector.shape_cast %11 : vector<1x1x32x128xbf16> to vector<32x128xbf16>
    %cst_10 = arith.constant dense<0.000000e+00> : vector<256x128xf32>
    %13 = tpu.matmul %10, %12, %cst_10 {dimension_numbers = #tpu.dot_dimension_numbers<[1], [0], [0], [1], [0, 0, 1, 1], [], []>} : vector<256x32xbf16>, vector<32x128xbf16>, vector<256x128xf32> -> vector<256x128xf32>
    %14 = arith.addf %7, %13 : vector<256x128xf32>
    %15 = vector.extract_strided_slice %1 {offsets = [0, 2, 0], sizes = [16, 16, 32], strides = [1, 1, 1]} : vector<18x18x32xf32> to vector<16x16x32xf32>
    %16 = vector.shape_cast %15 : vector<16x16x32xf32> to vector<256x32xf32>
    %17 = arith.truncf %16 : vector<256x32xf32> to vector<256x32xbf16>
    %c0_11 = arith.constant 0 : index
    %c2 = arith.constant 2 : index
    %c0_12 = arith.constant 0 : index
    %c0_13 = arith.constant 0 : index
    %18 = vector.load %arg3[%c0_11, %c2, %c0_12, %c0_13] : memref<3x3x32x128xbf16, #tpu.memory_space<vmem>>, vector<1x1x32x128xbf16>
    %19 = vector.shape_cast %18 : vector<1x1x32x128xbf16> to vector<32x128xbf16>
    %cst_14 = arith.constant dense<0.000000e+00> : vector<256x128xf32>
    %20 = tpu.matmul %17, %19, %cst_14 {dimension_numbers = #tpu.dot_dimension_numbers<[1], [0], [0], [1], [0, 0, 1, 1], [], []>} : vector<256x32xbf16>, vector<32x128xbf16>, vector<256x128xf32> -> vector<256x128xf32>
    %21 = arith.addf %14, %20 : vector<256x128xf32>
    %22 = vector.extract_strided_slice %1 {offsets = [1, 0, 0], sizes = [16, 16, 32], strides = [1, 1, 1]} : vector<18x18x32xf32> to vector<16x16x32xf32>
    %23 = vector.shape_cast %22 : vector<16x16x32xf32> to vector<256x32xf32>
    %24 = arith.truncf %23 : vector<256x32xf32> to vector<256x32xbf16>
    %c1_15 = arith.constant 1 : index
    %c0_16 = arith.constant 0 : index
    %c0_17 = arith.constant 0 : index
    %c0_18 = arith.constant 0 : index
    %25 = vector.load %arg3[%c1_15, %c0_16, %c0_17, %c0_18] : memref<3x3x32x128xbf16, #tpu.memory_space<vmem>>, vector<1x1x32x128xbf16>
    %26 = vector.shape_cast %25 : vector<1x1x32x128xbf16> to vector<32x128xbf16>
    %cst_19 = arith.constant dense<0.000000e+00> : vector<256x128xf32>
    %27 = tpu.matmul %24, %26, %cst_19 {dimension_numbers = #tpu.dot_dimension_numbers<[1], [0], [0], [1], [0, 0, 1, 1], [], []>} : vector<256x32xbf16>, vector<32x128xbf16>, vector<256x128xf32> -> vector<256x128xf32>
    %28 = arith.addf %21, %27 : vector<256x128xf32>
    %29 = vector.extract_strided_slice %1 {offsets = [1, 1, 0], sizes = [16, 16, 32], strides = [1, 1, 1]} : vector<18x18x32xf32> to vector<16x16x32xf32>
    %30 = vector.shape_cast %29 : vector<16x16x32xf32> to vector<256x32xf32>
    %31 = arith.truncf %30 : vector<256x32xf32> to vector<256x32xbf16>
    %c1_20 = arith.constant 1 : index
    %c1_21 = arith.constant 1 : index
    %c0_22 = arith.constant 0 : index
    %c0_23 = arith.constant 0 : index
    %32 = vector.load %arg3[%c1_20, %c1_21, %c0_22, %c0_23] : memref<3x3x32x128xbf16, #tpu.memory_space<vmem>>, vector<1x1x32x128xbf16>
    %33 = vector.shape_cast %32 : vector<1x1x32x128xbf16> to vector<32x128xbf16>
    %cst_24 = arith.constant dense<0.000000e+00> : vector<256x128xf32>
    %34 = tpu.matmul %31, %33, %cst_24 {dimension_numbers = #tpu.dot_dimension_numbers<[1], [0], [0], [1], [0, 0, 1, 1], [], []>} : vector<256x32xbf16>, vector<32x128xbf16>, vector<256x128xf32> -> vector<256x128xf32>
    %35 = arith.addf %28, %34 : vector<256x128xf32>
    %36 = vector.extract_strided_slice %1 {offsets = [1, 2, 0], sizes = [16, 16, 32], strides = [1, 1, 1]} : vector<18x18x32xf32> to vector<16x16x32xf32>
    %37 = vector.shape_cast %36 : vector<16x16x32xf32> to vector<256x32xf32>
    %38 = arith.truncf %37 : vector<256x32xf32> to vector<256x32xbf16>
    %c1_25 = arith.constant 1 : index
    %c2_26 = arith.constant 2 : index
    %c0_27 = arith.constant 0 : index
    %c0_28 = arith.constant 0 : index
    %39 = vector.load %arg3[%c1_25, %c2_26, %c0_27, %c0_28] : memref<3x3x32x128xbf16, #tpu.memory_space<vmem>>, vector<1x1x32x128xbf16>
    %40 = vector.shape_cast %39 : vector<1x1x32x128xbf16> to vector<32x128xbf16>
    %cst_29 = arith.constant dense<0.000000e+00> : vector<256x128xf32>
    %41 = tpu.matmul %38, %40, %cst_29 {dimension_numbers = #tpu.dot_dimension_numbers<[1], [0], [0], [1], [0, 0, 1, 1], [], []>} : vector<256x32xbf16>, vector<32x128xbf16>, vector<256x128xf32> -> vector<256x128xf32>
    %42 = arith.addf %35, %41 : vector<256x128xf32>
    %43 = vector.extract_strided_slice %1 {offsets = [2, 0, 0], sizes = [16, 16, 32], strides = [1, 1, 1]} : vector<18x18x32xf32> to vector<16x16x32xf32>
    %44 = vector.shape_cast %43 : vector<16x16x32xf32> to vector<256x32xf32>
    %45 = arith.truncf %44 : vector<256x32xf32> to vector<256x32xbf16>
    %c2_30 = arith.constant 2 : index
    %c0_31 = arith.constant 0 : index
    %c0_32 = arith.constant 0 : index
    %c0_33 = arith.constant 0 : index
    %46 = vector.load %arg3[%c2_30, %c0_31, %c0_32, %c0_33] : memref<3x3x32x128xbf16, #tpu.memory_space<vmem>>, vector<1x1x32x128xbf16>
    %47 = vector.shape_cast %46 : vector<1x1x32x128xbf16> to vector<32x128xbf16>
    %cst_34 = arith.constant dense<0.000000e+00> : vector<256x128xf32>
    %48 = tpu.matmul %45, %47, %cst_34 {dimension_numbers = #tpu.dot_dimension_numbers<[1], [0], [0], [1], [0, 0, 1, 1], [], []>} : vector<256x32xbf16>, vector<32x128xbf16>, vector<256x128xf32> -> vector<256x128xf32>
    %49 = arith.addf %42, %48 : vector<256x128xf32>
    %50 = vector.extract_strided_slice %1 {offsets = [2, 1, 0], sizes = [16, 16, 32], strides = [1, 1, 1]} : vector<18x18x32xf32> to vector<16x16x32xf32>
    %51 = vector.shape_cast %50 : vector<16x16x32xf32> to vector<256x32xf32>
    %52 = arith.truncf %51 : vector<256x32xf32> to vector<256x32xbf16>
    %c2_35 = arith.constant 2 : index
    %c1_36 = arith.constant 1 : index
    %c0_37 = arith.constant 0 : index
    %c0_38 = arith.constant 0 : index
    %53 = vector.load %arg3[%c2_35, %c1_36, %c0_37, %c0_38] : memref<3x3x32x128xbf16, #tpu.memory_space<vmem>>, vector<1x1x32x128xbf16>
    %54 = vector.shape_cast %53 : vector<1x1x32x128xbf16> to vector<32x128xbf16>
    %cst_39 = arith.constant dense<0.000000e+00> : vector<256x128xf32>
    %55 = tpu.matmul %52, %54, %cst_39 {dimension_numbers = #tpu.dot_dimension_numbers<[1], [0], [0], [1], [0, 0, 1, 1], [], []>} : vector<256x32xbf16>, vector<32x128xbf16>, vector<256x128xf32> -> vector<256x128xf32>
    %56 = arith.addf %49, %55 : vector<256x128xf32>
    %57 = vector.extract_strided_slice %1 {offsets = [2, 2, 0], sizes = [16, 16, 32], strides = [1, 1, 1]} : vector<18x18x32xf32> to vector<16x16x32xf32>
    %58 = vector.shape_cast %57 : vector<16x16x32xf32> to vector<256x32xf32>
    %59 = arith.truncf %58 : vector<256x32xf32> to vector<256x32xbf16>
    %c2_40 = arith.constant 2 : index
    %c2_41 = arith.constant 2 : index
    %c0_42 = arith.constant 0 : index
    %c0_43 = arith.constant 0 : index
    %60 = vector.load %arg3[%c2_40, %c2_41, %c0_42, %c0_43] : memref<3x3x32x128xbf16, #tpu.memory_space<vmem>>, vector<1x1x32x128xbf16>
    %61 = vector.shape_cast %60 : vector<1x1x32x128xbf16> to vector<32x128xbf16>
    %cst_44 = arith.constant dense<0.000000e+00> : vector<256x128xf32>
    %62 = tpu.matmul %59, %61, %cst_44 {dimension_numbers = #tpu.dot_dimension_numbers<[1], [0], [0], [1], [0, 0, 1, 1], [], []>} : vector<256x32xbf16>, vector<32x128xbf16>, vector<256x128xf32> -> vector<256x128xf32>
    %63 = arith.addf %56, %62 : vector<256x128xf32>
    %c0_45 = arith.constant 0 : index
    %c0_46 = arith.constant 0 : index
    %64 = vector.load %arg4[%c0_45, %c0_46] : memref<1x128xf32, #tpu.memory_space<vmem>>, vector<1x128xf32>
    %65 = vector.broadcast %64 : vector<1x128xf32> to vector<256x128xf32>
    %66 = arith.addf %63, %65 : vector<256x128xf32>
    %67 = vector.extract_strided_slice %66 {offsets = [0, 0], sizes = [256, 32], strides = [1, 1]} : vector<256x128xf32> to vector<256x32xf32>
    %c0_47 = arith.constant 0 : index
    %c0_48 = arith.constant 0 : index
    %c0_49 = arith.constant 0 : index
    %68 = vector.load %arg2[%c0_47, %c0_48, %c0_49] : memref<1x256x32xf32, #tpu.memory_space<vmem>>, vector<1x256x32xf32>
    %69 = vector.shape_cast %68 : vector<1x256x32xf32> to vector<256x32xf32>
    %70 = arith.addf %67, %69 : vector<256x32xf32>
    %c0_50 = arith.constant 0 : index
    %c0_51 = arith.constant 0 : index
    %c0_52 = arith.constant 0 : index
    %71 = vector.load %arg5[%c0_50, %c0_51, %c0_52] : memref<1x256x32xf32, #tpu.memory_space<vmem>>, vector<1x256x32xf32>
    %72 = vector.shape_cast %71 : vector<1x256x32xf32> to vector<256x32xf32>
    %73 = vector.shape_cast %70 : vector<256x32xf32> to vector<1x256x32xf32>
    tpu.vector_store %arg5[%c0_50, %c0_51, %c0_52], %73 {strides = array<i32>} : memref<1x256x32xf32, #tpu.memory_space<vmem>>, vector<1x256x32xf32>,
    return
  }
  func.func @transform_0(%arg0: i32) -> (i32, i32, i32, i32) {
    %c0_i32 = arith.constant 0 : i32
    %c0_i32_0 = arith.constant 0 : i32
    %c0_i32_1 = arith.constant 0 : i32
    %c0_i32_2 = arith.constant 0 : i32
    return %arg0, %c0_i32, %c0_i32_0, %c0_i32_1 : i32, i32, i32, i32
  }
  func.func @transform_1(%arg0: i32) -> (i32, i32, i32) {
    %c0_i32 = arith.constant 0 : i32
    %c0_i32_0 = arith.constant 0 : i32
    %c0_i32_1 = arith.constant 0 : i32
    return %arg0, %c0_i32, %c0_i32_0 : i32, i32, i32
  }
  func.func @transform_2(%arg0: i32) -> (i32, i32, i32, i32) {
    %c0_i32 = arith.constant 0 : i32
    %c0_i32_0 = arith.constant 0 : i32
    %c0_i32_1 = arith.constant 0 : i32
    %c0_i32_2 = arith.constant 0 : i32
    %c0_i32_3 = arith.constant 0 : i32
    return %c0_i32, %c0_i32_0, %c0_i32_1, %c0_i32_2 : i32, i32, i32, i32
  }
  func.func @transform_3(%arg0: i32) -> (i32, i32) {
    %c0_i32 = arith.constant 0 : i32
    %c0_i32_0 = arith.constant 0 : i32
    %c0_i32_1 = arith.constant 0 : i32
    return %c0_i32, %c0_i32_0 : i32, i32
  }
  func.func @transform_4(%arg0: i32) -> (i32, i32, i32) {
    %c0_i32 = arith.constant 0 : i32
    %c0_i32_0 = arith.constant 0 : i32
    %c0_i32_1 = arith.constant 0 : i32
    return %arg0, %c0_i32, %c0_i32_0 : i32, i32, i32
  }
}

</mosaic_0001>

<bundles_post_ra>
// kernel: _lambda_.7
= control target key start
LH: loop header
LB: loop body
LE: loop exit
PB: predicated region body
PF: predicated region fallthrough
CT: control target
= control target key end

     0   :  { %v147_v0 = vmov 0.0   ;;  %vm148_vm0 = vmmov 0   ;;  %vm63_vm1 = vcmask 523264   ;;  %vm107_vm2 = vcmask 254976   ;;  %s190_s1 = inlined_call_operand.vmem [shape: bf16[64,32], index: 1, kind: input, shape index: {}]   ;;  %s191_s0 = inlined_call_operand.vmem [shape: f32[2,64], index: 0, kind: input, shape index: {}]   ;;  %s192_s2 = inlined_call_operand.vmem [shape: f32[1,32], index: 2, kind: input, shape index: {}]   ;;  %s193_s3 = inlined_call_operand.vmem [shape: f32[2,32], index: 3, kind: output, shape index: {}]  }
   0x1   :  { %125 = vmatprep.subr.bf16.mxu0 %v147_v0  ;;  %v139_v1 = vld [vmem:[%s190_s1] sm:$0xff]   ;;  %133 = vmatprep.mubr.msk.bf16.mxu0 %vm148_vm0, %v147_v0  ;;  %v140_v2 = vld [vmem:[%s190_s1 + $0x8] sm:$0xff]   ;;  %v141_v5 = vld [vmem:[%s190_s1 + $0x10] sm:$0xff]  }
   0x2   :  { %126 = vmatpush3.bf16.msra.mxu0 %v139_v1  ;;  %v15_v3 = vld [vmem:[%s191_s0] sm:$0x3]  ;;  %v142_v6 = vld [vmem:[%s190_s1 + $0x18] sm:$0xff]  }
   0x3   :  { %127 = vmatprep.subr.bf16.mxu0 %v147_v0  ;;  %v113_v4 = vmul.f32 -1.442695, %v15_v3  ;;  %v114_v12 = vld [vmem:[%s192_s2] ss:$0 sm:$0xff] }
   0x5   :  { %143 = vpow2.f32 %v113_v4 }
   0x6   :  { %128 = vmatpush3.bf16.msra.mxu0 %v140_v2 }
   0x7   :  { %129 = vmatprep.subr.bf16.mxu0 %v147_v0 }
   0xa   :  { %130 = vmatpush3.bf16.msra.mxu0 %v141_v5 }
   0xb   :  { %131 = vmatprep.subr.bf16.mxu0 %v147_v0 }
   0xe   :  { %132 = vmatpush3.bf16.msra.mxu0 %v142_v6 }
   0xf   :  { %v144_v7 = vpop.eup %143 }
  0x10   :  { %v19_v8 = vadd.f32 1.0, %v144_v7 }
  0x12   :  { %145 = vrcp.f32 %v19_v8 }
  0x1c   :  { %v146_v9 = vpop.eup %145 }
  0x1d   :  { %v22_v10 = vmul.f32 %v146_v9, %v15_v3 }
  0x1f   :  { %v23_v11 = vpack.c.bf16 %v22_v10, %v22_v10 }
  0x21   :  { %134 = vmatmul.mubr.msk.bf16.vlgmr.msra.gmra.mrb[0].mxu0 %vm63_vm1, %v23_v11 }
  0xf4   :  { %v101_v13 = vpop.f32.mrb[0].mxu0 }
  0xf5   :  { %v102_v14 = vadd.f32 %v114_v12, %v101_v13  ;;  %v135_v15 = vpop.f32.mrb[1].mxu0 }
  0xf6   :  { %v104_v16 = vpop.f32.mrb[2].mxu0 }
  0xf7   :  { %108 = vst.msk [vmem:[%s193_s3] sm:$0x3] %vm107_vm2, %v102_v14  ;;  %v136_v17 = vpop.f32.mrb[3].mxu0 }

// kernel: _lambda_.5
= control target key start
LH: loop header
LB: loop body
LE: loop exit
PB: predicated region body
PF: predicated region fallthrough
CT: control target
= control target key end

     0   :  { %10 = vsyncpa [#allocation3], 0  ;;  %s4887_s0 = inlined_call_operand.hbm [shape: f32[2,256,32], index: 0, kind: input, shape index: {}]   ;;  %s4888_s1 = inlined_call_operand.vmem [shape: f32[1,32], index: 1, kind: input, shape index: {}]   ;;  %s4889_s2 = inlined_call_operand.vmem [shape: f32[1,32], index: 2, kind: input, shape index: {}]   ;;  %s4890_s3 = inlined_call_operand.vmem [shape: f32[32,32], index: 3, kind: input, shape index: {}]   ;;  %s4891_s4 = inlined_call_operand.vmem [shape: f32[32,32], index: 4, kind: input, shape index: {}]   ;;  %s4892_s5 = inlined_call_operand.vmem [shape: f32[2,256,32], index: 5, kind: output, shape index: {}]  }
   0x1   :  { %12 = vsyncpa [#allocation3 + $0x1], 0  ;;  %s3775_s18 = smov 0   ;;  %s3777_s19 = smov 0  }
   0x2   :  { %s3779_s20 = smov 0   ;;  %s3781_s21 = smov 0  }
   0x3 LB: > { %s3794_s22 = sadd.s32 4294967295, %s3737_s21   ;;  %s3797_s23 = sadd.s32 1, %s3737_s21   ;;  %s3737_s21 = sphi %s3781_s21, %s4935_s21   ;;  %s3733_s20 = sphi %s3779_s20, %s4934_s20   ;;  %s3729_s19 = sphi %s3777_s19, %s4933_s19   ;;  %s3725_s18 = sphi %s3775_s18, %s4932_s18  }
   0x4   : > { %s22_s24 = ssub.s32 %s3737_s21, %s3797_s23  ;;  %s25_s25 = sadd.s32 1, %s3733_s20 }
   0x5   : > { %p23_p0 = scmp.eq.s32.totalorder %s22_s24, 0  ;;  %p32_p1 = scmp.ne.s32.totalorder %s3733_s20, %s3729_s19 }
   0x6   : > { %p33_p2 = scmp.eq.s32.totalorder %s3737_s21, 0  ;;  %p38_p3 = scmp.ne.s32.totalorder %s3729_s19, %s3725_s18 }
   0x7   : > { %s3807_s26 = scalar_select %p23_p0, %s3733_s20, %s25_s25  }
   0x8   : > { %p34_p4 = por %p33_p2, %p32_p1  ;;  %p39_p5 = scmp.eq.s32.totalorder %s3794_s22, 0 }
   0x9   : > { %p3505_p6 = scmp.lt.s32.totalorder %s3737_s21, 2  ;;  %s184_s28 = sand.u32 1, %s3733_s20  }
   0xa   : > { %p3811_p7 = por %p39_p5, %p38_p3  ;;  %s2885_s29 = sshll.u32 %s184_s28, 8 }
   0xb   : > { %s2928_s30 = sshll.u32 %s3737_s21, 12  ;;  %s188_s9 = scalar_lea.vmem [#allocation2], %s2885_s29 }
   0xc   : > { %s3820_s8 = scalar_lea.hbm %s4887_s0, %s2928_s30  ;;  %s195_s10 = sshll.u32 %s188_s9, 4  ;;  %s3822_s10 = int_to_ptr.vmem [resolvable:$true] %s195_s10 }
   0xd   : > { %p3824_p8 = pnand %p3505_p6, %p34_p4  ;;  %s3829_s12 = scalar_lea.sflag [#allocation3], %s184_s28 }
   0xe   : > { %s3673_s13 = scalar_lea.hbm %s3820_s8, 4096  ;;  %s3678_s16 = scalar_lea.hbm %s4887_s0, 8192 }
   0xf   : > { %p3674_p10 = scmp.ne.s32.totalorder %s3820_s8, %s3673_s13  ;;  %p3675_p11 = pneg %p3824_p8 }
  0x10   : > { %p3679_p0 = scmp.lt.u32.totalorder %s3820_s8, %s4887_s0  ;;  %p3680_p1 = scmp.lt.u32.totalorder %s3678_s16, %s3673_s13 }
  0x11   : > { %p3676_p12 = pnand %p3675_p11, %p3674_p10  ;;  %p3682_p3 = scmp.lt.u32.totalorder %s3673_s13, %s3820_s8 }
  0x12   : > { %p3681_p2 = por %p3680_p1, %p3679_p0 }
  0x13   : > { %p3677_p13 = pneg %p3676_p12 }
  0x14   : > { %p3683_p4 = por %p3682_p3, %p3681_p2 }
  0x16   : > { %p3684_p5 = pnand %p3683_p4, %p3677_p13 }
  0x18   : > { %3687 = shalt.err (!%p3684_p5)
}
  0x19   : > { %s3688_s24 = scalar_lea.vmem %s3822_s10, 4096  ;;  %s3739_s25 = smov [#allocation2]  }
  0x1a   : > { %p3689_p6 = scmp.ne.s32.totalorder %s3822_s10, %s3688_s24  ;;  %s3693_s28 = sshll.u32 %s3739_s25, 4  ;;  %s3694_s28 = int_to_ptr.vmem [resolvable:$false] %s3693_s28 }
  0x1b   : > { %s3695_s29 = scalar_lea.vmem %s3694_s28, 8192  ;;  %p3696_p9 = scmp.lt.s32.totalorder %s3822_s10, %s3694_s28 }
  0x1c   : > { %p3691_p10 = pnand %p3689_p6, %p3675_p11  ;;  %p3697_p0 = scmp.lt.s32.totalorder %s3695_s29, %s3688_s24 }
  0x1e   : > { %p3692_p12 = pneg %p3691_p10  ;;  %p3698_p1 = por %p3697_p0, %p3696_p9 }
  0x20   : > { %p3699_p2 = pnand %p3698_p1, %p3692_p12 }
  0x22   : > { %3702 = shalt.err (!%p3699_p2)
}
  0x23   : > { %s3740_s30 = smov 128   ;;  %s3741_s6 = smov 8  }
  0x24   : > { %3504 = dma.hbm_to_vmem [thread:$0]  (!%p3824_p8), %s3820_s8, 4096, %s3822_s10, %s3829_s12, %s3740_s30, %s3740_s30, %s3741_s6  }
  0x25   : > { %p203_p11 = scmp.lt.s32.totalorder %s3737_s21, 3  ;;  %p4910_p13 = scmp.ge.s32.totalorder %s3737_s21, 1 }
  0x27   : > { %p204_p3 = pnand %p4910_p13, %p203_p11 }
  0x29   : > { %207 = sbr.rel (%p204_p3) target bundleno = 1369 (0x559), region = 40 }
  0x30   : > { %s209_s7 = sand.u32 1, %s3729_s19  }
  0x31   : > { %s2889_s9 = sshll.u32 %s209_s7, 8  ;;  %s210_s13 = scalar_lea.sflag [#allocation3], %s209_s7 }
  0x32   : > { %s3861_s14 = scalar_lea.vmem [#allocation2], %s2889_s9 }
  0x33   : > { %3720 = dma.done.wait (%p3811_p7), %s210_s13, 4096  }
  0x34   : > { %3722 = vsyncadd (%p3811_p7), %s210_s13, 4294963200  ;;  %v4897_v0 = vmov 0.0|0.0   ;;  %vm3743_vm0 = vmmov 0   ;;  %v4893_v1 = vmov 0.0   ;;  %vm277_vm1 = vcmask 261120   ;;  %v347_v2 = vld [vmem:[%s4890_s3] sm:$0xff] }
  0x35   : > { %3314 = vmatprep.subr.bf16.mxu0 %v4897_v0  ;;  %3058 = vmatprep.mubr.msk.f32.mxu0 %vm3743_vm0, %v4893_v1  ;;  %v348_v3 = vld [vmem:[%s4890_s3 + $0x8] sm:$0xff]  ;;  %v349_v4 = vld [vmem:[%s4890_s3 + $0x10] sm:$0xff]  ;;  %v355_v5 = vand.u32 4294901760, %v347_v2  ;;  %v350_v7 = vld [vmem:[%s4890_s3 + $0x18] sm:$0xff]  ;;  %p240_p7 = scmp.lt.s32.totalorder %s3794_s22, 1 }
  0x36   : > { %3350 = vmatprep.subr.bf16.mxu1 %v4897_v0  ;;  %3124 = vmatprep.mubr.msk.f32.mxu1 %vm3743_vm0, %v4893_v1  ;;  %v358_v6 = vand.u32 4294901760, %v348_v3  ;;  %v361_v8 = vand.u32 4294901760, %v349_v4  ;;  %v3886_v9 = vld [vmem:[%s3861_s14] sm:$0xff]  ;;  %v3889_v10 = vld [vmem:[%s3861_s14 + $0x8] sm:$0xff]  ;;  %v364_v11 = vand.u32 4294901760, %v350_v7  ;;  %v3892_v12 = vld [vmem:[%s3861_s14 + $0x10] sm:$0xff] }
  0x37   : > { %v3895_v13 = vld [vmem:[%s3861_s14 + $0x18] sm:$0xff]  ;;  %v278_v14 = vsel %vm277_vm1, %v3886_v9, 0.0  ;;  %v279_v15 = vsel %vm277_vm1, %v3889_v10, 0.0  ;;  %v3904_v17 = vld [vmem:[%s3861_s14 + $0x20] sm:$0xff]  ;;  %v281_v19 = vsel %vm277_vm1, %v3892_v12, 0.0  ;;  %v3914_v22 = vld [vmem:[%s3861_s14 + $0x28] sm:$0xff]  ;;  %v435_v25 = vsub.f32 %v347_v2, %v355_v5 }
  0x38   : > { %v3901_v16 = vpack.c.bf16 %v358_v6, %v355_v5  ;;  %v280_v18 = vadd.f32 %v279_v15, %v278_v14  ;;  %v283_v20 = vsel %vm277_vm1, %v3895_v13, 0.0  ;;  %v3911_v21 = vpack.c.bf16 %v364_v11, %v361_v8  ;;  %v3920_v26 = vld [vmem:[%s3861_s14 + $0x30] sm:$0xff]  ;;  %v3926_v30 = vld [vmem:[%s3861_s14 + $0x38] sm:$0xff]  ;;  %v3932_v34 = vld [vmem:[%s3861_s14 + $0x40] sm:$0xff]  ;;  %s4937_s22 = smov (!%p240_p7, %s3794_s22), 1 }
  0x39   : > { %v285_v24 = vsel %vm277_vm1, %v3904_v17, 0.0  ;;  %v287_v28 = vsel %vm277_vm1, %v3914_v22, 0.0  ;;  %v442_v29 = vsub.f32 %v348_v3, %v358_v6  ;;  %v289_v32 = vsel %vm277_vm1, %v3920_v26, 0.0  ;;  %v3937_v37 = vld [vmem:[%s3861_s14 + $0x48] sm:$0xff]  ;;  %v3944_v45 = vld [vmem:[%s3861_s14 + $0x50] sm:$0xff]  ;;  %v3953_v54 = vld [vmem:[%s3861_s14 + $0x58] sm:$0xff] }
  0x3a   : > { %3316 = vmatpush3.bf16.msra.mxu0 %v3901_v16  ;;  %4911 = vst [vmem:[#allocation5_spill] sm:$0xff] %v3911_v21  ;;  %v282_v23 = vadd.f32 %v281_v19, %v280_v18  ;;  %v449_v33 = vsub.f32 %v349_v4, %v361_v8  ;;  %v291_v36 = vsel %vm277_vm1, %v3926_v30, 0.0  ;;  %v436_v39 = vand.u32 4294901760, %v435_v25  ;;  %v3960_v62 = vld [vmem:[%s3861_s14 + $0x60] sm:$0xff]  ;;  %v3967_v5 = vld [vmem:[%s3861_s14 + $0x68] sm:$0xff]  ;;  %v3979_v18 = vld [vmem:[%s3861_s14 + $0x78] sm:$0xff] }
  0x3b   : > { %3317 = vmatprep.subr.bf16.mxu0 %v4897_v0  ;;  %v443_v40 = vand.u32 4294901760, %v442_v29  ;;  %v293_v42 = vsel %vm277_vm1, %v3932_v34, 0.0  ;;  %v456_v43 = vsub.f32 %v350_v7, %v364_v11  ;;  %v3941_v44 = vpack.c.bf16 %v442_v29, %v435_v25  ;;  %v3974_v11 = vld [vmem:[%s3861_s14 + $0x70] sm:$0xff]  ;;  %s2929_s21 = sshll.u32 %s4937_s22, 8 }
  0x3c   : > { %v284_v27 = vadd.f32 %v283_v20, %v282_v23  ;;  %v450_v41 = vand.u32 4294901760, %v449_v33  ;;  %v437_v47 = vsub.f32 %v435_v25, %v436_v39  ;;  %v295_v50 = vsel %vm277_vm1, %v3937_v37, 0.0  ;;  %v3984_v23 = vld [vmem:[%s3861_s14 + $0x80] sm:$0xff]  ;;  %s4763_s10 = scalar_lea.vmem %s4892_s5, %s2929_s21 }
  0x3d   : > { %v444_v48 = vsub.f32 %v442_v29, %v443_v40  ;;  %v457_v51 = vand.u32 4294901760, %v456_v43  ;;  %v3948_v52 = vpack.c.bf16 %v456_v43, %v449_v33  ;;  %v3950_v53 = vpack.c.bf16 %v443_v40, %v436_v39  ;;  %v4004_v39 = vld [vmem:[%s3861_s14 + $0xa0] sm:$0xff] }
  0x3e   : > { %3319 = vmatpush3.bf16.msra.mxu0 %v3911_v21  ;;  %v286_v31 = vadd.f32 %v285_v24, %v284_v27  ;;  %v451_v49 = vsub.f32 %v449_v33, %v450_v41  ;;  %v438_v56 = vand.u32 4294901760, %v437_v47  ;;  %v297_v58 = vsel %vm277_vm1, %v3944_v45, 0.0  ;;  %v3989_v27 = vld [vmem:[%s3861_s14 + $0x88] sm:$0xff]  ;;  %v4014_v47 = vld [vmem:[%s3861_s14 + $0xb0] sm:$0xff] }
  0x3f   : > { %3320 = vmatprep.subr.bf16.mxu0 %v4897_v0  ;;  %4912 = vst [vmem:[#allocation6_spill] sm:$0xff] %v3950_v53  ;;  %v445_v57 = vand.u32 4294901760, %v444_v48  ;;  %v458_v60 = vsub.f32 %v456_v43, %v457_v51  ;;  %v3957_v61 = vpack.c.bf16 %v457_v51, %v450_v41  ;;  %v299_v3 = vsel %vm277_vm1, %v3953_v54, 0.0 }
  0x40   : > { %v288_v35 = vadd.f32 %v287_v28, %v286_v31  ;;  %v452_v59 = vand.u32 4294901760, %v451_v49  ;;  %v301_v7 = vsel %vm277_vm1, %v3960_v62, 0.0  ;;  %v303_v15 = vsel %vm277_vm1, %v3967_v5, 0.0  ;;  %v3994_v31 = vld [vmem:[%s3861_s14 + $0x90] sm:$0xff] }
  0x41   : > { %4913 = vst [vmem:[#allocation7_spill] sm:$0xff] %v3957_v61  ;;  %v3962_v2 = vpack.c.bf16 %v445_v57, %v438_v56  ;;  %v459_v4 = vand.u32 4294901760, %v458_v60  ;;  %v305_v20 = vsel %vm277_vm1, %v3974_v11, 0.0  ;;  %v307_v25 = vsel %vm277_vm1, %v3979_v18, 0.0  ;;  %v4024_v56 = vld [vmem:[%s3861_s14 + $0xc0] sm:$0xff] }
  0x42   : > { %v290_v38 = vadd.f32 %v289_v32, %v288_v35  ;;  %v309_v29 = vsel %vm277_vm1, %v3984_v23, 0.0  ;;  %v311_v33 = vsel %vm277_vm1, %v3989_v27, 0.0  ;;  %v3999_v35 = vld [vmem:[%s3861_s14 + $0x98] sm:$0xff] }
  0x43   : > { %v3971_v8 = vpack.c.bf16 %v459_v4, %v452_v59  ;;  %v315_v41 = vsel %vm277_vm1, %v3999_v35, 0.0  ;;  %v4029_v59 = vld [vmem:[%s3861_s14 + $0xc8] sm:$0xff] }
  0x44   : > { %v292_v46 = vadd.f32 %v291_v36, %v290_v38  ;;  %v313_v38 = vsel %vm277_vm1, %v3994_v31, 0.0 }
  0x46   : > { %v294_v55 = vadd.f32 %v293_v42, %v292_v46  ;;  %v4009_v42 = vld [vmem:[%s3861_s14 + $0xa8] sm:$0xff]  ;;  %v317_v46 = vsel %vm277_vm1, %v4004_v39, 0.0 }
  0x47   : > { %v319_v49 = vsel %vm277_vm1, %v4009_v42, 0.0 }
  0x48   : > { %v296_v63 = vadd.f32 %v295_v50, %v294_v55  ;;  %v4019_v50 = vld [vmem:[%s3861_s14 + $0xb8] sm:$0xff]  ;;  %v321_v55 = vsel %vm277_vm1, %v4014_v47, 0.0 }
  0x4a   : > { %v298_v6 = vadd.f32 %v297_v58, %v296_v63  ;;  %v323_v58 = vsel %vm277_vm1, %v4019_v50, 0.0  ;;  %v325_v63 = vsel %vm277_vm1, %v4024_v56, 0.0 }
  0x4c   : > { %v300_v14 = vadd.f32 %v299_v3, %v298_v6  ;;  %v4034_v3 = vld [vmem:[%s3861_s14 + $0xd0] sm:$0xff]  ;;  %v327_v6 = vsel %vm277_vm1, %v4029_v59, 0.0 }
  0x4e   : > { %v302_v19 = vadd.f32 %v301_v7, %v300_v14  ;;  %v4039_v7 = vld [vmem:[%s3861_s14 + $0xd8] sm:$0xff] }
  0x50   : > { %v304_v24 = vadd.f32 %v303_v15, %v302_v19  ;;  %v329_v15 = vsel %vm277_vm1, %v4034_v3, 0.0  ;;  %v4044_v19 = vld [vmem:[%s3861_s14 + $0xe0] sm:$0xff] }
  0x52   : > { %v306_v28 = vadd.f32 %v305_v20, %v304_v24  ;;  %v331_v24 = vsel %vm277_vm1, %v4039_v7, 0.0 }
  0x54   : > { %v308_v32 = vadd.f32 %v307_v25, %v306_v28  ;;  %v4049_v25 = vld [vmem:[%s3861_s14 + $0xe8] sm:$0xff] }
  0x56   : > { %v310_v36 = vadd.f32 %v309_v29, %v308_v32  ;;  %v333_v29 = vsel %vm277_vm1, %v4044_v19, 0.0  ;;  %v4054_v32 = vld [vmem:[%s3861_s14 + $0xf0] sm:$0xff] }
  0x58   : > { %v312_v40 = vadd.f32 %v311_v33, %v310_v36  ;;  %v335_v36 = vsel %vm277_vm1, %v4049_v25, 0.0 }
  0x5a   : > { %v314_v43 = vadd.f32 %v313_v38, %v312_v40  ;;  %v4059_v38 = vld [vmem:[%s3861_s14 + $0xf8] sm:$0xff] }
  0x5c   : > { %v316_v48 = vadd.f32 %v315_v41, %v314_v43  ;;  %v337_v41 = vsel %vm277_vm1, %v4054_v32, 0.0 }
  0x5e   : > { %v318_v51 = vadd.f32 %v317_v46, %v316_v48  ;;  %v339_v46 = vsel %vm277_vm1, %v4059_v38, 0.0 }
  0x60   : > { %v320_v57 = vadd.f32 %v319_v49, %v318_v51 }
  0x62   : > { %v322_v60 = vadd.f32 %v321_v55, %v320_v57 }
  0x64   : > { %v324_v4 = vadd.f32 %v323_v58, %v322_v60 }
  0x66   : > { %v326_v14 = vadd.f32 %v325_v63, %v324_v4 }
  0x68   : > { %v328_v20 = vadd.f32 %v327_v6, %v326_v14 }
  0x6a   : > { %v330_v28 = vadd.f32 %v329_v15, %v328_v20 }
  0x6c   : > { %v332_v33 = vadd.f32 %v331_v24, %v330_v28  ;;  %v839_v28 = vld [vmem:[%s4891_s4] sm:$0xff] }
  0x6e   : > { %v334_v40 = vadd.f32 %v333_v29, %v332_v33  ;;  %v840_v29 = vld [vmem:[%s4891_s4 + $0x8] sm:$0xff]  ;;  %v847_v33 = vand.u32 4294901760, %v839_v28 }
  0x70   : > { %v336_v43 = vadd.f32 %v335_v36, %v334_v40  ;;  %v850_v36 = vand.u32 4294901760, %v840_v29 }
  0x72   : > { %v338_v48 = vadd.f32 %v337_v41, %v336_v43  ;;  %v4108_v40 = vpack.c.bf16 %v850_v36, %v847_v33  ;;  %v927_v41 = vsub.f32 %v839_v28, %v847_v33  ;;  %v934_v43 = vsub.f32 %v840_v29, %v850_v36 }
  0x74   : > { %v340_v49 = vadd.f32 %v339_v46, %v338_v48  ;;  %v841_v46 = vld [vmem:[%s4891_s4 + $0x10] sm:$0xff]  ;;  %v842_v48 = vld [vmem:[%s4891_s4 + $0x18] sm:$0xff]  ;;  %3352 = vmatpush3.bf16.msra.mxu1 %v4108_v40 }
  0x75   : > { %3353 = vmatprep.subr.bf16.mxu1 %v4897_v0 }
  0x76   : > { %v341_v51 = vrot.slane %v340_v49, 4 }
  0x78   : > { %v342_v55 = vadd.f32 %v341_v51, %v340_v49  ;;  %v853_v49 = vand.u32 4294901760, %v841_v46  ;;  %v856_v51 = vand.u32 4294901760, %v842_v48 }
  0x7a   : > { %v343_v57 = vrot.slane %v342_v55, 2 }
  0x7c   : > { %v344_v58 = vadd.f32 %v343_v57, %v342_v55  ;;  %v928_v55 = vand.u32 4294901760, %v927_v41  ;;  %v935_v57 = vand.u32 4294901760, %v934_v43 }
  0x7e   : > { %v345_v60 = vrot.slane %v344_v58, 1 }
  0x80   : > { %v346_v63 = vadd.f32 %v345_v60, %v344_v58  ;;  %v4118_v58 = vpack.c.bf16 %v856_v51, %v853_v49  ;;  %v929_v60 = vsub.f32 %v927_v41, %v928_v55 }
  0x82   : > { %v352_v4 = vsel %vm277_vm1, %v346_v63, 0  ;;  %v936_v63 = vsub.f32 %v934_v43, %v935_v57  ;;  %3355 = vmatpush3.bf16.msra.mxu1 %v4118_v58 }
  0x83   : > { %v423_v6 = vand.u32 4294901760, %v352_v4  ;;  %3356 = vmatprep.subr.bf16.mxu1 %v4897_v0 }
  0x85   : > { %v424_v14 = vsub.f32 %v352_v4, %v423_v6  ;;  %v941_v4 = vsub.f32 %v841_v46, %v853_v49 }
  0x87   : > { %v425_v15 = vand.u32 4294901760, %v424_v14 }
  0x89   : > { %v426_v20 = vsub.f32 %v424_v14, %v425_v15 }
  0x8b   : > { %v427_v24 = vand.u32 4294901760, %v426_v20  ;;  %v942_v20 = vand.u32 4294901760, %v941_v4 }
  0x8d   : > { %3059 = vmatmul.mubr.f32.vlgmr.msra.gmra.mrb[0].mxu0 %v427_v24  ;;  %v943_v29 = vsub.f32 %v941_v4, %v942_v20 }
  0x8e   : > { %3322 = vmatpush3.bf16.msra.mxu0 %v3962_v2  ;;  %3069 = vmatprep.mubr.msk.f32.mxu0 %vm3743_vm0, %v4893_v1 }
  0x8f   : > { %3323 = vmatprep.subr.bf16.mxu0 %v4897_v0  ;;  %v944_v36 = vand.u32 4294901760, %v943_v29 }
  0x92   : > { %3325 = vmatpush3.bf16.msra.mxu0 %v3971_v8 }
  0x93   : > { %3326 = vmatprep.subr.bf16.mxu0 %v4897_v0 }
  0x95   : > { %3070 = vmatmul.mubr.f32.vlgmr.msra.gmra.mrb[0].mxu0 %v423_v6 }
  0x96   : > { %3328 = vmatpush3.bf16.msra.mxu0 %v3941_v44  ;;  %3080 = vmatprep.mubr.msk.f32.mxu0 %vm3743_vm0, %v4893_v1 }
  0x97   : > { %3329 = vmatprep.subr.bf16.mxu0 %v4897_v0 }
  0x9a   : > { %3331 = vmatpush3.bf16.msra.mxu0 %v3948_v52 }
  0x9b   : > { %3332 = vmatprep.subr.bf16.mxu0 %v4897_v0 }
  0x9d   : > { %3081 = vmatmul.mubr.f32.vlgmr.msra.gmra.mrb[0].mxu0 %v424_v14  ;;  %v930_v14 = vand.u32 4294901760, %v929_v60 }
  0x9e   : > { %3334 = vmatpush3.bf16.msra.mxu0 %v3901_v16  ;;  %3091 = vmatprep.mubr.msk.f32.mxu0 %vm3743_vm0, %v4893_v1 }
  0x9f   : > { %3335 = vmatprep.subr.bf16.mxu0 %v4897_v0 }
  0xa2   : > { %3337 = vmatpush3.bf16.msra.mxu0 %v3911_v21 }
  0xa3   : > { %3338 = vmatprep.subr.bf16.mxu0 %v4897_v0 }
  0xa5   : > { %3092 = vmatmul.mubr.f32.vlgmr.msra.gmra.mrb[0].mxu0 %v425_v15  ;;  %v937_v15 = vand.u32 4294901760, %v936_v63 }
  0xa6   : > { %3340 = vmatpush3.bf16.msra.mxu0 %v3950_v53  ;;  %3102 = vmatprep.mubr.msk.f32.mxu0 %vm3743_vm0, %v4893_v1  ;;  %v4126_v53 = vpack.c.bf16 %v934_v43, %v927_v41  ;;  %v4915_v41 = vmov 0.0|0.0  }
  0xa7   : > { %3341 = vmatprep.subr.bf16.mxu0 %v4897_v0  ;;  %v4122_v28 = vpack.c.bf16 %v937_v15, %v930_v14 }
  0xaa   : > { %3343 = vmatpush3.bf16.msra.mxu0 %v3957_v61 }
  0xab   : > { %3344 = vmatprep.subr.bf16.mxu0 %v4897_v0 }
  0xad   : > { %3103 = vmatmul.mubr.f32.vlgmr.msra.gmra.mrb[0].mxu0 %v423_v6 }
  0xae   : > { %3346 = vmatpush3.bf16.msra.mxu0 %v3901_v16  ;;  %3113 = vmatprep.mubr.msk.f32.mxu0 %vm3743_vm0, %v4893_v1 }
  0xaf   : > { %3347 = vmatprep.subr.bf16.mxu0 %v4897_v0 }
  0xb2   : > { %3349 = vmatpush3.bf16.msra.mxu0 %v3911_v21 }
  0xb3   : > { %3386 = vmatprep.subr.bf16.mxu0 %v4897_v0 }
  0xb5   : > { %3114 = vmatmul.mubr.f32.vlgmr.msra.gmra.mrb[0].mxu0 %v423_v6  ;;  %v948_v6 = vsub.f32 %v842_v48, %v856_v51  ;;  %v4130_v48 = vpack.c.bf16 %v935_v57, %v928_v55 }
  0xb6   : > { %3388 = vmatpush3.bf16.msra.mxu0 %v3901_v16  ;;  %3190 = vmatprep.mubr.msk.f32.mxu0 %vm3743_vm0, %v4893_v1 }
  0xb7   : > { %3389 = vmatprep.subr.bf16.mxu0 %v4897_v0  ;;  %v949_v24 = vand.u32 4294901760, %v948_v6  ;;  %v4128_v46 = vpack.c.bf16 %v948_v6, %v941_v4 }
  0xb9   : > { %v950_v33 = vsub.f32 %v948_v6, %v949_v24  ;;  %v4132_v49 = vpack.c.bf16 %v949_v24, %v942_v20 }
  0xba   : > { %3391 = vmatpush3.bf16.msra.mxu0 %v3911_v21 }
  0xbb   : > { %3392 = vmatprep.subr.bf16.mxu0 %v4897_v0  ;;  %v951_v1 = vand.u32 4294901760, %v950_v33 }
  0xbd   : > { %v4124_v61 = vpack.c.bf16 %v951_v1, %v944_v36  ;;  %v4914_v1 = vmov 0.0  }
 0x188   : > { %v835_v51 = vpop.f32.mrb[0].mxu0 }
 0x189   : > { %v844_v60 = vsel %vm277_vm1, %v835_v51, 0  ;;  %v3115_v63 = vpop.f32.mrb[1].mxu0 }
 0x18a   : > { %v915_v14 = vand.u32 4294901760, %v844_v60 }
 0x18c   : > { %v916_v15 = vsub.f32 %v844_v60, %v915_v14 }
 0x18e   : > { %v917_v0 = vand.u32 4294901760, %v916_v15 }
 0x190   : > { %v918_v21 = vsub.f32 %v916_v15, %v917_v0 }
 0x192   : > { %v919_v29 = vand.u32 4294901760, %v918_v21 }
 0x194   : > { %3125 = vmatmul.mubr.f32.vlgmr.msra.gmra.mrb[0].mxu1 %v919_v29 }
 0x195   : > { %3358 = vmatpush3.bf16.msra.mxu1 %v4122_v28  ;;  %3135 = vmatprep.mubr.msk.f32.mxu1 %vm3743_vm0, %v4914_v1 }
 0x196   : > { %3359 = vmatprep.subr.bf16.mxu1 %v4915_v41 }
 0x199   : > { %3361 = vmatpush3.bf16.msra.mxu1 %v4124_v61 }
 0x19a   : > { %3362 = vmatprep.subr.bf16.mxu1 %v4915_v41 }
 0x19c   : > { %3136 = vmatmul.mubr.f32.vlgmr.msra.gmra.mrb[0].mxu1 %v915_v14 }
 0x19d   : > { %3364 = vmatpush3.bf16.msra.mxu1 %v4126_v53  ;;  %3146 = vmatprep.mubr.msk.f32.mxu1 %vm3743_vm0, %v4914_v1 }
 0x19e   : > { %3365 = vmatprep.subr.bf16.mxu1 %v4915_v41 }
 0x1a1   : > { %3367 = vmatpush3.bf16.msra.mxu1 %v4128_v46 }
 0x1a2   : > { %3368 = vmatprep.subr.bf16.mxu1 %v4915_v41 }
 0x1a4   : > { %3147 = vmatmul.mubr.f32.vlgmr.msra.gmra.mrb[0].mxu1 %v916_v15 }
 0x1a5   : > { %3370 = vmatpush3.bf16.msra.mxu1 %v4108_v40  ;;  %3157 = vmatprep.mubr.msk.f32.mxu1 %vm3743_vm0, %v4914_v1 }
 0x1a6   : > { %3371 = vmatprep.subr.bf16.mxu1 %v4915_v41 }
 0x1a9   : > { %3373 = vmatpush3.bf16.msra.mxu1 %v4118_v58 }
 0x1aa   : > { %3374 = vmatprep.subr.bf16.mxu1 %v4915_v41 }
 0x1ac   : > { %3158 = vmatmul.mubr.f32.vlgmr.msra.gmra.mrb[0].mxu1 %v917_v0  ;;  %v1331_v0 = vlaneseq }
 0x1ad   : > { %3376 = vmatpush3.bf16.msra.mxu1 %v4130_v48  ;;  %3168 = vmatprep.mubr.msk.f32.mxu1 %vm3743_vm0, %v4914_v1 }
 0x1ae   : > { %3377 = vmatprep.subr.bf16.mxu1 %v4915_v41  ;;  %v4171_v21 = vshrl.u32 %v1331_v0, 7 }
 0x1b0   : > { %v4901_v57 = vsub.s32 0, %v4171_v21 }
 0x1b1   : > { %3379 = vmatpush3.bf16.msra.mxu1 %v4132_v49 }
 0x1b2   : > { %3380 = vmatprep.subr.bf16.mxu1 %v4915_v41 }
 0x1b4   : > { %3169 = vmatmul.mubr.f32.vlgmr.msra.gmra.mrb[0].mxu1 %v915_v14 }
 0x1b5   : > { %3382 = vmatpush3.bf16.msra.mxu1 %v4108_v40  ;;  %3179 = vmatprep.mubr.msk.f32.mxu1 %vm3743_vm0, %v4914_v1 }
 0x1b6   : > { %3383 = vmatprep.subr.bf16.mxu1 %v4915_v41 }
 0x1b9   : > { %3385 = vmatpush3.bf16.msra.mxu1 %v4118_v58 }
 0x1ba   : > { %3422 = vmatprep.subr.bf16.mxu1 %v4915_v41 }
 0x1bc   : > { %3180 = vmatmul.mubr.f32.vlgmr.msra.gmra.mrb[0].mxu1 %v915_v14 }
 0x1bd   : > { %3424 = vmatpush3.bf16.msra.mxu1 %v4108_v40  ;;  %3256 = vmatprep.mubr.msk.f32.mxu1 %vm3743_vm0, %v4914_v1 }
 0x1be   : > { %3425 = vmatprep.subr.bf16.mxu1 %v4915_v41 }
 0x1c1   : > { %3427 = vmatpush3.bf16.msra.mxu1 %v4118_v58 }
 0x1c2   : > { %3428 = vmatprep.subr.bf16.mxu1 %v4915_v41 }
 0x28f   : > { %v1327_v43 = vpop.f32.mrb[0].mxu1 }
 0x290   : > { %v3181_v55 = vpop.f32.mrb[1].mxu1  ;;  %v4176_v4 = vrot.slane %v1327_v43, %v4901_v57 }
 0x292   : > { %v4180_v6 = vsub.f32 %v3886_v9, %v4176_v4  ;;  %v4184_v20 = vsub.f32 %v3889_v10, %v4176_v4  ;;  %v4188_v24 = vsub.f32 %v3892_v12, %v4176_v4  ;;  %v4192_v33 = vsub.f32 %v3895_v13, %v4176_v4 }
 0x293   : > { %v4200_v9 = vsub.f32 %v3904_v17, %v4176_v4  ;;  %v4206_v12 = vsub.f32 %v3914_v22, %v4176_v4  ;;  %v4214_v15 = vsub.f32 %v3920_v26, %v4176_v4  ;;  %v4221_v22 = vsub.f32 %v3926_v30, %v4176_v4 }
 0x294   : > { %v1367_v36 = vmul.f32 %v4180_v6, %v4180_v6  ;;  %v1368_v51 = vmul.f32 %v4184_v20, %v4184_v20  ;;  %v1369_v10 = vmul.f32 %v4188_v24, %v4188_v24  ;;  %v1370_v13 = vmul.f32 %v4192_v33, %v4192_v33 }
 0x295   : > { %v1371_v17 = vmul.f32 %v4200_v9, %v4200_v9  ;;  %v1372_v43 = vmul.f32 %v4206_v12, %v4206_v12  ;;  %v4228_v26 = vsub.f32 %v3932_v34, %v4176_v4  ;;  %v4235_v30 = vsub.f32 %v3937_v37, %v4176_v4 }
 0x296   : > { %v1399_v60 = vsel %vm277_vm1, %v1367_v36, 0.0  ;;  %v1400_v63 = vsel %vm277_vm1, %v1368_v51, 0.0  ;;  %v1402_v29 = vsel %vm277_vm1, %v1369_v10, 0.0  ;;  %v1404_v55 = vsel %vm277_vm1, %v1370_v13, 0.0 }
 0x297   : > { %v1401_v14 = vadd.f32 %v1400_v63, %v1399_v60  ;;  %v1373_v51 = vmul.f32 %v4214_v15, %v4214_v15  ;;  %v1406_v10 = vsel %vm277_vm1, %v1371_v17, 0.0  ;;  %v1374_v63 = vmul.f32 %v4221_v22, %v4221_v22 }
 0x298   : > { %v1408_v13 = vsel %vm277_vm1, %v1372_v43, 0.0  ;;  %v4242_v34 = vsub.f32 %v3944_v45, %v4176_v4  ;;  %v4249_v37 = vsub.f32 %v3953_v54, %v4176_v4  ;;  %v4256_v45 = vsub.f32 %v3960_v62, %v4176_v4 }
 0x299   : > { %v1403_v0 = vadd.f32 %v1402_v29, %v1401_v14  ;;  %v1375_v29 = vmul.f32 %v4228_v26, %v4228_v26  ;;  %v1410_v17 = vsel %vm277_vm1, %v1373_v51, 0.0  ;;  %v1412_v43 = vsel %vm277_vm1, %v1374_v63, 0.0 }
 0x29a   : > { %v4263_v54 = vsub.f32 %v3967_v5, %v4176_v4  ;;  %v4270_v62 = vsub.f32 %v3974_v11, %v4176_v4  ;;  %v4277_v5 = vsub.f32 %v3979_v18, %v4176_v4  ;;  %v4284_v11 = vsub.f32 %v3984_v23, %v4176_v4 }
 0x29b   : > { %v1405_v36 = vadd.f32 %v1404_v55, %v1403_v0  ;;  %v1376_v55 = vmul.f32 %v4235_v30, %v4235_v30  ;;  %v1414_v51 = vsel %vm277_vm1, %v1375_v29, 0.0  ;;  %v4291_v18 = vsub.f32 %v3989_v27, %v4176_v4 }
 0x29c   : > { %v4298_v23 = vsub.f32 %v3994_v31, %v4176_v4  ;;  %v4305_v27 = vsub.f32 %v3999_v35, %v4176_v4  ;;  %v4312_v31 = vsub.f32 %v4004_v39, %v4176_v4  ;;  %v4319_v35 = vsub.f32 %v4009_v42, %v4176_v4 }
 0x29d   : > { %v1407_v60 = vadd.f32 %v1406_v10, %v1405_v36  ;;  %v1377_v10 = vmul.f32 %v4242_v34, %v4242_v34  ;;  %v1416_v63 = vsel %vm277_vm1, %v1376_v55, 0.0  ;;  %v4326_v39 = vsub.f32 %v4014_v47, %v4176_v4 }
 0x29e   : > { %v4333_v42 = vsub.f32 %v4019_v50, %v4176_v4  ;;  %v4340_v47 = vsub.f32 %v4024_v56, %v4176_v4  ;;  %v4347_v50 = vsub.f32 %v4029_v59, %v4176_v4  ;;  %v4354_v56 = vsub.f32 %v4034_v3, %v4176_v4 }
 0x29f   : > { %v1409_v14 = vadd.f32 %v1408_v13, %v1407_v60  ;;  %v1378_v13 = vmul.f32 %v4249_v37, %v4249_v37  ;;  %v1418_v29 = vsel %vm277_vm1, %v1377_v10, 0.0  ;;  %v4361_v59 = vsub.f32 %v4039_v7, %v4176_v4 }
 0x2a0   : > { %v4368_v3 = vsub.f32 %v4044_v19, %v4176_v4  ;;  %v4375_v7 = vsub.f32 %v4049_v25, %v4176_v4  ;;  %v4382_v19 = vsub.f32 %v4054_v32, %v4176_v4  ;;  %v4389_v25 = vsub.f32 %v4059_v38, %v4176_v4 }
 0x2a1   : > { %v1411_v0 = vadd.f32 %v1410_v17, %v1409_v14  ;;  %v1379_v17 = vmul.f32 %v4256_v45, %v4256_v45  ;;  %v1420_v55 = vsel %vm277_vm1, %v1378_v13, 0.0  ;;  %4916 = vst [vmem:[#allocation8_spill] sm:$0xff] %v4361_v59 }
 0x2a2   : > { %4917 = vst [vmem:[#allocation9_spill] sm:$0xff] %v4368_v3  ;;  %4918 = vst [vmem:[#allocation10_spill] sm:$0xff] %v4375_v7  ;;  %v1397_v32 = vmul.f32 %v4382_v19, %v4382_v19 }
 0x2a3   : > { %v1413_v36 = vadd.f32 %v1412_v43, %v1411_v0  ;;  %v1380_v43 = vmul.f32 %v4263_v54, %v4263_v54  ;;  %v1422_v10 = vsel %vm277_vm1, %v1379_v17, 0.0  ;;  %4919 = vst [vmem:[#allocation11_spill] sm:$0xff] %v4382_v19  ;;  %4920 = vst [vmem:[#allocation12_spill] sm:$0xff] %v4389_v25 }
 0x2a4   : > { %v1458_v38 = vsel %vm277_vm1, %v1397_v32, 0.0 }
 0x2a5   : > { %v1415_v60 = vadd.f32 %v1414_v51, %v1413_v36  ;;  %v1381_v51 = vmul.f32 %v4270_v62, %v4270_v62  ;;  %v1424_v13 = vsel %vm277_vm1, %v1380_v43, 0.0 }
 0x2a7   : > { %v1417_v14 = vadd.f32 %v1416_v63, %v1415_v60  ;;  %v1382_v63 = vmul.f32 %v4277_v5, %v4277_v5  ;;  %v1426_v17 = vsel %vm277_vm1, %v1381_v51, 0.0 }
 0x2a9   : > { %v1419_v0 = vadd.f32 %v1418_v29, %v1417_v14  ;;  %v1383_v29 = vmul.f32 %v4284_v11, %v4284_v11  ;;  %v1428_v43 = vsel %vm277_vm1, %v1382_v63, 0.0 }
 0x2ab   : > { %v1421_v36 = vadd.f32 %v1420_v55, %v1419_v0  ;;  %v1384_v55 = vmul.f32 %v4291_v18, %v4291_v18  ;;  %v1430_v51 = vsel %vm277_vm1, %v1383_v29, 0.0 }
 0x2ad   : > { %v1423_v60 = vadd.f32 %v1422_v10, %v1421_v36  ;;  %v1385_v10 = vmul.f32 %v4298_v23, %v4298_v23  ;;  %v1432_v63 = vsel %vm277_vm1, %v1384_v55, 0.0 }
 0x2af   : > { %v1425_v14 = vadd.f32 %v1424_v13, %v1423_v60  ;;  %v1386_v13 = vmul.f32 %v4305_v27, %v4305_v27  ;;  %v1434_v29 = vsel %vm277_vm1, %v1385_v10, 0.0 }
 0x2b1   : > { %v1427_v0 = vadd.f32 %v1426_v17, %v1425_v14  ;;  %v1387_v17 = vmul.f32 %v4312_v31, %v4312_v31  ;;  %v1436_v55 = vsel %vm277_vm1, %v1386_v13, 0.0 }
 0x2b3   : > { %v1429_v36 = vadd.f32 %v1428_v43, %v1427_v0  ;;  %v1388_v43 = vmul.f32 %v4319_v35, %v4319_v35  ;;  %v1438_v10 = vsel %vm277_vm1, %v1387_v17, 0.0 }
 0x2b5   : > { %v1431_v60 = vadd.f32 %v1430_v51, %v1429_v36  ;;  %v1389_v51 = vmul.f32 %v4326_v39, %v4326_v39  ;;  %v1440_v13 = vsel %vm277_vm1, %v1388_v43, 0.0 }
 0x2b7   : > { %v1433_v14 = vadd.f32 %v1432_v63, %v1431_v60  ;;  %v1390_v63 = vmul.f32 %v4333_v42, %v4333_v42  ;;  %v1442_v17 = vsel %vm277_vm1, %v1389_v51, 0.0 }
 0x2b9   : > { %v1435_v0 = vadd.f32 %v1434_v29, %v1433_v14  ;;  %v1391_v29 = vmul.f32 %v4340_v47, %v4340_v47  ;;  %v1444_v43 = vsel %vm277_vm1, %v1390_v63, 0.0 }
 0x2bb   : > { %v1437_v36 = vadd.f32 %v1436_v55, %v1435_v0  ;;  %v1392_v55 = vmul.f32 %v4347_v50, %v4347_v50  ;;  %v1446_v51 = vsel %vm277_vm1, %v1391_v29, 0.0 }
 0x2bd   : > { %v1439_v60 = vadd.f32 %v1438_v10, %v1437_v36  ;;  %v1393_v10 = vmul.f32 %v4354_v56, %v4354_v56  ;;  %v1448_v63 = vsel %vm277_vm1, %v1392_v55, 0.0 }
 0x2bf   : > { %v1441_v14 = vadd.f32 %v1440_v13, %v1439_v60  ;;  %v1394_v13 = vmul.f32 %v4361_v59, %v4361_v59  ;;  %v1450_v29 = vsel %vm277_vm1, %v1393_v10, 0.0  ;;  %v1398_v10 = vmul.f32 %v4389_v25, %v4389_v25 }
 0x2c1   : > { %v1443_v0 = vadd.f32 %v1442_v17, %v1441_v14  ;;  %v1395_v17 = vmul.f32 %v4368_v3, %v4368_v3  ;;  %v1452_v55 = vsel %vm277_vm1, %v1394_v13, 0.0 }
 0x2c3   : > { %v1445_v36 = vadd.f32 %v1444_v43, %v1443_v0  ;;  %v1396_v43 = vmul.f32 %v4375_v7, %v4375_v7 }
 0x2c5   : > { %v1447_v60 = vadd.f32 %v1446_v51, %v1445_v36  ;;  %v1454_v51 = vsel %vm277_vm1, %v1395_v17, 0.0 }
 0x2c7   : > { %v1449_v14 = vadd.f32 %v1448_v63, %v1447_v60  ;;  %v1456_v63 = vsel %vm277_vm1, %v1396_v43, 0.0 }
 0x2c9   : > { %v1451_v0 = vadd.f32 %v1450_v29, %v1449_v14  ;;  %v1460_v29 = vsel %vm277_vm1, %v1398_v10, 0.0 }
 0x2cb   : > { %v1453_v36 = vadd.f32 %v1452_v55, %v1451_v0 }
 0x2cd   : > { %v1455_v60 = vadd.f32 %v1454_v51, %v1453_v36 }
 0x2cf   : > { %v1457_v14 = vadd.f32 %v1456_v63, %v1455_v60 }
 0x2d1   : > { %v1459_v4 = vadd.f32 %v1458_v38, %v1457_v14 }
 0x2d3   : > { %v1461_v57 = vadd.f32 %v1460_v29, %v1459_v4 }
 0x2d5   : > { %v1462_v13 = vrot.slane %v1461_v57, 4 }
 0x2d7   : > { %v1463_v0 = vadd.f32 %v1462_v13, %v1461_v57 }
 0x2d9   : > { %v1464_v55 = vrot.slane %v1463_v0, 2 }
 0x2db   : > { %v1465_v7 = vadd.f32 %v1464_v55, %v1463_v0 }
 0x2dd   : > { %v1466_v19 = vrot.slane %v1465_v7, 1 }
 0x2df   : > { %v1467_v3 = vadd.f32 %v1466_v19, %v1465_v7 }
 0x2e1   : > { %v1469_v17 = vsel %vm277_vm1, %v1467_v3, 0 }
 0x2e2   : > { %v1540_v36 = vand.u32 4294901760, %v1469_v17 }
 0x2e4   : > { %v1541_v51 = vsub.f32 %v1469_v17, %v1540_v36 }
 0x2e6   : > { %v1542_v25 = vand.u32 4294901760, %v1541_v51 }
 0x2e8   : > { %v1543_v59 = vsub.f32 %v1541_v51, %v1542_v25 }
 0x2ea   : > { %v1544_v43 = vand.u32 4294901760, %v1543_v59 }
 0x2ec   : > { %3191 = vmatmul.mubr.f32.vlgmr.msra.gmra.mrb[2].mxu0 %v1544_v43  ;;  %v4927_v43 = vld [vmem:[#allocation10_spill] sm:$0xff] }
 0x2ed   : > { %3394 = vmatpush3.bf16.msra.mxu0 %v3962_v2  ;;  %3201 = vmatprep.mubr.msk.f32.mxu0 %vm3743_vm0, %v4914_v1  ;;  %v4921_v2 = vld [vmem:[#allocation5_spill] sm:$0xff] }
 0x2ee   : > { %3395 = vmatprep.subr.bf16.mxu0 %v4915_v41 }
 0x2f1   : > { %3397 = vmatpush3.bf16.msra.mxu0 %v3971_v8 }
 0x2f2   : > { %3398 = vmatprep.subr.bf16.mxu0 %v4915_v41 }
 0x2f4   : > { %3202 = vmatmul.mubr.f32.vlgmr.msra.gmra.mrb[2].mxu0 %v1540_v36 }
 0x2f5   : > { %3400 = vmatpush3.bf16.msra.mxu0 %v3941_v44  ;;  %3212 = vmatprep.mubr.msk.f32.mxu0 %vm3743_vm0, %v4914_v1  ;;  %v4922_v44 = vld [vmem:[#allocation6_spill] sm:$0xff] }
 0x2f6   : > { %3401 = vmatprep.subr.bf16.mxu0 %v4915_v41 }
 0x2f9   : > { %3403 = vmatpush3.bf16.msra.mxu0 %v3948_v52  ;;  %v4923_v52 = vld [vmem:[#allocation7_spill] sm:$0xff] }
 0x2fa   : > { %3404 = vmatprep.subr.bf16.mxu0 %v4915_v41 }
 0x2fc   : > { %3213 = vmatmul.mubr.f32.vlgmr.msra.gmra.mrb[2].mxu0 %v1541_v51 }
 0x2fd   : > { %3406 = vmatpush3.bf16.msra.mxu0 %v3901_v16  ;;  %3223 = vmatprep.mubr.msk.f32.mxu0 %vm3743_vm0, %v4914_v1 }
 0x2fe   : > { %3407 = vmatprep.subr.bf16.mxu0 %v4915_v41 }
 0x301   : > { %3409 = vmatpush3.bf16.msra.mxu0 %v4921_v2 }
 0x302   : > { %3410 = vmatprep.subr.bf16.mxu0 %v4915_v41 }
 0x304   : > { %3224 = vmatmul.mubr.f32.vlgmr.msra.gmra.mrb[2].mxu0 %v1542_v25 }
 0x305   : > { %3412 = vmatpush3.bf16.msra.mxu0 %v4922_v44  ;;  %3234 = vmatprep.mubr.msk.f32.mxu0 %vm3743_vm0, %v4914_v1 }
 0x306   : > { %3413 = vmatprep.subr.bf16.mxu0 %v4915_v41 }
 0x309   : > { %3415 = vmatpush3.bf16.msra.mxu0 %v4923_v52 }
 0x30a   : > { %3416 = vmatprep.subr.bf16.mxu0 %v4915_v41 }
 0x30c   : > { %3235 = vmatmul.mubr.f32.vlgmr.msra.gmra.mrb[2].mxu0 %v1540_v36 }
 0x30d   : > { %3418 = vmatpush3.bf16.msra.mxu0 %v3901_v16  ;;  %3245 = vmatprep.mubr.msk.f32.mxu0 %vm3743_vm0, %v4914_v1 }
 0x30e   : > { %3419 = vmatprep.subr.bf16.mxu0 %v4915_v41 }
 0x311   : > { %3421 = vmatpush3.bf16.msra.mxu0 %v4921_v2 }
 0x314   : > { %3246 = vmatmul.mubr.f32.vlgmr.msra.gmra.mrb[2].mxu0 %v1540_v36  ;;  %v4926_v36 = vld [vmem:[#allocation9_spill] sm:$0xff] }
 0x3e7   : > { %v1952_v8 = vpop.f32.mrb[2].mxu0 }
 0x3e8   : > { %v1957_v57 = vsel %vm277_vm1, %v1952_v8, 0  ;;  %v3247_v59 = vpop.f32.mrb[3].mxu0 }
 0x3e9   : > { %v2028_v3 = vand.u32 4294901760, %v1957_v57 }
 0x3eb   : > { %v2029_v7 = vsub.f32 %v1957_v57, %v2028_v3 }
 0x3ed   : > { %v2030_v19 = vand.u32 4294901760, %v2029_v7 }
 0x3ef   : > { %v2031_v25 = vsub.f32 %v2029_v7, %v2030_v19 }
 0x3f1   : > { %v2032_v32 = vand.u32 4294901760, %v2031_v25 }
 0x3f3   : > { %3257 = vmatmul.mubr.f32.vlgmr.msra.gmra.mrb[2].mxu1 %v2032_v32 }
 0x3f4   : > { %3430 = vmatpush3.bf16.msra.mxu1 %v4122_v28  ;;  %3267 = vmatprep.mubr.msk.f32.mxu1 %vm3743_vm0, %v4914_v1 }
 0x3f5   : > { %3431 = vmatprep.subr.bf16.mxu1 %v4915_v41 }
 0x3f8   : > { %3433 = vmatpush3.bf16.msra.mxu1 %v4124_v61 }
 0x3f9   : > { %3434 = vmatprep.subr.bf16.mxu1 %v4915_v41 }
 0x3fb   : > { %3268 = vmatmul.mubr.f32.vlgmr.msra.gmra.mrb[2].mxu1 %v2028_v3 }
 0x3fc   : > { %3436 = vmatpush3.bf16.msra.mxu1 %v4126_v53  ;;  %3278 = vmatprep.mubr.msk.f32.mxu1 %vm3743_vm0, %v4914_v1 }
 0x3fd   : > { %3437 = vmatprep.subr.bf16.mxu1 %v4915_v41 }
 0x400   : > { %3439 = vmatpush3.bf16.msra.mxu1 %v4128_v46  ;;  %v4924_v46 = vsub.s32 0, %v4171_v21  ;;  %v4475_v21 = vld [vmem:[%s4888_s1] ss:$0 sm:$0xff] }
 0x401   : > { %3440 = vmatprep.subr.bf16.mxu1 %v4915_v41 }
 0x403   : > { %3279 = vmatmul.mubr.f32.vlgmr.msra.gmra.mrb[2].mxu1 %v2029_v7 }
 0x404   : > { %3442 = vmatpush3.bf16.msra.mxu1 %v4108_v40  ;;  %3289 = vmatprep.mubr.msk.f32.mxu1 %vm3743_vm0, %v4914_v1 }
 0x405   : > { %3443 = vmatprep.subr.bf16.mxu1 %v4915_v41 }
 0x408   : > { %3445 = vmatpush3.bf16.msra.mxu1 %v4118_v58 }
 0x409   : > { %3446 = vmatprep.subr.bf16.mxu1 %v4915_v41 }
 0x40b   : > { %3290 = vmatmul.mubr.f32.vlgmr.msra.gmra.mrb[2].mxu1 %v2030_v19 }
 0x40c   : > { %3448 = vmatpush3.bf16.msra.mxu1 %v4130_v48  ;;  %3300 = vmatprep.mubr.msk.f32.mxu1 %vm3743_vm0, %v4914_v1 }
 0x40d   : > { %3449 = vmatprep.subr.bf16.mxu1 %v4915_v41 }
 0x410   : > { %3451 = vmatpush3.bf16.msra.mxu1 %v4132_v49 }
 0x411   : > { %3452 = vmatprep.subr.bf16.mxu1 %v4915_v41 }
 0x413   : > { %3301 = vmatmul.mubr.f32.vlgmr.msra.gmra.mrb[2].mxu1 %v2028_v3 }
 0x414   : > { %3454 = vmatpush3.bf16.msra.mxu1 %v4108_v40  ;;  %3311 = vmatprep.mubr.msk.f32.mxu1 %vm3743_vm0, %v4914_v1 }
 0x415   : > { %3455 = vmatprep.subr.bf16.mxu1 %v4915_v41 }
 0x418   : > { %3457 = vmatpush3.bf16.msra.mxu1 %v4118_v58 }
 0x41b   : > { %3312 = vmatmul.mubr.f32.vlgmr.msra.gmra.mrb[2].mxu1 %v2028_v3 }
 0x4ee   : > { %v2440_v16 = vpop.f32.mrb[2].mxu1 }
 0x4ef   : > { %v3313_v53 = vpop.f32.mrb[3].mxu1  ;;  %v3458_v61 = vadd.f32 1e-05, %v2440_v16  ;;  %v4929_v16 = vld [vmem:[#allocation12_spill] sm:$0xff] }
 0x4f1   : > { %3543 = vrsqrt.f32 %v3458_v61 }
 0x4fb   : > { %v3544_v28 = vpop.eup %3543 }
 0x4fc   : > { %v2448_v48 = vrot.slane %v3544_v28, %v4924_v46 }
 0x4fe   : > { %v2449_v49 = vmul.f32 %v2448_v48, %v4180_v6  ;;  %v2450_v40 = vmul.f32 %v2448_v48, %v4184_v20  ;;  %v2451_v60 = vmul.f32 %v2448_v48, %v4188_v24  ;;  %v2452_v1 = vmul.f32 %v2448_v48, %v4192_v33 }
 0x4ff   : > { %v2453_v41 = vmul.f32 %v2448_v48, %v4200_v9  ;;  %v2454_v58 = vmul.f32 %v2448_v48, %v4206_v12  ;;  %v2455_v10 = vmul.f32 %v2448_v48, %v4214_v15  ;;  %v2456_v63 = vmul.f32 %v2448_v48, %v4221_v22 }
 0x500   : > { %v2457_v6 = vmul.f32 %v2448_v48, %v4228_v26  ;;  %v2458_v20 = vmul.f32 %v2448_v48, %v4235_v30  ;;  %v2459_v24 = vmul.f32 %v2448_v48, %v4242_v34  ;;  %v2460_v33 = vmul.f32 %v2448_v48, %v4249_v37 }
 0x501   : > { %v2461_v9 = vmul.f32 %v2448_v48, %v4256_v45  ;;  %v2462_v12 = vmul.f32 %v2448_v48, %v4263_v54  ;;  %v2463_v15 = vmul.f32 %v2448_v48, %v4270_v62  ;;  %v2464_v22 = vmul.f32 %v2448_v48, %v4277_v5  ;;  %v4498_v62 = vld [vmem:[%s4889_s2] ss:$0 sm:$0xff] }
 0x502   : > { %v2465_v14 = vmul.f32 %v2448_v48, %v4284_v11  ;;  %v2488_v38 = vmul.f32 %v4475_v21, %v2449_v49  ;;  %v2489_v26 = vmul.f32 %v4475_v21, %v2450_v40  ;;  %v2490_v30 = vmul.f32 %v4475_v21, %v2451_v60 }
 0x503   : > { %v2466_v34 = vmul.f32 %v2448_v48, %v4291_v18  ;;  %v2467_v37 = vmul.f32 %v2448_v48, %v4298_v23  ;;  %v4492_v45 = vmul.f32 %v2448_v48, %v4305_v27  ;;  %v2491_v54 = vmul.f32 %v4475_v21, %v2452_v1 }
 0x504   : > { %v4501_v5 = vmul.f32 %v2448_v48, %v4312_v31  ;;  %v4504_v11 = vmul.f32 %v2448_v48, %v4319_v35  ;;  %v4507_v18 = vmul.f32 %v2448_v48, %v4326_v39  ;;  %v2492_v23 = vmul.f32 %v4475_v21, %v2453_v41 }
 0x505   : > { %v4511_v27 = vmul.f32 %v2448_v48, %v4333_v42  ;;  %v4514_v4 = vmul.f32 %v2448_v48, %v4340_v47  ;;  %v4517_v29 = vmul.f32 %v2448_v48, %v4347_v50  ;;  %v2493_v31 = vmul.f32 %v4475_v21, %v2454_v58  ;;  %v4925_v47 = vld [vmem:[#allocation8_spill] sm:$0xff] }
 0x506   : > { %v2494_v13 = vmul.f32 %v4475_v21, %v2455_v10  ;;  %v4522_v35 = vadd.f32 %v4498_v62, %v2488_v38  ;;  %v4525_v39 = vadd.f32 %v4498_v62, %v2489_v26  ;;  %v4528_v0 = vadd.f32 %v4498_v62, %v2490_v30 }
 0x507   : > { %v4531_v42 = vmul.f32 %v2448_v48, %v4354_v56  ;;  %v4534_v55 = vmul.f32 %v2448_v48, %v4925_v47  ;;  %v2495_v50 = vmul.f32 %v4475_v21, %v2456_v63  ;;  %v4538_v17 = vadd.f32 %v4498_v62, %v2491_v54  ;;  %v4928_v56 = vld [vmem:[#allocation11_spill] sm:$0xff] }
 0x508   : > { %v4541_v51 = vmul.f32 %v2448_v48, %v4926_v36  ;;  %v4544_v2 = vmul.f32 %v2448_v48, %v4927_v43  ;;  %v2496_v44 = vmul.f32 %v4475_v21, %v2457_v6  ;;  %v4548_v52 = vadd.f32 %v4498_v62, %v2492_v23 }
 0x509   : > { %v4551_v8 = vmul.f32 %v2448_v48, %v4928_v56  ;;  %v2497_v57 = vmul.f32 %v4475_v21, %v2458_v20  ;;  %v2498_v59 = vmul.f32 %v4475_v21, %v2459_v24  ;;  %v4556_v3 = vadd.f32 %v4498_v62, %v2493_v31 }
 0x50a   : > { %v4559_v7 = vadd.f32 %v4498_v62, %v2494_v13  ;;  %v2894_v19 = vmul.f32 -1.442695, %v4522_v35  ;;  %v2895_v25 = vmul.f32 -1.442695, %v4525_v39  ;;  %v2896_v32 = vmul.f32 -1.442695, %v4528_v0 }
 0x50b   : > { %v4565_v53 = vmul.f32 %v2448_v48, %v4929_v16  ;;  %v2499_v61 = vmul.f32 %v4475_v21, %v2460_v33  ;;  %v4569_v28 = vadd.f32 %v4498_v62, %v2495_v50  ;;  %v2897_v46 = vmul.f32 -1.442695, %v4538_v17 }
 0x50c   : > { %v2500_v49 = vmul.f32 %v4475_v21, %v2461_v9  ;;  %v4574_v40 = vadd.f32 %v4498_v62, %v2496_v44  ;;  %3545 = vpow2.f32 %v2894_v19  ;;  %v2898_v60 = vmul.f32 -1.442695, %v4548_v52 }
 0x50d   : > { %v2501_v1 = vmul.f32 %v4475_v21, %v2462_v12  ;;  %v4579_v48 = vadd.f32 %v4498_v62, %v2497_v57  ;;  %3547 = vpow2.f32 %v2895_v25  ;;  %v2899_v41 = vmul.f32 -1.442695, %v4556_v3 }
 0x50e   : > { %v2502_v58 = vmul.f32 %v4475_v21, %v2463_v15  ;;  %v4584_v10 = vadd.f32 %v4498_v62, %v2498_v59  ;;  %3549 = vpow2.f32 %v2896_v32  ;;  %v2900_v63 = vmul.f32 -1.442695, %v4559_v7 }
 0x50f   : > { %v2503_v6 = vmul.f32 %v4475_v21, %v2464_v22  ;;  %v4589_v20 = vadd.f32 %v4498_v62, %v2499_v61  ;;  %3551 = vpow2.f32 %v2897_v46  ;;  %v2901_v24 = vmul.f32 -1.442695, %v4569_v28 }
 0x510   : > { %v2504_v33 = vmul.f32 %v4475_v21, %v2465_v14  ;;  %v4594_v9 = vadd.f32 %v4498_v62, %v2500_v49  ;;  %3553 = vpow2.f32 %v2898_v60  ;;  %v2902_v12 = vmul.f32 -1.442695, %v4574_v40 }
 0x511   : > { %v2505_v15 = vmul.f32 %v4475_v21, %v2466_v34  ;;  %v4599_v38 = vadd.f32 %v4498_v62, %v2501_v1  ;;  %3555 = vpow2.f32 %v2899_v41  ;;  %v2903_v22 = vmul.f32 -1.442695, %v4579_v48 }
 0x512   : > { %v2506_v26 = vmul.f32 %v4475_v21, %v2467_v37  ;;  %v4604_v30 = vadd.f32 %v4498_v62, %v2502_v58  ;;  %3557 = vpow2.f32 %v2900_v63  ;;  %v2904_v14 = vmul.f32 -1.442695, %v4584_v10 }
 0x513   : > { %v2507_v54 = vmul.f32 %v4475_v21, %v4492_v45  ;;  %v4610_v23 = vadd.f32 %v4498_v62, %v2503_v6  ;;  %3559 = vpow2.f32 %v2901_v24  ;;  %v2905_v34 = vmul.f32 -1.442695, %v4589_v20 }
 0x514   : > { %v2508_v31 = vmul.f32 %v4475_v21, %v4501_v5  ;;  %v4616_v37 = vadd.f32 %v4498_v62, %v2504_v33  ;;  %3561 = vpow2.f32 %v2902_v12  ;;  %v2906_v13 = vmul.f32 -1.442695, %v4594_v9 }
 0x515   : > { %v2509_v47 = vmul.f32 %v4475_v21, %v4504_v11  ;;  %v4622_v45 = vadd.f32 %v4498_v62, %v2505_v15  ;;  %3563 = vpow2.f32 %v2903_v22  ;;  %v2907_v50 = vmul.f32 -1.442695, %v4599_v38 }
 0x516   : > { %v4625_v36 = vpop.eup %3545  ;;  %v2510_v5 = vmul.f32 %v4475_v21, %v4507_v18  ;;  %v4630_v43 = vadd.f32 %v4498_v62, %v2506_v26  ;;  %3565 = vpow2.f32 %v2904_v14  ;;  %v2908_v44 = vmul.f32 -1.442695, %v4604_v30 }
 0x517   : > { %v4633_v56 = vpop.eup %3547  ;;  %v2511_v11 = vmul.f32 %v4475_v21, %v4511_v27  ;;  %v4638_v57 = vadd.f32 %v4498_v62, %v2507_v54  ;;  %3567 = vpow2.f32 %v2905_v34  ;;  %v2909_v59 = vmul.f32 -1.442695, %v4610_v23 }
 0x518   : > { %v4641_v19 = vpop.eup %3549  ;;  %v2512_v18 = vmul.f32 %v4475_v21, %v4514_v4  ;;  %v4646_v25 = vadd.f32 %v4498_v62, %v2508_v31  ;;  %3569 = vpow2.f32 %v2906_v13  ;;  %v2910_v32 = vmul.f32 -1.442695, %v4616_v37 }
 0x519   : > { %v4649_v16 = vpop.eup %3551  ;;  %v2513_v27 = vmul.f32 %v4475_v21, %v4517_v29  ;;  %v4654_v61 = vadd.f32 %v4498_v62, %v2509_v47  ;;  %3571 = vpow2.f32 %v2907_v50  ;;  %v2911_v46 = vmul.f32 -1.442695, %v4622_v45 }
 0x51a   : > { %v4657_v49 = vpop.eup %3553  ;;  %v2514_v4 = vmul.f32 %v4475_v21, %v4531_v42  ;;  %v4662_v60 = vadd.f32 %v4498_v62, %v2510_v5  ;;  %3573 = vpow2.f32 %v2908_v44  ;;  %v2912_v1 = vmul.f32 -1.442695, %v4630_v43 }
 0x51b   : > { %v4665_v41 = vpop.eup %3555  ;;  %v2515_v29 = vmul.f32 %v4475_v21, %v4534_v55  ;;  %v4670_v58 = vadd.f32 %v4498_v62, %v2511_v11  ;;  %3575 = vpow2.f32 %v2909_v59  ;;  %v2913_v63 = vmul.f32 -1.442695, %v4638_v57 }
 0x51c   : > { %v4673_v6 = vpop.eup %3557  ;;  %v2516_v42 = vmul.f32 %v4475_v21, %v4541_v51  ;;  %v4678_v24 = vadd.f32 %v4498_v62, %v2512_v18  ;;  %3577 = vpow2.f32 %v2910_v32  ;;  %v2914_v33 = vmul.f32 -1.442695, %v4646_v25 }
 0x51d   : > { %v4681_v12 = vpop.eup %3559  ;;  %v2517_v55 = vmul.f32 %v4475_v21, %v4544_v2  ;;  %v4686_v15 = vadd.f32 %v4498_v62, %v2513_v27  ;;  %3579 = vpow2.f32 %v2911_v46  ;;  %v2915_v22 = vmul.f32 -1.442695, %v4654_v61 }
 0x51e   : > { %v4689_v26 = vpop.eup %3561  ;;  %v2518_v51 = vmul.f32 %v4475_v21, %v4551_v8  ;;  %v4694_v14 = vadd.f32 %v4498_v62, %v2514_v4  ;;  %3581 = vpow2.f32 %v2912_v1  ;;  %v2916_v54 = vmul.f32 -1.442695, %v4662_v60 }
 0x51f   : > { %v3564_v34 = vpop.eup %3563  ;;  %v2519_v2 = vmul.f32 %v4475_v21, %v4565_v53  ;;  %v4700_v31 = vadd.f32 %v4498_v62, %v2515_v29  ;;  %3583 = vpow2.f32 %v2913_v63  ;;  %v2917_v13 = vmul.f32 -1.442695, %v4670_v58 }
 0x520   : > { %v3566_v47 = vpop.eup %3565  ;;  %v4704_v50 = vadd.f32 %v4498_v62, %v2516_v42  ;;  %3585 = vpow2.f32 %v2914_v33  ;;  %v2918_v8 = vmul.f32 -1.442695, %v4678_v24  ;;  %v4708_v44 = vadd.f32 %v4498_v62, %v2517_v55 }
 0x521   : > { %v3568_v5 = vpop.eup %3567  ;;  %3587 = vpow2.f32 %v2915_v22  ;;  %v2919_v21 = vmul.f32 -1.442695, %v4686_v15  ;;  %v4712_v11 = vadd.f32 %v4498_v62, %v2518_v51  ;;  %v2920_v59 = vmul.f32 -1.442695, %v4694_v14 }
 0x522   : > { %v3570_v53 = vpop.eup %3569  ;;  %3589 = vpow2.f32 %v2916_v54  ;;  %v4716_v32 = vadd.f32 %v4498_v62, %v2519_v2  ;;  %v2921_v27 = vmul.f32 -1.442695, %v4700_v31  ;;  %v2922_v4 = vmul.f32 -1.442695, %v4704_v50 }
 0x523   : > { %v3572_v18 = vpop.eup %3571  ;;  %3591 = vpow2.f32 %v2917_v13  ;;  %v2923_v29 = vmul.f32 -1.442695, %v4708_v44  ;;  %v2924_v42 = vmul.f32 -1.442695, %v4712_v11  ;;  %v2655_v22 = vadd.f32 1.0, %v4625_v36 }
 0x524   : > { %4930 = vst [vmem:[#allocation5_spill] sm:$0xff] %v4716_v32  ;;  %v3574_v46 = vpop.eup %3573  ;;  %3593 = vpow2.f32 %v2918_v8  ;;  %v2925_v62 = vmul.f32 -1.442695, %v4716_v32  ;;  %v2656_v54 = vadd.f32 1.0, %v4633_v56  ;;  %v2657_v13 = vadd.f32 1.0, %v4641_v19 }
 0x525   : > { %v3576_v1 = vpop.eup %3575  ;;  %3595 = vpow2.f32 %v2919_v21  ;;  %v2658_v21 = vadd.f32 1.0, %v4649_v16  ;;  %v2659_v36 = vadd.f32 1.0, %v4657_v49  ;;  %v2660_v56 = vadd.f32 1.0, %v4665_v41 }
 0x526   : > { %v3578_v63 = vpop.eup %3577  ;;  %3597 = vpow2.f32 %v2920_v59  ;;  %v2661_v19 = vadd.f32 1.0, %v4673_v6  ;;  %v2662_v16 = vadd.f32 1.0, %v4681_v12  ;;  %v2663_v49 = vadd.f32 1.0, %v4689_v26 }
 0x527   : > { %v3580_v33 = vpop.eup %3579  ;;  %3599 = vpow2.f32 %v2921_v27  ;;  %v2664_v41 = vadd.f32 1.0, %v3564_v34  ;;  %v2668_v26 = vadd.f32 1.0, %v3572_v18  ;;  %v2669_v34 = vadd.f32 1.0, %v3574_v46 }
 0x528   : > { %v3582_v55 = vpop.eup %3581  ;;  %3601 = vpow2.f32 %v2922_v4 }
 0x529   : > { %v4724_v51 = vpop.eup %3583  ;;  %3603 = vpow2.f32 %v2923_v29 }
 0x52a   : > { %v4727_v2 = vpop.eup %3585  ;;  %3605 = vpow2.f32 %v2924_v42 }
 0x52b   : > { %v4730_v8 = vpop.eup %3587  ;;  %3607 = vpow2.f32 %v2925_v62 }
 0x52c   : > { %v4734_v59 = vpop.eup %3589  ;;  %3609 = vrcp.f32 %v2655_v22 }
 0x52d   : > { %v4737_v27 = vpop.eup %3591  ;;  %3611 = vrcp.f32 %v2656_v54  ;;  %v2665_v54 = vadd.f32 1.0, %v3566_v47 }
 0x52e   : > { %v4740_v4 = vpop.eup %3593  ;;  %3613 = vrcp.f32 %v2657_v13  ;;  %v2666_v13 = vadd.f32 1.0, %v3568_v5  ;;  %v2670_v5 = vadd.f32 1.0, %v3576_v1  ;;  %v2673_v1 = vadd.f32 1.0, %v3582_v55 }
 0x52f   : > { %v4743_v29 = vpop.eup %3595  ;;  %3615 = vrcp.f32 %v2658_v21  ;;  %v2667_v21 = vadd.f32 1.0, %v3570_v53 }
 0x530   : > { %v4747_v42 = vpop.eup %3597  ;;  %3617 = vrcp.f32 %v2659_v36 }
 0x531   : > { %v4750_v62 = vpop.eup %3599  ;;  %3619 = vrcp.f32 %v2660_v56 }
 0x532   : > { %v4752_v22 = vpop.eup %3601  ;;  %3621 = vrcp.f32 %v2661_v19  ;;  %v2671_v19 = vadd.f32 1.0, %v3578_v63  ;;  %v2674_v63 = vadd.f32 1.0, %v4724_v51 }
 0x533   : > { %v4754_v6 = vpop.eup %3603  ;;  %3623 = vrcp.f32 %v2662_v16 }
 0x534   : > { %v4756_v12 = vpop.eup %3605  ;;  %3625 = vrcp.f32 %v2663_v49  ;;  %v2672_v49 = vadd.f32 1.0, %v3580_v33  ;;  %v2675_v33 = vadd.f32 1.0, %v4727_v2 }
 0x535   : > { %v4758_v32 = vpop.eup %3607  ;;  %3627 = vrcp.f32 %v2664_v41 }
 0x536   : > { %v3610_v36 = vpop.eup %3609  ;;  %3629 = vrcp.f32 %v2665_v54 }
 0x537   : > { %v3612_v47 = vpop.eup %3611  ;;  %3631 = vrcp.f32 %v2666_v13  ;;  %v2751_v53 = vmul.f32 %v3610_v36, %v4522_v35  ;;  %v2676_v13 = vadd.f32 1.0, %v4730_v8  ;;  %v2679_v36 = vadd.f32 1.0, %v4740_v4 }
 0x538   : > { %v3614_v56 = vpop.eup %3613  ;;  %3633 = vrcp.f32 %v2667_v21  ;;  %v2752_v18 = vmul.f32 %v3612_v47, %v4525_v39  ;;  %v2677_v21 = vadd.f32 1.0, %v4734_v59  ;;  %v2681_v47 = vadd.f32 1.0, %v4747_v42 }
 0x539   : > { %v3616_v16 = vpop.eup %3615  ;;  %3635 = vrcp.f32 %v2668_v26  ;;  %v2753_v41 = vmul.f32 %v3614_v56, %v4528_v0  ;;  %2783 = vst.msk [vmem:[%s4763_s10] sm:$0xff] %vm277_vm1, %v2751_v53  ;;  %v2678_v26 = vadd.f32 1.0, %v4737_v27  ;;  %v2683_v53 = vadd.f32 1.0, %v4752_v22 }
 0x53a   : > { %v3618_v46 = vpop.eup %3617  ;;  %3637 = vrcp.f32 %v2669_v34  ;;  %v2754_v54 = vmul.f32 %v3616_v16, %v4538_v17  ;;  %2784 = vst.msk [vmem:[%s4763_s10 + $0x8] sm:$0xff] %vm277_vm1, %v2752_v18  ;;  %v2680_v34 = vadd.f32 1.0, %v4743_v29  ;;  %v2684_v56 = vadd.f32 1.0, %v4754_v6 }
 0x53b   : > { %v3620_v35 = vpop.eup %3619  ;;  %3639 = vrcp.f32 %v2670_v5  ;;  %v2755_v39 = vmul.f32 %v3618_v46, %v4548_v52  ;;  %2785 = vst.msk [vmem:[%s4763_s10 + $0x10] sm:$0xff] %vm277_vm1, %v2753_v41  ;;  %v2682_v5 = vadd.f32 1.0, %v4750_v62  ;;  %v2686_v18 = vadd.f32 1.0, %v4758_v32 }
 0x53c   : > { %v3622_v0 = vpop.eup %3621  ;;  %3641 = vrcp.f32 %v2671_v19  ;;  %v2756_v55 = vmul.f32 %v3620_v35, %v4556_v3  ;;  %2786 = vst.msk [vmem:[%s4763_s10 + $0x18] sm:$0xff] %vm277_vm1, %v2754_v54  ;;  %v2685_v19 = vadd.f32 1.0, %v4756_v12 }
 0x53d   : > { %v3624_v17 = vpop.eup %3623  ;;  %3643 = vrcp.f32 %v2672_v49  ;;  %v2757_v51 = vmul.f32 %v3622_v0, %v4559_v7  ;;  %2787 = vst.msk [vmem:[%s4763_s10 + $0x20] sm:$0xff] %vm277_vm1, %v2755_v39 }
 0x53e   : > { %v3626_v52 = vpop.eup %3625  ;;  %3645 = vrcp.f32 %v2673_v1  ;;  %v2758_v2 = vmul.f32 %v3624_v17, %v4569_v28  ;;  %2788 = vst.msk [vmem:[%s4763_s10 + $0x28] sm:$0xff] %vm277_vm1, %v2756_v55 }
 0x53f   : > { %v3628_v3 = vpop.eup %3627  ;;  %3647 = vrcp.f32 %v2674_v63  ;;  %v2759_v8 = vmul.f32 %v3626_v52, %v4574_v40  ;;  %2789 = vst.msk [vmem:[%s4763_s10 + $0x30] sm:$0xff] %vm277_vm1, %v2757_v51 }
 0x540   : > { %v3630_v7 = vpop.eup %3629  ;;  %3649 = vrcp.f32 %v2675_v33  ;;  %v2760_v59 = vmul.f32 %v3628_v3, %v4579_v48  ;;  %2790 = vst.msk [vmem:[%s4763_s10 + $0x38] sm:$0xff] %vm277_vm1, %v2758_v2 }
 0x541   : > { %v3632_v28 = vpop.eup %3631  ;;  %3651 = vrcp.f32 %v2676_v13  ;;  %v2761_v27 = vmul.f32 %v3630_v7, %v4584_v10  ;;  %2791 = vst.msk [vmem:[%s4763_s10 + $0x40] sm:$0xff] %vm277_vm1, %v2759_v8  ;;  %v4931_v13 = vld [vmem:[#allocation5_spill] sm:$0xff] }
 0x542   : > { %v3634_v40 = vpop.eup %3633  ;;  %3653 = vrcp.f32 %v2677_v21  ;;  %v2762_v4 = vmul.f32 %v3632_v28, %v4589_v20  ;;  %2792 = vst.msk [vmem:[%s4763_s10 + $0x48] sm:$0xff] %vm277_vm1, %v2760_v59 }
 0x543   : > { %v3636_v48 = vpop.eup %3635  ;;  %3655 = vrcp.f32 %v2678_v26  ;;  %v2763_v29 = vmul.f32 %v3634_v40, %v4594_v9  ;;  %2793 = vst.msk [vmem:[%s4763_s10 + $0x50] sm:$0xff] %vm277_vm1, %v2761_v27 }
 0x544   : > { %v3638_v10 = vpop.eup %3637  ;;  %3657 = vrcp.f32 %v2679_v36  ;;  %v2764_v42 = vmul.f32 %v3636_v48, %v4599_v38  ;;  %2794 = vst.msk [vmem:[%s4763_s10 + $0x58] sm:$0xff] %vm277_vm1, %v2762_v4 }
 0x545   : > { %v3640_v20 = vpop.eup %3639  ;;  %3659 = vrcp.f32 %v2680_v34  ;;  %v2765_v62 = vmul.f32 %v3638_v10, %v4604_v30  ;;  %2795 = vst.msk [vmem:[%s4763_s10 + $0x60] sm:$0xff] %vm277_vm1, %v2763_v29 }
 0x546   : > { %v3642_v9 = vpop.eup %3641  ;;  %3661 = vrcp.f32 %v2681_v47  ;;  %v2766_v22 = vmul.f32 %v3640_v20, %v4610_v23  ;;  %2796 = vst.msk [vmem:[%s4763_s10 + $0x68] sm:$0xff] %vm277_vm1, %v2764_v42 }
 0x547   : > { %v3644_v38 = vpop.eup %3643  ;;  %3663 = vrcp.f32 %v2682_v5  ;;  %v2767_v6 = vmul.f32 %v3642_v9, %v4616_v37  ;;  %2797 = vst.msk [vmem:[%s4763_s10 + $0x70] sm:$0xff] %vm277_vm1, %v2765_v62 }
 0x548   : > { %v3646_v30 = vpop.eup %3645  ;;  %3665 = vrcp.f32 %v2683_v53  ;;  %v2768_v12 = vmul.f32 %v3644_v38, %v4622_v45  ;;  %2798 = vst.msk [vmem:[%s4763_s10 + $0x78] sm:$0xff] %vm277_vm1, %v2766_v22 }
 0x549   : > { %v3648_v23 = vpop.eup %3647  ;;  %3667 = vrcp.f32 %v2684_v56  ;;  %v2769_v16 = vmul.f32 %v3646_v30, %v4630_v43  ;;  %2799 = vst.msk [vmem:[%s4763_s10 + $0x80] sm:$0xff] %vm277_vm1, %v2767_v6 }
 0x54a   : > { %v3650_v32 = vpop.eup %3649  ;;  %3669 = vrcp.f32 %v2685_v19  ;;  %v2770_v37 = vmul.f32 %v3648_v23, %v4638_v57  ;;  %2800 = vst.msk [vmem:[%s4763_s10 + $0x88] sm:$0xff] %vm277_vm1, %v2768_v12 }
 0x54b   : > { %v3652_v49 = vpop.eup %3651  ;;  %3671 = vrcp.f32 %v2686_v18  ;;  %v2771_v45 = vmul.f32 %v3650_v32, %v4646_v25  ;;  %2801 = vst.msk [vmem:[%s4763_s10 + $0x90] sm:$0xff] %vm277_vm1, %v2769_v16 }
 0x54c   : > { %v3654_v41 = vpop.eup %3653  ;;  %v2772_v43 = vmul.f32 %v3652_v49, %v4654_v61  ;;  %2802 = vst.msk [vmem:[%s4763_s10 + $0x98] sm:$0xff] %vm277_vm1, %v2770_v37 }
 0x54d   : > { %v3656_v46 = vpop.eup %3655  ;;  %v2773_v1 = vmul.f32 %v3654_v41, %v4662_v60  ;;  %2803 = vst.msk [vmem:[%s4763_s10 + $0xa0] sm:$0xff] %vm277_vm1, %v2771_v45 }
 0x54e   : > { %v3658_v57 = vpop.eup %3657  ;;  %v2774_v54 = vmul.f32 %v3656_v46, %v4670_v58  ;;  %2804 = vst.msk [vmem:[%s4763_s10 + $0xa8] sm:$0xff] %vm277_vm1, %v2772_v43 }
 0x54f   : > { %v3660_v25 = vpop.eup %3659  ;;  %v2775_v35 = vmul.f32 %v3658_v57, %v4678_v24  ;;  %2805 = vst.msk [vmem:[%s4763_s10 + $0xb0] sm:$0xff] %vm277_vm1, %v2773_v1 }
 0x550   : > { %v3662_v61 = vpop.eup %3661  ;;  %v2776_v63 = vmul.f32 %v3660_v25, %v4686_v15  ;;  %2806 = vst.msk [vmem:[%s4763_s10 + $0xb8] sm:$0xff] %vm277_vm1, %v2774_v54 }
 0x551   : > { %v3664_v60 = vpop.eup %3663  ;;  %v2777_v39 = vmul.f32 %v3662_v61, %v4694_v14  ;;  %2807 = vst.msk [vmem:[%s4763_s10 + $0xc0] sm:$0xff] %vm277_vm1, %v2775_v35 }
 0x552   : > { %v3666_v58 = vpop.eup %3665  ;;  %v2778_v24 = vmul.f32 %v3664_v60, %v4700_v31  ;;  %2808 = vst.msk [vmem:[%s4763_s10 + $0xc8] sm:$0xff] %vm277_vm1, %v2776_v63 }
 0x553   : > { %v3668_v0 = vpop.eup %3667  ;;  %v2779_v33 = vmul.f32 %v3666_v58, %v4704_v50  ;;  %2809 = vst.msk [vmem:[%s4763_s10 + $0xd0] sm:$0xff] %vm277_vm1, %v2777_v39 }
 0x554   : > { %v3670_v15 = vpop.eup %3669  ;;  %v2780_v55 = vmul.f32 %v3668_v0, %v4708_v44  ;;  %2810 = vst.msk [vmem:[%s4763_s10 + $0xd8] sm:$0xff] %vm277_vm1, %v2778_v24 }
 0x555   : > { %v3672_v14 = vpop.eup %3671  ;;  %v2781_v17 = vmul.f32 %v3670_v15, %v4712_v11  ;;  %2811 = vst.msk [vmem:[%s4763_s10 + $0xe0] sm:$0xff] %vm277_vm1, %v2779_v33 }
 0x556   : > { %v2782_v51 = vmul.f32 %v3672_v14, %v4931_v13  ;;  %2812 = vst.msk [vmem:[%s4763_s10 + $0xe8] sm:$0xff] %vm277_vm1, %v2780_v55 }
 0x557   : > { %2813 = vst.msk [vmem:[%s4763_s10 + $0xf0] sm:$0xff] %vm277_vm1, %v2781_v17 }
 0x558   : > { %2814 = vst.msk [vmem:[%s4763_s10 + $0xf8] sm:$0xff] %vm277_vm1, %v2782_v51 }
 0x559 PF: > { %p15_p8 = scmp.ge.s32.totalorder %s3797_s23, 4   ;;  %s4932_s18 = smov %s3729_s19 }
 0x55a   : > { %s4933_s19 = smov %s3733_s20  ;;  %s4934_s20 = smov %s3807_s26 }
 0x55b   : > { %s4935_s21 = smov %s3797_s23  ;;  %17 = sbr.rel (!%p15_p8) target bundleno = 3 (0x3), region = 80 }
 0x562   :  { %2836 = vsyncpa [#allocation3], 1 }
 0x563   :  { %2838 = vsyncpa [#allocation3 + $0x1], 1 }

// kernel: _lambda_.8
= control target key start
LH: loop header
LB: loop body
LE: loop exit
PB: predicated region body
PF: predicated region fallthrough
CT: control target
= control target key end

     0   :  { %s3743_s21 = smov 0   ;;  %s4813_s0 = inlined_call_operand.vmem [shape: f32[2,256,32], index: 0, kind: input, shape index: {}]   ;;  %s4814_s1 = inlined_call_operand.vmem [shape: f32[2,1,32], index: 1, kind: input, shape index: {}]   ;;  %s4815_s2 = inlined_call_operand.vmem [shape: f32[1,32], index: 2, kind: input, shape index: {}]   ;;  %s4816_s3 = inlined_call_operand.vmem [shape: f32[1,32], index: 3, kind: input, shape index: {}]   ;;  %s4817_s4 = inlined_call_operand.vmem [shape: f32[32,32], index: 4, kind: input, shape index: {}]   ;;  %s4818_s5 = inlined_call_operand.vmem [shape: f32[32,32], index: 5, kind: input, shape index: {}]   ;;  %s4819_s6 = inlined_call_operand.vmem [shape: f32[2,256,32], index: 6, kind: output, shape index: {}]  }
   0x1 LB: > { %s2939_s22 = sadd.s32 4294967295, %s3703_s21   ;;  %p2943_p0 = scmp.ge.s32.totalorder %s3703_s21, 1  ;;  %s3703_s21 = sphi %s3743_s21, %s16_s21  }
   0x2   : > { %p220_p1 = scmp.lt.s32.totalorder %s3703_s21, 3 }
   0x4   : > { %p221_p2 = pnand %p2943_p0, %p220_p1 }
   0x6   : > { %224 = sbr.rel (%p221_p2) target bundleno = 1336 (0x538), region = 44 }
   0xd   : > { %v407_v0 = vld [vmem:[%s4817_s4] sm:$0xff]  ;;  %v408_v1 = vld [vmem:[%s4817_s4 + $0x8] sm:$0xff]  ;;  %v409_v2 = vld [vmem:[%s4817_s4 + $0x10] sm:$0xff]  ;;  %v4824_v3 = vmov 0.0|0.0   ;;  %vm3706_vm0 = vmmov 0   ;;  %v4820_v8 = vmov 0.0  }
   0xe   : > { %3371 = vmatprep.subr.bf16.mxu0 %v4824_v3  ;;  %v415_v4 = vand.u32 4294901760, %v407_v0  ;;  %v418_v5 = vand.u32 4294901760, %v408_v1  ;;  %v410_v6 = vld [vmem:[%s4817_s4 + $0x18] sm:$0xff]  ;;  %v421_v7 = vand.u32 4294901760, %v409_v2  ;;  %3115 = vmatprep.mubr.msk.f32.mxu0 %vm3706_vm0, %v4820_v8  ;;  %p253_p3 = scmp.lt.s32.totalorder %s2939_s22, 1  ;;  %vm337_vm1 = vcmask 261120  }
   0xf   : > { %v424_v9 = vand.u32 4294901760, %v410_v6  ;;  %3407 = vmatprep.subr.bf16.mxu1 %v4824_v3  ;;  %3181 = vmatprep.mubr.msk.f32.mxu1 %vm3706_vm0, %v4820_v8 }
  0x10   : > { %v3769_v10 = vpack.c.bf16 %v418_v5, %v415_v4  ;;  %s4857_s22 = smov (!%p253_p3, %s2939_s22), 1  ;;  %v495_v11 = vsub.f32 %v407_v0, %v415_v4  ;;  %v502_v12 = vsub.f32 %v408_v1, %v418_v5  ;;  %v3773_v13 = vsub.f32 %v409_v2, %v421_v7 }
  0x11   : > { %v3775_v14 = vsub.f32 %v410_v6, %v424_v9  ;;  %v3778_v15 = vpack.c.bf16 %v424_v9, %v421_v7  ;;  %s2985_s7 = sshll.u32 %s4857_s22, 8  ;;  %s260_s10 = scalar_lea.vmem %s4814_s1, %s4857_s22 }
  0x12   : > { %3373 = vmatpush3.bf16.msra.mxu0 %v3769_v10  ;;  %v496_v16 = vand.u32 4294901760, %v495_v11  ;;  %v503_v17 = vand.u32 4294901760, %v502_v12  ;;  %v3785_v18 = vpack.c.bf16 %v502_v12, %v495_v11  ;;  %s3793_s13 = scalar_lea.vmem %s4813_s0, %s2985_s7  ;;  %v3795_v19 = vld [vmem:[%s260_s10] ss:$0 sm:$0xff]  ;;  %v510_v50 = vand.u32 4294901760, %v3773_v13  ;;  %s4700_s30 = scalar_lea.vmem %s4819_s6, %s2985_s7 }
  0x13   : > { %4835 = vst [vmem:[#allocation2_spill] sm:$0xff] %v3778_v15  ;;  %3374 = vmatprep.subr.bf16.mxu0 %v4824_v3  ;;  %v3799_v20 = vpack.c.bf16 %v3775_v14, %v3773_v13  ;;  %v266_v21 = vld [vmem:[%s3793_s13] sm:$0xff]  ;;  %v267_v22 = vld [vmem:[%s3793_s13 + $0x8] sm:$0xff]  ;;  %v268_v23 = vld [vmem:[%s3793_s13 + $0x10] sm:$0xff]  ;;  %v517_v53 = vand.u32 4294901760, %v3775_v14 }
  0x14   : > { %v3804_v24 = vpack.c.bf16 %v503_v17, %v496_v16  ;;  %v269_v25 = vld [vmem:[%s3793_s13 + $0x18] sm:$0xff]  ;;  %v3808_v26 = vadd.f32 %v3795_v19, %v266_v21  ;;  %v3811_v27 = vadd.f32 %v3795_v19, %v267_v22  ;;  %v3815_v28 = vadd.f32 %v3795_v19, %v268_v23  ;;  %v270_v29 = vld [vmem:[%s3793_s13 + $0x20] sm:$0xff]  ;;  %v271_v31 = vld [vmem:[%s3793_s13 + $0x28] sm:$0xff] }
  0x15   : > { %v3823_v32 = vadd.f32 %v3795_v19, %v269_v25  ;;  %v272_v34 = vld [vmem:[%s3793_s13 + $0x30] sm:$0xff]  ;;  %v3829_v36 = vadd.f32 %v3795_v19, %v270_v29  ;;  %v273_v38 = vld [vmem:[%s3793_s13 + $0x38] sm:$0xff]  ;;  %v3835_v39 = vadd.f32 %v3795_v19, %v271_v31  ;;  %v274_v43 = vld [vmem:[%s3793_s13 + $0x40] sm:$0xff]  ;;  %v497_v56 = vsub.f32 %v495_v11, %v496_v16 }
  0x16   : > { %4836 = vst [vmem:[#allocation3_spill] sm:$0xff] %v3804_v24  ;;  %3376 = vmatpush3.bf16.msra.mxu0 %v3778_v15  ;;  %v338_v30 = vsel %vm337_vm1, %v3808_v26, 0.0  ;;  %v339_v33 = vsel %vm337_vm1, %v3811_v27, 0.0  ;;  %v341_v37 = vsel %vm337_vm1, %v3815_v28, 0.0  ;;  %v3838_v41 = vadd.f32 %v3795_v19, %v272_v34  ;;  %v275_v47 = vld [vmem:[%s3793_s13 + $0x48] sm:$0xff]  ;;  %v276_v54 = vld [vmem:[%s3793_s13 + $0x50] sm:$0xff] }
  0x17   : > { %3377 = vmatprep.subr.bf16.mxu0 %v4824_v3  ;;  %v340_v35 = vadd.f32 %v339_v33, %v338_v30  ;;  %v343_v42 = vsel %vm337_vm1, %v3823_v32, 0.0  ;;  %v3844_v45 = vadd.f32 %v3795_v19, %v273_v38  ;;  %v345_v46 = vsel %vm337_vm1, %v3829_v36, 0.0  ;;  %v277_v59 = vld [vmem:[%s3793_s13 + $0x58] sm:$0xff]  ;;  %v278_v2 = vld [vmem:[%s3793_s13 + $0x60] sm:$0xff]  ;;  %v279_v9 = vld [vmem:[%s3793_s13 + $0x68] sm:$0xff] }
  0x18   : > { %v347_v49 = vsel %vm337_vm1, %v3835_v39, 0.0  ;;  %v3853_v51 = vadd.f32 %v3795_v19, %v274_v43  ;;  %v349_v52 = vsel %vm337_vm1, %v3838_v41, 0.0  ;;  %v3860_v57 = vadd.f32 %v3795_v19, %v275_v47  ;;  %v280_v22 = vld [vmem:[%s3793_s13 + $0x70] sm:$0xff]  ;;  %v281_v33 = vld [vmem:[%s3793_s13 + $0x78] sm:$0xff]  ;;  %v282_v38 = vld [vmem:[%s3793_s13 + $0x80] sm:$0xff] }
  0x19   : > { %v342_v40 = vadd.f32 %v341_v37, %v340_v35  ;;  %v351_v58 = vsel %vm337_vm1, %v3844_v45, 0.0  ;;  %v504_v61 = vsub.f32 %v502_v12, %v503_v17  ;;  %v511_v62 = vsub.f32 %v3773_v13, %v510_v50 }
  0x1a   : > { %v3867_v63 = vadd.f32 %v3795_v19, %v276_v54  ;;  %v353_v0 = vsel %vm337_vm1, %v3853_v51, 0.0  ;;  %v518_v1 = vsub.f32 %v3775_v14, %v517_v53  ;;  %v498_v5 = vand.u32 4294901760, %v497_v56  ;;  %v285_v54 = vld [vmem:[%s3793_s13 + $0x98] sm:$0xff] }
  0x1b   : > { %v344_v44 = vadd.f32 %v343_v42, %v342_v40  ;;  %v3874_v6 = vadd.f32 %v3795_v19, %v277_v59  ;;  %v355_v7 = vsel %vm337_vm1, %v3860_v57, 0.0  ;;  %v505_v12 = vand.u32 4294901760, %v504_v61  ;;  %v286_v59 = vld [vmem:[%s3793_s13 + $0xa0] sm:$0xff] }
  0x1c   : > { %v512_v13 = vand.u32 4294901760, %v511_v62  ;;  %v3880_v16 = vadd.f32 %v3795_v19, %v278_v2  ;;  %v357_v14 = vsel %vm337_vm1, %v3867_v63, 0.0  ;;  %v519_v17 = vand.u32 4294901760, %v518_v1 }
  0x1d   : > { %v346_v48 = vadd.f32 %v345_v46, %v344_v44  ;;  %v3884_v21 = vpack.c.bf16 %v517_v53, %v510_v50  ;;  %v3887_v25 = vpack.c.bf16 %v505_v12, %v498_v5  ;;  %v3890_v29 = vadd.f32 %v3795_v19, %v279_v9  ;;  %v283_v44 = vld [vmem:[%s3793_s13 + $0x88] sm:$0xff]  ;;  %v288_v5 = vld [vmem:[%s3793_s13 + $0xb0] sm:$0xff]  ;;  %v289_v12 = vld [vmem:[%s3793_s13 + $0xb8] sm:$0xff] }
  0x1e   : > { %v359_v30 = vsel %vm337_vm1, %v3874_v6, 0.0  ;;  %v3894_v31 = vpack.c.bf16 %v519_v17, %v512_v13  ;;  %v3898_v35 = vadd.f32 %v3795_v19, %v280_v22  ;;  %v361_v37 = vsel %vm337_vm1, %v3880_v16, 0.0  ;;  %v290_v22 = vld [vmem:[%s3793_s13 + $0xc0] sm:$0xff] }
  0x1f   : > { %v348_v55 = vadd.f32 %v347_v49, %v346_v48  ;;  %4837 = vst [vmem:[#allocation4_spill] sm:$0xff] %v3884_v21  ;;  %v3904_v42 = vadd.f32 %v3795_v19, %v281_v33  ;;  %v363_v43 = vsel %vm337_vm1, %v3890_v29, 0.0  ;;  %v3910_v47 = vadd.f32 %v3795_v19, %v282_v38  ;;  %v284_v49 = vld [vmem:[%s3793_s13 + $0x90] sm:$0xff] }
  0x20   : > { %v365_v48 = vsel %vm337_vm1, %v3898_v35, 0.0  ;;  %v3922_v56 = vadd.f32 %v3795_v19, %v284_v49  ;;  %v3928_v61 = vadd.f32 %v3795_v19, %v285_v54  ;;  %v3934_v2 = vadd.f32 %v3795_v19, %v286_v59  ;;  %v293_v49 = vld [vmem:[%s3793_s13 + $0xd8] sm:$0xff] }
  0x21   : > { %v350_v60 = vadd.f32 %v349_v52, %v348_v55  ;;  %v3916_v52 = vadd.f32 %v3795_v19, %v283_v44  ;;  %v367_v53 = vsel %vm337_vm1, %v3904_v42, 0.0  ;;  %v3958_v38 = vadd.f32 %v3795_v19, %v290_v22 }
  0x22   : > { %v377_v17 = vsel %vm337_vm1, %v3934_v2, 0.0  ;;  %v3976_v59 = vadd.f32 %v3795_v19, %v293_v49 }
  0x23   : > { %v352_v4 = vadd.f32 %v351_v58, %v350_v60  ;;  %v369_v58 = vsel %vm337_vm1, %v3910_v47, 0.0  ;;  %v371_v62 = vsel %vm337_vm1, %v3916_v52, 0.0  ;;  %v385_v54 = vsel %vm337_vm1, %v3958_v38, 0.0 }
  0x25   : > { %v354_v11 = vadd.f32 %v353_v0, %v352_v4  ;;  %v287_v0 = vld [vmem:[%s3793_s13 + $0xa8] sm:$0xff]  ;;  %v373_v4 = vsel %vm337_vm1, %v3922_v56, 0.0 }
  0x26   : > { %v3940_v9 = vadd.f32 %v3795_v19, %v287_v0 }
  0x27   : > { %v356_v23 = vadd.f32 %v355_v7, %v354_v11  ;;  %v375_v11 = vsel %vm337_vm1, %v3928_v61, 0.0 }
  0x28   : > { %v379_v33 = vsel %vm337_vm1, %v3940_v9, 0.0 }
  0x29   : > { %v358_v34 = vadd.f32 %v357_v14, %v356_v23  ;;  %v3946_v14 = vadd.f32 %v3795_v19, %v288_v5  ;;  %v296_v5 = vld [vmem:[%s3793_s13 + $0xf0] sm:$0xff] }
  0x2a   : > { %v3994_v22 = vadd.f32 %v3795_v19, %v296_v5 }
  0x2b   : > { %v360_v40 = vadd.f32 %v359_v30, %v358_v34  ;;  %v3952_v30 = vadd.f32 %v3795_v19, %v289_v12  ;;  %v291_v34 = vld [vmem:[%s3793_s13 + $0xc8] sm:$0xff]  ;;  %v391_v12 = vsel %vm337_vm1, %v3976_v59, 0.0 }
  0x2d   : > { %v362_v46 = vadd.f32 %v361_v37, %v360_v40  ;;  %v381_v40 = vsel %vm337_vm1, %v3946_v14, 0.0 }
  0x2f   : > { %v364_v50 = vadd.f32 %v363_v43, %v362_v46  ;;  %v292_v43 = vld [vmem:[%s3793_s13 + $0xd0] sm:$0xff]  ;;  %v3964_v46 = vadd.f32 %v3795_v19, %v291_v34 }
  0x31   : > { %v366_v55 = vadd.f32 %v365_v48, %v364_v50  ;;  %v383_v48 = vsel %vm337_vm1, %v3952_v30, 0.0 }
  0x33   : > { %v368_v60 = vadd.f32 %v367_v53, %v366_v55  ;;  %v3970_v53 = vadd.f32 %v3795_v19, %v292_v43  ;;  %v294_v55 = vld [vmem:[%s3793_s13 + $0xe0] sm:$0xff]  ;;  %v397_v43 = vsel %vm337_vm1, %v3994_v22, 0.0 }
  0x35   : > { %v370_v1 = vadd.f32 %v369_v58, %v368_v60  ;;  %v387_v60 = vsel %vm337_vm1, %v3964_v46, 0.0 }
  0x37   : > { %v372_v7 = vadd.f32 %v371_v62, %v370_v1  ;;  %v295_v62 = vld [vmem:[%s3793_s13 + $0xe8] sm:$0xff]  ;;  %v3982_v1 = vadd.f32 %v3795_v19, %v294_v55 }
  0x39   : > { %v374_v13 = vadd.f32 %v373_v4, %v372_v7  ;;  %v389_v4 = vsel %vm337_vm1, %v3970_v53, 0.0 }
  0x3b   : > { %v376_v23 = vadd.f32 %v375_v11, %v374_v13  ;;  %v3988_v11 = vadd.f32 %v3795_v19, %v295_v62  ;;  %v297_v13 = vld [vmem:[%s3793_s13 + $0xf8] sm:$0xff] }
  0x3c   : > { %v3999_v34 = vadd.f32 %v3795_v19, %v297_v13 }
  0x3d   : > { %v378_v37 = vadd.f32 %v377_v17, %v376_v23  ;;  %v393_v23 = vsel %vm337_vm1, %v3982_v1, 0.0 }
  0x3f   : > { %v380_v44 = vadd.f32 %v379_v33, %v378_v37  ;;  %v395_v37 = vsel %vm337_vm1, %v3988_v11, 0.0 }
  0x41   : > { %v382_v50 = vadd.f32 %v381_v40, %v380_v44 }
  0x43   : > { %v384_v58 = vadd.f32 %v383_v48, %v382_v50  ;;  %v399_v48 = vsel %vm337_vm1, %v3999_v34, 0.0 }
  0x45   : > { %v386_v0 = vadd.f32 %v385_v54, %v384_v58 }
  0x47   : > { %v388_v7 = vadd.f32 %v387_v60, %v386_v0 }
  0x49   : > { %v390_v17 = vadd.f32 %v389_v4, %v388_v7 }
  0x4b   : > { %v392_v33 = vadd.f32 %v391_v12, %v390_v17  ;;  %v899_v17 = vld [vmem:[%s4818_s5] sm:$0xff] }
  0x4d   : > { %v394_v40 = vadd.f32 %v393_v23, %v392_v33  ;;  %v900_v23 = vld [vmem:[%s4818_s5 + $0x8] sm:$0xff]  ;;  %v907_v33 = vand.u32 4294901760, %v899_v17 }
  0x4f   : > { %v396_v44 = vadd.f32 %v395_v37, %v394_v40  ;;  %v910_v37 = vand.u32 4294901760, %v900_v23 }
  0x51   : > { %v398_v49 = vadd.f32 %v397_v43, %v396_v44  ;;  %v4050_v40 = vpack.c.bf16 %v910_v37, %v907_v33  ;;  %v987_v43 = vsub.f32 %v899_v17, %v907_v33  ;;  %v994_v44 = vsub.f32 %v900_v23, %v910_v37 }
  0x53   : > { %v400_v50 = vadd.f32 %v399_v48, %v398_v49  ;;  %v901_v48 = vld [vmem:[%s4818_s5 + $0x10] sm:$0xff]  ;;  %v902_v49 = vld [vmem:[%s4818_s5 + $0x18] sm:$0xff]  ;;  %3409 = vmatpush3.bf16.msra.mxu1 %v4050_v40 }
  0x54   : > { %3410 = vmatprep.subr.bf16.mxu1 %v4824_v3 }
  0x55   : > { %v401_v54 = vrot.slane %v400_v50, 4 }
  0x57   : > { %v402_v55 = vadd.f32 %v401_v54, %v400_v50  ;;  %v913_v50 = vand.u32 4294901760, %v901_v48  ;;  %v916_v54 = vand.u32 4294901760, %v902_v49 }
  0x59   : > { %v403_v58 = vrot.slane %v402_v55, 2 }
  0x5b   : > { %v404_v60 = vadd.f32 %v403_v58, %v402_v55  ;;  %v988_v55 = vand.u32 4294901760, %v987_v43  ;;  %v995_v58 = vand.u32 4294901760, %v994_v44 }
  0x5d   : > { %v405_v62 = vrot.slane %v404_v60, 1 }
  0x5f   : > { %v406_v19 = vadd.f32 %v405_v62, %v404_v60  ;;  %v4060_v60 = vpack.c.bf16 %v916_v54, %v913_v50  ;;  %v989_v62 = vsub.f32 %v987_v43, %v988_v55 }
  0x61   : > { %v412_v0 = vsel %vm337_vm1, %v406_v19, 0  ;;  %v996_v19 = vsub.f32 %v994_v44, %v995_v58  ;;  %3412 = vmatpush3.bf16.msra.mxu1 %v4060_v60 }
  0x62   : > { %v483_v4 = vand.u32 4294901760, %v412_v0  ;;  %3413 = vmatprep.subr.bf16.mxu1 %v4824_v3 }
  0x64   : > { %v484_v5 = vsub.f32 %v412_v0, %v483_v4  ;;  %v1001_v0 = vsub.f32 %v901_v48, %v913_v50 }
  0x66   : > { %v485_v7 = vand.u32 4294901760, %v484_v5 }
  0x68   : > { %v486_v12 = vsub.f32 %v484_v5, %v485_v7 }
  0x6a   : > { %v487_v13 = vand.u32 4294901760, %v486_v12  ;;  %v1002_v12 = vand.u32 4294901760, %v1001_v0 }
  0x6c   : > { %3116 = vmatmul.mubr.f32.vlgmr.msra.gmra.mrb[0].mxu0 %v487_v13  ;;  %v1003_v23 = vsub.f32 %v1001_v0, %v1002_v12 }
  0x6d   : > { %3379 = vmatpush3.bf16.msra.mxu0 %v3887_v25  ;;  %3126 = vmatprep.mubr.msk.f32.mxu0 %vm3706_vm0, %v4820_v8 }
  0x6e   : > { %3380 = vmatprep.subr.bf16.mxu0 %v4824_v3  ;;  %v1004_v37 = vand.u32 4294901760, %v1003_v23 }
  0x71   : > { %3382 = vmatpush3.bf16.msra.mxu0 %v3894_v31 }
  0x72   : > { %3383 = vmatprep.subr.bf16.mxu0 %v4824_v3 }
  0x74   : > { %3127 = vmatmul.mubr.f32.vlgmr.msra.gmra.mrb[0].mxu0 %v483_v4 }
  0x75   : > { %3385 = vmatpush3.bf16.msra.mxu0 %v3785_v18  ;;  %3137 = vmatprep.mubr.msk.f32.mxu0 %vm3706_vm0, %v4820_v8 }
  0x76   : > { %3386 = vmatprep.subr.bf16.mxu0 %v4824_v3 }
  0x79   : > { %3388 = vmatpush3.bf16.msra.mxu0 %v3799_v20 }
  0x7a   : > { %3389 = vmatprep.subr.bf16.mxu0 %v4824_v3 }
  0x7c   : > { %3138 = vmatmul.mubr.f32.vlgmr.msra.gmra.mrb[0].mxu0 %v484_v5  ;;  %v990_v5 = vand.u32 4294901760, %v989_v62 }
  0x7d   : > { %3391 = vmatpush3.bf16.msra.mxu0 %v3769_v10  ;;  %3148 = vmatprep.mubr.msk.f32.mxu0 %vm3706_vm0, %v4820_v8 }
  0x7e   : > { %3392 = vmatprep.subr.bf16.mxu0 %v4824_v3 }
  0x81   : > { %3394 = vmatpush3.bf16.msra.mxu0 %v3778_v15 }
  0x82   : > { %3395 = vmatprep.subr.bf16.mxu0 %v4824_v3 }
  0x84   : > { %3149 = vmatmul.mubr.f32.vlgmr.msra.gmra.mrb[0].mxu0 %v485_v7  ;;  %v997_v7 = vand.u32 4294901760, %v996_v19 }
  0x85   : > { %3397 = vmatpush3.bf16.msra.mxu0 %v3804_v24  ;;  %3159 = vmatprep.mubr.msk.f32.mxu0 %vm3706_vm0, %v4820_v8  ;;  %v4068_v24 = vpack.c.bf16 %v994_v44, %v987_v43  ;;  %v4839_v43 = vmov 0.0|0.0  }
  0x86   : > { %3398 = vmatprep.subr.bf16.mxu0 %v4824_v3  ;;  %v4064_v17 = vpack.c.bf16 %v997_v7, %v990_v5 }
  0x89   : > { %3400 = vmatpush3.bf16.msra.mxu0 %v3884_v21 }
  0x8a   : > { %3401 = vmatprep.subr.bf16.mxu0 %v4824_v3 }
  0x8c   : > { %3160 = vmatmul.mubr.f32.vlgmr.msra.gmra.mrb[0].mxu0 %v483_v4 }
  0x8d   : > { %3403 = vmatpush3.bf16.msra.mxu0 %v3769_v10  ;;  %3170 = vmatprep.mubr.msk.f32.mxu0 %vm3706_vm0, %v4820_v8 }
  0x8e   : > { %3404 = vmatprep.subr.bf16.mxu0 %v4824_v3 }
  0x91   : > { %3406 = vmatpush3.bf16.msra.mxu0 %v3778_v15 }
  0x92   : > { %3443 = vmatprep.subr.bf16.mxu0 %v4824_v3 }
  0x94   : > { %3171 = vmatmul.mubr.f32.vlgmr.msra.gmra.mrb[0].mxu0 %v483_v4  ;;  %v1008_v4 = vsub.f32 %v902_v49, %v916_v54  ;;  %v4072_v49 = vpack.c.bf16 %v995_v58, %v988_v55 }
  0x95   : > { %3445 = vmatpush3.bf16.msra.mxu0 %v3769_v10  ;;  %3247 = vmatprep.mubr.msk.f32.mxu0 %vm3706_vm0, %v4820_v8 }
  0x96   : > { %3446 = vmatprep.subr.bf16.mxu0 %v4824_v3  ;;  %v1009_v13 = vand.u32 4294901760, %v1008_v4  ;;  %v4070_v48 = vpack.c.bf16 %v1008_v4, %v1001_v0 }
  0x98   : > { %v1010_v33 = vsub.f32 %v1008_v4, %v1009_v13  ;;  %v4074_v50 = vpack.c.bf16 %v1009_v13, %v1002_v12 }
  0x99   : > { %3448 = vmatpush3.bf16.msra.mxu0 %v3778_v15 }
  0x9a   : > { %3449 = vmatprep.subr.bf16.mxu0 %v4824_v3  ;;  %v1011_v8 = vand.u32 4294901760, %v1010_v33 }
  0x9c   : > { %v4066_v21 = vpack.c.bf16 %v1011_v8, %v1004_v37  ;;  %v4838_v8 = vmov 0.0  }
 0x167   : > { %v895_v54 = vpop.f32.mrb[0].mxu0 }
 0x168   : > { %v904_v62 = vsel %vm337_vm1, %v895_v54, 0  ;;  %v3172_v19 = vpop.f32.mrb[1].mxu0 }
 0x169   : > { %v975_v5 = vand.u32 4294901760, %v904_v62 }
 0x16b   : > { %v976_v7 = vsub.f32 %v904_v62, %v975_v5 }
 0x16d   : > { %v977_v3 = vand.u32 4294901760, %v976_v7 }
 0x16f   : > { %v978_v15 = vsub.f32 %v976_v7, %v977_v3 }
 0x171   : > { %v979_v23 = vand.u32 4294901760, %v978_v15 }
 0x173   : > { %3182 = vmatmul.mubr.f32.vlgmr.msra.gmra.mrb[0].mxu1 %v979_v23 }
 0x174   : > { %3415 = vmatpush3.bf16.msra.mxu1 %v4064_v17  ;;  %3192 = vmatprep.mubr.msk.f32.mxu1 %vm3706_vm0, %v4838_v8 }
 0x175   : > { %3416 = vmatprep.subr.bf16.mxu1 %v4839_v43 }
 0x178   : > { %3418 = vmatpush3.bf16.msra.mxu1 %v4066_v21 }
 0x179   : > { %3419 = vmatprep.subr.bf16.mxu1 %v4839_v43 }
 0x17b   : > { %3193 = vmatmul.mubr.f32.vlgmr.msra.gmra.mrb[0].mxu1 %v975_v5 }
 0x17c   : > { %3421 = vmatpush3.bf16.msra.mxu1 %v4068_v24  ;;  %3203 = vmatprep.mubr.msk.f32.mxu1 %vm3706_vm0, %v4838_v8 }
 0x17d   : > { %3422 = vmatprep.subr.bf16.mxu1 %v4839_v43 }
 0x180   : > { %3424 = vmatpush3.bf16.msra.mxu1 %v4070_v48 }
 0x181   : > { %3425 = vmatprep.subr.bf16.mxu1 %v4839_v43 }
 0x183   : > { %3204 = vmatmul.mubr.f32.vlgmr.msra.gmra.mrb[0].mxu1 %v976_v7 }
 0x184   : > { %3427 = vmatpush3.bf16.msra.mxu1 %v4050_v40  ;;  %3214 = vmatprep.mubr.msk.f32.mxu1 %vm3706_vm0, %v4838_v8 }
 0x185   : > { %3428 = vmatprep.subr.bf16.mxu1 %v4839_v43 }
 0x188   : > { %3430 = vmatpush3.bf16.msra.mxu1 %v4060_v60 }
 0x189   : > { %3431 = vmatprep.subr.bf16.mxu1 %v4839_v43 }
 0x18b   : > { %3215 = vmatmul.mubr.f32.vlgmr.msra.gmra.mrb[0].mxu1 %v977_v3  ;;  %v1391_v3 = vlaneseq }
 0x18c   : > { %3433 = vmatpush3.bf16.msra.mxu1 %v4072_v49  ;;  %3225 = vmatprep.mubr.msk.f32.mxu1 %vm3706_vm0, %v4838_v8 }
 0x18d   : > { %3434 = vmatprep.subr.bf16.mxu1 %v4839_v43  ;;  %v4113_v15 = vshrl.u32 %v1391_v3, 7 }
 0x18f   : > { %v4828_v58 = vsub.s32 0, %v4113_v15 }
 0x190   : > { %3436 = vmatpush3.bf16.msra.mxu1 %v4074_v50 }
 0x191   : > { %3437 = vmatprep.subr.bf16.mxu1 %v4839_v43 }
 0x193   : > { %3226 = vmatmul.mubr.f32.vlgmr.msra.gmra.mrb[0].mxu1 %v975_v5 }
 0x194   : > { %3439 = vmatpush3.bf16.msra.mxu1 %v4050_v40  ;;  %3236 = vmatprep.mubr.msk.f32.mxu1 %vm3706_vm0, %v4838_v8 }
 0x195   : > { %3440 = vmatprep.subr.bf16.mxu1 %v4839_v43 }
 0x198   : > { %3442 = vmatpush3.bf16.msra.mxu1 %v4060_v60 }
 0x199   : > { %3479 = vmatprep.subr.bf16.mxu1 %v4839_v43 }
 0x19b   : > { %3237 = vmatmul.mubr.f32.vlgmr.msra.gmra.mrb[0].mxu1 %v975_v5 }
 0x19c   : > { %3481 = vmatpush3.bf16.msra.mxu1 %v4050_v40  ;;  %3313 = vmatprep.mubr.msk.f32.mxu1 %vm3706_vm0, %v4838_v8 }
 0x19d   : > { %3482 = vmatprep.subr.bf16.mxu1 %v4839_v43 }
 0x1a0   : > { %3484 = vmatpush3.bf16.msra.mxu1 %v4060_v60 }
 0x1a1   : > { %3485 = vmatprep.subr.bf16.mxu1 %v4839_v43 }
 0x26e   : > { %v1387_v44 = vpop.f32.mrb[0].mxu1 }
 0x26f   : > { %v3238_v55 = vpop.f32.mrb[1].mxu1  ;;  %v4118_v0 = vrot.slane %v1387_v44, %v4828_v58 }
 0x271   : > { %v4122_v4 = vsub.f32 %v3808_v26, %v4118_v0  ;;  %v4126_v12 = vsub.f32 %v3811_v27, %v4118_v0  ;;  %v4130_v13 = vsub.f32 %v3815_v28, %v4118_v0  ;;  %v4134_v33 = vsub.f32 %v3823_v32, %v4118_v0 }
 0x272   : > { %v4142_v26 = vsub.f32 %v3829_v36, %v4118_v0  ;;  %v4148_v28 = vsub.f32 %v3835_v39, %v4118_v0  ;;  %v4156_v7 = vsub.f32 %v3838_v41, %v4118_v0  ;;  %v4163_v39 = vsub.f32 %v3844_v45, %v4118_v0 }
 0x273   : > { %v1427_v37 = vmul.f32 %v4122_v4, %v4122_v4  ;;  %v1428_v54 = vmul.f32 %v4126_v12, %v4126_v12  ;;  %v1429_v27 = vmul.f32 %v4130_v13, %v4130_v13  ;;  %v1430_v32 = vmul.f32 %v4134_v33, %v4134_v33 }
 0x274   : > { %v1431_v36 = vmul.f32 %v4142_v26, %v4142_v26  ;;  %v1432_v44 = vmul.f32 %v4148_v28, %v4148_v28  ;;  %v4170_v41 = vsub.f32 %v3853_v51, %v4118_v0  ;;  %v4177_v45 = vsub.f32 %v3860_v57, %v4118_v0 }
 0x275   : > { %v1459_v62 = vsel %vm337_vm1, %v1427_v37, 0.0  ;;  %v1460_v19 = vsel %vm337_vm1, %v1428_v54, 0.0  ;;  %v1462_v23 = vsel %vm337_vm1, %v1429_v27, 0.0  ;;  %v1464_v55 = vsel %vm337_vm1, %v1430_v32, 0.0 }
 0x276   : > { %v1461_v5 = vadd.f32 %v1460_v19, %v1459_v62  ;;  %v1433_v54 = vmul.f32 %v4156_v7, %v4156_v7  ;;  %v1466_v27 = vsel %vm337_vm1, %v1431_v36, 0.0  ;;  %v1434_v19 = vmul.f32 %v4163_v39, %v4163_v39 }
 0x277   : > { %v1468_v32 = vsel %vm337_vm1, %v1432_v44, 0.0  ;;  %v4184_v51 = vsub.f32 %v3867_v63, %v4118_v0  ;;  %v4191_v57 = vsub.f32 %v3874_v6, %v4118_v0  ;;  %v4198_v63 = vsub.f32 %v3880_v16, %v4118_v0 }
 0x278   : > { %v1463_v3 = vadd.f32 %v1462_v23, %v1461_v5  ;;  %v1435_v23 = vmul.f32 %v4170_v41, %v4170_v41  ;;  %v1470_v36 = vsel %vm337_vm1, %v1433_v54, 0.0  ;;  %v1472_v44 = vsel %vm337_vm1, %v1434_v19, 0.0 }
 0x279   : > { %v4205_v6 = vsub.f32 %v3890_v29, %v4118_v0  ;;  %v4212_v16 = vsub.f32 %v3898_v35, %v4118_v0  ;;  %v4219_v29 = vsub.f32 %v3904_v42, %v4118_v0  ;;  %v4226_v35 = vsub.f32 %v3910_v47, %v4118_v0 }
 0x27a   : > { %v1465_v37 = vadd.f32 %v1464_v55, %v1463_v3  ;;  %v1436_v55 = vmul.f32 %v4177_v45, %v4177_v45  ;;  %v1474_v54 = vsel %vm337_vm1, %v1435_v23, 0.0  ;;  %v4233_v42 = vsub.f32 %v3916_v52, %v4118_v0 }
 0x27b   : > { %v4240_v47 = vsub.f32 %v3922_v56, %v4118_v0  ;;  %v4247_v52 = vsub.f32 %v3928_v61, %v4118_v0  ;;  %v4254_v56 = vsub.f32 %v3934_v2, %v4118_v0  ;;  %v4261_v61 = vsub.f32 %v3940_v9, %v4118_v0 }
 0x27c   : > { %v1467_v62 = vadd.f32 %v1466_v27, %v1465_v37  ;;  %v1437_v27 = vmul.f32 %v4184_v51, %v4184_v51  ;;  %v1476_v19 = vsel %vm337_vm1, %v1436_v55, 0.0  ;;  %v4268_v2 = vsub.f32 %v3946_v14, %v4118_v0 }
 0x27d   : > { %v4275_v9 = vsub.f32 %v3952_v30, %v4118_v0  ;;  %v4282_v14 = vsub.f32 %v3958_v38, %v4118_v0  ;;  %v4289_v30 = vsub.f32 %v3964_v46, %v4118_v0  ;;  %v4296_v38 = vsub.f32 %v3970_v53, %v4118_v0 }
 0x27e   : > { %v1469_v5 = vadd.f32 %v1468_v32, %v1467_v62  ;;  %v1438_v32 = vmul.f32 %v4191_v57, %v4191_v57  ;;  %v1478_v23 = vsel %vm337_vm1, %v1437_v27, 0.0  ;;  %v4303_v46 = vsub.f32 %v3976_v59, %v4118_v0 }
 0x27f   : > { %v4310_v53 = vsub.f32 %v3982_v1, %v4118_v0  ;;  %v4317_v59 = vsub.f32 %v3988_v11, %v4118_v0  ;;  %v4324_v1 = vsub.f32 %v3994_v22, %v4118_v0  ;;  %v4331_v11 = vsub.f32 %v3999_v34, %v4118_v0 }
 0x280   : > { %v1471_v3 = vadd.f32 %v1470_v36, %v1469_v5  ;;  %v1439_v36 = vmul.f32 %v4198_v63, %v4198_v63  ;;  %v1480_v55 = vsel %vm337_vm1, %v1438_v32, 0.0  ;;  %4840 = vst [vmem:[#allocation5_spill] sm:$0xff] %v4303_v46 }
 0x281   : > { %4841 = vst [vmem:[#allocation6_spill] sm:$0xff] %v4310_v53  ;;  %4842 = vst [vmem:[#allocation7_spill] sm:$0xff] %v4317_v59  ;;  %v1457_v22 = vmul.f32 %v4324_v1, %v4324_v1 }
 0x282   : > { %v1473_v37 = vadd.f32 %v1472_v44, %v1471_v3  ;;  %v1440_v44 = vmul.f32 %v4205_v6, %v4205_v6  ;;  %v1482_v27 = vsel %vm337_vm1, %v1439_v36, 0.0  ;;  %4843 = vst [vmem:[#allocation8_spill] sm:$0xff] %v4324_v1  ;;  %4844 = vst [vmem:[#allocation9_spill] sm:$0xff] %v4331_v11 }
 0x283   : > { %v1518_v34 = vsel %vm337_vm1, %v1457_v22, 0.0 }
 0x284   : > { %v1475_v62 = vadd.f32 %v1474_v54, %v1473_v37  ;;  %v1441_v54 = vmul.f32 %v4212_v16, %v4212_v16  ;;  %v1484_v32 = vsel %vm337_vm1, %v1440_v44, 0.0 }
 0x286   : > { %v1477_v5 = vadd.f32 %v1476_v19, %v1475_v62  ;;  %v1442_v19 = vmul.f32 %v4219_v29, %v4219_v29  ;;  %v1486_v36 = vsel %vm337_vm1, %v1441_v54, 0.0 }
 0x288   : > { %v1479_v3 = vadd.f32 %v1478_v23, %v1477_v5  ;;  %v1443_v23 = vmul.f32 %v4226_v35, %v4226_v35  ;;  %v1488_v44 = vsel %vm337_vm1, %v1442_v19, 0.0 }
 0x28a   : > { %v1481_v37 = vadd.f32 %v1480_v55, %v1479_v3  ;;  %v1444_v55 = vmul.f32 %v4233_v42, %v4233_v42  ;;  %v1490_v54 = vsel %vm337_vm1, %v1443_v23, 0.0 }
 0x28c   : > { %v1483_v62 = vadd.f32 %v1482_v27, %v1481_v37  ;;  %v1445_v27 = vmul.f32 %v4240_v47, %v4240_v47  ;;  %v1492_v19 = vsel %vm337_vm1, %v1444_v55, 0.0 }
 0x28e   : > { %v1485_v5 = vadd.f32 %v1484_v32, %v1483_v62  ;;  %v1446_v32 = vmul.f32 %v4247_v52, %v4247_v52  ;;  %v1494_v23 = vsel %vm337_vm1, %v1445_v27, 0.0 }
 0x290   : > { %v1487_v3 = vadd.f32 %v1486_v36, %v1485_v5  ;;  %v1447_v36 = vmul.f32 %v4254_v56, %v4254_v56  ;;  %v1496_v55 = vsel %vm337_vm1, %v1446_v32, 0.0 }
 0x292   : > { %v1489_v37 = vadd.f32 %v1488_v44, %v1487_v3  ;;  %v1448_v44 = vmul.f32 %v4261_v61, %v4261_v61  ;;  %v1498_v27 = vsel %vm337_vm1, %v1447_v36, 0.0 }
 0x294   : > { %v1491_v62 = vadd.f32 %v1490_v54, %v1489_v37  ;;  %v1449_v54 = vmul.f32 %v4268_v2, %v4268_v2  ;;  %v1500_v32 = vsel %vm337_vm1, %v1448_v44, 0.0 }
 0x296   : > { %v1493_v5 = vadd.f32 %v1492_v19, %v1491_v62  ;;  %v1450_v19 = vmul.f32 %v4275_v9, %v4275_v9  ;;  %v1502_v36 = vsel %vm337_vm1, %v1449_v54, 0.0 }
 0x298   : > { %v1495_v3 = vadd.f32 %v1494_v23, %v1493_v5  ;;  %v1451_v23 = vmul.f32 %v4282_v14, %v4282_v14  ;;  %v1504_v44 = vsel %vm337_vm1, %v1450_v19, 0.0 }
 0x29a   : > { %v1497_v37 = vadd.f32 %v1496_v55, %v1495_v3  ;;  %v1452_v55 = vmul.f32 %v4289_v30, %v4289_v30  ;;  %v1506_v54 = vsel %vm337_vm1, %v1451_v23, 0.0 }
 0x29c   : > { %v1499_v62 = vadd.f32 %v1498_v27, %v1497_v37  ;;  %v1453_v27 = vmul.f32 %v4296_v38, %v4296_v38  ;;  %v1508_v19 = vsel %vm337_vm1, %v1452_v55, 0.0 }
 0x29e   : > { %v1501_v5 = vadd.f32 %v1500_v32, %v1499_v62  ;;  %v1454_v32 = vmul.f32 %v4303_v46, %v4303_v46  ;;  %v1510_v23 = vsel %vm337_vm1, %v1453_v27, 0.0  ;;  %v1458_v27 = vmul.f32 %v4331_v11, %v4331_v11 }
 0x2a0   : > { %v1503_v3 = vadd.f32 %v1502_v36, %v1501_v5  ;;  %v1455_v36 = vmul.f32 %v4310_v53, %v4310_v53  ;;  %v1512_v55 = vsel %vm337_vm1, %v1454_v32, 0.0 }
 0x2a2   : > { %v1505_v37 = vadd.f32 %v1504_v44, %v1503_v3  ;;  %v1456_v44 = vmul.f32 %v4317_v59, %v4317_v59 }
 0x2a4   : > { %v1507_v62 = vadd.f32 %v1506_v54, %v1505_v37  ;;  %v1514_v54 = vsel %vm337_vm1, %v1455_v36, 0.0 }
 0x2a6   : > { %v1509_v5 = vadd.f32 %v1508_v19, %v1507_v62  ;;  %v1516_v19 = vsel %vm337_vm1, %v1456_v44, 0.0 }
 0x2a8   : > { %v1511_v3 = vadd.f32 %v1510_v23, %v1509_v5  ;;  %v1520_v23 = vsel %vm337_vm1, %v1458_v27, 0.0 }
 0x2aa   : > { %v1513_v37 = vadd.f32 %v1512_v55, %v1511_v3 }
 0x2ac   : > { %v1515_v62 = vadd.f32 %v1514_v54, %v1513_v37 }
 0x2ae   : > { %v1517_v5 = vadd.f32 %v1516_v19, %v1515_v62 }
 0x2b0   : > { %v1519_v0 = vadd.f32 %v1518_v34, %v1517_v5 }
 0x2b2   : > { %v1521_v58 = vadd.f32 %v1520_v23, %v1519_v0 }
 0x2b4   : > { %v1522_v32 = vrot.slane %v1521_v58, 4 }
 0x2b6   : > { %v1523_v3 = vadd.f32 %v1522_v32, %v1521_v58 }
 0x2b8   : > { %v1524_v55 = vrot.slane %v1523_v3, 2 }
 0x2ba   : > { %v1525_v59 = vadd.f32 %v1524_v55, %v1523_v3 }
 0x2bc   : > { %v1526_v1 = vrot.slane %v1525_v59, 1 }
 0x2be   : > { %v1527_v53 = vadd.f32 %v1526_v1, %v1525_v59 }
 0x2c0   : > { %v1529_v36 = vsel %vm337_vm1, %v1527_v53, 0 }
 0x2c1   : > { %v1600_v37 = vand.u32 4294901760, %v1529_v36 }
 0x2c3   : > { %v1601_v54 = vsub.f32 %v1529_v36, %v1600_v37 }
 0x2c5   : > { %v1602_v11 = vand.u32 4294901760, %v1601_v54 }
 0x2c7   : > { %v1603_v46 = vsub.f32 %v1601_v54, %v1602_v11 }
 0x2c9   : > { %v1604_v44 = vand.u32 4294901760, %v1603_v46 }
 0x2cb   : > { %3248 = vmatmul.mubr.f32.vlgmr.msra.gmra.mrb[2].mxu0 %v1604_v44  ;;  %v4851_v44 = vld [vmem:[#allocation7_spill] sm:$0xff] }
 0x2cc   : > { %3451 = vmatpush3.bf16.msra.mxu0 %v3887_v25  ;;  %3258 = vmatprep.mubr.msk.f32.mxu0 %vm3706_vm0, %v4838_v8  ;;  %v4845_v25 = vld [vmem:[#allocation2_spill] sm:$0xff] }
 0x2cd   : > { %3452 = vmatprep.subr.bf16.mxu0 %v4839_v43 }
 0x2d0   : > { %3454 = vmatpush3.bf16.msra.mxu0 %v3894_v31 }
 0x2d1   : > { %3455 = vmatprep.subr.bf16.mxu0 %v4839_v43 }
 0x2d3   : > { %3259 = vmatmul.mubr.f32.vlgmr.msra.gmra.mrb[2].mxu0 %v1600_v37 }
 0x2d4   : > { %3457 = vmatpush3.bf16.msra.mxu0 %v3785_v18  ;;  %3269 = vmatprep.mubr.msk.f32.mxu0 %vm3706_vm0, %v4838_v8  ;;  %v4846_v18 = vld [vmem:[#allocation3_spill] sm:$0xff] }
 0x2d5   : > { %3458 = vmatprep.subr.bf16.mxu0 %v4839_v43 }
 0x2d8   : > { %3460 = vmatpush3.bf16.msra.mxu0 %v3799_v20  ;;  %v4847_v20 = vld [vmem:[#allocation4_spill] sm:$0xff] }
 0x2d9   : > { %3461 = vmatprep.subr.bf16.mxu0 %v4839_v43 }
 0x2db   : > { %3270 = vmatmul.mubr.f32.vlgmr.msra.gmra.mrb[2].mxu0 %v1601_v54 }
 0x2dc   : > { %3463 = vmatpush3.bf16.msra.mxu0 %v3769_v10  ;;  %3280 = vmatprep.mubr.msk.f32.mxu0 %vm3706_vm0, %v4838_v8 }
 0x2dd   : > { %3464 = vmatprep.subr.bf16.mxu0 %v4839_v43 }
 0x2e0   : > { %3466 = vmatpush3.bf16.msra.mxu0 %v4845_v25 }
 0x2e1   : > { %3467 = vmatprep.subr.bf16.mxu0 %v4839_v43 }
 0x2e3   : > { %3281 = vmatmul.mubr.f32.vlgmr.msra.gmra.mrb[2].mxu0 %v1602_v11 }
 0x2e4   : > { %3469 = vmatpush3.bf16.msra.mxu0 %v4846_v18  ;;  %3291 = vmatprep.mubr.msk.f32.mxu0 %vm3706_vm0, %v4838_v8 }
 0x2e5   : > { %3470 = vmatprep.subr.bf16.mxu0 %v4839_v43 }
 0x2e8   : > { %3472 = vmatpush3.bf16.msra.mxu0 %v4847_v20 }
 0x2e9   : > { %3473 = vmatprep.subr.bf16.mxu0 %v4839_v43 }
 0x2eb   : > { %3292 = vmatmul.mubr.f32.vlgmr.msra.gmra.mrb[2].mxu0 %v1600_v37 }
 0x2ec   : > { %3475 = vmatpush3.bf16.msra.mxu0 %v3769_v10  ;;  %3302 = vmatprep.mubr.msk.f32.mxu0 %vm3706_vm0, %v4838_v8 }
 0x2ed   : > { %3476 = vmatprep.subr.bf16.mxu0 %v4839_v43 }
 0x2f0   : > { %3478 = vmatpush3.bf16.msra.mxu0 %v4845_v25 }
 0x2f3   : > { %3303 = vmatmul.mubr.f32.vlgmr.msra.gmra.mrb[2].mxu0 %v1600_v37  ;;  %v4850_v37 = vld [vmem:[#allocation6_spill] sm:$0xff] }
 0x3c6   : > { %v2012_v31 = vpop.f32.mrb[2].mxu0 }
 0x3c7   : > { %v2017_v58 = vsel %vm337_vm1, %v2012_v31, 0  ;;  %v3304_v46 = vpop.f32.mrb[3].mxu0 }
 0x3c8   : > { %v2088_v53 = vand.u32 4294901760, %v2017_v58 }
 0x3ca   : > { %v2089_v59 = vsub.f32 %v2017_v58, %v2088_v53 }
 0x3cc   : > { %v2090_v1 = vand.u32 4294901760, %v2089_v59 }
 0x3ce   : > { %v2091_v11 = vsub.f32 %v2089_v59, %v2090_v1 }
 0x3d0   : > { %v2092_v22 = vand.u32 4294901760, %v2091_v11 }
 0x3d2   : > { %3314 = vmatmul.mubr.f32.vlgmr.msra.gmra.mrb[2].mxu1 %v2092_v22 }
 0x3d3   : > { %3487 = vmatpush3.bf16.msra.mxu1 %v4064_v17  ;;  %3324 = vmatprep.mubr.msk.f32.mxu1 %vm3706_vm0, %v4838_v8 }
 0x3d4   : > { %3488 = vmatprep.subr.bf16.mxu1 %v4839_v43 }
 0x3d7   : > { %3490 = vmatpush3.bf16.msra.mxu1 %v4066_v21 }
 0x3d8   : > { %3491 = vmatprep.subr.bf16.mxu1 %v4839_v43 }
 0x3da   : > { %3325 = vmatmul.mubr.f32.vlgmr.msra.gmra.mrb[2].mxu1 %v2088_v53 }
 0x3db   : > { %3493 = vmatpush3.bf16.msra.mxu1 %v4068_v24  ;;  %3335 = vmatprep.mubr.msk.f32.mxu1 %vm3706_vm0, %v4838_v8 }
 0x3dc   : > { %3494 = vmatprep.subr.bf16.mxu1 %v4839_v43 }
 0x3df   : > { %3496 = vmatpush3.bf16.msra.mxu1 %v4070_v48  ;;  %v4848_v48 = vsub.s32 0, %v4113_v15  ;;  %v4417_v15 = vld [vmem:[%s4815_s2] ss:$0 sm:$0xff] }
 0x3e0   : > { %3497 = vmatprep.subr.bf16.mxu1 %v4839_v43 }
 0x3e2   : > { %3336 = vmatmul.mubr.f32.vlgmr.msra.gmra.mrb[2].mxu1 %v2089_v59 }
 0x3e3   : > { %3499 = vmatpush3.bf16.msra.mxu1 %v4050_v40  ;;  %3346 = vmatprep.mubr.msk.f32.mxu1 %vm3706_vm0, %v4838_v8 }
 0x3e4   : > { %3500 = vmatprep.subr.bf16.mxu1 %v4839_v43 }
 0x3e7   : > { %3502 = vmatpush3.bf16.msra.mxu1 %v4060_v60 }
 0x3e8   : > { %3503 = vmatprep.subr.bf16.mxu1 %v4839_v43 }
 0x3ea   : > { %3347 = vmatmul.mubr.f32.vlgmr.msra.gmra.mrb[2].mxu1 %v2090_v1 }
 0x3eb   : > { %3505 = vmatpush3.bf16.msra.mxu1 %v4072_v49  ;;  %3357 = vmatprep.mubr.msk.f32.mxu1 %vm3706_vm0, %v4838_v8 }
 0x3ec   : > { %3506 = vmatprep.subr.bf16.mxu1 %v4839_v43 }
 0x3ef   : > { %3508 = vmatpush3.bf16.msra.mxu1 %v4074_v50 }
 0x3f0   : > { %3509 = vmatprep.subr.bf16.mxu1 %v4839_v43 }
 0x3f2   : > { %3358 = vmatmul.mubr.f32.vlgmr.msra.gmra.mrb[2].mxu1 %v2088_v53 }
 0x3f3   : > { %3511 = vmatpush3.bf16.msra.mxu1 %v4050_v40  ;;  %3368 = vmatprep.mubr.msk.f32.mxu1 %vm3706_vm0, %v4838_v8 }
 0x3f4   : > { %3512 = vmatprep.subr.bf16.mxu1 %v4839_v43 }
 0x3f7   : > { %3514 = vmatpush3.bf16.msra.mxu1 %v4060_v60 }
 0x3fa   : > { %3369 = vmatmul.mubr.f32.vlgmr.msra.gmra.mrb[2].mxu1 %v2088_v53 }
 0x4cd   : > { %v2500_v10 = vpop.f32.mrb[2].mxu1 }
 0x4ce   : > { %v3370_v24 = vpop.f32.mrb[3].mxu1  ;;  %v3515_v21 = vadd.f32 1e-05, %v2500_v10  ;;  %v4853_v10 = vld [vmem:[#allocation9_spill] sm:$0xff] }
 0x4d0   : > { %3567 = vrsqrt.f32 %v3515_v21 }
 0x4da   : > { %v3568_v17 = vpop.eup %3567 }
 0x4db   : > { %v2508_v49 = vrot.slane %v3568_v17, %v4848_v48 }
 0x4dd   : > { %v2509_v50 = vmul.f32 %v2508_v49, %v4122_v4  ;;  %v2510_v40 = vmul.f32 %v2508_v49, %v4126_v12  ;;  %v2511_v62 = vmul.f32 %v2508_v49, %v4130_v13  ;;  %v2512_v8 = vmul.f32 %v2508_v49, %v4134_v33 }
 0x4de   : > { %v2513_v43 = vmul.f32 %v2508_v49, %v4142_v26  ;;  %v2514_v60 = vmul.f32 %v2508_v49, %v4148_v28  ;;  %v2515_v27 = vmul.f32 %v2508_v49, %v4156_v7  ;;  %v2516_v19 = vmul.f32 %v2508_v49, %v4163_v39 }
 0x4df   : > { %v2517_v4 = vmul.f32 %v2508_v49, %v4170_v41  ;;  %v2518_v12 = vmul.f32 %v2508_v49, %v4177_v45  ;;  %v2519_v13 = vmul.f32 %v2508_v49, %v4184_v51  ;;  %v2520_v33 = vmul.f32 %v2508_v49, %v4191_v57 }
 0x4e0   : > { %v2521_v26 = vmul.f32 %v2508_v49, %v4198_v63  ;;  %v2522_v28 = vmul.f32 %v2508_v49, %v4205_v6  ;;  %v2523_v7 = vmul.f32 %v2508_v49, %v4212_v16  ;;  %v2524_v39 = vmul.f32 %v2508_v49, %v4219_v29  ;;  %v4440_v16 = vld [vmem:[%s4816_s3] ss:$0 sm:$0xff] }
 0x4e1   : > { %v2525_v5 = vmul.f32 %v2508_v49, %v4226_v35  ;;  %v2548_v34 = vmul.f32 %v4417_v15, %v2509_v50  ;;  %v2549_v41 = vmul.f32 %v4417_v15, %v2510_v40  ;;  %v2550_v45 = vmul.f32 %v4417_v15, %v2511_v62 }
 0x4e2   : > { %v2526_v51 = vmul.f32 %v2508_v49, %v4233_v42  ;;  %v2527_v57 = vmul.f32 %v2508_v49, %v4240_v47  ;;  %v4434_v63 = vmul.f32 %v2508_v49, %v4247_v52  ;;  %v2551_v6 = vmul.f32 %v4417_v15, %v2512_v8 }
 0x4e3   : > { %v4443_v29 = vmul.f32 %v2508_v49, %v4254_v56  ;;  %v4446_v35 = vmul.f32 %v2508_v49, %v4261_v61  ;;  %v4449_v42 = vmul.f32 %v2508_v49, %v4268_v2  ;;  %v2552_v47 = vmul.f32 %v4417_v15, %v2513_v43 }
 0x4e4   : > { %v4453_v52 = vmul.f32 %v2508_v49, %v4275_v9  ;;  %v4456_v0 = vmul.f32 %v2508_v49, %v4282_v14  ;;  %v4459_v23 = vmul.f32 %v2508_v49, %v4289_v30  ;;  %v2553_v56 = vmul.f32 %v4417_v15, %v2514_v60  ;;  %v4849_v14 = vld [vmem:[#allocation5_spill] sm:$0xff] }
 0x4e5   : > { %v2554_v32 = vmul.f32 %v4417_v15, %v2515_v27  ;;  %v4464_v61 = vadd.f32 %v4440_v16, %v2548_v34  ;;  %v4467_v2 = vadd.f32 %v4440_v16, %v2549_v41  ;;  %v4470_v3 = vadd.f32 %v4440_v16, %v2550_v45 }
 0x4e6   : > { %v4473_v9 = vmul.f32 %v2508_v49, %v4296_v38  ;;  %v4476_v55 = vmul.f32 %v2508_v49, %v4849_v14  ;;  %v2555_v30 = vmul.f32 %v4417_v15, %v2516_v19  ;;  %v4480_v36 = vadd.f32 %v4440_v16, %v2551_v6  ;;  %v4852_v38 = vld [vmem:[#allocation8_spill] sm:$0xff] }
 0x4e7   : > { %v4483_v54 = vmul.f32 %v2508_v49, %v4850_v37  ;;  %v4486_v25 = vmul.f32 %v2508_v49, %v4851_v44  ;;  %v2556_v18 = vmul.f32 %v4417_v15, %v2517_v4  ;;  %v4490_v20 = vadd.f32 %v4440_v16, %v2552_v47 }
 0x4e8   : > { %v4493_v31 = vmul.f32 %v2508_v49, %v4852_v38  ;;  %v2557_v58 = vmul.f32 %v4417_v15, %v2518_v12  ;;  %v2558_v46 = vmul.f32 %v4417_v15, %v2519_v13  ;;  %v4498_v53 = vadd.f32 %v4440_v16, %v2553_v56 }
 0x4e9   : > { %v4501_v59 = vadd.f32 %v4440_v16, %v2554_v32  ;;  %v2951_v1 = vmul.f32 -1.442695, %v4464_v61  ;;  %v2952_v11 = vmul.f32 -1.442695, %v4467_v2  ;;  %v2953_v22 = vmul.f32 -1.442695, %v4470_v3 }
 0x4ea   : > { %v4507_v24 = vmul.f32 %v2508_v49, %v4853_v10  ;;  %v2559_v21 = vmul.f32 %v4417_v15, %v2520_v33  ;;  %v4511_v17 = vadd.f32 %v4440_v16, %v2555_v30  ;;  %v2954_v48 = vmul.f32 -1.442695, %v4480_v36 }
 0x4eb   : > { %v2560_v50 = vmul.f32 %v4417_v15, %v2521_v26  ;;  %v4516_v40 = vadd.f32 %v4440_v16, %v2556_v18  ;;  %3569 = vpow2.f32 %v2951_v1  ;;  %v2955_v62 = vmul.f32 -1.442695, %v4490_v20 }
 0x4ec   : > { %v2561_v8 = vmul.f32 %v4417_v15, %v2522_v28  ;;  %v4521_v49 = vadd.f32 %v4440_v16, %v2557_v58  ;;  %3571 = vpow2.f32 %v2952_v11  ;;  %v2956_v43 = vmul.f32 -1.442695, %v4498_v53 }
 0x4ed   : > { %v2562_v60 = vmul.f32 %v4417_v15, %v2523_v7  ;;  %v4526_v27 = vadd.f32 %v4440_v16, %v2558_v46  ;;  %3573 = vpow2.f32 %v2953_v22  ;;  %v2957_v19 = vmul.f32 -1.442695, %v4501_v59 }
 0x4ee   : > { %v2563_v4 = vmul.f32 %v4417_v15, %v2524_v39  ;;  %v4531_v12 = vadd.f32 %v4440_v16, %v2559_v21  ;;  %3575 = vpow2.f32 %v2954_v48  ;;  %v2958_v13 = vmul.f32 -1.442695, %v4511_v17 }
 0x4ef   : > { %v2564_v33 = vmul.f32 %v4417_v15, %v2525_v5  ;;  %v4536_v26 = vadd.f32 %v4440_v16, %v2560_v50  ;;  %3577 = vpow2.f32 %v2955_v62  ;;  %v2959_v28 = vmul.f32 -1.442695, %v4516_v40 }
 0x4f0   : > { %v2565_v7 = vmul.f32 %v4417_v15, %v2526_v51  ;;  %v4541_v34 = vadd.f32 %v4440_v16, %v2561_v8  ;;  %3579 = vpow2.f32 %v2956_v43  ;;  %v2960_v39 = vmul.f32 -1.442695, %v4521_v49 }
 0x4f1   : > { %v2566_v41 = vmul.f32 %v4417_v15, %v2527_v57  ;;  %v4546_v45 = vadd.f32 %v4440_v16, %v2562_v60  ;;  %3581 = vpow2.f32 %v2957_v19  ;;  %v2961_v5 = vmul.f32 -1.442695, %v4526_v27 }
 0x4f2   : > { %v2567_v6 = vmul.f32 %v4417_v15, %v4434_v63  ;;  %v4552_v47 = vadd.f32 %v4440_v16, %v2563_v4  ;;  %3583 = vpow2.f32 %v2958_v13  ;;  %v2962_v51 = vmul.f32 -1.442695, %v4531_v12 }
 0x4f3   : > { %v2568_v56 = vmul.f32 %v4417_v15, %v4443_v29  ;;  %v4558_v57 = vadd.f32 %v4440_v16, %v2564_v33  ;;  %3585 = vpow2.f32 %v2959_v28  ;;  %v2963_v32 = vmul.f32 -1.442695, %v4536_v26 }
 0x4f4   : > { %v2569_v14 = vmul.f32 %v4417_v15, %v4446_v35  ;;  %v4564_v63 = vadd.f32 %v4440_v16, %v2565_v7  ;;  %3587 = vpow2.f32 %v2960_v39  ;;  %v2964_v30 = vmul.f32 -1.442695, %v4541_v34 }
 0x4f5   : > { %v4567_v37 = vpop.eup %3569  ;;  %v2570_v29 = vmul.f32 %v4417_v15, %v4449_v42  ;;  %v4572_v44 = vadd.f32 %v4440_v16, %v2566_v41  ;;  %3589 = vpow2.f32 %v2961_v5  ;;  %v2965_v18 = vmul.f32 -1.442695, %v4546_v45 }
 0x4f6   : > { %v4575_v38 = vpop.eup %3571  ;;  %v2571_v35 = vmul.f32 %v4417_v15, %v4453_v52  ;;  %v4580_v58 = vadd.f32 %v4440_v16, %v2567_v6  ;;  %3591 = vpow2.f32 %v2962_v51  ;;  %v2966_v46 = vmul.f32 -1.442695, %v4552_v47 }
 0x4f7   : > { %v4583_v1 = vpop.eup %3573  ;;  %v2572_v42 = vmul.f32 %v4417_v15, %v4456_v0  ;;  %v4588_v11 = vadd.f32 %v4440_v16, %v2568_v56  ;;  %3593 = vpow2.f32 %v2963_v32  ;;  %v2967_v22 = vmul.f32 -1.442695, %v4558_v57 }
 0x4f8   : > { %v4591_v10 = vpop.eup %3575  ;;  %v2573_v52 = vmul.f32 %v4417_v15, %v4459_v23  ;;  %v4596_v21 = vadd.f32 %v4440_v16, %v2569_v14  ;;  %3595 = vpow2.f32 %v2964_v30  ;;  %v2968_v48 = vmul.f32 -1.442695, %v4564_v63 }
 0x4f9   : > { %v4599_v50 = vpop.eup %3577  ;;  %v2574_v0 = vmul.f32 %v4417_v15, %v4473_v9  ;;  %v4604_v62 = vadd.f32 %v4440_v16, %v2570_v29  ;;  %3597 = vpow2.f32 %v2965_v18  ;;  %v2969_v8 = vmul.f32 -1.442695, %v4572_v44 }
 0x4fa   : > { %v4607_v43 = vpop.eup %3579  ;;  %v2575_v23 = vmul.f32 %v4417_v15, %v4476_v55  ;;  %v4612_v60 = vadd.f32 %v4440_v16, %v2571_v35  ;;  %3599 = vpow2.f32 %v2966_v46  ;;  %v2970_v19 = vmul.f32 -1.442695, %v4580_v58 }
 0x4fb   : > { %v4615_v4 = vpop.eup %3581  ;;  %v2576_v9 = vmul.f32 %v4417_v15, %v4483_v54  ;;  %v4620_v13 = vadd.f32 %v4440_v16, %v2572_v42  ;;  %3601 = vpow2.f32 %v2967_v22  ;;  %v2971_v33 = vmul.f32 -1.442695, %v4588_v11 }
 0x4fc   : > { %v4623_v28 = vpop.eup %3583  ;;  %v2577_v55 = vmul.f32 %v4417_v15, %v4486_v25  ;;  %v4628_v7 = vadd.f32 %v4440_v16, %v2573_v52  ;;  %3603 = vpow2.f32 %v2968_v48  ;;  %v2972_v39 = vmul.f32 -1.442695, %v4596_v21 }
 0x4fd   : > { %v3586_v41 = vpop.eup %3585  ;;  %v2578_v54 = vmul.f32 %v4417_v15, %v4493_v31  ;;  %v4634_v5 = vadd.f32 %v4440_v16, %v2574_v0  ;;  %3605 = vpow2.f32 %v2969_v8  ;;  %v2973_v6 = vmul.f32 -1.442695, %v4604_v62 }
 0x4fe   : > { %v3588_v51 = vpop.eup %3587  ;;  %v2579_v25 = vmul.f32 %v4417_v15, %v4507_v24  ;;  %v4640_v56 = vadd.f32 %v4440_v16, %v2575_v23  ;;  %3607 = vpow2.f32 %v2970_v19  ;;  %v2974_v32 = vmul.f32 -1.442695, %v4612_v60 }
 0x4ff   : > { %v3590_v14 = vpop.eup %3589  ;;  %v4644_v30 = vadd.f32 %v4440_v16, %v2576_v9  ;;  %3609 = vpow2.f32 %v2971_v33  ;;  %v2975_v31 = vmul.f32 -1.442695, %v4620_v13  ;;  %v4648_v18 = vadd.f32 %v4440_v16, %v2577_v55 }
 0x500   : > { %v3592_v29 = vpop.eup %3591  ;;  %3611 = vpow2.f32 %v2972_v39  ;;  %v2976_v15 = vmul.f32 -1.442695, %v4628_v7  ;;  %v4652_v35 = vadd.f32 %v4440_v16, %v2578_v54  ;;  %v2977_v46 = vmul.f32 -1.442695, %v4634_v5 }
 0x501   : > { %v3594_v24 = vpop.eup %3593  ;;  %3613 = vpow2.f32 %v2973_v6  ;;  %v4656_v22 = vadd.f32 %v4440_v16, %v2579_v25  ;;  %v2978_v52 = vmul.f32 -1.442695, %v4640_v56  ;;  %v2979_v0 = vmul.f32 -1.442695, %v4644_v30 }
 0x502   : > { %v3596_v42 = vpop.eup %3595  ;;  %3615 = vpow2.f32 %v2974_v32  ;;  %v2980_v23 = vmul.f32 -1.442695, %v4648_v18  ;;  %v2981_v9 = vmul.f32 -1.442695, %v4652_v35  ;;  %v2715_v39 = vadd.f32 1.0, %v4567_v37 }
 0x503   : > { %4854 = vst [vmem:[#allocation2_spill] sm:$0xff] %v4656_v22  ;;  %v3598_v48 = vpop.eup %3597  ;;  %3617 = vpow2.f32 %v2975_v31  ;;  %v2982_v16 = vmul.f32 -1.442695, %v4656_v22  ;;  %v2716_v6 = vadd.f32 1.0, %v4575_v38  ;;  %v2717_v32 = vadd.f32 1.0, %v4583_v1 }
 0x504   : > { %v3600_v8 = vpop.eup %3599  ;;  %3619 = vpow2.f32 %v2976_v15  ;;  %v2718_v15 = vadd.f32 1.0, %v4591_v10 }
 0x505   : > { %v3602_v19 = vpop.eup %3601  ;;  %3621 = vpow2.f32 %v2977_v46 }
 0x506   : > { %v3604_v33 = vpop.eup %3603  ;;  %3623 = vpow2.f32 %v2978_v52  ;;  %v2719_v52 = vadd.f32 1.0, %v4599_v50 }
 0x507   : > { %v3606_v55 = vpop.eup %3605  ;;  %3625 = vpow2.f32 %v2979_v0  ;;  %v2720_v0 = vadd.f32 1.0, %v4607_v43 }
 0x508   : > { %v3608_v54 = vpop.eup %3607  ;;  %3627 = vpow2.f32 %v2980_v23  ;;  %v2721_v23 = vadd.f32 1.0, %v4615_v4 }
 0x509   : > { %v4665_v25 = vpop.eup %3609  ;;  %3629 = vpow2.f32 %v2981_v9  ;;  %v2722_v9 = vadd.f32 1.0, %v4623_v28  ;;  %v2727_v28 = vadd.f32 1.0, %v3594_v24 }
 0x50a   : > { %v4668_v31 = vpop.eup %3611  ;;  %3631 = vpow2.f32 %v2982_v16  ;;  %v2723_v16 = vadd.f32 1.0, %v3586_v41  ;;  %v2728_v41 = vadd.f32 1.0, %v3596_v42 }
 0x50b   : > { %v4671_v46 = vpop.eup %3613  ;;  %3633 = vrcp.f32 %v2715_v39  ;;  %v2724_v39 = vadd.f32 1.0, %v3588_v51  ;;  %v2729_v51 = vadd.f32 1.0, %v3598_v48 }
 0x50c   : > { %v4674_v37 = vpop.eup %3615  ;;  %3635 = vrcp.f32 %v2716_v6  ;;  %v2725_v6 = vadd.f32 1.0, %v3590_v14 }
 0x50d   : > { %v4677_v38 = vpop.eup %3617  ;;  %3637 = vrcp.f32 %v2717_v32  ;;  %v2726_v32 = vadd.f32 1.0, %v3592_v29  ;;  %v2730_v29 = vadd.f32 1.0, %v3600_v8  ;;  %v2733_v8 = vadd.f32 1.0, %v3606_v55 }
 0x50e   : > { %v4680_v1 = vpop.eup %3619  ;;  %3639 = vrcp.f32 %v2718_v15 }
 0x50f   : > { %v4683_v10 = vpop.eup %3621  ;;  %3641 = vrcp.f32 %v2719_v52 }
 0x510   : > { %v4685_v50 = vpop.eup %3623  ;;  %3643 = vrcp.f32 %v2720_v0 }
 0x511   : > { %v4687_v43 = vpop.eup %3625  ;;  %3645 = vrcp.f32 %v2721_v23  ;;  %v2731_v23 = vadd.f32 1.0, %v3602_v19  ;;  %v2734_v19 = vadd.f32 1.0, %v3608_v54 }
 0x512   : > { %v4689_v4 = vpop.eup %3627  ;;  %3647 = vrcp.f32 %v2722_v9 }
 0x513   : > { %v4691_v22 = vpop.eup %3629  ;;  %3649 = vrcp.f32 %v2723_v16  ;;  %v2732_v16 = vadd.f32 1.0, %v3604_v33  ;;  %v2735_v33 = vadd.f32 1.0, %v4665_v25 }
 0x514   : > { %v4693_v15 = vpop.eup %3631  ;;  %3651 = vrcp.f32 %v2724_v39 }
 0x515   : > { %v3634_v52 = vpop.eup %3633  ;;  %3653 = vrcp.f32 %v2725_v6 }
 0x516   : > { %v3636_v14 = vpop.eup %3635  ;;  %3655 = vrcp.f32 %v2726_v32  ;;  %v2811_v24 = vmul.f32 %v3634_v52, %v4464_v61  ;;  %v2736_v32 = vadd.f32 1.0, %v4668_v31  ;;  %v2739_v52 = vadd.f32 1.0, %v4677_v38 }
 0x517   : > { %v3638_v0 = vpop.eup %3637  ;;  %3657 = vrcp.f32 %v2727_v28  ;;  %v2812_v42 = vmul.f32 %v3636_v14, %v4467_v2  ;;  %v2737_v28 = vadd.f32 1.0, %v4671_v46  ;;  %v2741_v14 = vadd.f32 1.0, %v4683_v10 }
 0x518   : > { %v3640_v9 = vpop.eup %3639  ;;  %3659 = vrcp.f32 %v2728_v41  ;;  %v2813_v39 = vmul.f32 %v3638_v0, %v4470_v3  ;;  %2843 = vst.msk [vmem:[%s4700_s30] sm:$0xff] %vm337_vm1, %v2811_v24  ;;  %v2738_v41 = vadd.f32 1.0, %v4674_v37  ;;  %v2743_v24 = vadd.f32 1.0, %v4687_v43 }
 0x519   : > { %v3642_v48 = vpop.eup %3641  ;;  %3661 = vrcp.f32 %v2729_v51  ;;  %v2814_v6 = vmul.f32 %v3640_v9, %v4480_v36  ;;  %2844 = vst.msk [vmem:[%s4700_s30 + $0x8] sm:$0xff] %vm337_vm1, %v2812_v42  ;;  %v2740_v51 = vadd.f32 1.0, %v4680_v1  ;;  %v2744_v0 = vadd.f32 1.0, %v4689_v4 }
 0x51a   : > { %v3644_v61 = vpop.eup %3643  ;;  %3663 = vrcp.f32 %v2730_v29  ;;  %v2815_v2 = vmul.f32 %v3642_v48, %v4490_v20  ;;  %2845 = vst.msk [vmem:[%s4700_s30 + $0x10] sm:$0xff] %vm337_vm1, %v2813_v39  ;;  %v2742_v29 = vadd.f32 1.0, %v4685_v50  ;;  %v2746_v42 = vadd.f32 1.0, %v4693_v15 }
 0x51b   : > { %v3646_v3 = vpop.eup %3645  ;;  %3665 = vrcp.f32 %v2731_v23  ;;  %v2816_v55 = vmul.f32 %v3644_v61, %v4498_v53  ;;  %2846 = vst.msk [vmem:[%s4700_s30 + $0x18] sm:$0xff] %vm337_vm1, %v2814_v6  ;;  %v2745_v23 = vadd.f32 1.0, %v4691_v22 }
 0x51c   : > { %v3648_v36 = vpop.eup %3647  ;;  %3667 = vrcp.f32 %v2732_v16  ;;  %v2817_v54 = vmul.f32 %v3646_v3, %v4501_v59  ;;  %2847 = vst.msk [vmem:[%s4700_s30 + $0x20] sm:$0xff] %vm337_vm1, %v2815_v2 }
 0x51d   : > { %v3650_v20 = vpop.eup %3649  ;;  %3669 = vrcp.f32 %v2733_v8  ;;  %v2818_v25 = vmul.f32 %v3648_v36, %v4511_v17  ;;  %2848 = vst.msk [vmem:[%s4700_s30 + $0x28] sm:$0xff] %vm337_vm1, %v2816_v55 }
 0x51e   : > { %v3652_v53 = vpop.eup %3651  ;;  %3671 = vrcp.f32 %v2734_v19  ;;  %v2819_v31 = vmul.f32 %v3650_v20, %v4516_v40  ;;  %2849 = vst.msk [vmem:[%s4700_s30 + $0x30] sm:$0xff] %vm337_vm1, %v2817_v54 }
 0x51f   : > { %v3654_v59 = vpop.eup %3653  ;;  %3673 = vrcp.f32 %v2735_v33  ;;  %v2820_v46 = vmul.f32 %v3652_v53, %v4521_v49  ;;  %2850 = vst.msk [vmem:[%s4700_s30 + $0x38] sm:$0xff] %vm337_vm1, %v2818_v25 }
 0x520   : > { %v3656_v17 = vpop.eup %3655  ;;  %3675 = vrcp.f32 %v2736_v32  ;;  %v2821_v37 = vmul.f32 %v3654_v59, %v4526_v27  ;;  %2851 = vst.msk [vmem:[%s4700_s30 + $0x40] sm:$0xff] %vm337_vm1, %v2819_v31  ;;  %v4855_v32 = vld [vmem:[#allocation2_spill] sm:$0xff] }
 0x521   : > { %v3658_v40 = vpop.eup %3657  ;;  %3677 = vrcp.f32 %v2737_v28  ;;  %v2822_v38 = vmul.f32 %v3656_v17, %v4531_v12  ;;  %2852 = vst.msk [vmem:[%s4700_s30 + $0x48] sm:$0xff] %vm337_vm1, %v2820_v46 }
 0x522   : > { %v3660_v49 = vpop.eup %3659  ;;  %3679 = vrcp.f32 %v2738_v41  ;;  %v2823_v1 = vmul.f32 %v3658_v40, %v4536_v26  ;;  %2853 = vst.msk [vmem:[%s4700_s30 + $0x50] sm:$0xff] %vm337_vm1, %v2821_v37 }
 0x523   : > { %v3662_v27 = vpop.eup %3661  ;;  %3681 = vrcp.f32 %v2739_v52  ;;  %v2824_v10 = vmul.f32 %v3660_v49, %v4541_v34  ;;  %2854 = vst.msk [vmem:[%s4700_s30 + $0x58] sm:$0xff] %vm337_vm1, %v2822_v38 }
 0x524   : > { %v3664_v12 = vpop.eup %3663  ;;  %3683 = vrcp.f32 %v2740_v51  ;;  %v2825_v50 = vmul.f32 %v3662_v27, %v4546_v45  ;;  %2855 = vst.msk [vmem:[%s4700_s30 + $0x60] sm:$0xff] %vm337_vm1, %v2823_v1 }
 0x525   : > { %v3666_v26 = vpop.eup %3665  ;;  %3685 = vrcp.f32 %v2741_v14  ;;  %v2826_v43 = vmul.f32 %v3664_v12, %v4552_v47  ;;  %2856 = vst.msk [vmem:[%s4700_s30 + $0x68] sm:$0xff] %vm337_vm1, %v2824_v10 }
 0x526   : > { %v3668_v34 = vpop.eup %3667  ;;  %3687 = vrcp.f32 %v2742_v29  ;;  %v2827_v4 = vmul.f32 %v3666_v26, %v4558_v57  ;;  %2857 = vst.msk [vmem:[%s4700_s30 + $0x70] sm:$0xff] %vm337_vm1, %v2825_v50 }
 0x527   : > { %v3670_v45 = vpop.eup %3669  ;;  %3689 = vrcp.f32 %v2743_v24  ;;  %v2828_v22 = vmul.f32 %v3668_v34, %v4564_v63  ;;  %2858 = vst.msk [vmem:[%s4700_s30 + $0x78] sm:$0xff] %vm337_vm1, %v2826_v43 }
 0x528   : > { %v3672_v47 = vpop.eup %3671  ;;  %3691 = vrcp.f32 %v2744_v0  ;;  %v2829_v9 = vmul.f32 %v3670_v45, %v4572_v44  ;;  %2859 = vst.msk [vmem:[%s4700_s30 + $0x80] sm:$0xff] %vm337_vm1, %v2827_v4 }
 0x529   : > { %v3674_v15 = vpop.eup %3673  ;;  %3693 = vrcp.f32 %v2745_v23  ;;  %v2830_v57 = vmul.f32 %v3672_v47, %v4580_v58  ;;  %2860 = vst.msk [vmem:[%s4700_s30 + $0x88] sm:$0xff] %vm337_vm1, %v2828_v22 }
 0x52a   : > { %v3676_v16 = vpop.eup %3675  ;;  %3695 = vrcp.f32 %v2746_v42  ;;  %v2831_v63 = vmul.f32 %v3674_v15, %v4588_v11  ;;  %2861 = vst.msk [vmem:[%s4700_s30 + $0x90] sm:$0xff] %vm337_vm1, %v2829_v9 }
 0x52b   : > { %v3678_v39 = vpop.eup %3677  ;;  %v2832_v44 = vmul.f32 %v3676_v16, %v4596_v21  ;;  %2862 = vst.msk [vmem:[%s4700_s30 + $0x98] sm:$0xff] %vm337_vm1, %v2830_v57 }
 0x52c   : > { %v3680_v48 = vpop.eup %3679  ;;  %v2833_v8 = vmul.f32 %v3678_v39, %v4604_v62  ;;  %2863 = vst.msk [vmem:[%s4700_s30 + $0xa0] sm:$0xff] %vm337_vm1, %v2831_v63 }
 0x52d   : > { %v3682_v58 = vpop.eup %3681  ;;  %v2834_v6 = vmul.f32 %v3680_v48, %v4612_v60  ;;  %2864 = vst.msk [vmem:[%s4700_s30 + $0xa8] sm:$0xff] %vm337_vm1, %v2832_v44 }
 0x52e   : > { %v3684_v11 = vpop.eup %3683  ;;  %v2835_v61 = vmul.f32 %v3682_v58, %v4620_v13  ;;  %2865 = vst.msk [vmem:[%s4700_s30 + $0xb0] sm:$0xff] %vm337_vm1, %v2833_v8 }
 0x52f   : > { %v3686_v21 = vpop.eup %3685  ;;  %v2836_v19 = vmul.f32 %v3684_v11, %v4628_v7  ;;  %2866 = vst.msk [vmem:[%s4700_s30 + $0xb8] sm:$0xff] %vm337_vm1, %v2834_v6 }
 0x530   : > { %v3688_v62 = vpop.eup %3687  ;;  %v2837_v2 = vmul.f32 %v3686_v21, %v4634_v5  ;;  %2867 = vst.msk [vmem:[%s4700_s30 + $0xc0] sm:$0xff] %vm337_vm1, %v2835_v61 }
 0x531   : > { %v3690_v60 = vpop.eup %3689  ;;  %v2838_v13 = vmul.f32 %v3688_v62, %v4640_v56  ;;  %2868 = vst.msk [vmem:[%s4700_s30 + $0xc8] sm:$0xff] %vm337_vm1, %v2836_v19 }
 0x532   : > { %v3692_v3 = vpop.eup %3691  ;;  %v2839_v33 = vmul.f32 %v3690_v60, %v4644_v30  ;;  %2869 = vst.msk [vmem:[%s4700_s30 + $0xd0] sm:$0xff] %vm337_vm1, %v2837_v2 }
 0x533   : > { %v3694_v7 = vpop.eup %3693  ;;  %v2840_v55 = vmul.f32 %v3692_v3, %v4648_v18  ;;  %2870 = vst.msk [vmem:[%s4700_s30 + $0xd8] sm:$0xff] %vm337_vm1, %v2838_v13 }
 0x534   : > { %v3696_v5 = vpop.eup %3695  ;;  %v2841_v36 = vmul.f32 %v3694_v7, %v4652_v35  ;;  %2871 = vst.msk [vmem:[%s4700_s30 + $0xe0] sm:$0xff] %vm337_vm1, %v2839_v33 }
 0x535   : > { %v2842_v54 = vmul.f32 %v3696_v5, %v4855_v32  ;;  %2872 = vst.msk [vmem:[%s4700_s30 + $0xe8] sm:$0xff] %vm337_vm1, %v2840_v55 }
 0x536   : > { %2873 = vst.msk [vmem:[%s4700_s30 + $0xf0] sm:$0xff] %vm337_vm1, %v2841_v36 }
 0x537   : > { %2874 = vst.msk [vmem:[%s4700_s30 + $0xf8] sm:$0xff] %vm337_vm1, %v2842_v54 }
 0x538 PF: > { %s16_s21 = sadd.s32 1, %s3703_s21  }
 0x539   : > { %p13_p4 = scmp.ge.s32.totalorder %s16_s21, 4  }
 0x53b   :  { %15 = sbr.rel (!%p13_p4) target bundleno = 1 (0x1), region = 77 }

// kernel: _lambda_.6
= control target key start
LH: loop header
LB: loop body
LE: loop exit
PB: predicated region body
PF: predicated region fallthrough
CT: control target
= control target key end

     0   :  { %s3709_s12 = smov 0   ;;  %s4663_s0 = inlined_call_operand.vmem [shape: f32[2,18,18,32], index: 0, kind: input, shape index: {}]   ;;  %s4664_s1 = inlined_call_operand.vmem [shape: bf16[3,3,32,128], index: 1, kind: input, shape index: {}]   ;;  %s4665_s2 = inlined_call_operand.vmem [shape: f32[1,128], index: 2, kind: input, shape index: {}]   ;;  %s4666_s3 = inlined_call_operand.vmem [shape: f32[2,256,32], index: 3, kind: output, shape index: {}]  }
   0x1 LB: > { %s2702_s13 = sadd.s32 4294967295, %s3687_s12   ;;  %p2706_p0 = scmp.ge.s32.totalorder %s3687_s12, 1  ;;  %s3687_s12 = sphi %s3709_s12, %s13_s12  }
   0x2   : > { %p137_p1 = scmp.lt.s32.totalorder %s3687_s12, 3 }
   0x4   : > { %p138_p2 = pnand %p2706_p0, %p137_p1 }
   0x6   : > { %141 = sbr.rel (%p138_p2) target bundleno = 529 (0x211), region = 32 }
   0xd   : > { %v3663_v0 = vld [vmem:[%s4664_s1 + $0x10] sm:$0xff]   ;;  %p161_p3 = scmp.lt.s32.totalorder %s2702_s13, 1  ;;  %v3723_v1 = vld [vmem:[%s4664_s1 + $0x40] sm:$0xff]   ;;  %v3665_v2 = vld [vmem:[%s4664_s1 + $0x18] sm:$0xff]   ;;  %vm294_vm0 = vcmask 1046528   ;;  %vm440_vm1 = vcmask 261120  }
   0xe   : > { %4694 = vst [vmem:[#allocation2_spill] sm:$0xff] %v3723_v1  ;;  %3070 = vmatprep.subr.bf16.mxu1 %v3663_v0  ;;  %3214 = vmatprep.subr.bf16.mxu0 %v3723_v1  ;;  %v3734_v3 = vld [vmem:[%s4664_s1 + $0x48] sm:$0xff]   ;;  %v3667_v4 = vld [vmem:[%s4664_s1] sm:$0xff]   ;;  %v3745_v5 = vld [vmem:[%s4664_s1 + $0x50] sm:$0xff]   ;;  %vm871_vm2 = vcmask 1045504  }
   0xf   : > { %s4729_s13 = smov (!%p161_p3, %s2702_s13), 1  ;;  %3071 = vmatpush3.bf16.msra.mxu1 %v3663_v0  ;;  %4695 = vst [vmem:[#allocation3_spill] sm:$0xff] %v3734_v3  ;;  %3215 = vmatpush3.bf16.msra.mxu0 %v3723_v1  ;;  %v3669_v51 = vld [vmem:[%s4664_s1 + $0x58] sm:$0xff]   ;;  %v3670_v55 = vld [vmem:[%s4664_s1 + $0x8] sm:$0xff]   ;;  %v3874_v0 = vld [vmem:[%s4664_s1 + $0x60] sm:$0xff]  }
  0x10   : > { %3072 = vmatprep.subr.bf16.mxu1 %v3665_v2  ;;  %s3654_s22 = smul.u32 432, %s4729_s13  ;;  %3216 = vmatprep.subr.bf16.mxu0 %v3734_v3 }
  0x12   : > { %s3750_s29 = scalar_lea.vmem %s4663_s0, %s3654_s22 }
  0x13   : > { %3073 = vmatpush3.bf16.msra.mxu1 %v3665_v2  ;;  %v3753_v6 = vld [vmem:[%s3750_s29] sm:$0xff]  ;;  %v3756_v7 = vld [vmem:[%s3750_s29 + $0x8] sm:$0xff]  ;;  %v3759_v8 = vld [vmem:[%s3750_s29 + $0x10] sm:$0x3]  ;;  %3217 = vmatpush3.bf16.msra.mxu0 %v3734_v3 }
  0x14   : > { %v295_v9 = vrot.slane %v3753_v6, 1  ;;  %v296_v10 = vrot.slane %v3756_v7, 1  ;;  %v298_v11 = vrot.slane %v3759_v8, 1  ;;  %3106 = vmatprep.subr.bf16.mxu1 %v3667_v4  ;;  %v3766_v12 = vld [vmem:[%s3750_s29 + $0x18] sm:$0xff]  ;;  %v3769_v13 = vld [vmem:[%s3750_s29 + $0x20] sm:$0xff]  ;;  %3250 = vmatprep.subr.bf16.mxu0 %v3745_v5  ;;  %v3781_v17 = vld [vmem:[%s3750_s29 + $0x30] sm:$0xff] }
  0x15   : > { %v3772_v14 = vld [vmem:[%s3750_s29 + $0x28] sm:$0x3]  ;;  %v3776_v15 = vpack.c.bf16 %v3769_v13, %v3766_v12  ;;  %v300_v16 = vrot.slane %v3766_v12, 1  ;;  %v301_v20 = vrot.slane %v3769_v13, 1  ;;  %v3788_v22 = vld [vmem:[%s3750_s29 + $0x38] sm:$0xff]  ;;  %v3797_v26 = vld [vmem:[%s3750_s29 + $0x50] sm:$0xff] }
  0x16   : > { %v297_v18 = vsel %vm294_vm0, %v295_v9, %v296_v10  ;;  %v299_v19 = vsel %vm294_vm0, %v296_v10, %v298_v11  ;;  %v303_v21 = vrot.slane %v3772_v14, 1  ;;  %v3791_v23 = vld [vmem:[%s3750_s29 + $0x40] sm:$0x3]  ;;  %v3794_v25 = vld [vmem:[%s3750_s29 + $0x48] sm:$0xff]  ;;  %v305_v29 = vrot.slane %v3781_v17, 1  ;;  %v3818_v37 = vld [vmem:[%s3750_s29 + $0x78] sm:$0xff] }
  0x17   : > { %v407_v24 = vpack.c.bf16 %v299_v19, %v297_v18  ;;  %v302_v27 = vsel %vm294_vm0, %v300_v16, %v301_v20  ;;  %v306_v30 = vrot.slane %v3788_v22, 1  ;;  %v3804_v31 = vld [vmem:[%s3750_s29 + $0x58] sm:$0x3]  ;;  %v3807_v32 = vld [vmem:[%s3750_s29 + $0x60] sm:$0xff]  ;;  %v3810_v33 = vld [vmem:[%s3750_s29 + $0x68] sm:$0xff]  ;;  %v308_v35 = vrot.slane %v3791_v23, 1 }
  0x18   : > { %v304_v28 = vsel %vm294_vm0, %v301_v20, %v303_v21  ;;  %v3815_v36 = vld [vmem:[%s3750_s29 + $0x70] sm:$0x3]  ;;  %v310_v39 = vrot.slane %v3794_v25, 1  ;;  %v311_v40 = vrot.slane %v3797_v26, 1  ;;  %v3824_v41 = vld [vmem:[%s3750_s29 + $0x80] sm:$0xff]  ;;  %v313_v44 = vrot.slane %v3804_v31, 1 }
  0x19   : > { %3074 = vmatprep.mubr.msk.bf16.mxu1 %vm440_vm1, %v407_v24  ;;  %v408_v34 = vpack.c.bf16 %v304_v28, %v302_v27  ;;  %v307_v38 = vsel %vm294_vm0, %v305_v29, %v306_v30  ;;  %v3827_v42 = vld [vmem:[%s3750_s29 + $0x88] sm:$0x3]  ;;  %v309_v43 = vsel %vm294_vm0, %v306_v30, %v308_v35  ;;  %v315_v45 = vrot.slane %v3807_v32, 1  ;;  %v3859_v59 = vld [vmem:[%s3750_s29 + $0x90] sm:$0xff]  ;;  %v3866_v62 = vld [vmem:[%s3750_s29 + $0x98] sm:$0xff] }
  0x1a   : > { %v316_v46 = vrot.slane %v3810_v33, 1  ;;  %v3835_v47 = vpack.c.bf16 %v309_v43, %v307_v38  ;;  %v312_v48 = vsel %vm294_vm0, %v310_v39, %v311_v40  ;;  %v318_v49 = vrot.slane %v3815_v36, 1  ;;  %v3869_v63 = vld [vmem:[%s3750_s29 + $0xa0] sm:$0x3]  ;;  %v3877_v2 = vld [vmem:[%s3750_s29 + $0xa8] sm:$0xff]  ;;  %v4127_v1 = vld [vmem:[%s3750_s29 + $0x170] sm:$0xff] }
  0x1b   : > { %3218 = vmatprep.mubr.msk.bf16.mxu0 %vm440_vm1, %v408_v34  ;;  %3075 = vmatmul.mubr.msk.bf16.vlgmr.msra.gmra.mrb[0].mxu1 %vm440_vm1, %v408_v34  ;;  %v320_v50 = vrot.slane %v3818_v37, 1  ;;  %v314_v52 = vsel %vm294_vm0, %v311_v40, %v313_v44  ;;  %v321_v53 = vrot.slane %v3824_v41, 1  ;;  %v323_v54 = vrot.slane %v3827_v42, 1  ;;  %v3903_v24 = vld [vmem:[%s3750_s29 + $0xc0] sm:$0xff]  ;;  %v3910_v29 = vld [vmem:[%s3750_s29 + $0xc8] sm:$0xff] }
  0x1c   : > { %3107 = vmatpush3.bf16.msra.mxu1 %v3667_v4  ;;  %4696 = vst [vmem:[#allocation4_spill] sm:$0xff] %v3835_v47  ;;  %3219 = vmatmul.mubr.msk.bf16.vlgmr.msra.gmra.mrb[0].mxu0 %vm440_vm1, %v3835_v47  ;;  %v3853_v56 = vpack.c.bf16 %v314_v52, %v312_v48  ;;  %v317_v57 = vsel %vm294_vm0, %v315_v45, %v316_v46  ;;  %v3880_v4 = vld [vmem:[%s3750_s29 + $0xb0] sm:$0xff]  ;;  %v325_v11 = vrot.slane %v3859_v59, 1  ;;  %v326_v16 = vrot.slane %v3866_v62, 1  ;;  %v3915_v30 = vld [vmem:[%s4664_s1 + $0x20] sm:$0xff]  }
  0x1d   : > { %3078 = vmatprep.mubr.msk.bf16.mxu1 %vm440_vm1, %v3835_v47  ;;  %3251 = vmatpush3.bf16.msra.mxu0 %v3745_v5  ;;  %v319_v58 = vsel %vm294_vm0, %v316_v46, %v318_v49  ;;  %v322_v60 = vsel %vm294_vm0, %v320_v50, %v321_v53  ;;  %v324_v61 = vsel %vm294_vm0, %v321_v53, %v323_v54  ;;  %v3883_v5 = vld [vmem:[%s3750_s29 + $0xb8] sm:$0x3]  ;;  %v328_v18 = vrot.slane %v3869_v63, 1  ;;  %v3920_v38 = vld [vmem:[%s3750_s29 + $0xd0] sm:$0x3] }
  0x1e   : > { %4697 = vst [vmem:[#allocation5_spill] sm:$0xff] %v3853_v56  ;;  %3108 = vmatprep.subr.bf16.mxu1 %v3670_v55  ;;  %3222 = vmatprep.mubr.msk.bf16.mxu0 %vm440_vm1, %v3853_v56  ;;  %v3885_v9 = vpack.c.bf16 %v319_v58, %v317_v57  ;;  %v3889_v10 = vpack.c.bf16 %v324_v61, %v322_v60  ;;  %v330_v19 = vrot.slane %v3877_v2, 1  ;;  %v331_v20 = vrot.slane %v3880_v4, 1  ;;  %v3932_v49 = vld [vmem:[%s3750_s29 + $0xd8] sm:$0xff]  ;;  %v3945_v50 = vld [vmem:[%s3750_s29 + $0xe8] sm:$0x3] }
  0x1f   : > { %3252 = vmatprep.subr.bf16.mxu0 %v3669_v51  ;;  %v333_v21 = vrot.slane %v3883_v5, 1  ;;  %v327_v27 = vsel %vm294_vm0, %v325_v11, %v326_v16  ;;  %v329_v28 = vsel %vm294_vm0, %v326_v16, %v328_v18  ;;  %v877_v39 = vrot.slane %v3766_v12, 2  ;;  %v3950_v53 = vld [vmem:[%s3750_s29 + $0xf0] sm:$0xff]  ;;  %v3953_v54 = vld [vmem:[%s3750_s29 + $0xf8] sm:$0xff]  ;;  %v3961_v60 = vld [vmem:[%s3750_s29 + $0x100] sm:$0x3] }
  0x20   : > { %3109 = vmatpush3.bf16.msra.mxu1 %v3670_v55  ;;  %4698 = vst [vmem:[#allocation6_spill] sm:$0xff] %v3885_v9  ;;  %4699 = vst [vmem:[#allocation7_spill] sm:$0xff] %v3889_v10  ;;  %v332_v34 = vsel %vm294_vm0, %v330_v19, %v331_v20  ;;  %v878_v40 = vrot.slane %v3769_v13, 2  ;;  %v880_v43 = vrot.slane %v3772_v14, 2  ;;  %v882_v44 = vrot.slane %v3781_v17, 2  ;;  %v3940_v14 = vld [vmem:[%s3750_s29 + $0xe0] sm:$0xff] }
  0x21   : > { %3253 = vmatpush3.bf16.msra.mxu0 %v3669_v51  ;;  %v334_v35 = vsel %vm294_vm0, %v331_v20, %v333_v21  ;;  %3142 = vmatprep.subr.bf16.mxu1 %v3915_v30  ;;  %v3927_v45 = vpack.c.bf16 %v329_v28, %v327_v27  ;;  %v335_v46 = vrot.slane %v3903_v24, 1  ;;  %v336_v48 = vrot.slane %v3910_v29, 1  ;;  %v3972_v20 = vld [vmem:[%s3750_s29 + $0x108] sm:$0xff]  ;;  %v3976_v27 = vld [vmem:[%s3750_s29 + $0x110] sm:$0xff] }
  0x22   : > { %3286 = vmatprep.subr.bf16.mxu0 %v3874_v0  ;;  %v3936_v12 = vpack.c.bf16 %v334_v35, %v332_v34  ;;  %v338_v13 = vrot.slane %v3920_v38, 1  ;;  %v883_v51 = vrot.slane %v3788_v22, 2  ;;  %v885_v52 = vrot.slane %v3791_v23, 2  ;;  %v3983_v35 = vld [vmem:[%s3750_s29 + $0x118] sm:$0x3] }
  0x23   : > { %3079 = vmatmul.mubr.msk.bf16.gmra.mrb[4].mxu1 %vm440_vm1, %v3853_v56  ;;  %4700 = vst [vmem:[#allocation8_spill] sm:$0xff] %v3927_v45  ;;  %v337_v55 = vsel %vm294_vm0, %v335_v46, %v336_v48  ;;  %v879_v57 = vsel %vm871_vm2, %v877_v39, %v878_v40  ;;  %v881_v58 = vsel %vm871_vm2, %v878_v40, %v880_v43  ;;  %v340_v61 = vrot.slane %v3932_v49, 1 }
  0x24   : > { %3082 = vmatprep.mubr.msk.bf16.mxu1 %vm440_vm1, %v3885_v9  ;;  %3223 = vmatmul.mubr.msk.bf16.gmra.mrb[4].mxu0 %vm440_vm1, %v3885_v9  ;;  %4701 = vst [vmem:[#allocation9_spill] sm:$0xff] %v3936_v12  ;;  %v339_v23 = vsel %vm294_vm0, %v336_v48, %v338_v13  ;;  %v341_v11 = vrot.slane %v3940_v14, 1  ;;  %v343_v16 = vrot.slane %v3945_v50, 1  ;;  %v345_v18 = vrot.slane %v3950_v53, 1  ;;  %v3992_v48 = vld [vmem:[%s3750_s29 + $0x120] sm:$0xff]  ;;  %v4030_v9 = vld [vmem:[%s3750_s29 + $0x138] sm:$0xff] }
  0x25   : > { %3226 = vmatprep.mubr.msk.bf16.mxu0 %vm440_vm1, %v3889_v10  ;;  %v346_v19 = vrot.slane %v3953_v54, 1  ;;  %v348_v21 = vrot.slane %v3961_v60, 1  ;;  %v3978_v28 = vpack.c.bf16 %v339_v23, %v337_v55  ;;  %v3980_v34 = vpack.c.bf16 %v881_v58, %v879_v57  ;;  %v4001_v23 = vld [vmem:[%s3750_s29 + $0x128] sm:$0xff] }
  0x26   : > { %v342_v39 = vsel %vm294_vm0, %v340_v61, %v341_v11  ;;  %v344_v40 = vsel %vm294_vm0, %v341_v11, %v343_v16  ;;  %v884_v43 = vsel %vm871_vm2, %v882_v44, %v883_v51  ;;  %v886_v46 = vsel %vm871_vm2, %v883_v51, %v885_v52  ;;  %v4004_v61 = vld [vmem:[%s3750_s29 + $0x130] sm:$0x3] }
  0x27   : > { %4702 = vst [vmem:[#allocation10_spill] sm:$0xff] %v3978_v28  ;;  %v347_v13 = vsel %vm294_vm0, %v345_v18, %v346_v19  ;;  %v887_v55 = vrot.slane %v3794_v25, 2  ;;  %v888_v57 = vrot.slane %v3797_v26, 2  ;;  %v890_v58 = vrot.slane %v3804_v31, 2 }
  0x28   : > { %v349_v44 = vsel %vm294_vm0, %v346_v19, %v348_v21  ;;  %v350_v51 = vrot.slane %v3972_v20, 1  ;;  %v351_v52 = vrot.slane %v3976_v27, 1  ;;  %v353_v11 = vrot.slane %v3983_v35, 1 }
  0x29   : > { %v4014_v31 = vpack.c.bf16 %v344_v40, %v342_v39  ;;  %v355_v16 = vrot.slane %v3992_v48, 1  ;;  %v356_v18 = vrot.slane %v4001_v23, 1  ;;  %v358_v19 = vrot.slane %v4004_v61, 1 }
  0x2a   : > { %v4019_v21 = vpack.c.bf16 %v886_v46, %v884_v43  ;;  %v4021_v3 = vpack.c.bf16 %v349_v44, %v347_v13  ;;  %v354_v39 = vsel %vm294_vm0, %v351_v52, %v353_v11  ;;  %v892_v40 = vrot.slane %v3807_v32, 2  ;;  %v4033_v43 = vld [vmem:[%s3750_s29 + $0x140] sm:$0xff]  ;;  %v4053_v11 = vld [vmem:[%s3750_s29 + $0x150] sm:$0xff] }
  0x2b   : > { %3083 = vmatmul.mubr.msk.bf16.gmra.mrb[8].mxu1 %vm440_vm1, %v3889_v10  ;;  %4703 = vst [vmem:[#allocation11_spill] sm:$0xff] %v4014_v31  ;;  %v893_v10 = vrot.slane %v3810_v33, 2  ;;  %v895_v46 = vrot.slane %v3815_v36, 2  ;;  %v897_v13 = vrot.slane %v3818_v37, 2  ;;  %v900_v36 = vrot.slane %v3827_v42, 2 }
  0x2c   : > { %3086 = vmatprep.mubr.msk.bf16.mxu1 %vm440_vm1, %v3927_v45  ;;  %3227 = vmatmul.mubr.msk.bf16.gmra.mrb[8].mxu0 %vm440_vm1, %v3927_v45  ;;  %4704 = vst [vmem:[#allocation12_spill] sm:$0xff] %v4019_v21  ;;  %4705 = vst [vmem:[#allocation13_spill] sm:$0xff] %v4021_v3  ;;  %v352_v45 = vsel %vm294_vm0, %v350_v51, %v351_v52  ;;  %v357_v51 = vsel %vm294_vm0, %v355_v16, %v356_v18  ;;  %v360_v56 = vrot.slane %v4030_v9, 1 }
  0x2d   : > { %3230 = vmatprep.mubr.msk.bf16.mxu0 %vm440_vm1, %v3936_v12  ;;  %v359_v52 = vsel %vm294_vm0, %v356_v18, %v358_v19  ;;  %v894_v42 = vsel %vm871_vm2, %v892_v40, %v893_v10  ;;  %v4074_v18 = vpack.c.bf16 %v3797_v26, %v3794_v25  ;;  %v896_v19 = vsel %vm871_vm2, %v893_v10, %v895_v46 }
  0x2e   : > { %v365_v26 = vrot.slane %v4053_v11, 1  ;;  %v902_v46 = vrot.slane %v3859_v59, 2 }
  0x33   : > { %3087 = vmatmul.mubr.msk.bf16.gmra.mrb[12].mxu1 %vm440_vm1, %v3936_v12  ;;  %v889_v12 = vsel %vm871_vm2, %v887_v55, %v888_v57  ;;  %v898_v55 = vrot.slane %v3824_v41, 2 }
  0x34   : > { %3090 = vmatprep.mubr.msk.bf16.mxu1 %vm440_vm1, %v3978_v28  ;;  %3231 = vmatmul.mubr.msk.bf16.gmra.mrb[12].mxu0 %vm440_vm1, %v3978_v28  ;;  %v891_v28 = vsel %vm871_vm2, %v888_v57, %v890_v58  ;;  %v4039_v57 = vld [vmem:[%s3750_s29 + $0x148] sm:$0x3]  ;;  %v4043_v58 = vpack.c.bf16 %v3788_v22, %v3781_v17  ;;  %v361_v17 = vrot.slane %v4033_v43, 1  ;;  %v4060_v22 = vld [vmem:[%s3750_s29 + $0x158] sm:$0xff] }
  0x35   : > { %3254 = vmatprep.mubr.msk.bf16.mxu0 %vm440_vm1, %v3980_v34  ;;  %v4047_v44 = vpack.c.bf16 %v891_v28, %v889_v12  ;;  %v3673_v12 = vld [vmem:[%s4664_s1 + $0x68] sm:$0xff]   ;;  %v4068_v28 = vpack.c.bf16 %v354_v39, %v352_v45  ;;  %v363_v16 = vrot.slane %v4039_v57, 1  ;;  %v899_v47 = vsel %vm871_vm2, %v897_v13, %v898_v55 }
  0x36   : > { %v4084_v45 = vpack.c.bf16 %v3810_v33, %v3807_v32  ;;  %v901_v25 = vsel %vm871_vm2, %v898_v55, %v900_v36  ;;  %v366_v10 = vrot.slane %v4060_v22, 1  ;;  %v362_v40 = vsel %vm294_vm0, %v360_v56, %v361_v17 }
  0x37   : > { %4706 = vst [vmem:[#allocation14_spill] sm:$0xff] %v4047_v44  ;;  %4707 = vst [vmem:[#allocation15_spill] sm:$0xff] %v4068_v28  ;;  %v903_v32 = vrot.slane %v3866_v62, 2  ;;  %v4098_v33 = vpack.c.bf16 %v3824_v41, %v3818_v37  ;;  %v364_v13 = vsel %vm294_vm0, %v361_v17, %v363_v16  ;;  %v905_v56 = vrot.slane %v3869_v63, 2  ;;  %v4115_v41 = vld [vmem:[%s3750_s29 + $0x168] sm:$0xff] }
  0x38   : > { %v907_v55 = vrot.slane %v3877_v2, 2  ;;  %v4110_v36 = vpack.c.bf16 %v896_v19, %v894_v42  ;;  %v4112_v37 = vpack.c.bf16 %v901_v25, %v899_v47  ;;  %v367_v63 = vsel %vm294_vm0, %v365_v26, %v366_v10  ;;  %v4130_v42 = vld [vmem:[%s3750_s29 + $0x178] sm:$0x3] }
  0x39   : > { %v910_v16 = vrot.slane %v3883_v5, 2  ;;  %v4134_v47 = vpack.c.bf16 %v3880_v4, %v3877_v2  ;;  %v4140_v19 = vpack.c.bf16 %v364_v13, %v362_v40  ;;  %v904_v5 = vsel %vm871_vm2, %v902_v46, %v903_v32 }
  0x3a   : > { %4709 = vst [vmem:[#allocation17_spill] sm:$0xff] %v4110_v36  ;;  %4710 = vst [vmem:[#allocation18_spill] sm:$0xff] %v4112_v37  ;;  %v906_v25 = vsel %vm871_vm2, %v903_v32, %v905_v56  ;;  %v370_v2 = vrot.slane %v4115_v41, 1  ;;  %v371_v26 = vrot.slane %v4127_v1, 1  ;;  %v4166_v46 = vpack.c.bf16 %v3953_v54, %v3950_v53 }
  0x3b   : > { %3091 = vmatmul.mubr.msk.bf16.gmra.mrb[16].mxu1 %vm440_vm1, %v4014_v31  ;;  %v4063_v31 = vld [vmem:[%s3750_s29 + $0x160] sm:$0x3]  ;;  %v4170_v32 = vpack.c.bf16 %v3976_v27, %v3972_v20  ;;  %v4174_v13 = vpack.c.bf16 %v4001_v23, %v3992_v48  ;;  %v4178_v56 = vpack.c.bf16 %v4033_v43, %v4030_v9 }
  0x3c   : > { %3094 = vmatprep.mubr.msk.bf16.mxu1 %vm440_vm1, %v4021_v3  ;;  %3255 = vmatmul.mubr.msk.bf16.vlgmr.msra.gmra.mrb[0].mxu0 %vm440_vm1, %v4019_v21  ;;  %v4079_v3 = vpack.c.bf16 %v359_v52, %v357_v51  ;;  %v368_v39 = vrot.slane %v4063_v31, 1  ;;  %v908_v51 = vrot.slane %v3880_v4, 2  ;;  %v872_v52 = vrot.slane %v3753_v6, 2 }
  0x3d   : > { %3287 = vmatpush3.bf16.msra.mxu0 %v3874_v0  ;;  %3258 = vmatprep.mubr.msk.bf16.mxu0 %vm440_vm1, %v4047_v44  ;;  %v4103_v0 = vld [vmem:[%s4664_s1 + $0x70] sm:$0xff]   ;;  %v4119_v44 = vpack.c.bf16 %v3866_v62, %v3859_v59  ;;  %v873_v59 = vrot.slane %v3756_v7, 2  ;;  %v875_v62 = vrot.slane %v3759_v8, 2  ;;  %v4149_v4 = vpack.c.bf16 %v3910_v29, %v3903_v24 }
  0x3e   : > { %4708 = vst [vmem:[#allocation16_spill] sm:$0xff] %v4079_v3  ;;  %3288 = vmatprep.subr.bf16.mxu0 %v3673_v12  ;;  %v369_v17 = vsel %vm294_vm0, %v366_v10, %v368_v39  ;;  %v373_v10 = vrot.slane %v4130_v42, 1  ;;  %v4159_v39 = vpack.c.bf16 %v3940_v14, %v3932_v49  ;;  %v911_v40 = vsel %vm871_vm2, %v908_v51, %v910_v16 }
  0x3f   : > { %v4153_v8 = vpack.c.bf16 %v369_v17, %v367_v63  ;;  %v4189_v63 = vsel %vm871_vm2, %v872_v52, %v873_v59  ;;  %v4192_v17 = vsel %vm871_vm2, %v873_v59, %v875_v62  ;;  %v4194_v16 = vpack.c.bf16 %v906_v25, %v904_v5 }
  0x40   : > { %v913_v52 = vrot.slane %v3910_v29, 2  ;;  %v915_v21 = vrot.slane %v3920_v38, 2  ;;  %v374_v59 = vsel %vm294_vm0, %v371_v26, %v373_v10  ;;  %v918_v62 = vrot.slane %v3940_v14, 2 }
  0x41   : > { %3289 = vmatpush3.bf16.msra.mxu0 %v3673_v12  ;;  %v909_v12 = vsel %vm871_vm2, %v907_v55, %v908_v51  ;;  %v4182_v55 = vpack.c.bf16 %v4060_v22, %v4053_v11  ;;  %v4186_v51 = vpack.c.bf16 %v4127_v1, %v4115_v41  ;;  %v920_v5 = vrot.slane %v3945_v50, 2 }
  0x42   : > { %3322 = vmatprep.subr.bf16.mxu0 %v4103_v0  ;;  %v916_v25 = vsel %vm871_vm2, %v913_v52, %v915_v21  ;;  %v925_v21 = vrot.slane %v3961_v60, 2 }
  0x43   : > { %3095 = vmatmul.mubr.msk.bf16.gmra.mrb[20].mxu1 %vm440_vm1, %v4068_v28  ;;  %v984_v28 = vpack.c.bf16 %v4192_v17, %v4189_v63  ;;  %v921_v14 = vsel %vm871_vm2, %v918_v62, %v920_v5  ;;  %v940_v5 = vrot.slane %v4039_v57, 2  ;;  %v4713_v63 = vld [vmem:[#allocation14_spill] sm:$0xff] }
  0x44   : > { %3098 = vmatprep.mubr.msk.bf16.mxu1 %vm440_vm1, %v4079_v3  ;;  %3259 = vmatmul.mubr.msk.bf16.gmra.mrb[4].mxu0 %vm440_vm1, %v4110_v36  ;;  %v912_v3 = vrot.slane %v3903_v24, 2  ;;  %v372_v36 = vsel %vm294_vm0, %v370_v2, %v371_v26  ;;  %v917_v24 = vrot.slane %v3932_v49, 2  ;;  %v930_v26 = vrot.slane %v3983_v35, 2  ;;  %v4715_v17 = vld [vmem:[#allocation18_spill] sm:$0xff] }
  0x45   : > { %3262 = vmatprep.mubr.msk.bf16.mxu0 %vm440_vm1, %v4112_v37  ;;  %v4201_v37 = vpack.c.bf16 %v911_v40, %v909_v12  ;;  %v4216_v29 = vpack.c.bf16 %v374_v59, %v372_v36  ;;  %v226_v12 = vpack.c.bf16 %v3756_v7, %v3753_v6  ;;  %v922_v36 = vrot.slane %v3950_v53, 2 }
  0x46   : > { %v914_v38 = vsel %vm871_vm2, %v912_v3, %v913_v52  ;;  %v919_v49 = vsel %vm871_vm2, %v917_v24, %v918_v62  ;;  %v923_v3 = vrot.slane %v3953_v54, 2  ;;  %v927_v6 = vrot.slane %v3972_v20, 2  ;;  %v3674_v20 = vld [vmem:[%s4664_s1 + $0x28] sm:$0xff]  }
  0x47   : > { %v4224_v50 = vpack.c.bf16 %v916_v25, %v914_v38  ;;  %v4228_v2 = vpack.c.bf16 %v921_v14, %v919_v49  ;;  %v928_v7 = vrot.slane %v3976_v27, 2  ;;  %v932_v40 = vrot.slane %v3992_v48, 2  ;;  %v4266_v48 = vld [vmem:[%s4664_s1 + $0x30] sm:$0xff]  }
  0x48   : > { %v924_v53 = vsel %vm871_vm2, %v922_v36, %v923_v3  ;;  %v926_v54 = vsel %vm871_vm2, %v923_v3, %v925_v21  ;;  %v933_v52 = vrot.slane %v4001_v23, 2  ;;  %v935_v59 = vrot.slane %v4004_v61, 2  ;;  %v220_v21 = vld [vmem:[%s3750_s29 + $0x180] sm:$0xff] }
  0x49   : > { %v929_v60 = vsel %vm871_vm2, %v927_v6, %v928_v7  ;;  %v931_v10 = vsel %vm871_vm2, %v928_v7, %v930_v26  ;;  %v4248_v27 = vpack.c.bf16 %v926_v54, %v924_v53  ;;  %v937_v24 = vrot.slane %v4030_v9, 2  ;;  %v222_v6 = vld [vmem:[%s3750_s29 + $0x190] sm:$0x3] }
  0x4a   : > { %v4252_v35 = vpack.c.bf16 %v931_v10, %v929_v60  ;;  %v938_v62 = vrot.slane %v4033_v43, 2  ;;  %v936_v9 = vsel %vm871_vm2, %v933_v52, %v935_v59  ;;  %v942_v38 = vrot.slane %v4053_v11, 2 }
  0x4b   : > { %3099 = vmatmul.mubr.msk.bf16.gmra.mrb[24].mxu1 %vm440_vm1, %v4140_v19  ;;  %v943_v25 = vrot.slane %v4060_v22, 2  ;;  %v947_v49 = vrot.slane %v4115_v41, 2  ;;  %v948_v14 = vrot.slane %v4127_v1, 2  ;;  %v950_v36 = vrot.slane %v4130_v42, 2  ;;  %v221_v41 = vld [vmem:[%s3750_s29 + $0x188] sm:$0xff] }
  0x4c   : > { %3102 = vmatprep.mubr.msk.bf16.mxu1 %vm440_vm1, %v4153_v8  ;;  %3263 = vmatmul.mubr.msk.bf16.gmra.mrb[8].mxu0 %vm440_vm1, %v4194_v16  ;;  %v939_v23 = vsel %vm871_vm2, %v937_v24, %v938_v62  ;;  %v941_v61 = vsel %vm871_vm2, %v938_v62, %v940_v5  ;;  %v1696_v7 = vrot.slane %v220_v21, 2  ;;  %v1697_v26 = vrot.slane %v221_v41, 2  ;;  %v3677_v5 = vld [vmem:[%s4664_s1 + $0x78] sm:$0xff]  }
  0x4d   : > { %3266 = vmatprep.mubr.msk.bf16.mxu0 %vm440_vm1, %v4201_v37  ;;  %v4281_v57 = vpack.c.bf16 %v941_v61, %v939_v23  ;;  %v944_v11 = vsel %vm871_vm2, %v942_v38, %v943_v25  ;;  %v951_v3 = vsel %vm871_vm2, %v948_v14, %v950_v36  ;;  %v1699_v53 = vrot.slane %v222_v6, 2  ;;  %v223_v23 = vld [vmem:[%s3750_s29 + $0x198] sm:$0xff]  ;;  %v224_v61 = vld [vmem:[%s3750_s29 + $0x1a0] sm:$0xff] }
  0x4e   : > { %v1475_v54 = vrot.slane %v220_v21, 1  ;;  %v1476_v60 = vrot.slane %v221_v41, 1  ;;  %v1478_v10 = vrot.slane %v222_v6, 1  ;;  %v2355_v38 = vrot.slane %v223_v23, 2  ;;  %v4719_v6 = vld [vmem:[#allocation7_spill] sm:$0xff] }
  0x50   : > { %v1479_v59 = vsel %vm294_vm0, %v1476_v60, %v1478_v10  ;;  %v4725_v10 = vld [vmem:[#allocation3_spill] sm:$0xff] }
  0x53   : > { %3103 = vmatmul.mubr.msk.bf16.gmra.mrb[28].mxu1 %vm440_vm1, %v4216_v29 }
  0x54   : > { %3110 = vmatprep.mubr.msk.bf16.mxu1 %vm440_vm1, %v226_v12  ;;  %3267 = vmatmul.mubr.msk.bf16.gmra.mrb[12].mxu0 %vm440_vm1, %v4224_v50  ;;  %v945_v12 = vrot.slane %v4063_v31, 2  ;;  %v949_v31 = vsel %vm871_vm2, %v947_v49, %v948_v14  ;;  %v1917_v14 = vpack.c.bf16 %v224_v61, %v223_v23 }
  0x55   : > { %3270 = vmatprep.mubr.msk.bf16.mxu0 %vm440_vm1, %v4228_v2  ;;  %v4306_v42 = vpack.c.bf16 %v951_v3, %v949_v31  ;;  %v4716_v31 = vld [vmem:[#allocation4_spill] sm:$0xff]  ;;  %v3680_v3 = vld [vmem:[%s4664_s1 + $0x88] sm:$0xff]  }
  0x56   : > { %v946_v22 = vsel %vm871_vm2, %v943_v25, %v945_v12  ;;  %v2356_v25 = vrot.slane %v224_v61, 2  ;;  %v225_v12 = vld [vmem:[%s3750_s29 + $0x1a8] sm:$0x3]  ;;  %s2907_s29 = sshll.u32 %s4729_s13, 8 }
  0x57   : > { %v4302_v1 = vpack.c.bf16 %v946_v22, %v944_v11  ;;  %v2358_v49 = vrot.slane %v225_v12, 2  ;;  %s4562_s7 = scalar_lea.vmem %s4666_s3, %s2907_s29 }
  0x58   : > { %v4408_v36 = vsel %vm871_vm2, %v2355_v38, %v2356_v25 }
  0x59   : > { %v4411_v11 = vsel %vm871_vm2, %v2356_v25, %v2358_v49 }
  0x5a   : > { %v2362_v22 = vpack.c.bf16 %v4411_v11, %v4408_v36 }
  0x5b   : > { %3111 = vmatmul.mubr.msk.bf16.vlgmr.msra.gmra.mrb[0].mxu1 %vm440_vm1, %v3776_v15 }
  0x5c   : > { %3143 = vmatpush3.bf16.msra.mxu1 %v3915_v30  ;;  %3114 = vmatprep.mubr.msk.bf16.mxu1 %vm440_vm1, %v4043_v58  ;;  %v934_v30 = vsel %vm871_vm2, %v932_v40, %v933_v52  ;;  %v1700_v40 = vsel %vm871_vm2, %v1697_v26, %v1699_v53  ;;  %v1477_v52 = vsel %vm294_vm0, %v1475_v54, %v1476_v60  ;;  %v4722_v53 = vld [vmem:[#allocation10_spill] sm:$0xff]  ;;  %v4723_v54 = vld [vmem:[#allocation11_spill] sm:$0xff]  ;;  %v4724_v60 = vld [vmem:[#allocation13_spill] sm:$0xff] }
  0x5d   : > { %3144 = vmatprep.subr.bf16.mxu1 %v3674_v20  ;;  %3271 = vmatmul.mubr.msk.bf16.gmra.mrb[16].mxu0 %vm440_vm1, %v4248_v27  ;;  %v4277_v43 = vpack.c.bf16 %v936_v9, %v934_v30  ;;  %v4318_v24 = vpack.c.bf16 %v1479_v59, %v1477_v52  ;;  %v3679_v30 = vld [vmem:[%s4664_s1 + $0x80] sm:$0xff]   ;;  %v4711_v9 = vld [vmem:[#allocation12_spill] sm:$0xff] }
  0x5e   : > { %3274 = vmatprep.mubr.msk.bf16.mxu0 %vm440_vm1, %v4252_v35 }
  0x60   : > { %3145 = vmatpush3.bf16.msra.mxu1 %v3674_v20  ;;  %v1698_v20 = vsel %vm871_vm2, %v1696_v7, %v1697_v26  ;;  %v4720_v7 = vld [vmem:[#allocation8_spill] sm:$0xff]  ;;  %v4721_v26 = vld [vmem:[#allocation9_spill] sm:$0xff] }
  0x61   : > { %3178 = vmatprep.subr.bf16.mxu1 %v4266_v48  ;;  %v4320_v62 = vpack.c.bf16 %v1700_v40, %v1698_v20  ;;  %v4726_v20 = vld [vmem:[#allocation15_spill] sm:$0xff]  ;;  %v2137_v40 = vrot.slane %v225_v12, 1 }
  0x63   : > { %3115 = vmatmul.mubr.msk.bf16.gmra.mrb[4].mxu1 %vm440_vm1, %v4074_v18 }
  0x64   : > { %3118 = vmatprep.mubr.msk.bf16.mxu1 %vm440_vm1, %v4084_v45 }
  0x65   : > { %3275 = vmatmul.mubr.msk.bf16.gmra.mrb[20].mxu0 %vm440_vm1, %v4277_v43 }
  0x66   : > { %3278 = vmatprep.mubr.msk.bf16.mxu0 %vm440_vm1, %v4281_v57 }
  0x6b   : > { %3119 = vmatmul.mubr.msk.bf16.gmra.mrb[8].mxu1 %vm440_vm1, %v4098_v33 }
  0x6c   : > { %3122 = vmatprep.mubr.msk.bf16.mxu1 %vm440_vm1, %v4119_v44 }
  0x6d   : > { %3279 = vmatmul.mubr.msk.bf16.gmra.mrb[24].mxu0 %vm440_vm1, %v4302_v1 }
  0x6e   : > { %3282 = vmatprep.mubr.msk.bf16.mxu0 %vm440_vm1, %v4306_v42 }
  0x73   : > { %3123 = vmatmul.mubr.msk.bf16.gmra.mrb[12].mxu1 %vm440_vm1, %v4134_v47 }
  0x74   : > { %3126 = vmatprep.mubr.msk.bf16.mxu1 %vm440_vm1, %v4149_v4 }
  0x75   : > { %3283 = vmatmul.mubr.msk.bf16.gmra.mrb[28].mxu0 %vm440_vm1, %v4320_v62 }
  0x76   : > { %3290 = vmatprep.mubr.msk.bf16.mxu0 %vm440_vm1, %v4043_v58 }
  0x7b   : > { %3127 = vmatmul.mubr.msk.bf16.gmra.mrb[16].mxu1 %vm440_vm1, %v4159_v39 }
  0x7c   : > { %3130 = vmatprep.mubr.msk.bf16.mxu1 %vm440_vm1, %v4166_v46 }
  0x7d   : > { %3291 = vmatmul.mubr.msk.bf16.vlgmr.msra.gmra.mrb[0].mxu0 %vm440_vm1, %v4074_v18 }
  0x7e   : > { %3323 = vmatpush3.bf16.msra.mxu0 %v4103_v0  ;;  %3294 = vmatprep.mubr.msk.bf16.mxu0 %vm440_vm1, %v4084_v45  ;;  %v3678_v0 = vld [vmem:[%s4664_s1 + $0x38] sm:$0xff]  }
  0x7f   : > { %3324 = vmatprep.subr.bf16.mxu0 %v3677_v5 }
  0x82   : > { %3325 = vmatpush3.bf16.msra.mxu0 %v3677_v5 }
  0x83   : > { %3131 = vmatmul.mubr.msk.bf16.gmra.mrb[20].mxu1 %vm440_vm1, %v4170_v32  ;;  %3358 = vmatprep.subr.bf16.mxu0 %v3679_v30 }
  0x84   : > { %3134 = vmatprep.mubr.msk.bf16.mxu1 %vm440_vm1, %v4174_v13 }
  0x85   : > { %3295 = vmatmul.mubr.msk.bf16.gmra.mrb[4].mxu0 %vm440_vm1, %v4098_v33 }
  0x86   : > { %3298 = vmatprep.mubr.msk.bf16.mxu0 %vm440_vm1, %v4119_v44 }
  0x8b   : > { %3135 = vmatmul.mubr.msk.bf16.gmra.mrb[24].mxu1 %vm440_vm1, %v4178_v56 }
  0x8c   : > { %3138 = vmatprep.mubr.msk.bf16.mxu1 %vm440_vm1, %v4182_v55 }
  0x8d   : > { %3299 = vmatmul.mubr.msk.bf16.gmra.mrb[8].mxu0 %vm440_vm1, %v4134_v47 }
  0x8e   : > { %3302 = vmatprep.mubr.msk.bf16.mxu0 %vm440_vm1, %v4149_v4 }
  0x93   : > { %3139 = vmatmul.mubr.msk.bf16.gmra.mrb[28].mxu1 %vm440_vm1, %v4186_v51 }
  0x94   : > { %3146 = vmatprep.mubr.msk.bf16.mxu1 %vm440_vm1, %v984_v28  ;;  %v4712_v28 = vld [vmem:[#allocation2_spill] sm:$0xff] }
  0x95   : > { %3303 = vmatmul.mubr.msk.bf16.gmra.mrb[12].mxu0 %vm440_vm1, %v4159_v39 }
  0x96   : > { %3306 = vmatprep.mubr.msk.bf16.mxu0 %vm440_vm1, %v4166_v46 }
  0x9b   : > { %3147 = vmatmul.mubr.msk.bf16.vlgmr.msra.gmra.mrb[0].mxu1 %vm440_vm1, %v3980_v34  ;;  %v4714_v34 = vld [vmem:[#allocation17_spill] sm:$0xff] }
  0x9c   : > { %3179 = vmatpush3.bf16.msra.mxu1 %v4266_v48  ;;  %3150 = vmatprep.mubr.msk.bf16.mxu1 %vm440_vm1, %v4711_v9  ;;  %v4394_v48 = vpack.c.bf16 %v221_v41, %v220_v21  ;;  %v4717_v21 = vld [vmem:[#allocation5_spill] sm:$0xff]  ;;  %v4718_v41 = vld [vmem:[#allocation6_spill] sm:$0xff] }
  0x9d   : > { %3180 = vmatprep.subr.bf16.mxu1 %v3678_v0  ;;  %3307 = vmatmul.mubr.msk.bf16.gmra.mrb[16].mxu0 %vm440_vm1, %v4170_v32 }
  0x9e   : > { %3310 = vmatprep.mubr.msk.bf16.mxu0 %vm440_vm1, %v4174_v13 }
  0xa0   : > { %3181 = vmatpush3.bf16.msra.mxu1 %v3678_v0 }
  0xa1   : > { %3394 = vmatprep.subr.bf16.mxu1 %v4712_v28 }
  0xa3   : > { %3151 = vmatmul.mubr.msk.bf16.gmra.mrb[4].mxu1 %vm440_vm1, %v4713_v63 }
  0xa4   : > { %3154 = vmatprep.mubr.msk.bf16.mxu1 %vm440_vm1, %v4714_v34 }
  0xa5   : > { %3311 = vmatmul.mubr.msk.bf16.gmra.mrb[20].mxu0 %vm440_vm1, %v4178_v56 }
  0xa6   : > { %3314 = vmatprep.mubr.msk.bf16.mxu0 %vm440_vm1, %v4182_v55 }
  0xab   : > { %3155 = vmatmul.mubr.msk.bf16.gmra.mrb[8].mxu1 %vm440_vm1, %v4715_v17 }
  0xac   : > { %3158 = vmatprep.mubr.msk.bf16.mxu1 %vm440_vm1, %v4194_v16 }
  0xad   : > { %3315 = vmatmul.mubr.msk.bf16.gmra.mrb[24].mxu0 %vm440_vm1, %v4186_v51 }
  0xae   : > { %3318 = vmatprep.mubr.msk.bf16.mxu0 %vm440_vm1, %v4394_v48 }
  0xb3   : > { %3159 = vmatmul.mubr.msk.bf16.gmra.mrb[12].mxu1 %vm440_vm1, %v4201_v37 }
  0xb4   : > { %3162 = vmatprep.mubr.msk.bf16.mxu1 %vm440_vm1, %v4224_v50 }
  0xb5   : > { %3319 = vmatmul.mubr.msk.bf16.gmra.mrb[28].mxu0 %vm440_vm1, %v1917_v14 }
  0xb6   : > { %3326 = vmatprep.mubr.msk.bf16.mxu0 %vm440_vm1, %v4716_v31 }
  0xbb   : > { %3163 = vmatmul.mubr.msk.bf16.gmra.mrb[16].mxu1 %vm440_vm1, %v4228_v2 }
  0xbc   : > { %3166 = vmatprep.mubr.msk.bf16.mxu1 %vm440_vm1, %v4248_v27 }
  0xbd   : > { %3327 = vmatmul.mubr.msk.bf16.vlgmr.msra.gmra.mrb[0].mxu0 %vm440_vm1, %v4717_v21 }
  0xbe   : > { %3359 = vmatpush3.bf16.msra.mxu0 %v3679_v30  ;;  %3330 = vmatprep.mubr.msk.bf16.mxu0 %vm440_vm1, %v4718_v41 }
  0xbf   : > { %3360 = vmatprep.subr.bf16.mxu0 %v3680_v3 }
  0xc2   : > { %3361 = vmatpush3.bf16.msra.mxu0 %v3680_v3 }
  0xc3   : > { %3167 = vmatmul.mubr.msk.bf16.gmra.mrb[20].mxu1 %vm440_vm1, %v4252_v35 }
  0xc4   : > { %3170 = vmatprep.mubr.msk.bf16.mxu1 %vm440_vm1, %v4277_v43 }
  0xc5   : > { %3331 = vmatmul.mubr.msk.bf16.gmra.mrb[4].mxu0 %vm440_vm1, %v4719_v6 }
  0xc6   : > { %3334 = vmatprep.mubr.msk.bf16.mxu0 %vm440_vm1, %v4720_v7 }
  0xcb   : > { %3171 = vmatmul.mubr.msk.bf16.gmra.mrb[24].mxu1 %vm440_vm1, %v4281_v57 }
  0xcc   : > { %3174 = vmatprep.mubr.msk.bf16.mxu1 %vm440_vm1, %v4302_v1 }
  0xcd   : > { %3335 = vmatmul.mubr.msk.bf16.gmra.mrb[8].mxu0 %vm440_vm1, %v4721_v26 }
  0xce   : > { %3338 = vmatprep.mubr.msk.bf16.mxu0 %vm440_vm1, %v4722_v53 }
  0xd3   : > { %3175 = vmatmul.mubr.msk.bf16.gmra.mrb[28].mxu1 %vm440_vm1, %v4306_v42 }
  0xd4   : > { %3182 = vmatprep.mubr.msk.bf16.mxu1 %vm440_vm1, %v3776_v15  ;;  %v4727_v15 = vld [vmem:[#allocation16_spill] sm:$0xff] }
  0xd5   : > { %3339 = vmatmul.mubr.msk.bf16.gmra.mrb[12].mxu0 %vm440_vm1, %v4723_v54 }
  0xd6   : > { %3342 = vmatprep.mubr.msk.bf16.mxu0 %vm440_vm1, %v4724_v60 }
  0xdb   : > { %3183 = vmatmul.mubr.msk.bf16.vlgmr.msra.gmra.mrb[0].mxu1 %vm440_vm1, %v4043_v58  ;;  %v2134_v58 = vrot.slane %v223_v23, 1 }
  0xdc   : > { %3396 = vmatpush3.bf16.msra.mxu1 %v4712_v28  ;;  %3186 = vmatprep.mubr.msk.bf16.mxu1 %vm440_vm1, %v4074_v18  ;;  %v2135_v18 = vrot.slane %v224_v61, 1 }
  0xdd   : > { %3395 = vmatprep.subr.bf16.mxu1 %v4725_v10  ;;  %3343 = vmatmul.mubr.msk.bf16.gmra.mrb[16].mxu0 %vm440_vm1, %v4726_v20 }
  0xde   : > { %3346 = vmatprep.mubr.msk.bf16.mxu0 %vm440_vm1, %v4727_v15 }
  0xe0   : > { %3397 = vmatpush3.bf16.msra.mxu1 %v4725_v10 }
  0xe3   : > { %3187 = vmatmul.mubr.msk.bf16.gmra.mrb[4].mxu1 %vm440_vm1, %v4084_v45  ;;  %v2136_v45 = vsel %vm294_vm0, %v2134_v58, %v2135_v18 }
  0xe4   : > { %3190 = vmatprep.mubr.msk.bf16.mxu1 %vm440_vm1, %v4098_v33  ;;  %v2138_v33 = vsel %vm294_vm0, %v2135_v18, %v2137_v40 }
  0xe5   : > { %3347 = vmatmul.mubr.msk.bf16.gmra.mrb[20].mxu0 %vm440_vm1, %v4140_v19  ;;  %v2141_v52 = vpack.c.bf16 %v2138_v33, %v2136_v45 }
  0xe6   : > { %3350 = vmatprep.mubr.msk.bf16.mxu0 %vm440_vm1, %v4153_v8 }
  0xeb   : > { %3191 = vmatmul.mubr.msk.bf16.gmra.mrb[8].mxu1 %vm440_vm1, %v4119_v44 }
  0xec   : > { %3194 = vmatprep.mubr.msk.bf16.mxu1 %vm440_vm1, %v4134_v47 }
  0xed   : > { %3351 = vmatmul.mubr.msk.bf16.gmra.mrb[24].mxu0 %vm440_vm1, %v4216_v29 }
  0xee   : > { %3354 = vmatprep.mubr.msk.bf16.mxu0 %vm440_vm1, %v4318_v24 }
  0xf3   : > { %3195 = vmatmul.mubr.msk.bf16.gmra.mrb[12].mxu1 %vm440_vm1, %v4149_v4 }
  0xf4   : > { %3198 = vmatprep.mubr.msk.bf16.mxu1 %vm440_vm1, %v4159_v39 }
  0xf5   : > { %3355 = vmatmul.mubr.msk.bf16.gmra.mrb[28].mxu0 %vm440_vm1, %v2141_v52 }
  0xf6   : > { %3362 = vmatprep.mubr.msk.bf16.mxu0 %vm440_vm1, %v4711_v9 }
  0xfb   : > { %3199 = vmatmul.mubr.msk.bf16.gmra.mrb[16].mxu1 %vm440_vm1, %v4166_v46 }
  0xfc   : > { %3202 = vmatprep.mubr.msk.bf16.mxu1 %vm440_vm1, %v4170_v32 }
  0xfd   : > { %3363 = vmatmul.mubr.msk.bf16.vlgmr.msra.gmra.mrb[0].mxu0 %vm440_vm1, %v4713_v63 }
  0xfe   : > { %3366 = vmatprep.mubr.msk.bf16.mxu0 %vm440_vm1, %v4714_v34 }
 0x103   : > { %3203 = vmatmul.mubr.msk.bf16.gmra.mrb[20].mxu1 %vm440_vm1, %v4174_v13 }
 0x104   : > { %3206 = vmatprep.mubr.msk.bf16.mxu1 %vm440_vm1, %v4178_v56 }
 0x105   : > { %3367 = vmatmul.mubr.msk.bf16.gmra.mrb[4].mxu0 %vm440_vm1, %v4715_v17 }
 0x106   : > { %3370 = vmatprep.mubr.msk.bf16.mxu0 %vm440_vm1, %v4194_v16 }
 0x10b   : > { %3207 = vmatmul.mubr.msk.bf16.gmra.mrb[24].mxu1 %vm440_vm1, %v4182_v55 }
 0x10c   : > { %3210 = vmatprep.mubr.msk.bf16.mxu1 %vm440_vm1, %v4186_v51 }
 0x10d   : > { %3371 = vmatmul.mubr.msk.bf16.gmra.mrb[8].mxu0 %vm440_vm1, %v4201_v37 }
 0x10e   : > { %3374 = vmatprep.mubr.msk.bf16.mxu0 %vm440_vm1, %v4224_v50 }
 0x113   : > { %3211 = vmatmul.mubr.msk.bf16.gmra.mrb[28].mxu1 %vm440_vm1, %v4394_v48 }
 0x114   : > { %3234 = vmatprep.mubr.msk.bf16.mxu1 %vm440_vm1, %v4723_v54 }
 0x115   : > { %3375 = vmatmul.mubr.msk.bf16.gmra.mrb[12].mxu0 %vm440_vm1, %v4228_v2 }
 0x116   : > { %3378 = vmatprep.mubr.msk.bf16.mxu0 %vm440_vm1, %v4248_v27  ;;  %v4557_v27 = vld [vmem:[%s4665_s2] ss:$0 sm:$0xff] }
 0x11b   : > { %3235 = vmatmul.mubr.msk.bf16.vlgmr.msra.gmra.mrb[16].mxu1 %vm440_vm1, %v4724_v60 }
 0x11c   : > { %3238 = vmatprep.mubr.msk.bf16.mxu1 %vm440_vm1, %v4726_v20 }
 0x11d   : > { %3379 = vmatmul.mubr.msk.bf16.gmra.mrb[16].mxu0 %vm440_vm1, %v4252_v35 }
 0x11e   : > { %3382 = vmatprep.mubr.msk.bf16.mxu0 %vm440_vm1, %v4277_v43 }
 0x123   : > { %3239 = vmatmul.mubr.msk.bf16.gmra.mrb[20].mxu1 %vm440_vm1, %v4727_v15 }
 0x124   : > { %3242 = vmatprep.mubr.msk.bf16.mxu1 %vm440_vm1, %v4140_v19 }
 0x125   : > { %3383 = vmatmul.mubr.msk.bf16.gmra.mrb[20].mxu0 %vm440_vm1, %v4281_v57 }
 0x126   : > { %3386 = vmatprep.mubr.msk.bf16.mxu0 %vm440_vm1, %v4302_v1 }
 0x12b   : > { %3243 = vmatmul.mubr.msk.bf16.gmra.mrb[24].mxu1 %vm440_vm1, %v4153_v8 }
 0x12c   : > { %3246 = vmatprep.mubr.msk.bf16.mxu1 %vm440_vm1, %v4216_v29 }
 0x12d   : > { %3387 = vmatmul.mubr.msk.bf16.gmra.mrb[24].mxu0 %vm440_vm1, %v4306_v42 }
 0x12e   : > { %3390 = vmatprep.mubr.msk.bf16.mxu0 %vm440_vm1, %v4320_v62 }
 0x133   : > { %3247 = vmatmul.mubr.msk.bf16.gmra.mrb[28].mxu1 %vm440_vm1, %v4318_v24 }
 0x135   : > { %3391 = vmatmul.mubr.msk.bf16.gmra.mrb[28].mxu0 %vm440_vm1, %v2362_v22 }
 0x1ae   : > { %v3184_v44 = vpop.f32.mrb[0].mxu1 }
 0x1af   : > { %v1313_v37 = vpop.f32.mrb[1].mxu1 }
 0x1b0   : > { %v3185_v47 = vpop.f32.mrb[2].mxu1 }
 0x1b1   : > { %v1316_v19 = vpop.f32.mrb[3].mxu1 }
 0x1b6   : > { %v3188_v4 = vpop.f32.mrb[4].mxu1 }
 0x1b7   : > { %v1329_v8 = vpop.f32.mrb[5].mxu1 }
 0x1b8   : > { %v3189_v39 = vpop.f32.mrb[6].mxu1 }
 0x1b9   : > { %v1332_v46 = vpop.f32.mrb[7].mxu1 }
 0x1be   : > { %v3192_v32 = vpop.f32.mrb[8].mxu1 }
 0x1bf   : > { %v1345_v13 = vpop.f32.mrb[9].mxu1 }
 0x1c0   : > { %v3193_v56 = vpop.f32.mrb[10].mxu1 }
 0x1c1   : > { %v1348_v55 = vpop.f32.mrb[11].mxu1 }
 0x1c6   : > { %v3196_v51 = vpop.f32.mrb[12].mxu1 }
 0x1c7   : > { %v1361_v16 = vpop.f32.mrb[13].mxu1 }
 0x1c8   : > { %v3197_v29 = vpop.f32.mrb[14].mxu1 }
 0x1c9   : > { %v1364_v50 = vpop.f32.mrb[15].mxu1 }
 0x1d0   : > { %v3364_v2 = vpop.f32.mrb[0].mxu0 }
 0x1d1   : > { %v3398_v35 = vadd.f32 %v3364_v2, %v3184_v44  ;;  %v2417_v43 = vpop.f32.mrb[1].mxu0 }
 0x1d2   : > { %v3399_v57 = vadd.f32 %v2417_v43, %v1313_v37  ;;  %v3365_v1 = vpop.f32.mrb[2].mxu0 }
 0x1d3   : > { %v2585_v42 = vadd.f32 %v3398_v35, %v4557_v27  ;;  %v3400_v59 = vadd.f32 %v3365_v1, %v3185_v47  ;;  %v2420_v24 = vpop.f32.mrb[3].mxu0 }
 0x1d4   : > { %v2583_v62 = vadd.f32 %v3399_v57, %v4557_v27  ;;  %v3401_v5 = vadd.f32 %v2420_v24, %v1316_v19 }
 0x1d5   : > { %2617 = vst.msk [vmem:[%s4562_s7 + $0x10] sm:$0xff] %vm440_vm1, %v2585_v42  ;;  %v2586_v30 = vadd.f32 %v3400_v59, %v4557_v27 }
 0x1d6   : > { %2615 = vst.msk [vmem:[%s4562_s7] sm:$0xff] %vm440_vm1, %v2583_v62  ;;  %v2584_v0 = vadd.f32 %v3401_v5, %v4557_v27 }
 0x1d7   : > { %2618 = vst.msk [vmem:[%s4562_s7 + $0x18] sm:$0xff] %vm440_vm1, %v2586_v30 }
 0x1d8   : > { %2616 = vst.msk [vmem:[%s4562_s7 + $0x8] sm:$0xff] %vm440_vm1, %v2584_v0  ;;  %v3368_v9 = vpop.f32.mrb[4].mxu0 }
 0x1d9   : > { %v3402_v28 = vadd.f32 %v3368_v9, %v3188_v4  ;;  %v2433_v63 = vpop.f32.mrb[5].mxu0 }
 0x1da   : > { %v3403_v34 = vadd.f32 %v2433_v63, %v1329_v8  ;;  %v3369_v17 = vpop.f32.mrb[6].mxu0 }
 0x1db   : > { %v2589_v48 = vadd.f32 %v3402_v28, %v4557_v27  ;;  %v3404_v23 = vadd.f32 %v3369_v17, %v3189_v39  ;;  %v2436_v61 = vpop.f32.mrb[7].mxu0 }
 0x1dc   : > { %v2587_v38 = vadd.f32 %v3403_v34, %v4557_v27  ;;  %v3405_v25 = vadd.f32 %v2436_v61, %v1332_v46 }
 0x1dd   : > { %2621 = vst.msk [vmem:[%s4562_s7 + $0x30] sm:$0xff] %vm440_vm1, %v2589_v48  ;;  %v2590_v12 = vadd.f32 %v3404_v23, %v4557_v27 }
 0x1de   : > { %2619 = vst.msk [vmem:[%s4562_s7 + $0x20] sm:$0xff] %vm440_vm1, %v2587_v38  ;;  %v2588_v49 = vadd.f32 %v3405_v25, %v4557_v27 }
 0x1df   : > { %2622 = vst.msk [vmem:[%s4562_s7 + $0x38] sm:$0xff] %vm440_vm1, %v2590_v12 }
 0x1e0   : > { %2620 = vst.msk [vmem:[%s4562_s7 + $0x28] sm:$0xff] %vm440_vm1, %v2588_v49  ;;  %v3372_v14 = vpop.f32.mrb[8].mxu0 }
 0x1e1   : > { %v3406_v36 = vadd.f32 %v3372_v14, %v3192_v32  ;;  %v2449_v11 = vpop.f32.mrb[9].mxu0 }
 0x1e2   : > { %v3407_v22 = vadd.f32 %v2449_v11, %v1345_v13  ;;  %v3373_v31 = vpop.f32.mrb[10].mxu0 }
 0x1e3   : > { %v2593_v3 = vadd.f32 %v3406_v36, %v4557_v27  ;;  %v3408_v21 = vadd.f32 %v3373_v31, %v3193_v56  ;;  %v2452_v41 = vpop.f32.mrb[11].mxu0 }
 0x1e4   : > { %v2591_v6 = vadd.f32 %v3407_v22, %v4557_v27  ;;  %v3409_v7 = vadd.f32 %v2452_v41, %v1348_v55 }
 0x1e5   : > { %2625 = vst.msk [vmem:[%s4562_s7 + $0x50] sm:$0xff] %vm440_vm1, %v2593_v3  ;;  %v2594_v26 = vadd.f32 %v3408_v21, %v4557_v27 }
 0x1e6   : > { %2623 = vst.msk [vmem:[%s4562_s7 + $0x40] sm:$0xff] %vm440_vm1, %v2591_v6  ;;  %v2592_v53 = vadd.f32 %v3409_v7, %v4557_v27 }
 0x1e7   : > { %2626 = vst.msk [vmem:[%s4562_s7 + $0x58] sm:$0xff] %vm440_vm1, %v2594_v26 }
 0x1e8   : > { %2624 = vst.msk [vmem:[%s4562_s7 + $0x48] sm:$0xff] %vm440_vm1, %v2592_v53  ;;  %v3376_v54 = vpop.f32.mrb[12].mxu0 }
 0x1e9   : > { %v3410_v60 = vadd.f32 %v3376_v54, %v3196_v51  ;;  %v2465_v10 = vpop.f32.mrb[13].mxu0 }
 0x1ea   : > { %v3411_v20 = vadd.f32 %v2465_v10, %v1361_v16  ;;  %v3377_v15 = vpop.f32.mrb[14].mxu0 }
 0x1eb   : > { %v2597_v58 = vadd.f32 %v3410_v60, %v4557_v27  ;;  %v3412_v18 = vadd.f32 %v3377_v15, %v3197_v29  ;;  %v2468_v40 = vpop.f32.mrb[15].mxu0 }
 0x1ec   : > { %v2595_v45 = vadd.f32 %v3411_v20, %v4557_v27  ;;  %v3413_v33 = vadd.f32 %v2468_v40, %v1364_v50 }
 0x1ed   : > { %2629 = vst.msk [vmem:[%s4562_s7 + $0x70] sm:$0xff] %vm440_vm1, %v2597_v58  ;;  %v2598_v52 = vadd.f32 %v3412_v18, %v4557_v27 }
 0x1ee   : > { %v3236_v44 = vpop.f32.mrb[16].mxu1  ;;  %2627 = vst.msk [vmem:[%s4562_s7 + $0x60] sm:$0xff] %vm440_vm1, %v2595_v45  ;;  %v2596_v37 = vadd.f32 %v3413_v33, %v4557_v27 }
 0x1ef   : > { %v1601_v47 = vpop.f32.mrb[17].mxu1  ;;  %2630 = vst.msk [vmem:[%s4562_s7 + $0x78] sm:$0xff] %vm440_vm1, %v2598_v52 }
 0x1f0   : > { %v3237_v19 = vpop.f32.mrb[18].mxu1  ;;  %2628 = vst.msk [vmem:[%s4562_s7 + $0x68] sm:$0xff] %vm440_vm1, %v2596_v37  ;;  %v3380_v4 = vpop.f32.mrb[16].mxu0 }
 0x1f1   : > { %v1604_v8 = vpop.f32.mrb[19].mxu1  ;;  %v3414_v39 = vadd.f32 %v3380_v4, %v3236_v44  ;;  %v2481_v46 = vpop.f32.mrb[17].mxu0 }
 0x1f2   : > { %v3415_v32 = vadd.f32 %v2481_v46, %v1601_v47  ;;  %v3381_v13 = vpop.f32.mrb[18].mxu0 }
 0x1f3   : > { %v2601_v56 = vadd.f32 %v3414_v39, %v4557_v27  ;;  %v3416_v55 = vadd.f32 %v3381_v13, %v3237_v19  ;;  %v2484_v51 = vpop.f32.mrb[19].mxu0 }
 0x1f4   : > { %v2599_v16 = vadd.f32 %v3415_v32, %v4557_v27  ;;  %v3417_v29 = vadd.f32 %v2484_v51, %v1604_v8 }
 0x1f5   : > { %2633 = vst.msk [vmem:[%s4562_s7 + $0x90] sm:$0xff] %vm440_vm1, %v2601_v56  ;;  %v2602_v50 = vadd.f32 %v3416_v55, %v4557_v27 }
 0x1f6   : > { %v3240_v2 = vpop.f32.mrb[20].mxu1  ;;  %2631 = vst.msk [vmem:[%s4562_s7 + $0x80] sm:$0xff] %vm440_vm1, %v2599_v16  ;;  %v2600_v35 = vadd.f32 %v3417_v29, %v4557_v27 }
 0x1f7   : > { %v1617_v43 = vpop.f32.mrb[21].mxu1  ;;  %2634 = vst.msk [vmem:[%s4562_s7 + $0x98] sm:$0xff] %vm440_vm1, %v2602_v50 }
 0x1f8   : > { %v3241_v57 = vpop.f32.mrb[22].mxu1  ;;  %2632 = vst.msk [vmem:[%s4562_s7 + $0x88] sm:$0xff] %vm440_vm1, %v2600_v35  ;;  %v3384_v1 = vpop.f32.mrb[20].mxu0 }
 0x1f9   : > { %v1620_v42 = vpop.f32.mrb[23].mxu1  ;;  %v3418_v59 = vadd.f32 %v3384_v1, %v3240_v2  ;;  %v2497_v24 = vpop.f32.mrb[21].mxu0 }
 0x1fa   : > { %v3419_v62 = vadd.f32 %v2497_v24, %v1617_v43  ;;  %v3385_v5 = vpop.f32.mrb[22].mxu0 }
 0x1fb   : > { %v2605_v30 = vadd.f32 %v3418_v59, %v4557_v27  ;;  %v3420_v0 = vadd.f32 %v3385_v5, %v3241_v57  ;;  %v2500_v9 = vpop.f32.mrb[23].mxu0 }
 0x1fc   : > { %v2603_v28 = vadd.f32 %v3419_v62, %v4557_v27  ;;  %v3421_v63 = vadd.f32 %v2500_v9, %v1620_v42 }
 0x1fd   : > { %2637 = vst.msk [vmem:[%s4562_s7 + $0xb0] sm:$0xff] %vm440_vm1, %v2605_v30  ;;  %v2606_v34 = vadd.f32 %v3420_v0, %v4557_v27 }
 0x1fe   : > { %v3244_v17 = vpop.f32.mrb[24].mxu1  ;;  %2635 = vst.msk [vmem:[%s4562_s7 + $0xa0] sm:$0xff] %vm440_vm1, %v2603_v28  ;;  %v2604_v48 = vadd.f32 %v3421_v63, %v4557_v27 }
 0x1ff   : > { %v1633_v23 = vpop.f32.mrb[25].mxu1  ;;  %2638 = vst.msk [vmem:[%s4562_s7 + $0xb8] sm:$0xff] %vm440_vm1, %v2606_v34 }
 0x200   : > { %v3245_v61 = vpop.f32.mrb[26].mxu1  ;;  %2636 = vst.msk [vmem:[%s4562_s7 + $0xa8] sm:$0xff] %vm440_vm1, %v2604_v48  ;;  %v3388_v38 = vpop.f32.mrb[24].mxu0 }
 0x201   : > { %v1636_v25 = vpop.f32.mrb[27].mxu1  ;;  %v3422_v12 = vadd.f32 %v3388_v38, %v3244_v17  ;;  %v2513_v49 = vpop.f32.mrb[25].mxu0 }
 0x202   : > { %v3423_v14 = vadd.f32 %v2513_v49, %v1633_v23  ;;  %v3389_v36 = vpop.f32.mrb[26].mxu0 }
 0x203   : > { %v2609_v11 = vadd.f32 %v3422_v12, %v4557_v27  ;;  %v3424_v22 = vadd.f32 %v3389_v36, %v3245_v61  ;;  %v2516_v31 = vpop.f32.mrb[27].mxu0 }
 0x204   : > { %v2607_v3 = vadd.f32 %v3423_v14, %v4557_v27  ;;  %v3425_v21 = vadd.f32 %v2516_v31, %v1636_v25 }
 0x205   : > { %2641 = vst.msk [vmem:[%s4562_s7 + $0xd0] sm:$0xff] %vm440_vm1, %v2609_v11  ;;  %v2610_v41 = vadd.f32 %v3424_v22, %v4557_v27 }
 0x206   : > { %v3248_v6 = vpop.f32.mrb[28].mxu1  ;;  %2639 = vst.msk [vmem:[%s4562_s7 + $0xc0] sm:$0xff] %vm440_vm1, %v2607_v3  ;;  %v2608_v7 = vadd.f32 %v3425_v21, %v4557_v27 }
 0x207   : > { %v1649_v26 = vpop.f32.mrb[29].mxu1  ;;  %2642 = vst.msk [vmem:[%s4562_s7 + $0xd8] sm:$0xff] %vm440_vm1, %v2610_v41 }
 0x208   : > { %v3249_v53 = vpop.f32.mrb[30].mxu1  ;;  %2640 = vst.msk [vmem:[%s4562_s7 + $0xc8] sm:$0xff] %vm440_vm1, %v2608_v7  ;;  %v3392_v54 = vpop.f32.mrb[28].mxu0 }
 0x209   : > { %v1652_v60 = vpop.f32.mrb[31].mxu1  ;;  %v3426_v10 = vadd.f32 %v3392_v54, %v3248_v6  ;;  %v2529_v20 = vpop.f32.mrb[29].mxu0 }
 0x20a   : > { %v3427_v15 = vadd.f32 %v2529_v20, %v1649_v26  ;;  %v3393_v58 = vpop.f32.mrb[30].mxu0 }
 0x20b   : > { %v2613_v18 = vadd.f32 %v3426_v10, %v4557_v27  ;;  %v3428_v40 = vadd.f32 %v3393_v58, %v3249_v53  ;;  %v2532_v45 = vpop.f32.mrb[31].mxu0 }
 0x20c   : > { %v2611_v33 = vadd.f32 %v3427_v15, %v4557_v27  ;;  %v3429_v52 = vadd.f32 %v2532_v45, %v1652_v60 }
 0x20d   : > { %2645 = vst.msk [vmem:[%s4562_s7 + $0xf0] sm:$0xff] %vm440_vm1, %v2613_v18  ;;  %v2614_v44 = vadd.f32 %v3428_v40, %v4557_v27 }
 0x20e   : > { %2643 = vst.msk [vmem:[%s4562_s7 + $0xe0] sm:$0xff] %vm440_vm1, %v2611_v33  ;;  %v2612_v37 = vadd.f32 %v3429_v52, %v4557_v27 }
 0x20f   : > { %2646 = vst.msk [vmem:[%s4562_s7 + $0xf8] sm:$0xff] %vm440_vm1, %v2614_v44 }
 0x210   : > { %2644 = vst.msk [vmem:[%s4562_s7 + $0xe8] sm:$0xff] %vm440_vm1, %v2612_v37 }
 0x211 PF: > { %s13_s12 = sadd.s32 1, %s3687_s12  }
 0x212   : > { %p10_p4 = scmp.ge.s32.totalorder %s13_s12, 4  }
 0x214   :  { %12 = sbr.rel (!%p10_p4) target bundleno = 1 (0x1), region = 70 }

// kernel: _lambda_.9
= control target key start
LH: loop header
LB: loop body
LE: loop exit
PB: predicated region body
PF: predicated region fallthrough
CT: control target
= control target key end

     0   :  { %9 = vsyncpa [#allocation3], 0  ;;  %s5055_s0 = inlined_call_operand.vmem [shape: f32[2,18,18,32], index: 0, kind: input, shape index: {}]   ;;  %s5056_s1 = inlined_call_operand.vmem [shape: f32[2,256,32], index: 1, kind: input, shape index: {}]   ;;  %s5057_s2 = inlined_call_operand.vmem [shape: bf16[3,3,32,128], index: 2, kind: input, shape index: {}]   ;;  %s5058_s3 = inlined_call_operand.vmem [shape: f32[1,128], index: 3, kind: input, shape index: {}]   ;;  %s5059_s4 = inlined_call_operand.hbm [shape: f32[2,256,32], index: 4, kind: output, shape index: {}]  }
   0x1   :  { %11 = vsyncpa [#allocation3 + $0x1], 0  ;;  %s3952_s15 = smov 0   ;;  %s3954_s16 = smov 0  }
   0x2   :  { %s3956_s17 = smov 0   ;;  %s3958_s18 = smov 0  }
   0x3 LB: > { %s3973_s19 = sadd.s32 4294967295, %s3922_s18   ;;  %s2844_s20 = sadd.s32 4294967294, %s3922_s18   ;;  %s3922_s18 = sphi %s3958_s18, %s5126_s18   ;;  %s3918_s17 = sphi %s3956_s17, %s5125_s17   ;;  %s3914_s16 = sphi %s3954_s16, %s5124_s16   ;;  %s3910_s15 = sphi %s3952_s15, %s5123_s15  }
   0x4   : > { %s3977_s21 = sadd.s32 1, %s3922_s18   ;;  %s118_s22 = sadd.s32 1, %s3918_s17 }
   0x5   : > { %s115_s23 = ssub.s32 %s3922_s18, %s3977_s21  ;;  %p128_p0 = scmp.ne.s32.totalorder %s3918_s17, %s3914_s16 }
   0x6   : > { %p116_p1 = scmp.eq.s32.totalorder %s115_s23, 0  ;;  %p129_p2 = scmp.eq.s32.totalorder %s3973_s19, 1 }
   0x7   : > { %p134_p3 = scmp.ne.s32.totalorder %s3914_s16, %s3910_s15  ;;  %p135_p4 = scmp.eq.s32.totalorder %s2844_s20, 1 }
   0x8   : > { %s3988_s24 = scalar_select %p116_p1, %s3918_s17, %s118_s22  }
   0x9   : > { %p3990_p5 = por %p129_p2, %p128_p0  ;;  %p3994_p6 = por %p135_p4, %p134_p3 }
   0xa   : > { %p2847_p7 = scmp.ge.s32.totalorder %s3922_s18, 1  ;;  %p175_p8 = scmp.lt.s32.totalorder %s3922_s18, 3 }
   0xc   : > { %p176_p9 = pnand %p2847_p7, %p175_p8 }
   0xe   : > { %179 = sbr.rel (%p176_p9) target bundleno = 554 (0x22a), region = 36 }
  0x15   : > { %v3842_v0 = vld [vmem:[%s5057_s2 + $0x10] sm:$0xff]   ;;  %p206_p10 = scmp.lt.s32.totalorder %s3973_s19, 1  ;;  %v4007_v1 = vld [vmem:[%s5057_s2 + $0x40] sm:$0xff]   ;;  %v3844_v2 = vld [vmem:[%s5057_s2 + $0x18] sm:$0xff]   ;;  %vm339_vm0 = vcmask 1046528   ;;  %vm485_vm1 = vcmask 261120  }
  0x16   : > { %5089 = vst [vmem:[#allocation5_spill] sm:$0xff] %v4007_v1  ;;  %3216 = vmatprep.subr.bf16.mxu1 %v3842_v0  ;;  %3360 = vmatprep.subr.bf16.mxu0 %v4007_v1  ;;  %v4019_v3 = vld [vmem:[%s5057_s2 + $0x48] sm:$0xff]   ;;  %v3846_v4 = vld [vmem:[%s5057_s2] sm:$0xff]   ;;  %v4030_v5 = vld [vmem:[%s5057_s2 + $0x50] sm:$0xff]   ;;  %vm916_vm2 = vcmask 1045504   ;;  %s203_s11 = sand.u32 1, %s3914_s16  }
  0x17   : > { %s4013_s7 = scalar_select %p206_p10, %s3973_s19, 1  ;;  %3217 = vmatpush3.bf16.msra.mxu1 %v3842_v0  ;;  %5090 = vst [vmem:[#allocation6_spill] sm:$0xff] %v4019_v3  ;;  %3361 = vmatpush3.bf16.msra.mxu0 %v4007_v1  ;;  %v3848_v51 = vld [vmem:[%s5057_s2 + $0x58] sm:$0xff]   ;;  %v3849_v55 = vld [vmem:[%s5057_s2 + $0x8] sm:$0xff]   ;;  %v4159_v0 = vld [vmem:[%s5057_s2 + $0x60] sm:$0xff]  }
  0x18   : > { %3218 = vmatprep.subr.bf16.mxu1 %v3844_v2  ;;  %3362 = vmatprep.subr.bf16.mxu0 %v4019_v3  ;;  %s2848_s27 = sshll.u32 %s203_s11, 8  ;;  %s3053_s28 = sshll.u32 %s3973_s19, 12 }
  0x19   : > { %s3800_s10 = smul.u32 432, %s4013_s7  ;;  %s5002_s6 = scalar_lea.hbm %s5059_s4, %s3053_s28 }
  0x1a   : > { %s5014_s19 = scalar_lea.sflag [#allocation3], %s203_s11 }
  0x1b   : > { %s4035_s23 = scalar_lea.vmem %s5055_s0, %s3800_s10  ;;  %3219 = vmatpush3.bf16.msra.mxu1 %v3844_v2  ;;  %3363 = vmatpush3.bf16.msra.mxu0 %v4019_v3  ;;  %s3052_s10 = sshll.u32 %s4013_s7, 8 }
  0x1c   : > { %v4038_v6 = vld [vmem:[%s4035_s23] sm:$0xff]  ;;  %v4041_v7 = vld [vmem:[%s4035_s23 + $0x8] sm:$0xff]  ;;  %v4044_v8 = vld [vmem:[%s4035_s23 + $0x10] sm:$0x3]  ;;  %3252 = vmatprep.subr.bf16.mxu1 %v3846_v4  ;;  %3396 = vmatprep.subr.bf16.mxu0 %v4030_v5  ;;  %s4857_s14 = scalar_lea.vmem %s5056_s1, %s3052_s10  ;;  %s4874_s7 = scalar_lea.vmem [#allocation2], %s2848_s27 }
  0x1d   : > { %v340_v9 = vrot.slane %v4038_v6, 1  ;;  %v341_v10 = vrot.slane %v4041_v7, 1  ;;  %v343_v11 = vrot.slane %v4044_v8, 1  ;;  %v4051_v12 = vld [vmem:[%s4035_s23 + $0x18] sm:$0xff]  ;;  %v4054_v13 = vld [vmem:[%s4035_s23 + $0x20] sm:$0xff]  ;;  %v4066_v17 = vld [vmem:[%s4035_s23 + $0x30] sm:$0xff] }
  0x1e   : > { %v4057_v14 = vld [vmem:[%s4035_s23 + $0x28] sm:$0x3]  ;;  %v4061_v15 = vpack.c.bf16 %v4054_v13, %v4051_v12  ;;  %v345_v16 = vrot.slane %v4051_v12, 1  ;;  %v346_v20 = vrot.slane %v4054_v13, 1  ;;  %v4073_v22 = vld [vmem:[%s4035_s23 + $0x38] sm:$0xff]  ;;  %v4082_v26 = vld [vmem:[%s4035_s23 + $0x50] sm:$0xff] }
  0x1f   : > { %v342_v18 = vsel %vm339_vm0, %v340_v9, %v341_v10  ;;  %v344_v19 = vsel %vm339_vm0, %v341_v10, %v343_v11  ;;  %v348_v21 = vrot.slane %v4057_v14, 1  ;;  %v4076_v23 = vld [vmem:[%s4035_s23 + $0x40] sm:$0x3]  ;;  %v4079_v25 = vld [vmem:[%s4035_s23 + $0x48] sm:$0xff]  ;;  %v350_v29 = vrot.slane %v4066_v17, 1  ;;  %v4103_v37 = vld [vmem:[%s4035_s23 + $0x78] sm:$0xff] }
  0x20   : > { %v452_v24 = vpack.c.bf16 %v344_v19, %v342_v18  ;;  %v347_v27 = vsel %vm339_vm0, %v345_v16, %v346_v20  ;;  %v351_v30 = vrot.slane %v4073_v22, 1  ;;  %v4089_v31 = vld [vmem:[%s4035_s23 + $0x58] sm:$0x3]  ;;  %v4092_v32 = vld [vmem:[%s4035_s23 + $0x60] sm:$0xff]  ;;  %v4095_v33 = vld [vmem:[%s4035_s23 + $0x68] sm:$0xff]  ;;  %v353_v35 = vrot.slane %v4076_v23, 1 }
  0x21   : > { %v349_v28 = vsel %vm339_vm0, %v346_v20, %v348_v21  ;;  %v4100_v36 = vld [vmem:[%s4035_s23 + $0x70] sm:$0x3]  ;;  %v355_v39 = vrot.slane %v4079_v25, 1  ;;  %v356_v40 = vrot.slane %v4082_v26, 1  ;;  %v4109_v41 = vld [vmem:[%s4035_s23 + $0x80] sm:$0xff]  ;;  %v358_v44 = vrot.slane %v4089_v31, 1 }
  0x22   : > { %3220 = vmatprep.mubr.msk.bf16.mxu1 %vm485_vm1, %v452_v24  ;;  %v453_v34 = vpack.c.bf16 %v349_v28, %v347_v27  ;;  %v352_v38 = vsel %vm339_vm0, %v350_v29, %v351_v30  ;;  %v4112_v42 = vld [vmem:[%s4035_s23 + $0x88] sm:$0x3]  ;;  %v354_v43 = vsel %vm339_vm0, %v351_v30, %v353_v35  ;;  %v360_v45 = vrot.slane %v4092_v32, 1  ;;  %v4144_v59 = vld [vmem:[%s4035_s23 + $0x90] sm:$0xff]  ;;  %v4151_v62 = vld [vmem:[%s4035_s23 + $0x98] sm:$0xff]  ;;  %s2770_s29 = sshll.u32 %s4874_s7, 4  ;;  %s5004_s29 = int_to_ptr.vmem [resolvable:$true] %s2770_s29 }
  0x23   : > { %v361_v46 = vrot.slane %v4095_v33, 1  ;;  %v4120_v47 = vpack.c.bf16 %v354_v43, %v352_v38  ;;  %v357_v48 = vsel %vm339_vm0, %v355_v39, %v356_v40  ;;  %v363_v49 = vrot.slane %v4100_v36, 1  ;;  %v4154_v63 = vld [vmem:[%s4035_s23 + $0xa0] sm:$0x3]  ;;  %v4162_v2 = vld [vmem:[%s4035_s23 + $0xa8] sm:$0xff]  ;;  %v4412_v1 = vld [vmem:[%s4035_s23 + $0x170] sm:$0xff] }
  0x24   : > { %3364 = vmatprep.mubr.msk.bf16.mxu0 %vm485_vm1, %v453_v34  ;;  %3221 = vmatmul.mubr.msk.bf16.vlgmr.msra.gmra.mrb[0].mxu1 %vm485_vm1, %v453_v34  ;;  %v365_v50 = vrot.slane %v4103_v37, 1  ;;  %v359_v52 = vsel %vm339_vm0, %v356_v40, %v358_v44  ;;  %v366_v53 = vrot.slane %v4109_v41, 1  ;;  %v368_v54 = vrot.slane %v4112_v42, 1  ;;  %v4188_v24 = vld [vmem:[%s4035_s23 + $0xc0] sm:$0xff]  ;;  %v4195_v29 = vld [vmem:[%s4035_s23 + $0xc8] sm:$0xff]  ;;  %s3860_s8 = scalar_lea.vmem %s5004_s29, 4096 }
  0x25   : > { %3253 = vmatpush3.bf16.msra.mxu1 %v3846_v4  ;;  %5091 = vst [vmem:[#allocation7_spill] sm:$0xff] %v4120_v47  ;;  %3365 = vmatmul.mubr.msk.bf16.vlgmr.msra.gmra.mrb[0].mxu0 %vm485_vm1, %v4120_v47  ;;  %v4138_v56 = vpack.c.bf16 %v359_v52, %v357_v48  ;;  %v362_v57 = vsel %vm339_vm0, %v360_v45, %v361_v46  ;;  %v4165_v4 = vld [vmem:[%s4035_s23 + $0xb0] sm:$0xff]  ;;  %v370_v11 = vrot.slane %v4144_v59, 1  ;;  %v371_v16 = vrot.slane %v4151_v62, 1  ;;  %v4200_v30 = vld [vmem:[%s5057_s2 + $0x20] sm:$0xff]   ;;  %p3861_p11 = scmp.ne.s32.totalorder %s5004_s29, %s3860_s8 }
  0x26   : > { %3224 = vmatprep.mubr.msk.bf16.mxu1 %vm485_vm1, %v4120_v47  ;;  %3397 = vmatpush3.bf16.msra.mxu0 %v4030_v5  ;;  %v364_v58 = vsel %vm339_vm0, %v361_v46, %v363_v49  ;;  %v367_v60 = vsel %vm339_vm0, %v365_v50, %v366_v53  ;;  %v369_v61 = vsel %vm339_vm0, %v366_v53, %v368_v54  ;;  %v4168_v5 = vld [vmem:[%s4035_s23 + $0xb8] sm:$0x3]  ;;  %v373_v18 = vrot.slane %v4154_v63, 1  ;;  %v4205_v38 = vld [vmem:[%s4035_s23 + $0xd0] sm:$0x3] }
  0x27   : > { %5092 = vst [vmem:[#allocation8_spill] sm:$0xff] %v4138_v56  ;;  %3254 = vmatprep.subr.bf16.mxu1 %v3849_v55  ;;  %3368 = vmatprep.mubr.msk.bf16.mxu0 %vm485_vm1, %v4138_v56  ;;  %v4170_v9 = vpack.c.bf16 %v364_v58, %v362_v57  ;;  %v4174_v10 = vpack.c.bf16 %v369_v61, %v367_v60  ;;  %v375_v19 = vrot.slane %v4162_v2, 1  ;;  %v376_v20 = vrot.slane %v4165_v4, 1  ;;  %v4217_v49 = vld [vmem:[%s4035_s23 + $0xd8] sm:$0xff]  ;;  %v4230_v50 = vld [vmem:[%s4035_s23 + $0xe8] sm:$0x3]  ;;  %p3862_p12 = pnand %p3861_p11, %p3990_p5 }
  0x28   : > { %3398 = vmatprep.subr.bf16.mxu0 %v3848_v51  ;;  %v378_v21 = vrot.slane %v4168_v5, 1  ;;  %v372_v27 = vsel %vm339_vm0, %v370_v11, %v371_v16  ;;  %v374_v28 = vsel %vm339_vm0, %v371_v16, %v373_v18  ;;  %v922_v39 = vrot.slane %v4051_v12, 2  ;;  %v4235_v53 = vld [vmem:[%s4035_s23 + $0xf0] sm:$0xff]  ;;  %v4238_v54 = vld [vmem:[%s4035_s23 + $0xf8] sm:$0xff]  ;;  %v4246_v60 = vld [vmem:[%s4035_s23 + $0x100] sm:$0x3] }
  0x29   : > { %3255 = vmatpush3.bf16.msra.mxu1 %v3849_v55  ;;  %5093 = vst [vmem:[#allocation9_spill] sm:$0xff] %v4170_v9  ;;  %5094 = vst [vmem:[#allocation10_spill] sm:$0xff] %v4174_v10  ;;  %v377_v34 = vsel %vm339_vm0, %v375_v19, %v376_v20  ;;  %v923_v40 = vrot.slane %v4054_v13, 2  ;;  %v925_v43 = vrot.slane %v4057_v14, 2  ;;  %v927_v44 = vrot.slane %v4066_v17, 2  ;;  %v4225_v14 = vld [vmem:[%s4035_s23 + $0xe0] sm:$0xff]  ;;  %p3863_p13 = pneg %p3862_p12 }
  0x2a   : > { %3399 = vmatpush3.bf16.msra.mxu0 %v3848_v51  ;;  %v379_v35 = vsel %vm339_vm0, %v376_v20, %v378_v21  ;;  %3288 = vmatprep.subr.bf16.mxu1 %v4200_v30  ;;  %v4212_v45 = vpack.c.bf16 %v374_v28, %v372_v27  ;;  %v380_v46 = vrot.slane %v4188_v24, 1  ;;  %v381_v48 = vrot.slane %v4195_v29, 1  ;;  %v4257_v20 = vld [vmem:[%s4035_s23 + $0x108] sm:$0xff]  ;;  %v4261_v27 = vld [vmem:[%s4035_s23 + $0x110] sm:$0xff] }
  0x2b   : > { %3432 = vmatprep.subr.bf16.mxu0 %v4159_v0  ;;  %v4221_v12 = vpack.c.bf16 %v379_v35, %v377_v34  ;;  %v383_v13 = vrot.slane %v4205_v38, 1  ;;  %v928_v51 = vrot.slane %v4073_v22, 2  ;;  %v930_v52 = vrot.slane %v4076_v23, 2  ;;  %v4268_v35 = vld [vmem:[%s4035_s23 + $0x118] sm:$0x3] }
  0x2c   : > { %3225 = vmatmul.mubr.msk.bf16.gmra.mrb[4].mxu1 %vm485_vm1, %v4138_v56  ;;  %5095 = vst [vmem:[#allocation11_spill] sm:$0xff] %v4212_v45  ;;  %v382_v55 = vsel %vm339_vm0, %v380_v46, %v381_v48  ;;  %v924_v57 = vsel %vm916_vm2, %v922_v39, %v923_v40  ;;  %v926_v58 = vsel %vm916_vm2, %v923_v40, %v925_v43  ;;  %v385_v61 = vrot.slane %v4217_v49, 1 }
  0x2d   : > { %3228 = vmatprep.mubr.msk.bf16.mxu1 %vm485_vm1, %v4170_v9  ;;  %3369 = vmatmul.mubr.msk.bf16.gmra.mrb[4].mxu0 %vm485_vm1, %v4170_v9  ;;  %5096 = vst [vmem:[#allocation12_spill] sm:$0xff] %v4221_v12  ;;  %v384_v23 = vsel %vm339_vm0, %v381_v48, %v383_v13  ;;  %v386_v11 = vrot.slane %v4225_v14, 1  ;;  %v388_v16 = vrot.slane %v4230_v50, 1  ;;  %v390_v18 = vrot.slane %v4235_v53, 1  ;;  %v4277_v48 = vld [vmem:[%s4035_s23 + $0x120] sm:$0xff]  ;;  %v4315_v9 = vld [vmem:[%s4035_s23 + $0x138] sm:$0xff] }
  0x2e   : > { %3372 = vmatprep.mubr.msk.bf16.mxu0 %vm485_vm1, %v4174_v10  ;;  %v391_v19 = vrot.slane %v4238_v54, 1  ;;  %v393_v21 = vrot.slane %v4246_v60, 1  ;;  %v4263_v28 = vpack.c.bf16 %v384_v23, %v382_v55  ;;  %v4265_v34 = vpack.c.bf16 %v926_v58, %v924_v57  ;;  %v4286_v23 = vld [vmem:[%s4035_s23 + $0x128] sm:$0xff] }
  0x2f   : > { %v387_v39 = vsel %vm339_vm0, %v385_v61, %v386_v11  ;;  %v389_v40 = vsel %vm339_vm0, %v386_v11, %v388_v16  ;;  %v929_v43 = vsel %vm916_vm2, %v927_v44, %v928_v51  ;;  %v931_v46 = vsel %vm916_vm2, %v928_v51, %v930_v52  ;;  %v4289_v61 = vld [vmem:[%s4035_s23 + $0x130] sm:$0x3] }
  0x30   : > { %5097 = vst [vmem:[#allocation13_spill] sm:$0xff] %v4263_v28  ;;  %v392_v13 = vsel %vm339_vm0, %v390_v18, %v391_v19  ;;  %v932_v55 = vrot.slane %v4079_v25, 2  ;;  %v933_v57 = vrot.slane %v4082_v26, 2  ;;  %v935_v58 = vrot.slane %v4089_v31, 2 }
  0x31   : > { %v394_v44 = vsel %vm339_vm0, %v391_v19, %v393_v21  ;;  %v395_v51 = vrot.slane %v4257_v20, 1  ;;  %v396_v52 = vrot.slane %v4261_v27, 1  ;;  %v398_v11 = vrot.slane %v4268_v35, 1 }
  0x32   : > { %v4299_v31 = vpack.c.bf16 %v389_v40, %v387_v39  ;;  %v400_v16 = vrot.slane %v4277_v48, 1  ;;  %v401_v18 = vrot.slane %v4286_v23, 1  ;;  %v403_v19 = vrot.slane %v4289_v61, 1 }
  0x33   : > { %v4304_v21 = vpack.c.bf16 %v931_v46, %v929_v43  ;;  %v4306_v3 = vpack.c.bf16 %v394_v44, %v392_v13  ;;  %v399_v39 = vsel %vm339_vm0, %v396_v52, %v398_v11  ;;  %v937_v40 = vrot.slane %v4092_v32, 2  ;;  %v4318_v43 = vld [vmem:[%s4035_s23 + $0x140] sm:$0xff]  ;;  %v4338_v11 = vld [vmem:[%s4035_s23 + $0x150] sm:$0xff] }
  0x34   : > { %3229 = vmatmul.mubr.msk.bf16.gmra.mrb[8].mxu1 %vm485_vm1, %v4174_v10  ;;  %5098 = vst [vmem:[#allocation14_spill] sm:$0xff] %v4299_v31  ;;  %v938_v10 = vrot.slane %v4095_v33, 2  ;;  %v940_v46 = vrot.slane %v4100_v36, 2  ;;  %v942_v13 = vrot.slane %v4103_v37, 2  ;;  %v945_v36 = vrot.slane %v4112_v42, 2 }
  0x35   : > { %3232 = vmatprep.mubr.msk.bf16.mxu1 %vm485_vm1, %v4212_v45  ;;  %3373 = vmatmul.mubr.msk.bf16.gmra.mrb[8].mxu0 %vm485_vm1, %v4212_v45  ;;  %5099 = vst [vmem:[#allocation15_spill] sm:$0xff] %v4304_v21  ;;  %5100 = vst [vmem:[#allocation16_spill] sm:$0xff] %v4306_v3  ;;  %v397_v45 = vsel %vm339_vm0, %v395_v51, %v396_v52  ;;  %v402_v51 = vsel %vm339_vm0, %v400_v16, %v401_v18  ;;  %v405_v56 = vrot.slane %v4315_v9, 1 }
  0x36   : > { %3376 = vmatprep.mubr.msk.bf16.mxu0 %vm485_vm1, %v4221_v12  ;;  %v404_v52 = vsel %vm339_vm0, %v401_v18, %v403_v19  ;;  %v939_v42 = vsel %vm916_vm2, %v937_v40, %v938_v10  ;;  %v4359_v18 = vpack.c.bf16 %v4082_v26, %v4079_v25  ;;  %v941_v19 = vsel %vm916_vm2, %v938_v10, %v940_v46 }
  0x37   : > { %v410_v26 = vrot.slane %v4338_v11, 1  ;;  %v947_v46 = vrot.slane %v4144_v59, 2 }
  0x3c   : > { %3233 = vmatmul.mubr.msk.bf16.gmra.mrb[12].mxu1 %vm485_vm1, %v4221_v12  ;;  %v934_v12 = vsel %vm916_vm2, %v932_v55, %v933_v57  ;;  %v943_v55 = vrot.slane %v4109_v41, 2 }
  0x3d   : > { %3236 = vmatprep.mubr.msk.bf16.mxu1 %vm485_vm1, %v4263_v28  ;;  %3377 = vmatmul.mubr.msk.bf16.gmra.mrb[12].mxu0 %vm485_vm1, %v4263_v28  ;;  %v936_v28 = vsel %vm916_vm2, %v933_v57, %v935_v58  ;;  %v4324_v57 = vld [vmem:[%s4035_s23 + $0x148] sm:$0x3]  ;;  %v4328_v58 = vpack.c.bf16 %v4073_v22, %v4066_v17  ;;  %v406_v17 = vrot.slane %v4318_v43, 1  ;;  %v4345_v22 = vld [vmem:[%s4035_s23 + $0x158] sm:$0xff] }
  0x3e   : > { %3400 = vmatprep.mubr.msk.bf16.mxu0 %vm485_vm1, %v4265_v34  ;;  %v4332_v44 = vpack.c.bf16 %v936_v28, %v934_v12  ;;  %v3852_v12 = vld [vmem:[%s5057_s2 + $0x68] sm:$0xff]   ;;  %v4353_v28 = vpack.c.bf16 %v399_v39, %v397_v45  ;;  %v408_v16 = vrot.slane %v4324_v57, 1  ;;  %v944_v47 = vsel %vm916_vm2, %v942_v13, %v943_v55 }
  0x3f   : > { %v4369_v45 = vpack.c.bf16 %v4095_v33, %v4092_v32  ;;  %v946_v25 = vsel %vm916_vm2, %v943_v55, %v945_v36  ;;  %v411_v10 = vrot.slane %v4345_v22, 1  ;;  %v407_v40 = vsel %vm339_vm0, %v405_v56, %v406_v17 }
  0x40   : > { %5101 = vst [vmem:[#allocation17_spill] sm:$0xff] %v4332_v44  ;;  %5102 = vst [vmem:[#allocation18_spill] sm:$0xff] %v4353_v28  ;;  %v948_v32 = vrot.slane %v4151_v62, 2  ;;  %v4383_v33 = vpack.c.bf16 %v4109_v41, %v4103_v37  ;;  %v409_v13 = vsel %vm339_vm0, %v406_v17, %v408_v16  ;;  %v950_v56 = vrot.slane %v4154_v63, 2  ;;  %v4400_v41 = vld [vmem:[%s4035_s23 + $0x168] sm:$0xff] }
  0x41   : > { %v952_v55 = vrot.slane %v4162_v2, 2  ;;  %v4395_v36 = vpack.c.bf16 %v941_v19, %v939_v42  ;;  %v4397_v37 = vpack.c.bf16 %v946_v25, %v944_v47  ;;  %v412_v63 = vsel %vm339_vm0, %v410_v26, %v411_v10  ;;  %v4415_v42 = vld [vmem:[%s4035_s23 + $0x178] sm:$0x3] }
  0x42   : > { %v955_v16 = vrot.slane %v4168_v5, 2  ;;  %v4419_v47 = vpack.c.bf16 %v4165_v4, %v4162_v2  ;;  %v4425_v19 = vpack.c.bf16 %v409_v13, %v407_v40  ;;  %v949_v5 = vsel %vm916_vm2, %v947_v46, %v948_v32 }
  0x43   : > { %5104 = vst [vmem:[#allocation20_spill] sm:$0xff] %v4395_v36  ;;  %5105 = vst [vmem:[#allocation21_spill] sm:$0xff] %v4397_v37  ;;  %v951_v25 = vsel %vm916_vm2, %v948_v32, %v950_v56  ;;  %v415_v2 = vrot.slane %v4400_v41, 1  ;;  %v416_v26 = vrot.slane %v4412_v1, 1  ;;  %v4451_v46 = vpack.c.bf16 %v4238_v54, %v4235_v53 }
  0x44   : > { %3237 = vmatmul.mubr.msk.bf16.gmra.mrb[16].mxu1 %vm485_vm1, %v4299_v31  ;;  %v4348_v31 = vld [vmem:[%s4035_s23 + $0x160] sm:$0x3]  ;;  %v4455_v32 = vpack.c.bf16 %v4261_v27, %v4257_v20  ;;  %v4459_v13 = vpack.c.bf16 %v4286_v23, %v4277_v48  ;;  %v4463_v56 = vpack.c.bf16 %v4318_v43, %v4315_v9 }
  0x45   : > { %3240 = vmatprep.mubr.msk.bf16.mxu1 %vm485_vm1, %v4306_v3  ;;  %3401 = vmatmul.mubr.msk.bf16.vlgmr.msra.gmra.mrb[0].mxu0 %vm485_vm1, %v4304_v21  ;;  %v4364_v3 = vpack.c.bf16 %v404_v52, %v402_v51  ;;  %v413_v39 = vrot.slane %v4348_v31, 1  ;;  %v953_v51 = vrot.slane %v4165_v4, 2  ;;  %v917_v52 = vrot.slane %v4038_v6, 2 }
  0x46   : > { %3433 = vmatpush3.bf16.msra.mxu0 %v4159_v0  ;;  %3404 = vmatprep.mubr.msk.bf16.mxu0 %vm485_vm1, %v4332_v44  ;;  %v4388_v0 = vld [vmem:[%s5057_s2 + $0x70] sm:$0xff]   ;;  %v4404_v44 = vpack.c.bf16 %v4151_v62, %v4144_v59  ;;  %v918_v59 = vrot.slane %v4041_v7, 2  ;;  %v920_v62 = vrot.slane %v4044_v8, 2  ;;  %v4434_v4 = vpack.c.bf16 %v4195_v29, %v4188_v24 }
  0x47   : > { %5103 = vst [vmem:[#allocation19_spill] sm:$0xff] %v4364_v3  ;;  %3434 = vmatprep.subr.bf16.mxu0 %v3852_v12  ;;  %v414_v17 = vsel %vm339_vm0, %v411_v10, %v413_v39  ;;  %v418_v10 = vrot.slane %v4415_v42, 1  ;;  %v4444_v39 = vpack.c.bf16 %v4225_v14, %v4217_v49  ;;  %v956_v40 = vsel %vm916_vm2, %v953_v51, %v955_v16 }
  0x48   : > { %v4438_v8 = vpack.c.bf16 %v414_v17, %v412_v63  ;;  %v4474_v63 = vsel %vm916_vm2, %v917_v52, %v918_v59  ;;  %v4477_v17 = vsel %vm916_vm2, %v918_v59, %v920_v62  ;;  %v4479_v16 = vpack.c.bf16 %v951_v25, %v949_v5 }
  0x49   : > { %v958_v52 = vrot.slane %v4195_v29, 2  ;;  %v960_v21 = vrot.slane %v4205_v38, 2  ;;  %v419_v59 = vsel %vm339_vm0, %v416_v26, %v418_v10  ;;  %v963_v62 = vrot.slane %v4225_v14, 2 }
  0x4a   : > { %3435 = vmatpush3.bf16.msra.mxu0 %v3852_v12  ;;  %v954_v12 = vsel %vm916_vm2, %v952_v55, %v953_v51  ;;  %v4467_v55 = vpack.c.bf16 %v4345_v22, %v4338_v11  ;;  %v4471_v51 = vpack.c.bf16 %v4412_v1, %v4400_v41  ;;  %v965_v5 = vrot.slane %v4230_v50, 2 }
  0x4b   : > { %3468 = vmatprep.subr.bf16.mxu0 %v4388_v0  ;;  %v961_v25 = vsel %vm916_vm2, %v958_v52, %v960_v21  ;;  %v970_v21 = vrot.slane %v4246_v60, 2 }
  0x4c   : > { %3241 = vmatmul.mubr.msk.bf16.gmra.mrb[20].mxu1 %vm485_vm1, %v4353_v28  ;;  %v1029_v28 = vpack.c.bf16 %v4477_v17, %v4474_v63  ;;  %v966_v14 = vsel %vm916_vm2, %v963_v62, %v965_v5  ;;  %v985_v5 = vrot.slane %v4324_v57, 2  ;;  %v5108_v63 = vld [vmem:[#allocation17_spill] sm:$0xff] }
  0x4d   : > { %3244 = vmatprep.mubr.msk.bf16.mxu1 %vm485_vm1, %v4364_v3  ;;  %3405 = vmatmul.mubr.msk.bf16.gmra.mrb[4].mxu0 %vm485_vm1, %v4395_v36  ;;  %v957_v3 = vrot.slane %v4188_v24, 2  ;;  %v417_v36 = vsel %vm339_vm0, %v415_v2, %v416_v26  ;;  %v962_v24 = vrot.slane %v4217_v49, 2  ;;  %v975_v26 = vrot.slane %v4268_v35, 2  ;;  %v5110_v17 = vld [vmem:[#allocation21_spill] sm:$0xff] }
  0x4e   : > { %3408 = vmatprep.mubr.msk.bf16.mxu0 %vm485_vm1, %v4397_v37  ;;  %v4486_v37 = vpack.c.bf16 %v956_v40, %v954_v12  ;;  %v4501_v29 = vpack.c.bf16 %v419_v59, %v417_v36  ;;  %v271_v12 = vpack.c.bf16 %v4041_v7, %v4038_v6  ;;  %v967_v36 = vrot.slane %v4235_v53, 2 }
  0x4f   : > { %v959_v38 = vsel %vm916_vm2, %v957_v3, %v958_v52  ;;  %v964_v49 = vsel %vm916_vm2, %v962_v24, %v963_v62  ;;  %v968_v3 = vrot.slane %v4238_v54, 2  ;;  %v972_v6 = vrot.slane %v4257_v20, 2  ;;  %v3853_v20 = vld [vmem:[%s5057_s2 + $0x28] sm:$0xff]  }
  0x50   : > { %v4509_v50 = vpack.c.bf16 %v961_v25, %v959_v38  ;;  %v4513_v2 = vpack.c.bf16 %v966_v14, %v964_v49  ;;  %v973_v7 = vrot.slane %v4261_v27, 2  ;;  %v977_v40 = vrot.slane %v4277_v48, 2  ;;  %v4551_v48 = vld [vmem:[%s5057_s2 + $0x30] sm:$0xff]  }
  0x51   : > { %v969_v53 = vsel %vm916_vm2, %v967_v36, %v968_v3  ;;  %v971_v54 = vsel %vm916_vm2, %v968_v3, %v970_v21  ;;  %v978_v52 = vrot.slane %v4286_v23, 2  ;;  %v980_v59 = vrot.slane %v4289_v61, 2  ;;  %v265_v21 = vld [vmem:[%s4035_s23 + $0x180] sm:$0xff] }
  0x52   : > { %v974_v60 = vsel %vm916_vm2, %v972_v6, %v973_v7  ;;  %v976_v10 = vsel %vm916_vm2, %v973_v7, %v975_v26  ;;  %v4533_v27 = vpack.c.bf16 %v971_v54, %v969_v53  ;;  %v982_v24 = vrot.slane %v4315_v9, 2  ;;  %v267_v6 = vld [vmem:[%s4035_s23 + $0x190] sm:$0x3] }
  0x53   : > { %v4537_v35 = vpack.c.bf16 %v976_v10, %v974_v60  ;;  %v983_v62 = vrot.slane %v4318_v43, 2  ;;  %v981_v9 = vsel %vm916_vm2, %v978_v52, %v980_v59  ;;  %v987_v38 = vrot.slane %v4338_v11, 2 }
  0x54   : > { %3245 = vmatmul.mubr.msk.bf16.gmra.mrb[24].mxu1 %vm485_vm1, %v4425_v19  ;;  %v988_v25 = vrot.slane %v4345_v22, 2  ;;  %v992_v49 = vrot.slane %v4400_v41, 2  ;;  %v993_v14 = vrot.slane %v4412_v1, 2  ;;  %v995_v36 = vrot.slane %v4415_v42, 2  ;;  %v266_v41 = vld [vmem:[%s4035_s23 + $0x188] sm:$0xff] }
  0x55   : > { %3248 = vmatprep.mubr.msk.bf16.mxu1 %vm485_vm1, %v4438_v8  ;;  %3409 = vmatmul.mubr.msk.bf16.gmra.mrb[8].mxu0 %vm485_vm1, %v4479_v16  ;;  %v984_v23 = vsel %vm916_vm2, %v982_v24, %v983_v62  ;;  %v986_v61 = vsel %vm916_vm2, %v983_v62, %v985_v5  ;;  %v1741_v7 = vrot.slane %v265_v21, 2  ;;  %v1742_v26 = vrot.slane %v266_v41, 2  ;;  %v3856_v5 = vld [vmem:[%s5057_s2 + $0x78] sm:$0xff]  }
  0x56   : > { %3412 = vmatprep.mubr.msk.bf16.mxu0 %vm485_vm1, %v4486_v37  ;;  %v4566_v57 = vpack.c.bf16 %v986_v61, %v984_v23  ;;  %v989_v11 = vsel %vm916_vm2, %v987_v38, %v988_v25  ;;  %v996_v3 = vsel %vm916_vm2, %v993_v14, %v995_v36  ;;  %v1744_v53 = vrot.slane %v267_v6, 2  ;;  %v268_v23 = vld [vmem:[%s4035_s23 + $0x198] sm:$0xff]  ;;  %v269_v61 = vld [vmem:[%s4035_s23 + $0x1a0] sm:$0xff] }
  0x57   : > { %v1520_v54 = vrot.slane %v265_v21, 1  ;;  %v1521_v60 = vrot.slane %v266_v41, 1  ;;  %v1523_v10 = vrot.slane %v267_v6, 1  ;;  %v2400_v38 = vrot.slane %v268_v23, 2  ;;  %v5114_v6 = vld [vmem:[#allocation10_spill] sm:$0xff] }
  0x59   : > { %v1524_v59 = vsel %vm339_vm0, %v1521_v60, %v1523_v10  ;;  %v5120_v10 = vld [vmem:[#allocation6_spill] sm:$0xff] }
  0x5c   : > { %3249 = vmatmul.mubr.msk.bf16.gmra.mrb[28].mxu1 %vm485_vm1, %v4501_v29 }
  0x5d   : > { %3256 = vmatprep.mubr.msk.bf16.mxu1 %vm485_vm1, %v271_v12  ;;  %3413 = vmatmul.mubr.msk.bf16.gmra.mrb[12].mxu0 %vm485_vm1, %v4509_v50  ;;  %v990_v12 = vrot.slane %v4348_v31, 2  ;;  %v994_v31 = vsel %vm916_vm2, %v992_v49, %v993_v14  ;;  %v1962_v14 = vpack.c.bf16 %v269_v61, %v268_v23 }
  0x5e   : > { %3416 = vmatprep.mubr.msk.bf16.mxu0 %vm485_vm1, %v4513_v2  ;;  %v4591_v42 = vpack.c.bf16 %v996_v3, %v994_v31  ;;  %v5111_v31 = vld [vmem:[#allocation7_spill] sm:$0xff]  ;;  %v3859_v3 = vld [vmem:[%s5057_s2 + $0x88] sm:$0xff]  }
  0x5f   : > { %v991_v22 = vsel %vm916_vm2, %v988_v25, %v990_v12  ;;  %v2401_v25 = vrot.slane %v269_v61, 2  ;;  %v270_v12 = vld [vmem:[%s4035_s23 + $0x1a8] sm:$0x3]  ;;  %s3924_s23 = smov [#allocation2]  }
  0x60   : > { %v4587_v1 = vpack.c.bf16 %v991_v22, %v989_v11  ;;  %v2403_v49 = vrot.slane %v270_v12, 2  ;;  %s3864_s9 = sshll.u32 %s3924_s23, 4  ;;  %s3865_s9 = int_to_ptr.vmem [resolvable:$false] %s3864_s9 }
  0x61   : > { %v4693_v36 = vsel %vm916_vm2, %v2400_v38, %v2401_v25  ;;  %s3866_s10 = scalar_lea.vmem %s3865_s9, 8192  ;;  %p3867_p0 = scmp.lt.s32.totalorder %s5004_s29, %s3865_s9 }
  0x62   : > { %v4696_v11 = vsel %vm916_vm2, %v2401_v25, %v2403_v49  ;;  %v2666_v49 = vld [vmem:[%s4857_s14 + $0x30] sm:$0xff]  ;;  %p3868_p1 = scmp.lt.s32.totalorder %s3866_s10, %s3860_s8 }
  0x63   : > { %v2407_v22 = vpack.c.bf16 %v4696_v11, %v4693_v36 }
  0x64   : > { %3257 = vmatmul.mubr.msk.bf16.vlgmr.msra.gmra.mrb[0].mxu1 %vm485_vm1, %v4061_v15  ;;  %p3869_p2 = por %p3868_p1, %p3867_p0 }
  0x65   : > { %3289 = vmatpush3.bf16.msra.mxu1 %v4200_v30  ;;  %3260 = vmatprep.mubr.msk.bf16.mxu1 %vm485_vm1, %v4328_v58  ;;  %v979_v30 = vsel %vm916_vm2, %v977_v40, %v978_v52  ;;  %v1745_v40 = vsel %vm916_vm2, %v1742_v26, %v1744_v53  ;;  %v1522_v52 = vsel %vm339_vm0, %v1520_v54, %v1521_v60  ;;  %v5117_v53 = vld [vmem:[#allocation13_spill] sm:$0xff]  ;;  %v5118_v54 = vld [vmem:[#allocation14_spill] sm:$0xff]  ;;  %v5119_v60 = vld [vmem:[#allocation16_spill] sm:$0xff] }
  0x66   : > { %3290 = vmatprep.subr.bf16.mxu1 %v3853_v20  ;;  %3417 = vmatmul.mubr.msk.bf16.gmra.mrb[16].mxu0 %vm485_vm1, %v4533_v27  ;;  %v4562_v43 = vpack.c.bf16 %v981_v9, %v979_v30  ;;  %v4603_v24 = vpack.c.bf16 %v1524_v59, %v1522_v52  ;;  %v3858_v30 = vld [vmem:[%s5057_s2 + $0x80] sm:$0xff]   ;;  %v5106_v9 = vld [vmem:[#allocation15_spill] sm:$0xff]  ;;  %p3870_p3 = pnand %p3869_p2, %p3863_p13 }
  0x67   : > { %3420 = vmatprep.mubr.msk.bf16.mxu0 %vm485_vm1, %v4537_v35 }
  0x69   : > { %3291 = vmatpush3.bf16.msra.mxu1 %v3853_v20  ;;  %v1743_v20 = vsel %vm916_vm2, %v1741_v7, %v1742_v26  ;;  %v5115_v7 = vld [vmem:[#allocation11_spill] sm:$0xff]  ;;  %v5116_v26 = vld [vmem:[#allocation12_spill] sm:$0xff] }
  0x6a   : > { %3324 = vmatprep.subr.bf16.mxu1 %v4551_v48  ;;  %v4605_v62 = vpack.c.bf16 %v1745_v40, %v1743_v20  ;;  %v5121_v20 = vld [vmem:[#allocation18_spill] sm:$0xff]  ;;  %v2182_v40 = vrot.slane %v270_v12, 1 }
  0x6c   : > { %3261 = vmatmul.mubr.msk.bf16.gmra.mrb[4].mxu1 %vm485_vm1, %v4359_v18 }
  0x6d   : > { %3264 = vmatprep.mubr.msk.bf16.mxu1 %vm485_vm1, %v4369_v45 }
  0x6e   : > { %3421 = vmatmul.mubr.msk.bf16.gmra.mrb[20].mxu0 %vm485_vm1, %v4562_v43 }
  0x6f   : > { %3424 = vmatprep.mubr.msk.bf16.mxu0 %vm485_vm1, %v4566_v57 }
  0x74   : > { %3265 = vmatmul.mubr.msk.bf16.gmra.mrb[8].mxu1 %vm485_vm1, %v4383_v33 }
  0x75   : > { %3268 = vmatprep.mubr.msk.bf16.mxu1 %vm485_vm1, %v4404_v44 }
  0x76   : > { %3425 = vmatmul.mubr.msk.bf16.gmra.mrb[24].mxu0 %vm485_vm1, %v4587_v1 }
  0x77   : > { %3428 = vmatprep.mubr.msk.bf16.mxu0 %vm485_vm1, %v4591_v42 }
  0x7c   : > { %3269 = vmatmul.mubr.msk.bf16.gmra.mrb[12].mxu1 %vm485_vm1, %v4419_v47 }
  0x7d   : > { %3272 = vmatprep.mubr.msk.bf16.mxu1 %vm485_vm1, %v4434_v4 }
  0x7e   : > { %3429 = vmatmul.mubr.msk.bf16.gmra.mrb[28].mxu0 %vm485_vm1, %v4605_v62 }
  0x7f   : > { %3436 = vmatprep.mubr.msk.bf16.mxu0 %vm485_vm1, %v4328_v58 }
  0x84   : > { %3273 = vmatmul.mubr.msk.bf16.gmra.mrb[16].mxu1 %vm485_vm1, %v4444_v39 }
  0x85   : > { %3276 = vmatprep.mubr.msk.bf16.mxu1 %vm485_vm1, %v4451_v46 }
  0x86   : > { %3437 = vmatmul.mubr.msk.bf16.vlgmr.msra.gmra.mrb[0].mxu0 %vm485_vm1, %v4359_v18 }
  0x87   : > { %3469 = vmatpush3.bf16.msra.mxu0 %v4388_v0  ;;  %3440 = vmatprep.mubr.msk.bf16.mxu0 %vm485_vm1, %v4369_v45  ;;  %v3857_v0 = vld [vmem:[%s5057_s2 + $0x38] sm:$0xff]  }
  0x88   : > { %3470 = vmatprep.subr.bf16.mxu0 %v3856_v5 }
  0x8b   : > { %3471 = vmatpush3.bf16.msra.mxu0 %v3856_v5 }
  0x8c   : > { %3277 = vmatmul.mubr.msk.bf16.gmra.mrb[20].mxu1 %vm485_vm1, %v4455_v32  ;;  %3504 = vmatprep.subr.bf16.mxu0 %v3858_v30 }
  0x8d   : > { %3280 = vmatprep.mubr.msk.bf16.mxu1 %vm485_vm1, %v4459_v13 }
  0x8e   : > { %3441 = vmatmul.mubr.msk.bf16.gmra.mrb[4].mxu0 %vm485_vm1, %v4383_v33 }
  0x8f   : > { %3444 = vmatprep.mubr.msk.bf16.mxu0 %vm485_vm1, %v4404_v44 }
  0x94   : > { %3281 = vmatmul.mubr.msk.bf16.gmra.mrb[24].mxu1 %vm485_vm1, %v4463_v56 }
  0x95   : > { %3284 = vmatprep.mubr.msk.bf16.mxu1 %vm485_vm1, %v4467_v55 }
  0x96   : > { %3445 = vmatmul.mubr.msk.bf16.gmra.mrb[8].mxu0 %vm485_vm1, %v4419_v47 }
  0x97   : > { %3448 = vmatprep.mubr.msk.bf16.mxu0 %vm485_vm1, %v4434_v4 }
  0x9c   : > { %3285 = vmatmul.mubr.msk.bf16.gmra.mrb[28].mxu1 %vm485_vm1, %v4471_v51 }
  0x9d   : > { %3292 = vmatprep.mubr.msk.bf16.mxu1 %vm485_vm1, %v1029_v28  ;;  %v5107_v28 = vld [vmem:[#allocation5_spill] sm:$0xff] }
  0x9e   : > { %3449 = vmatmul.mubr.msk.bf16.gmra.mrb[12].mxu0 %vm485_vm1, %v4444_v39 }
  0x9f   : > { %3452 = vmatprep.mubr.msk.bf16.mxu0 %vm485_vm1, %v4451_v46 }
  0xa4   : > { %3293 = vmatmul.mubr.msk.bf16.vlgmr.msra.gmra.mrb[0].mxu1 %vm485_vm1, %v4265_v34  ;;  %v5109_v34 = vld [vmem:[#allocation20_spill] sm:$0xff] }
  0xa5   : > { %3325 = vmatpush3.bf16.msra.mxu1 %v4551_v48  ;;  %3296 = vmatprep.mubr.msk.bf16.mxu1 %vm485_vm1, %v5106_v9  ;;  %v4679_v48 = vpack.c.bf16 %v266_v41, %v265_v21  ;;  %v5112_v21 = vld [vmem:[#allocation8_spill] sm:$0xff]  ;;  %v5113_v41 = vld [vmem:[#allocation9_spill] sm:$0xff] }
  0xa6   : > { %3326 = vmatprep.subr.bf16.mxu1 %v3857_v0  ;;  %3453 = vmatmul.mubr.msk.bf16.gmra.mrb[16].mxu0 %vm485_vm1, %v4455_v32 }
  0xa7   : > { %3456 = vmatprep.mubr.msk.bf16.mxu0 %vm485_vm1, %v4459_v13 }
  0xa9   : > { %3327 = vmatpush3.bf16.msra.mxu1 %v3857_v0  ;;  %v2663_v0 = vld [vmem:[%s4857_s14 + $0x18] sm:$0xff] }
  0xaa   : > { %3540 = vmatprep.subr.bf16.mxu1 %v5107_v28 }
  0xac   : > { %3297 = vmatmul.mubr.msk.bf16.gmra.mrb[4].mxu1 %vm485_vm1, %v5108_v63 }
  0xad   : > { %3300 = vmatprep.mubr.msk.bf16.mxu1 %vm485_vm1, %v5109_v34 }
  0xae   : > { %3457 = vmatmul.mubr.msk.bf16.gmra.mrb[20].mxu0 %vm485_vm1, %v4463_v56 }
  0xaf   : > { %3460 = vmatprep.mubr.msk.bf16.mxu0 %vm485_vm1, %v4467_v55 }
  0xb4   : > { %3301 = vmatmul.mubr.msk.bf16.gmra.mrb[8].mxu1 %vm485_vm1, %v5110_v17 }
  0xb5   : > { %3304 = vmatprep.mubr.msk.bf16.mxu1 %vm485_vm1, %v4479_v16 }
  0xb6   : > { %3461 = vmatmul.mubr.msk.bf16.gmra.mrb[24].mxu0 %vm485_vm1, %v4471_v51 }
  0xb7   : > { %3464 = vmatprep.mubr.msk.bf16.mxu0 %vm485_vm1, %v4679_v48 }
  0xbc   : > { %3305 = vmatmul.mubr.msk.bf16.gmra.mrb[12].mxu1 %vm485_vm1, %v4486_v37 }
  0xbd   : > { %3308 = vmatprep.mubr.msk.bf16.mxu1 %vm485_vm1, %v4509_v50 }
  0xbe   : > { %3465 = vmatmul.mubr.msk.bf16.gmra.mrb[28].mxu0 %vm485_vm1, %v1962_v14 }
  0xbf   : > { %3472 = vmatprep.mubr.msk.bf16.mxu0 %vm485_vm1, %v5111_v31 }
  0xc4   : > { %3309 = vmatmul.mubr.msk.bf16.gmra.mrb[16].mxu1 %vm485_vm1, %v4513_v2 }
  0xc5   : > { %3312 = vmatprep.mubr.msk.bf16.mxu1 %vm485_vm1, %v4533_v27 }
  0xc6   : > { %3473 = vmatmul.mubr.msk.bf16.vlgmr.msra.gmra.mrb[0].mxu0 %vm485_vm1, %v5112_v21 }
  0xc7   : > { %3505 = vmatpush3.bf16.msra.mxu0 %v3858_v30  ;;  %3476 = vmatprep.mubr.msk.bf16.mxu0 %vm485_vm1, %v5113_v41  ;;  %v2667_v41 = vld [vmem:[%s4857_s14 + $0x38] sm:$0xff] }
  0xc8   : > { %3506 = vmatprep.subr.bf16.mxu0 %v3859_v3 }
  0xcb   : > { %3507 = vmatpush3.bf16.msra.mxu0 %v3859_v3 }
  0xcc   : > { %3313 = vmatmul.mubr.msk.bf16.gmra.mrb[20].mxu1 %vm485_vm1, %v4537_v35 }
  0xcd   : > { %3316 = vmatprep.mubr.msk.bf16.mxu1 %vm485_vm1, %v4562_v43 }
  0xce   : > { %3477 = vmatmul.mubr.msk.bf16.gmra.mrb[4].mxu0 %vm485_vm1, %v5114_v6 }
  0xcf   : > { %3480 = vmatprep.mubr.msk.bf16.mxu0 %vm485_vm1, %v5115_v7 }
  0xd4   : > { %3317 = vmatmul.mubr.msk.bf16.gmra.mrb[24].mxu1 %vm485_vm1, %v4566_v57 }
  0xd5   : > { %3320 = vmatprep.mubr.msk.bf16.mxu1 %vm485_vm1, %v4587_v1 }
  0xd6   : > { %3481 = vmatmul.mubr.msk.bf16.gmra.mrb[8].mxu0 %vm485_vm1, %v5116_v26 }
  0xd7   : > { %3484 = vmatprep.mubr.msk.bf16.mxu0 %vm485_vm1, %v5117_v53  ;;  %v2665_v53 = vld [vmem:[%s4857_s14 + $0x28] sm:$0xff] }
  0xdc   : > { %3321 = vmatmul.mubr.msk.bf16.gmra.mrb[28].mxu1 %vm485_vm1, %v4591_v42 }
  0xdd   : > { %3328 = vmatprep.mubr.msk.bf16.mxu1 %vm485_vm1, %v4061_v15  ;;  %v5122_v15 = vld [vmem:[#allocation19_spill] sm:$0xff] }
  0xde   : > { %3485 = vmatmul.mubr.msk.bf16.gmra.mrb[12].mxu0 %vm485_vm1, %v5118_v54 }
  0xdf   : > { %3488 = vmatprep.mubr.msk.bf16.mxu0 %vm485_vm1, %v5119_v60 }
  0xe4   : > { %3329 = vmatmul.mubr.msk.bf16.vlgmr.msra.gmra.mrb[0].mxu1 %vm485_vm1, %v4328_v58  ;;  %v2179_v58 = vrot.slane %v268_v23, 1 }
  0xe5   : > { %3542 = vmatpush3.bf16.msra.mxu1 %v5107_v28  ;;  %3332 = vmatprep.mubr.msk.bf16.mxu1 %vm485_vm1, %v4359_v18  ;;  %v2180_v18 = vrot.slane %v269_v61, 1 }
  0xe6   : > { %3541 = vmatprep.subr.bf16.mxu1 %v5120_v10  ;;  %3489 = vmatmul.mubr.msk.bf16.gmra.mrb[16].mxu0 %vm485_vm1, %v5121_v20 }
  0xe7   : > { %3492 = vmatprep.mubr.msk.bf16.mxu0 %vm485_vm1, %v5122_v15 }
  0xe9   : > { %3543 = vmatpush3.bf16.msra.mxu1 %v5120_v10 }
  0xec   : > { %3333 = vmatmul.mubr.msk.bf16.gmra.mrb[4].mxu1 %vm485_vm1, %v4369_v45  ;;  %v2181_v45 = vsel %vm339_vm0, %v2179_v58, %v2180_v18 }
  0xed   : > { %3336 = vmatprep.mubr.msk.bf16.mxu1 %vm485_vm1, %v4383_v33  ;;  %v2183_v33 = vsel %vm339_vm0, %v2180_v18, %v2182_v40  ;;  %v2670_v40 = vld [vmem:[%s4857_s14 + $0x50] sm:$0xff] }
  0xee   : > { %3493 = vmatmul.mubr.msk.bf16.gmra.mrb[20].mxu0 %vm485_vm1, %v4425_v19  ;;  %v2186_v52 = vpack.c.bf16 %v2183_v33, %v2181_v45 }
  0xef   : > { %3496 = vmatprep.mubr.msk.bf16.mxu0 %vm485_vm1, %v4438_v8 }
  0xf4   : > { %3337 = vmatmul.mubr.msk.bf16.gmra.mrb[8].mxu1 %vm485_vm1, %v4404_v44 }
  0xf5   : > { %3340 = vmatprep.mubr.msk.bf16.mxu1 %vm485_vm1, %v4419_v47 }
  0xf6   : > { %3497 = vmatmul.mubr.msk.bf16.gmra.mrb[24].mxu0 %vm485_vm1, %v4501_v29 }
  0xf7   : > { %3500 = vmatprep.mubr.msk.bf16.mxu0 %vm485_vm1, %v4603_v24 }
  0xfc   : > { %3341 = vmatmul.mubr.msk.bf16.gmra.mrb[12].mxu1 %vm485_vm1, %v4434_v4 }
  0xfd   : > { %3344 = vmatprep.mubr.msk.bf16.mxu1 %vm485_vm1, %v4444_v39 }
  0xfe   : > { %3501 = vmatmul.mubr.msk.bf16.gmra.mrb[28].mxu0 %vm485_vm1, %v2186_v52 }
  0xff   : > { %3508 = vmatprep.mubr.msk.bf16.mxu0 %vm485_vm1, %v5106_v9 }
 0x104   : > { %3345 = vmatmul.mubr.msk.bf16.gmra.mrb[16].mxu1 %vm485_vm1, %v4451_v46 }
 0x105   : > { %3348 = vmatprep.mubr.msk.bf16.mxu1 %vm485_vm1, %v4455_v32 }
 0x106   : > { %3509 = vmatmul.mubr.msk.bf16.vlgmr.msra.gmra.mrb[0].mxu0 %vm485_vm1, %v5108_v63 }
 0x107   : > { %3512 = vmatprep.mubr.msk.bf16.mxu0 %vm485_vm1, %v5109_v34  ;;  %v2661_v34 = vld [vmem:[%s4857_s14 + $0x8] sm:$0xff] }
 0x10c   : > { %3349 = vmatmul.mubr.msk.bf16.gmra.mrb[20].mxu1 %vm485_vm1, %v4459_v13 }
 0x10d   : > { %3352 = vmatprep.mubr.msk.bf16.mxu1 %vm485_vm1, %v4463_v56 }
 0x10e   : > { %3513 = vmatmul.mubr.msk.bf16.gmra.mrb[4].mxu0 %vm485_vm1, %v5110_v17 }
 0x10f   : > { %3516 = vmatprep.mubr.msk.bf16.mxu0 %vm485_vm1, %v4479_v16 }
 0x114   : > { %3353 = vmatmul.mubr.msk.bf16.gmra.mrb[24].mxu1 %vm485_vm1, %v4467_v55 }
 0x115   : > { %3356 = vmatprep.mubr.msk.bf16.mxu1 %vm485_vm1, %v4471_v51 }
 0x116   : > { %3517 = vmatmul.mubr.msk.bf16.gmra.mrb[8].mxu0 %vm485_vm1, %v4486_v37 }
 0x117   : > { %3520 = vmatprep.mubr.msk.bf16.mxu0 %vm485_vm1, %v4509_v50 }
 0x11c   : > { %3357 = vmatmul.mubr.msk.bf16.gmra.mrb[28].mxu1 %vm485_vm1, %v4679_v48 }
 0x11d   : > { %3380 = vmatprep.mubr.msk.bf16.mxu1 %vm485_vm1, %v5118_v54 }
 0x11e   : > { %3521 = vmatmul.mubr.msk.bf16.gmra.mrb[12].mxu0 %vm485_vm1, %v4513_v2 }
 0x11f   : > { %3524 = vmatprep.mubr.msk.bf16.mxu0 %vm485_vm1, %v4533_v27  ;;  %v4862_v27 = vld [vmem:[%s5058_s3] ss:$0 sm:$0xff] }
 0x124   : > { %3381 = vmatmul.mubr.msk.bf16.vlgmr.msra.gmra.mrb[16].mxu1 %vm485_vm1, %v5119_v60 }
 0x125   : > { %3384 = vmatprep.mubr.msk.bf16.mxu1 %vm485_vm1, %v5121_v20 }
 0x126   : > { %3525 = vmatmul.mubr.msk.bf16.gmra.mrb[16].mxu0 %vm485_vm1, %v4537_v35 }
 0x127   : > { %3528 = vmatprep.mubr.msk.bf16.mxu0 %vm485_vm1, %v4562_v43 }
 0x12c   : > { %3385 = vmatmul.mubr.msk.bf16.gmra.mrb[20].mxu1 %vm485_vm1, %v5122_v15 }
 0x12d   : > { %3388 = vmatprep.mubr.msk.bf16.mxu1 %vm485_vm1, %v4425_v19 }
 0x12e   : > { %3529 = vmatmul.mubr.msk.bf16.gmra.mrb[20].mxu0 %vm485_vm1, %v4566_v57  ;;  %v2662_v57 = vld [vmem:[%s4857_s14 + $0x10] sm:$0xff] }
 0x12f   : > { %3532 = vmatprep.mubr.msk.bf16.mxu0 %vm485_vm1, %v4587_v1 }
 0x134   : > { %3389 = vmatmul.mubr.msk.bf16.gmra.mrb[24].mxu1 %vm485_vm1, %v4438_v8 }
 0x135   : > { %3392 = vmatprep.mubr.msk.bf16.mxu1 %vm485_vm1, %v4501_v29 }
 0x136   : > { %3533 = vmatmul.mubr.msk.bf16.gmra.mrb[24].mxu0 %vm485_vm1, %v4591_v42 }
 0x137   : > { %3536 = vmatprep.mubr.msk.bf16.mxu0 %vm485_vm1, %v4605_v62 }
 0x13c   : > { %3393 = vmatmul.mubr.msk.bf16.gmra.mrb[28].mxu1 %vm485_vm1, %v4603_v24  ;;  %v2660_v24 = vld [vmem:[%s4857_s14] sm:$0xff] }
 0x13e   : > { %3537 = vmatmul.mubr.msk.bf16.gmra.mrb[28].mxu0 %vm485_vm1, %v2407_v22  ;;  %v2664_v22 = vld [vmem:[%s4857_s14 + $0x20] sm:$0xff] }
 0x1b7   : > { %v3330_v44 = vpop.f32.mrb[0].mxu1 }
 0x1b8   : > { %v1358_v37 = vpop.f32.mrb[1].mxu1 }
 0x1b9   : > { %v3331_v47 = vpop.f32.mrb[2].mxu1 }
 0x1ba   : > { %v1361_v19 = vpop.f32.mrb[3].mxu1 }
 0x1bf   : > { %v3334_v4 = vpop.f32.mrb[4].mxu1 }
 0x1c0   : > { %v1374_v8 = vpop.f32.mrb[5].mxu1 }
 0x1c1   : > { %v3335_v39 = vpop.f32.mrb[6].mxu1 }
 0x1c2   : > { %v1377_v46 = vpop.f32.mrb[7].mxu1 }
 0x1c7   : > { %v3338_v32 = vpop.f32.mrb[8].mxu1 }
 0x1c8   : > { %v4838_v13 = vpop.f32.mrb[9].mxu1 }
 0x1c9   : > { %v4840_v56 = vpop.f32.mrb[10].mxu1 }
 0x1ca   : > { %v4842_v55 = vpop.f32.mrb[11].mxu1 }
 0x1cf   : > { %v4844_v51 = vpop.f32.mrb[12].mxu1 }
 0x1d0   : > { %v4846_v16 = vpop.f32.mrb[13].mxu1 }
 0x1d1   : > { %v4848_v29 = vpop.f32.mrb[14].mxu1 }
 0x1d2   : > { %v4850_v50 = vpop.f32.mrb[15].mxu1 }
 0x1d9   : > { %v3510_v2 = vpop.f32.mrb[0].mxu0 }
 0x1da   : > { %v3544_v35 = vadd.f32 %v3510_v2, %v3330_v44  ;;  %v2462_v43 = vpop.f32.mrb[1].mxu0  ;;  %v2668_v44 = vld [vmem:[%s4857_s14 + $0x40] sm:$0xff] }
 0x1db   : > { %v3545_v1 = vadd.f32 %v2462_v43, %v1358_v37  ;;  %v3511_v42 = vpop.f32.mrb[2].mxu0 }
 0x1dc   : > { %v2630_v59 = vadd.f32 %v3544_v35, %v4862_v27  ;;  %v3546_v62 = vadd.f32 %v3511_v42, %v3331_v47  ;;  %v2465_v5 = vpop.f32.mrb[3].mxu0 }
 0x1dd   : > { %v2628_v30 = vadd.f32 %v3545_v1, %v4862_v27  ;;  %v3547_v9 = vadd.f32 %v2465_v5, %v1361_v19  ;;  %v2674_v1 = vld [vmem:[%s4857_s14 + $0x70] sm:$0xff] }
 0x1de   : > { %v2694_v28 = vadd.f32 %v2662_v57, %v2630_v59  ;;  %v2631_v63 = vadd.f32 %v3546_v62, %v4862_v27  ;;  %v2672_v62 = vld [vmem:[%s4857_s14 + $0x60] sm:$0xff] }
 0x1df   : > { %v2692_v17 = vadd.f32 %v2660_v24, %v2628_v30  ;;  %v2629_v48 = vadd.f32 %v3547_v9, %v4862_v27  ;;  %v2675_v9 = vld [vmem:[%s4857_s14 + $0x78] sm:$0xff] }
 0x1e0   : > { %2726 = vst.msk [vmem:[%s4874_s7 + $0x10] sm:$0xff] %vm485_vm1, %v2694_v28  ;;  %v2695_v23 = vadd.f32 %v2663_v0, %v2631_v63 }
 0x1e1   : > { %2724 = vst.msk [vmem:[%s4874_s7] sm:$0xff] %vm485_vm1, %v2692_v17  ;;  %v2693_v61 = vadd.f32 %v2661_v34, %v2629_v48  ;;  %v3514_v38 = vpop.f32.mrb[4].mxu0 }
 0x1e2   : > { %2727 = vst.msk [vmem:[%s4874_s7 + $0x18] sm:$0xff] %vm485_vm1, %v2695_v23  ;;  %v3548_v25 = vadd.f32 %v3514_v38, %v3334_v4  ;;  %v2478_v12 = vpop.f32.mrb[5].mxu0  ;;  %v2671_v4 = vld [vmem:[%s4857_s14 + $0x58] sm:$0xff] }
 0x1e3   : > { %2725 = vst.msk [vmem:[%s4874_s7 + $0x8] sm:$0xff] %vm485_vm1, %v2693_v61  ;;  %v3549_v14 = vadd.f32 %v2478_v12, %v1374_v8  ;;  %v3515_v36 = vpop.f32.mrb[6].mxu0 }
 0x1e4   : > { %v2634_v11 = vadd.f32 %v3548_v25, %v4862_v27  ;;  %v3550_v31 = vadd.f32 %v3515_v36, %v3335_v39  ;;  %v2481_v3 = vpop.f32.mrb[7].mxu0 }
 0x1e5   : > { %v2632_v21 = vadd.f32 %v3549_v14, %v4862_v27  ;;  %v3551_v6 = vadd.f32 %v2481_v3, %v1377_v46  ;;  %v2678_v14 = vld [vmem:[%s4857_s14 + $0x90] sm:$0xff] }
 0x1e6   : > { %v2698_v7 = vadd.f32 %v2666_v49, %v2634_v11  ;;  %v2635_v26 = vadd.f32 %v3550_v31, %v4862_v27  ;;  %v2676_v31 = vld [vmem:[%s4857_s14 + $0x80] sm:$0xff] }
 0x1e7   : > { %v2696_v54 = vadd.f32 %v2664_v22, %v2632_v21  ;;  %v2633_v60 = vadd.f32 %v3551_v6, %v4862_v27  ;;  %v2679_v6 = vld [vmem:[%s4857_s14 + $0x98] sm:$0xff] }
 0x1e8   : > { %2730 = vst.msk [vmem:[%s4874_s7 + $0x30] sm:$0xff] %vm485_vm1, %v2698_v7  ;;  %v2699_v10 = vadd.f32 %v2667_v41, %v2635_v26 }
 0x1e9   : > { %2728 = vst.msk [vmem:[%s4874_s7 + $0x20] sm:$0xff] %vm485_vm1, %v2696_v54  ;;  %v2697_v20 = vadd.f32 %v2665_v53, %v2633_v60  ;;  %v3518_v15 = vpop.f32.mrb[8].mxu0  ;;  %v2677_v54 = vld [vmem:[%s4857_s14 + $0x88] sm:$0xff] }
 0x1ea   : > { %2731 = vst.msk [vmem:[%s4874_s7 + $0x38] sm:$0xff] %vm485_vm1, %v2699_v10  ;;  %v3552_v58 = vadd.f32 %v3518_v15, %v3338_v32  ;;  %v2494_v18 = vpop.f32.mrb[9].mxu0  ;;  %v2669_v32 = vld [vmem:[%s4857_s14 + $0x48] sm:$0xff] }
 0x1eb   : > { %2729 = vst.msk [vmem:[%s4874_s7 + $0x28] sm:$0xff] %vm485_vm1, %v2697_v20  ;;  %v3553_v45 = vadd.f32 %v2494_v18, %v4838_v13  ;;  %v3519_v33 = vpop.f32.mrb[10].mxu0 }
 0x1ec   : > { %v2638_v52 = vadd.f32 %v3552_v58, %v4862_v27  ;;  %v3554_v37 = vadd.f32 %v3519_v33, %v4840_v56  ;;  %v2497_v47 = vpop.f32.mrb[11].mxu0 }
 0x1ed   : > { %v2636_v19 = vadd.f32 %v3553_v45, %v4862_v27  ;;  %v3555_v8 = vadd.f32 %v2497_v47, %v4842_v55 }
 0x1ee   : > { %v2702_v39 = vadd.f32 %v2670_v40, %v2638_v52  ;;  %v2639_v46 = vadd.f32 %v3554_v37, %v4862_v27  ;;  %v2682_v37 = vld [vmem:[%s4857_s14 + $0xb0] sm:$0xff] }
 0x1ef   : > { %v2700_v13 = vadd.f32 %v2668_v44, %v2636_v19  ;;  %v2637_v2 = vadd.f32 %v3555_v8, %v4862_v27  ;;  %v2680_v8 = vld [vmem:[%s4857_s14 + $0xa0] sm:$0xff] }
 0x1f0   : > { %2734 = vst.msk [vmem:[%s4874_s7 + $0x50] sm:$0xff] %vm485_vm1, %v2702_v39  ;;  %v2703_v35 = vadd.f32 %v2671_v4, %v2639_v46 }
 0x1f1   : > { %2732 = vst.msk [vmem:[%s4874_s7 + $0x40] sm:$0xff] %vm485_vm1, %v2700_v13  ;;  %v2701_v56 = vadd.f32 %v2669_v32, %v2637_v2  ;;  %v3522_v43 = vpop.f32.mrb[12].mxu0  ;;  %v2683_v13 = vld [vmem:[%s4857_s14 + $0xb8] sm:$0xff] }
 0x1f2   : > { %2735 = vst.msk [vmem:[%s4874_s7 + $0x58] sm:$0xff] %vm485_vm1, %v2703_v35  ;;  %v3556_v55 = vadd.f32 %v3522_v43, %v4844_v51  ;;  %v2510_v57 = vpop.f32.mrb[13].mxu0  ;;  %v2681_v43 = vld [vmem:[%s4857_s14 + $0xa8] sm:$0xff] }
 0x1f3   : > { %2733 = vst.msk [vmem:[%s4874_s7 + $0x48] sm:$0xff] %vm485_vm1, %v2701_v56  ;;  %v3557_v42 = vadd.f32 %v2510_v57, %v4846_v16  ;;  %v3523_v59 = vpop.f32.mrb[14].mxu0  ;;  %v2673_v16 = vld [vmem:[%s4857_s14 + $0x68] sm:$0xff] }
 0x1f4   : > { %v2642_v24 = vadd.f32 %v3556_v55, %v4862_v27  ;;  %v3558_v5 = vadd.f32 %v3523_v59, %v4848_v29  ;;  %v2513_v30 = vpop.f32.mrb[15].mxu0 }
 0x1f5   : > { %v2640_v0 = vadd.f32 %v3557_v42, %v4862_v27  ;;  %v3559_v51 = vadd.f32 %v2513_v30, %v4850_v50 }
 0x1f6   : > { %v2706_v28 = vadd.f32 %v2674_v1, %v2642_v24  ;;  %v2643_v63 = vadd.f32 %v3558_v5, %v4862_v27 }
 0x1f7   : > { %v3382_v34 = vpop.f32.mrb[16].mxu1  ;;  %v2704_v17 = vadd.f32 %v2672_v62, %v2640_v0  ;;  %v2641_v48 = vadd.f32 %v3559_v51, %v4862_v27  ;;  %v2686_v51 = vld [vmem:[%s4857_s14 + $0xd0] sm:$0xff] }
 0x1f8   : > { %v1646_v23 = vpop.f32.mrb[17].mxu1  ;;  %2738 = vst.msk [vmem:[%s4874_s7 + $0x70] sm:$0xff] %vm485_vm1, %v2706_v28  ;;  %v2707_v29 = vadd.f32 %v2675_v9, %v2643_v63 }
 0x1f9   : > { %v3383_v61 = vpop.f32.mrb[18].mxu1  ;;  %2736 = vst.msk [vmem:[%s4874_s7 + $0x60] sm:$0xff] %vm485_vm1, %v2704_v17  ;;  %v2705_v50 = vadd.f32 %v2673_v16, %v2641_v48  ;;  %v3526_v38 = vpop.f32.mrb[16].mxu0 }
 0x1fa   : > { %v1649_v25 = vpop.f32.mrb[19].mxu1  ;;  %2739 = vst.msk [vmem:[%s4874_s7 + $0x78] sm:$0xff] %vm485_vm1, %v2707_v29  ;;  %v3560_v12 = vadd.f32 %v3526_v38, %v3382_v34  ;;  %v2526_v49 = vpop.f32.mrb[17].mxu0  ;;  %v2684_v34 = vld [vmem:[%s4857_s14 + $0xc0] sm:$0xff]  ;;  %v2687_v29 = vld [vmem:[%s4857_s14 + $0xd8] sm:$0xff] }
 0x1fb   : > { %2737 = vst.msk [vmem:[%s4874_s7 + $0x68] sm:$0xff] %vm485_vm1, %v2705_v50  ;;  %v3561_v36 = vadd.f32 %v2526_v49, %v1646_v23  ;;  %v3527_v11 = vpop.f32.mrb[18].mxu0 }
 0x1fc   : > { %v2646_v22 = vadd.f32 %v3560_v12, %v4862_v27  ;;  %v3562_v3 = vadd.f32 %v3527_v11, %v3383_v61  ;;  %v2529_v21 = vpop.f32.mrb[19].mxu0 }
 0x1fd   : > { %v2644_v41 = vadd.f32 %v3561_v36, %v4862_v27  ;;  %v3563_v7 = vadd.f32 %v2529_v21, %v1649_v25  ;;  %v2685_v25 = vld [vmem:[%s4857_s14 + $0xc8] sm:$0xff] }
 0x1fe   : > { %v2710_v26 = vadd.f32 %v2678_v14, %v2646_v22  ;;  %v2647_v53 = vadd.f32 %v3562_v3, %v4862_v27 }
 0x1ff   : > { %v3386_v60 = vpop.f32.mrb[20].mxu1  ;;  %v2708_v10 = vadd.f32 %v2676_v31, %v2644_v41  ;;  %v2645_v20 = vadd.f32 %v3563_v7, %v4862_v27  ;;  %v2690_v7 = vld [vmem:[%s4857_s14 + $0xf0] sm:$0xff] }
 0x200   : > { %v1662_v15 = vpop.f32.mrb[21].mxu1  ;;  %2742 = vst.msk [vmem:[%s4874_s7 + $0x90] sm:$0xff] %vm485_vm1, %v2710_v26  ;;  %v2711_v58 = vadd.f32 %v2679_v6, %v2647_v53 }
 0x201   : > { %v3387_v18 = vpop.f32.mrb[22].mxu1  ;;  %2740 = vst.msk [vmem:[%s4874_s7 + $0x80] sm:$0xff] %vm485_vm1, %v2708_v10  ;;  %v2709_v40 = vadd.f32 %v2677_v54, %v2645_v20  ;;  %v3530_v45 = vpop.f32.mrb[20].mxu0 }
 0x202   : > { %v1665_v33 = vpop.f32.mrb[23].mxu1  ;;  %2743 = vst.msk [vmem:[%s4874_s7 + $0x98] sm:$0xff] %vm485_vm1, %v2711_v58  ;;  %v3564_v52 = vadd.f32 %v3530_v45, %v3386_v60  ;;  %v2542_v44 = vpop.f32.mrb[21].mxu0  ;;  %v2688_v60 = vld [vmem:[%s4857_s14 + $0xe0] sm:$0xff]  ;;  %v2691_v58 = vld [vmem:[%s4857_s14 + $0xf8] sm:$0xff] }
 0x203   : > { %2741 = vst.msk [vmem:[%s4874_s7 + $0x88] sm:$0xff] %vm485_vm1, %v2709_v40  ;;  %v3565_v47 = vadd.f32 %v2542_v44, %v1662_v15  ;;  %v3531_v19 = vpop.f32.mrb[22].mxu0 }
 0x204   : > { %v2650_v4 = vadd.f32 %v3564_v52, %v4862_v27  ;;  %v3566_v39 = vadd.f32 %v3531_v19, %v3387_v18  ;;  %v2545_v46 = vpop.f32.mrb[23].mxu0 }
 0x205   : > { %v2648_v32 = vadd.f32 %v3565_v47, %v4862_v27  ;;  %v3567_v2 = vadd.f32 %v2545_v46, %v1665_v33  ;;  %v2689_v33 = vld [vmem:[%s4857_s14 + $0xe8] sm:$0xff] }
 0x206   : > { %v2714_v35 = vadd.f32 %v2682_v37, %v2650_v4  ;;  %v2651_v56 = vadd.f32 %v3566_v39, %v4862_v27 }
 0x207   : > { %v3390_v55 = vpop.f32.mrb[24].mxu1  ;;  %v2712_v57 = vadd.f32 %v2680_v8, %v2648_v32  ;;  %v2649_v1 = vadd.f32 %v3567_v2, %v4862_v27 }
 0x208   : > { %v1678_v42 = vpop.f32.mrb[25].mxu1  ;;  %2746 = vst.msk [vmem:[%s4874_s7 + $0xb0] sm:$0xff] %vm485_vm1, %v2714_v35  ;;  %v2715_v59 = vadd.f32 %v2683_v13, %v2651_v56 }
 0x209   : > { %v3391_v24 = vpop.f32.mrb[26].mxu1  ;;  %2744 = vst.msk [vmem:[%s4874_s7 + $0xa0] sm:$0xff] %vm485_vm1, %v2712_v57  ;;  %v2713_v62 = vadd.f32 %v2681_v43, %v2649_v1  ;;  %v3534_v5 = vpop.f32.mrb[24].mxu0 }
 0x20a   : > { %v1681_v30 = vpop.f32.mrb[27].mxu1  ;;  %2747 = vst.msk [vmem:[%s4874_s7 + $0xb8] sm:$0xff] %vm485_vm1, %v2715_v59  ;;  %v3568_v0 = vadd.f32 %v3534_v5, %v3390_v55  ;;  %v2558_v9 = vpop.f32.mrb[25].mxu0 }
 0x20b   : > { %2745 = vst.msk [vmem:[%s4874_s7 + $0xa8] sm:$0xff] %vm485_vm1, %v2713_v62  ;;  %v3569_v28 = vadd.f32 %v2558_v9, %v1678_v42  ;;  %v3535_v63 = vpop.f32.mrb[26].mxu0 }
 0x20c   : > { %v2654_v16 = vadd.f32 %v3568_v0, %v4862_v27  ;;  %v3570_v17 = vadd.f32 %v3535_v63, %v3391_v24  ;;  %v2561_v48 = vpop.f32.mrb[27].mxu0 }
 0x20d   : > { %v2652_v23 = vadd.f32 %v3569_v28, %v4862_v27  ;;  %v3571_v61 = vadd.f32 %v2561_v48, %v1681_v30 }
 0x20e   : > { %v2718_v50 = vadd.f32 %v2686_v51, %v2654_v16  ;;  %v2655_v38 = vadd.f32 %v3570_v17, %v4862_v27 }
 0x20f   : > { %v3394_v12 = vpop.f32.mrb[28].mxu1  ;;  %v2716_v49 = vadd.f32 %v2684_v34, %v2652_v23  ;;  %v2653_v14 = vadd.f32 %v3571_v61, %v4862_v27 }
 0x210   : > { %v1694_v36 = vpop.f32.mrb[29].mxu1  ;;  %2750 = vst.msk [vmem:[%s4874_s7 + $0xd0] sm:$0xff] %vm485_vm1, %v2718_v50  ;;  %v2719_v11 = vadd.f32 %v2687_v29, %v2655_v38 }
 0x211   : > { %v3395_v22 = vpop.f32.mrb[30].mxu1  ;;  %2748 = vst.msk [vmem:[%s4874_s7 + $0xc0] sm:$0xff] %vm485_vm1, %v2716_v49  ;;  %v2717_v31 = vadd.f32 %v2685_v25, %v2653_v14  ;;  %v3538_v3 = vpop.f32.mrb[28].mxu0 }
 0x212   : > { %v1697_v21 = vpop.f32.mrb[31].mxu1  ;;  %2751 = vst.msk [vmem:[%s4874_s7 + $0xd8] sm:$0xff] %vm485_vm1, %v2719_v11  ;;  %v3572_v41 = vadd.f32 %v3538_v3, %v3394_v12  ;;  %v2574_v6 = vpop.f32.mrb[29].mxu0 }
 0x213   : > { %2749 = vst.msk [vmem:[%s4874_s7 + $0xc8] sm:$0xff] %vm485_vm1, %v2717_v31  ;;  %v3573_v26 = vadd.f32 %v2574_v6, %v1694_v36  ;;  %v3539_v53 = vpop.f32.mrb[30].mxu0 }
 0x214   : > { %v2658_v54 = vadd.f32 %v3572_v41, %v4862_v27  ;;  %v3574_v10 = vadd.f32 %v3539_v53, %v3395_v22  ;;  %v2577_v20 = vpop.f32.mrb[31].mxu0 }
 0x215   : > { %v2656_v15 = vadd.f32 %v3573_v26, %v4862_v27  ;;  %v3575_v18 = vadd.f32 %v2577_v20, %v1697_v21 }
 0x216   : > { %v2722_v40 = vadd.f32 %v2690_v7, %v2658_v54  ;;  %v2659_v45 = vadd.f32 %v3574_v10, %v4862_v27 }
 0x217   : > { %v2720_v52 = vadd.f32 %v2688_v60, %v2656_v15  ;;  %v2657_v44 = vadd.f32 %v3575_v18, %v4862_v27 }
 0x218   : > { %2754 = vst.msk [vmem:[%s4874_s7 + $0xf0] sm:$0xff] %vm485_vm1, %v2722_v40  ;;  %v2723_v37 = vadd.f32 %v2691_v58, %v2659_v45 }
 0x219   : > { %2752 = vst.msk [vmem:[%s4874_s7 + $0xe0] sm:$0xff] %vm485_vm1, %v2720_v52  ;;  %v2721_v47 = vadd.f32 %v2689_v33, %v2657_v44 }
 0x21a   : > { %2755 = vst.msk [vmem:[%s4874_s7 + $0xf8] sm:$0xff] %vm485_vm1, %v2723_v37 }
 0x21b   : > { %2753 = vst.msk [vmem:[%s4874_s7 + $0xe8] sm:$0xff] %vm485_vm1, %v2721_v47 }
 0x21c   : > { %3873 = shalt.err (!%p3870_p3)
}
 0x21d   : > { %s3874_s11 = scalar_lea.hbm %s5002_s6, 4096  ;;  %s3878_s14 = scalar_lea.hbm %s5059_s4, 8192 }
 0x21e   : > { %p3875_p4 = scmp.ne.s32.totalorder %s5002_s6, %s3874_s11  ;;  %p3879_p9 = scmp.lt.u32.totalorder %s5002_s6, %s5059_s4 }
 0x21f   : > { %p3880_p10 = scmp.lt.u32.totalorder %s3878_s14, %s3874_s11  ;;  %p3882_p12 = scmp.lt.u32.totalorder %s3874_s11, %s5002_s6 }
 0x220   : > { %p3876_p7 = pnand %p3875_p4, %p3990_p5 }
 0x221   : > { %p3881_p11 = por %p3880_p10, %p3879_p9 }
 0x222   : > { %p3877_p8 = pneg %p3876_p7 }
 0x223   : > { %p3883_p13 = por %p3882_p12, %p3881_p11 }
 0x225   : > { %p3884_p0 = pnand %p3883_p13, %p3877_p8 }
 0x227   : > { %3887 = shalt.err (!%p3884_p0)
}
 0x228   : > { %s3925_s27 = smov 128   ;;  %s3926_s7 = smov 8  }
 0x229   : > { %3801 = dma.vmem_to_hbm [thread:$0]  (%p3990_p5), %s5004_s29, 4096, %s5002_s6, %s5014_s19, %s3925_s27, %s3925_s27, %s3926_s7  }
 0x22a PF: > { %p3807_p1 = scmp.ge.s32.totalorder %s3922_s18, 2  ;;  %s2785_s28 = sand.u32 1, %s3910_s15  }
 0x22b   : > { %s2786_s30 = scalar_lea.sflag [#allocation3], %s2785_s28 }
 0x22c   : > { %p3804_p2 = pnand %p3807_p1, %p3994_p6 }
 0x22e   : > { %3905 = dma.done.wait (!%p3804_p2), %s2786_s30, 4096  }
 0x22f   : > { %3907 = vsyncadd (!%p3804_p2), %s2786_s30, 4294963200  ;;  %p14_p3 = scmp.ge.s32.totalorder %s3977_s21, 4   ;;  %s5123_s15 = smov %s3914_s16 }
 0x230   : > { %s5124_s16 = smov %s3918_s17  ;;  %s5125_s17 = smov %s3988_s24 }
 0x231   : > { %s5126_s18 = smov %s3977_s21  ;;  %16 = sbr.rel (!%p14_p3) target bundleno = 3 (0x3), region = 82 }
 0x238   :  { %2791 = vsyncpa [#allocation3], 1 }
 0x239   :  { %2793 = vsyncpa [#allocation3 + $0x1], 1 }

</bundles_post_ra>
